<compile_context>
chip_gen: v5e
topology: v5e:2x2
jax: 0.10.0
libtpu: 0.0.40
codegen_flags: <defaults>
</compile_context>

<pallas_src>
import functools

import jax
import jax.numpy as jnp
from jax.experimental import pallas as pl
from jax.experimental.pallas import tpu as pltpu


# ---------------------------------------------------------------------------
# Fused whole-network kernel
# ---------------------------------------------------------------------------

def _prekg_fused_kernel(*refs, n_exp, n_emb, kg_vocab):
    it = iter(refs)
    x_exp_ref = next(it)
    x_emb_ref = next(it)
    idx_ref = next(it)                 # (tm, 1) int32
    table_ref = next(it)               # (V, D) bf16, fully VMEM-resident
    exp_layers = [(next(it), next(it)) for _ in range(n_exp)]
    emb_layers = [(next(it), next(it)) for _ in range(n_emb)]
    kg_w_ref, kg_b_ref = next(it), next(it)
    w1a_ref, w1b_ref, w1c_ref, b1_ref = next(it), next(it), next(it), next(it)
    w2_ref, b2_ref = next(it), next(it)
    wo_ref, bo_ref = next(it), next(it)
    o_ref = next(it)

    act_dtype = x_exp_ref.dtype

    def dense(x, w_ref, b_ref, relu=True):
        y = jnp.dot(x, w_ref[...], preferred_element_type=jnp.float32) + b_ref[...]
        if relu:
            y = jnp.maximum(y, 0.0)
        return y.astype(act_dtype)

    # Expression branch MLP.
    x = x_exp_ref[...]
    for w_ref, b_ref in exp_layers:
        x = dense(x, w_ref, b_ref)
    x_exp = x

    # Text-embedding branch MLP.
    x = x_emb_ref[...]
    for w_ref, b_ref in emb_layers:
        x = dense(x, w_ref, b_ref)
    x_emb = x

    # KG branch: one-hot gather (VPU compare + MXU matmul) fused with kg_fc + ReLU.
    idx = idx_ref[...]                                              # (tm, 1) int32
    lanes = jax.lax.broadcasted_iota(jnp.int32, (idx.shape[0], kg_vocab), 1)
    onehot = (lanes == idx).astype(act_dtype)                       # (tm, V)
    kg_rows = jnp.dot(onehot, table_ref[...],
                      preferred_element_type=jnp.float32).astype(act_dtype)
    x_kg = dense(kg_rows, kg_w_ref, kg_b_ref)

    # fc1 with the 3-way concat fused away (weight pre-split at build time).
    h = (jnp.dot(x_exp, w1a_ref[...], preferred_element_type=jnp.float32)
         + jnp.dot(x_emb, w1b_ref[...], preferred_element_type=jnp.float32)
         + jnp.dot(x_kg, w1c_ref[...], preferred_element_type=jnp.float32)
         + b1_ref[...])
    h = jnp.maximum(h, 0.0).astype(act_dtype)

    # fc2 + ReLU, then the (lane-padded) output head, no activation.
    h = dense(h, w2_ref, b2_ref)
    logits = jnp.dot(h, wo_ref[...], preferred_element_type=jnp.float32) + bo_ref[...]
    o_ref[...] = logits.astype(o_ref.dtype)


def _pick_batch_tile(b):
    for cand in (128, 256):
        if b % cand == 0:
            return cand
    return b  # full extent - always a legal block


def prekg_pallas(params, exprs, embs, gene_idx):
    B, num_exp = exprs.shape
    _, num_emb = embs.shape
    V, D = params["kg_table"].shape
    n_pad = params["out"][0].shape[1]

    tm = _pick_batch_tile(B)
    grid = (B // tm,)

    row2d = lambda i: (i, 0)      # batch-tiled arrays
    const2d = lambda i: (0, 0)    # VMEM-resident weights / biases / table

    in_arrays = [exprs, embs, gene_idx.reshape(B, 1).astype(jnp.int32),
                 params["kg_table"]]
    in_specs = [
        pl.BlockSpec((tm, num_exp), row2d),
        pl.BlockSpec((tm, num_emb), row2d),
        pl.BlockSpec((tm, 1), row2d),
        pl.BlockSpec((V, D), const2d),
    ]

    def add(arr):
        in_arrays.append(arr)
        in_specs.append(pl.BlockSpec(arr.shape, const2d))

    for w, b in params["exp"]:
        add(w); add(b)
    for w, b in params["emb"]:
        add(w); add(b)
    kg_w, kg_b = params["kg_fc"]
    add(kg_w); add(kg_b)
    w1a, w1b, w1c, b1 = params["fc1"]
    add(w1a); add(w1b); add(w1c); add(b1)
    w2, b2 = params["fc2"]
    add(w2); add(b2)
    wo, bo = params["out"]
    add(wo); add(bo)

    kernel = functools.partial(
        _prekg_fused_kernel,
        n_exp=len(params["exp"]), n_emb=len(params["emb"]), kg_vocab=V)

    grid_spec = pltpu.PrefetchScalarGridSpec(
        num_scalar_prefetch=0,
        grid=grid,
        in_specs=in_specs,
        out_specs=pl.BlockSpec((tm, n_pad), row2d),
    )
    return pl.pallas_call(
        kernel,
        grid_spec=grid_spec,
        out_shape=jax.ShapeDtypeStruct((B, n_pad), jnp.float32),
        compiler_params=pltpu.CompilerParams(
            dimension_semantics=("parallel",),
            vmem_limit_bytes=32 * 1024 * 1024),
    )(*in_arrays)


@functools.partial(jax.jit, static_argnames=("n_output",))
def prekg_forward(params, exprs, embs, gene_idx, *, n_output):
    logits_padded = prekg_pallas(params, exprs, embs, gene_idx)
    return logits_padded[:, :n_output]


# ---------------------------------------------------------------------------
# Parameters: (in, out) bf16 weights, f32 biases, fc1 pre-split, padded head
# ---------------------------------------------------------------------------

def init_params(key, *, num_exp, hid_dims_exp, num_emb, hid_dims_emb,
                output_dim, kg_vocab, kg_emb_dim, n_output, dtype=jnp.bfloat16):
    dims_exp = [num_exp] + list(hid_dims_exp) + [output_dim]
    dims_emb = [num_emb] + list(hid_dims_emb) + [output_dim]

    def linear_params(k, fan_in, fan_out):
        kw, kb = jax.random.split(k)
        w = (jax.random.normal(kw, (fan_in, fan_out), jnp.float32)
             / jnp.sqrt(jnp.float32(fan_in)))
        bias = jax.random.normal(kb, (1, fan_out), jnp.float32) * 0.01
        return w.astype(dtype), bias

    keys = jax.random.split(key, 16)
    ki = iter(keys)

    params = {}
    params["exp"] = [linear_params(next(ki), dims_exp[i - 1], dims_exp[i])
                     for i in range(1, len(dims_exp))]
    params["emb"] = [linear_params(next(ki), dims_emb[i - 1], dims_emb[i])
                     for i in range(1, len(dims_emb))]
    params["kg_table"] = jax.random.normal(
        next(ki), (kg_vocab, kg_emb_dim), jnp.float32).astype(dtype)
    params["kg_fc"] = linear_params(next(ki), kg_emb_dim, output_dim)

    # fc1 weight pre-split into the three concat chunks (exp | emb | kg).
    w1, b1 = linear_params(next(ki), 3 * output_dim, 1024)
    params["fc1"] = (w1[:output_dim], w1[output_dim:2 * output_dim],
                     w1[2 * output_dim:], b1)
    params["fc2"] = linear_params(next(ki), 1024, 512)

    # Final Linear(512, n_output): zero-pad N up to a multiple of 128 so the store
    # is lane-dense; real logits are the first n_output columns.
    n_pad = max(128, ((n_output + 127) // 128) * 128)
    w_out, b_out = linear_params(next(ki), 512, n_output)
    params["out"] = (
        jnp.zeros((512, n_pad), dtype).at[:, :n_output].set(w_out),
        jnp.zeros((1, n_pad), jnp.float32).at[:, :n_output].set(b_out),
    )
    return params


# ---------------------------------------------------------------------------
# Pure-JAX reference (same dtype flow: bf16 storage between layers, f32 accumulate)
# ---------------------------------------------------------------------------

def _ref_linear(x, w, b, relu=True):
    y = jnp.dot(x, w, preferred_element_type=jnp.float32) + b
    if relu:
        y = jnp.maximum(y, 0.0)
    return y


def reference_forward(params, exprs, embs, gene_idx, *, n_output):
    act_dt = exprs.dtype
    x = exprs
    for w, b in params["exp"]:
        x = _ref_linear(x, w, b).astype(act_dt)
    x_exp = x
    x = embs
    for w, b in params["emb"]:
        x = _ref_linear(x, w, b).astype(act_dt)
    x_emb = x
    kg_w, kg_b = params["kg_fc"]
    x_kg = _ref_linear(jnp.take(params["kg_table"], gene_idx, axis=0),
                       kg_w, kg_b).astype(act_dt)
    h = jnp.concatenate([x_exp, x_emb, x_kg], axis=1)
    w1a, w1b, w1c, b1 = params["fc1"]
    w1 = jnp.concatenate([w1a, w1b, w1c], axis=0)
    h = _ref_linear(h, w1, b1).astype(act_dt)
    w2, b2 = params["fc2"]
    h = _ref_linear(h, w2, b2).astype(act_dt)
    wo, bo = params["out"]
    return _ref_linear(h, wo, bo, relu=False)[:, :n_output]


# ---------------------------------------------------------------------------
# Demo
# ---------------------------------------------------------------------------

if __name__ == "__main__":
    key = jax.random.PRNGKey(0)
    k_par, k_exp, k_emb, k_idx = jax.random.split(key, 4)

    # Small shapes consistent with the module (PreKGNet, hidden dims scaled down).
    B = 16
    num_exp, hid_dims_exp = 160, [512, 256]
    num_emb, hid_dims_emb = 768, [512, 256]
    output_dim = 128
    kg_vocab, kg_emb_dim = 64, 256
    n_output = 1

    params = init_params(k_par,
                         num_exp=num_exp, hid_dims_exp=hid_dims_exp,
                         num_emb=num_emb, hid_dims_emb=hid_dims_emb,
                         output_dim=output_dim, kg_vocab=kg_vocab,
                         kg_emb_dim=kg_emb_dim, n_output=n_output)

    exprs = jax.random.normal(k_exp, (B, num_exp), jnp.float32).astype(jnp.bfloat16)
    embs = jax.random.normal(k_emb, (B, num_emb), jnp.float32).astype(jnp.bfloat16)
    gene_idx = jax.random.randint(k_idx, (B,), 0, kg_vocab, dtype=jnp.int32)

    out = prekg_forward(params, exprs, embs, gene_idx, n_output=n_output)
    out = jax.block_until_ready(out)

    ref = reference_forward(params, exprs, embs, gene_idx, n_output=n_output)
    if not jnp.allclose(out, ref, atol=2e-2, rtol=2e-2):
        raise AssertionError("Pallas output does not match the JAX reference")

    print("KERNEL_OK")
</pallas_src>

<mosaic_0001>
module attributes {stable_mosaic.version = 11 : i64} {
  func.func @_prekg_fused_kernel(%arg0: i32, %arg1: memref<16x160xbf16, #tpu.memory_space<vmem>>, %arg2: memref<16x768xbf16, #tpu.memory_space<vmem>>, %arg3: memref<16x1xi32, #tpu.memory_space<vmem>>, %arg4: memref<64x256xbf16, #tpu.memory_space<vmem>>, %arg5: memref<160x512xbf16, #tpu.memory_space<vmem>>, %arg6: memref<1x512xf32, #tpu.memory_space<vmem>>, %arg7: memref<512x256xbf16, #tpu.memory_space<vmem>>, %arg8: memref<1x256xf32, #tpu.memory_space<vmem>>, %arg9: memref<256x128xbf16, #tpu.memory_space<vmem>>, %arg10: memref<1x128xf32, #tpu.memory_space<vmem>>, %arg11: memref<768x512xbf16, #tpu.memory_space<vmem>>, %arg12: memref<1x512xf32, #tpu.memory_space<vmem>>, %arg13: memref<512x256xbf16, #tpu.memory_space<vmem>>, %arg14: memref<1x256xf32, #tpu.memory_space<vmem>>, %arg15: memref<256x128xbf16, #tpu.memory_space<vmem>>, %arg16: memref<1x128xf32, #tpu.memory_space<vmem>>, %arg17: memref<256x128xbf16, #tpu.memory_space<vmem>>, %arg18: memref<1x128xf32, #tpu.memory_space<vmem>>, %arg19: memref<128x1024xbf16, #tpu.memory_space<vmem>>, %arg20: memref<128x1024xbf16, #tpu.memory_space<vmem>>, %arg21: memref<128x1024xbf16, #tpu.memory_space<vmem>>, %arg22: memref<1x1024xf32, #tpu.memory_space<vmem>>, %arg23: memref<1024x512xbf16, #tpu.memory_space<vmem>>, %arg24: memref<1x512xf32, #tpu.memory_space<vmem>>, %arg25: memref<512x128xbf16, #tpu.memory_space<vmem>>, %arg26: memref<1x128xf32, #tpu.memory_space<vmem>>, %arg27: memref<16x128xf32, #tpu.memory_space<vmem>>) attributes {dimension_semantics = [#tpu.dimension_semantics<parallel>], iteration_bounds = array<i64: 1>, scalar_prefetch = 0 : i64, scratch_operands = 0 : i64, tpu.core_type = #tpu.core_type<tc>, window_params = [{transform_indices = @transform_0, window_bounds = array<i64: 16, 160>}, {transform_indices = @transform_1, window_bounds = array<i64: 16, 768>}, {transform_indices = @transform_2, window_bounds = array<i64: 16, 1>}, {pipeline_mode = #tpu.pipeline_mode<synchronous>, transform_indices = @transform_3, window_bounds = array<i64: 64, 256>}, {pipeline_mode = #tpu.pipeline_mode<synchronous>, transform_indices = @transform_4, window_bounds = array<i64: 160, 512>}, {pipeline_mode = #tpu.pipeline_mode<synchronous>, transform_indices = @transform_5, window_bounds = array<i64: 1, 512>}, {pipeline_mode = #tpu.pipeline_mode<synchronous>, transform_indices = @transform_6, window_bounds = array<i64: 512, 256>}, {pipeline_mode = #tpu.pipeline_mode<synchronous>, transform_indices = @transform_7, window_bounds = array<i64: 1, 256>}, {pipeline_mode = #tpu.pipeline_mode<synchronous>, transform_indices = @transform_8, window_bounds = array<i64: 256, 128>}, {pipeline_mode = #tpu.pipeline_mode<synchronous>, transform_indices = @transform_9, window_bounds = array<i64: 1, 128>}, {pipeline_mode = #tpu.pipeline_mode<synchronous>, transform_indices = @transform_10, window_bounds = array<i64: 768, 512>}, {pipeline_mode = #tpu.pipeline_mode<synchronous>, transform_indices = @transform_11, window_bounds = array<i64: 1, 512>}, {pipeline_mode = #tpu.pipeline_mode<synchronous>, transform_indices = @transform_12, window_bounds = array<i64: 512, 256>}, {pipeline_mode = #tpu.pipeline_mode<synchronous>, transform_indices = @transform_13, window_bounds = array<i64: 1, 256>}, {pipeline_mode = #tpu.pipeline_mode<synchronous>, transform_indices = @transform_14, window_bounds = array<i64: 256, 128>}, {pipeline_mode = #tpu.pipeline_mode<synchronous>, transform_indices = @transform_15, window_bounds = array<i64: 1, 128>}, {pipeline_mode = #tpu.pipeline_mode<synchronous>, transform_indices = @transform_16, window_bounds = array<i64: 256, 128>}, {pipeline_mode = #tpu.pipeline_mode<synchronous>, transform_indices = @transform_17, window_bounds = array<i64: 1, 128>}, {pipeline_mode = #tpu.pipeline_mode<synchronous>, transform_indices = @transform_18, window_bounds = array<i64: 128, 1024>}, {pipeline_mode = #tpu.pipeline_mode<synchronous>, transform_indices = @transform_19, window_bounds = array<i64: 128, 1024>}, {pipeline_mode = #tpu.pipeline_mode<synchronous>, transform_indices = @transform_20, window_bounds = array<i64: 128, 1024>}, {pipeline_mode = #tpu.pipeline_mode<synchronous>, transform_indices = @transform_21, window_bounds = array<i64: 1, 1024>}, {pipeline_mode = #tpu.pipeline_mode<synchronous>, transform_indices = @transform_22, window_bounds = array<i64: 1024, 512>}, {pipeline_mode = #tpu.pipeline_mode<synchronous>, transform_indices = @transform_23, window_bounds = array<i64: 1, 512>}, {pipeline_mode = #tpu.pipeline_mode<synchronous>, transform_indices = @transform_24, window_bounds = array<i64: 512, 128>}, {pipeline_mode = #tpu.pipeline_mode<synchronous>, transform_indices = @transform_25, window_bounds = array<i64: 1, 128>}, {transform_indices = @transform_26, window_bounds = array<i64: 16, 128>}]} {
    %c0 = arith.constant 0 : index
    %c0_0 = arith.constant 0 : index
    %0 = vector.load %arg1[%c0, %c0_0] : memref<16x160xbf16, #tpu.memory_space<vmem>>, vector<16x160xbf16>
    %c0_1 = arith.constant 0 : index
    %c0_2 = arith.constant 0 : index
    %1 = vector.load %arg5[%c0_1, %c0_2] : memref<160x512xbf16, #tpu.memory_space<vmem>>, vector<160x512xbf16>
    %cst = arith.constant dense<0.000000e+00> : vector<16x512xf32>
    %2 = tpu.matmul %0, %1, %cst {dimension_numbers = #tpu.dot_dimension_numbers<[1], [0], [0], [1], [0, 0, 1, 1], [], []>} : vector<16x160xbf16>, vector<160x512xbf16>, vector<16x512xf32> -> vector<16x512xf32>
    %c0_3 = arith.constant 0 : index
    %c0_4 = arith.constant 0 : index
    %3 = vector.load %arg6[%c0_3, %c0_4] : memref<1x512xf32, #tpu.memory_space<vmem>>, vector<1x512xf32>
    %4 = vector.broadcast %3 : vector<1x512xf32> to vector<16x512xf32>
    %5 = arith.addf %2, %4 : vector<16x512xf32>
    %cst_5 = arith.constant 0.000000e+00 : f32
    %6 = vector.broadcast %cst_5 : f32 to vector<16x512xf32>
    %7 = arith.maximumf %5, %6 : vector<16x512xf32>
    %8 = arith.truncf %7 : vector<16x512xf32> to vector<16x512xbf16>
    %c0_6 = arith.constant 0 : index
    %c0_7 = arith.constant 0 : index
    %9 = vector.load %arg7[%c0_6, %c0_7] : memref<512x256xbf16, #tpu.memory_space<vmem>>, vector<512x256xbf16>
    %cst_8 = arith.constant dense<0.000000e+00> : vector<16x256xf32>
    %10 = tpu.matmul %8, %9, %cst_8 {dimension_numbers = #tpu.dot_dimension_numbers<[1], [0], [0], [1], [0, 0, 1, 1], [], []>} : vector<16x512xbf16>, vector<512x256xbf16>, vector<16x256xf32> -> vector<16x256xf32>
    %c0_9 = arith.constant 0 : index
    %c0_10 = arith.constant 0 : index
    %11 = vector.load %arg8[%c0_9, %c0_10] : memref<1x256xf32, #tpu.memory_space<vmem>>, vector<1x256xf32>
    %12 = vector.broadcast %11 : vector<1x256xf32> to vector<16x256xf32>
    %13 = arith.addf %10, %12 : vector<16x256xf32>
    %cst_11 = arith.constant 0.000000e+00 : f32
    %14 = vector.broadcast %cst_11 : f32 to vector<16x256xf32>
    %15 = arith.maximumf %13, %14 : vector<16x256xf32>
    %16 = arith.truncf %15 : vector<16x256xf32> to vector<16x256xbf16>
    %c0_12 = arith.constant 0 : index
    %c0_13 = arith.constant 0 : index
    %17 = vector.load %arg9[%c0_12, %c0_13] : memref<256x128xbf16, #tpu.memory_space<vmem>>, vector<256x128xbf16>
    %cst_14 = arith.constant dense<0.000000e+00> : vector<16x128xf32>
    %18 = tpu.matmul %16, %17, %cst_14 {dimension_numbers = #tpu.dot_dimension_numbers<[1], [0], [0], [1], [0, 0, 1, 1], [], []>} : vector<16x256xbf16>, vector<256x128xbf16>, vector<16x128xf32> -> vector<16x128xf32>
    %c0_15 = arith.constant 0 : index
    %c0_16 = arith.constant 0 : index
    %19 = vector.load %arg10[%c0_15, %c0_16] : memref<1x128xf32, #tpu.memory_space<vmem>>, vector<1x128xf32>
    %20 = vector.broadcast %19 : vector<1x128xf32> to vector<16x128xf32>
    %21 = arith.addf %18, %20 : vector<16x128xf32>
    %cst_17 = arith.constant 0.000000e+00 : f32
    %22 = vector.broadcast %cst_17 : f32 to vector<16x128xf32>
    %23 = arith.maximumf %21, %22 : vector<16x128xf32>
    %24 = arith.truncf %23 : vector<16x128xf32> to vector<16x128xbf16>
    %c0_18 = arith.constant 0 : index
    %c0_19 = arith.constant 0 : index
    %25 = vector.load %arg2[%c0_18, %c0_19] : memref<16x768xbf16, #tpu.memory_space<vmem>>, vector<16x768xbf16>
    %c0_20 = arith.constant 0 : index
    %c0_21 = arith.constant 0 : index
    %26 = vector.load %arg11[%c0_20, %c0_21] : memref<768x512xbf16, #tpu.memory_space<vmem>>, vector<768x512xbf16>
    %cst_22 = arith.constant dense<0.000000e+00> : vector<16x512xf32>
    %27 = tpu.matmul %25, %26, %cst_22 {dimension_numbers = #tpu.dot_dimension_numbers<[1], [0], [0], [1], [0, 0, 1, 1], [], []>} : vector<16x768xbf16>, vector<768x512xbf16>, vector<16x512xf32> -> vector<16x512xf32>
    %c0_23 = arith.constant 0 : index
    %c0_24 = arith.constant 0 : index
    %28 = vector.load %arg12[%c0_23, %c0_24] : memref<1x512xf32, #tpu.memory_space<vmem>>, vector<1x512xf32>
    %29 = vector.broadcast %28 : vector<1x512xf32> to vector<16x512xf32>
    %30 = arith.addf %27, %29 : vector<16x512xf32>
    %cst_25 = arith.constant 0.000000e+00 : f32
    %31 = vector.broadcast %cst_25 : f32 to vector<16x512xf32>
    %32 = arith.maximumf %30, %31 : vector<16x512xf32>
    %33 = arith.truncf %32 : vector<16x512xf32> to vector<16x512xbf16>
    %c0_26 = arith.constant 0 : index
    %c0_27 = arith.constant 0 : index
    %34 = vector.load %arg13[%c0_26, %c0_27] : memref<512x256xbf16, #tpu.memory_space<vmem>>, vector<512x256xbf16>
    %cst_28 = arith.constant dense<0.000000e+00> : vector<16x256xf32>
    %35 = tpu.matmul %33, %34, %cst_28 {dimension_numbers = #tpu.dot_dimension_numbers<[1], [0], [0], [1], [0, 0, 1, 1], [], []>} : vector<16x512xbf16>, vector<512x256xbf16>, vector<16x256xf32> -> vector<16x256xf32>
    %c0_29 = arith.constant 0 : index
    %c0_30 = arith.constant 0 : index
    %36 = vector.load %arg14[%c0_29, %c0_30] : memref<1x256xf32, #tpu.memory_space<vmem>>, vector<1x256xf32>
    %37 = vector.broadcast %36 : vector<1x256xf32> to vector<16x256xf32>
    %38 = arith.addf %35, %37 : vector<16x256xf32>
    %cst_31 = arith.constant 0.000000e+00 : f32
    %39 = vector.broadcast %cst_31 : f32 to vector<16x256xf32>
    %40 = arith.maximumf %38, %39 : vector<16x256xf32>
    %41 = arith.truncf %40 : vector<16x256xf32> to vector<16x256xbf16>
    %c0_32 = arith.constant 0 : index
    %c0_33 = arith.constant 0 : index
    %42 = vector.load %arg15[%c0_32, %c0_33] : memref<256x128xbf16, #tpu.memory_space<vmem>>, vector<256x128xbf16>
    %cst_34 = arith.constant dense<0.000000e+00> : vector<16x128xf32>
    %43 = tpu.matmul %41, %42, %cst_34 {dimension_numbers = #tpu.dot_dimension_numbers<[1], [0], [0], [1], [0, 0, 1, 1], [], []>} : vector<16x256xbf16>, vector<256x128xbf16>, vector<16x128xf32> -> vector<16x128xf32>
    %c0_35 = arith.constant 0 : index
    %c0_36 = arith.constant 0 : index
    %44 = vector.load %arg16[%c0_35, %c0_36] : memref<1x128xf32, #tpu.memory_space<vmem>>, vector<1x128xf32>
    %45 = vector.broadcast %44 : vector<1x128xf32> to vector<16x128xf32>
    %46 = arith.addf %43, %45 : vector<16x128xf32>
    %cst_37 = arith.constant 0.000000e+00 : f32
    %47 = vector.broadcast %cst_37 : f32 to vector<16x128xf32>
    %48 = arith.maximumf %46, %47 : vector<16x128xf32>
    %49 = arith.truncf %48 : vector<16x128xf32> to vector<16x128xbf16>
    %c0_38 = arith.constant 0 : index
    %c0_39 = arith.constant 0 : index
    %50 = vector.load %arg3[%c0_38, %c0_39] : memref<16x1xi32, #tpu.memory_space<vmem>>, vector<16x1xi32>
    %51 = tpu.iota {dimensions = array<i32: 1>} : vector<16x64xi32>
    %52 = vector.broadcast %50 : vector<16x1xi32> to vector<16x64xi32>
    %53 = arith.cmpi eq, %51, %52 : vector<16x64xi32>
    %54 = arith.extui %53 : vector<16x64xi1> to vector<16x64xi32>
    %55 = arith.sitofp %54 : vector<16x64xi32> to vector<16x64xf32>
    %56 = arith.truncf %55 : vector<16x64xf32> to vector<16x64xbf16>
    %c0_40 = arith.constant 0 : index
    %c0_41 = arith.constant 0 : index
    %57 = vector.load %arg4[%c0_40, %c0_41] : memref<64x256xbf16, #tpu.memory_space<vmem>>, vector<64x256xbf16>
    %cst_42 = arith.constant dense<0.000000e+00> : vector<16x256xf32>
    %58 = tpu.matmul %56, %57, %cst_42 {dimension_numbers = #tpu.dot_dimension_numbers<[1], [0], [0], [1], [0, 0, 1, 1], [], []>} : vector<16x64xbf16>, vector<64x256xbf16>, vector<16x256xf32> -> vector<16x256xf32>
    %59 = arith.truncf %58 : vector<16x256xf32> to vector<16x256xbf16>
    %c0_43 = arith.constant 0 : index
    %c0_44 = arith.constant 0 : index
    %60 = vector.load %arg17[%c0_43, %c0_44] : memref<256x128xbf16, #tpu.memory_space<vmem>>, vector<256x128xbf16>
    %cst_45 = arith.constant dense<0.000000e+00> : vector<16x128xf32>
    %61 = tpu.matmul %59, %60, %cst_45 {dimension_numbers = #tpu.dot_dimension_numbers<[1], [0], [0], [1], [0, 0, 1, 1], [], []>} : vector<16x256xbf16>, vector<256x128xbf16>, vector<16x128xf32> -> vector<16x128xf32>
    %c0_46 = arith.constant 0 : index
    %c0_47 = arith.constant 0 : index
    %62 = vector.load %arg18[%c0_46, %c0_47] : memref<1x128xf32, #tpu.memory_space<vmem>>, vector<1x128xf32>
    %63 = vector.broadcast %62 : vector<1x128xf32> to vector<16x128xf32>
    %64 = arith.addf %61, %63 : vector<16x128xf32>
    %cst_48 = arith.constant 0.000000e+00 : f32
    %65 = vector.broadcast %cst_48 : f32 to vector<16x128xf32>
    %66 = arith.maximumf %64, %65 : vector<16x128xf32>
    %67 = arith.truncf %66 : vector<16x128xf32> to vector<16x128xbf16>
    %c0_49 = arith.constant 0 : index
    %c0_50 = arith.constant 0 : index
    %68 = vector.load %arg19[%c0_49, %c0_50] : memref<128x1024xbf16, #tpu.memory_space<vmem>>, vector<128x1024xbf16>
    %cst_51 = arith.constant dense<0.000000e+00> : vector<16x1024xf32>
    %69 = tpu.matmul %24, %68, %cst_51 {dimension_numbers = #tpu.dot_dimension_numbers<[1], [0], [0], [1], [0, 0, 1, 1], [], []>} : vector<16x128xbf16>, vector<128x1024xbf16>, vector<16x1024xf32> -> vector<16x1024xf32>
    %c0_52 = arith.constant 0 : index
    %c0_53 = arith.constant 0 : index
    %70 = vector.load %arg20[%c0_52, %c0_53] : memref<128x1024xbf16, #tpu.memory_space<vmem>>, vector<128x1024xbf16>
    %cst_54 = arith.constant dense<0.000000e+00> : vector<16x1024xf32>
    %71 = tpu.matmul %49, %70, %cst_54 {dimension_numbers = #tpu.dot_dimension_numbers<[1], [0], [0], [1], [0, 0, 1, 1], [], []>} : vector<16x128xbf16>, vector<128x1024xbf16>, vector<16x1024xf32> -> vector<16x1024xf32>
    %72 = arith.addf %69, %71 : vector<16x1024xf32>
    %c0_55 = arith.constant 0 : index
    %c0_56 = arith.constant 0 : index
    %73 = vector.load %arg21[%c0_55, %c0_56] : memref<128x1024xbf16, #tpu.memory_space<vmem>>, vector<128x1024xbf16>
    %cst_57 = arith.constant dense<0.000000e+00> : vector<16x1024xf32>
    %74 = tpu.matmul %67, %73, %cst_57 {dimension_numbers = #tpu.dot_dimension_numbers<[1], [0], [0], [1], [0, 0, 1, 1], [], []>} : vector<16x128xbf16>, vector<128x1024xbf16>, vector<16x1024xf32> -> vector<16x1024xf32>
    %75 = arith.addf %72, %74 : vector<16x1024xf32>
    %c0_58 = arith.constant 0 : index
    %c0_59 = arith.constant 0 : index
    %76 = vector.load %arg22[%c0_58, %c0_59] : memref<1x1024xf32, #tpu.memory_space<vmem>>, vector<1x1024xf32>
    %77 = vector.broadcast %76 : vector<1x1024xf32> to vector<16x1024xf32>
    %78 = arith.addf %75, %77 : vector<16x1024xf32>
    %cst_60 = arith.constant 0.000000e+00 : f32
    %79 = vector.broadcast %cst_60 : f32 to vector<16x1024xf32>
    %80 = arith.maximumf %78, %79 : vector<16x1024xf32>
    %81 = arith.truncf %80 : vector<16x1024xf32> to vector<16x1024xbf16>
    %c0_61 = arith.constant 0 : index
    %c0_62 = arith.constant 0 : index
    %82 = vector.load %arg23[%c0_61, %c0_62] : memref<1024x512xbf16, #tpu.memory_space<vmem>>, vector<1024x512xbf16>
    %cst_63 = arith.constant dense<0.000000e+00> : vector<16x512xf32>
    %83 = tpu.matmul %81, %82, %cst_63 {dimension_numbers = #tpu.dot_dimension_numbers<[1], [0], [0], [1], [0, 0, 1, 1], [], []>} : vector<16x1024xbf16>, vector<1024x512xbf16>, vector<16x512xf32> -> vector<16x512xf32>
    %c0_64 = arith.constant 0 : index
    %c0_65 = arith.constant 0 : index
    %84 = vector.load %arg24[%c0_64, %c0_65] : memref<1x512xf32, #tpu.memory_space<vmem>>, vector<1x512xf32>
    %85 = vector.broadcast %84 : vector<1x512xf32> to vector<16x512xf32>
    %86 = arith.addf %83, %85 : vector<16x512xf32>
    %cst_66 = arith.constant 0.000000e+00 : f32
    %87 = vector.broadcast %cst_66 : f32 to vector<16x512xf32>
    %88 = arith.maximumf %86, %87 : vector<16x512xf32>
    %89 = arith.truncf %88 : vector<16x512xf32> to vector<16x512xbf16>
    %c0_67 = arith.constant 0 : index
    %c0_68 = arith.constant 0 : index
    %90 = vector.load %arg25[%c0_67, %c0_68] : memref<512x128xbf16, #tpu.memory_space<vmem>>, vector<512x128xbf16>
    %cst_69 = arith.constant dense<0.000000e+00> : vector<16x128xf32>
    %91 = tpu.matmul %89, %90, %cst_69 {dimension_numbers = #tpu.dot_dimension_numbers<[1], [0], [0], [1], [0, 0, 1, 1], [], []>} : vector<16x512xbf16>, vector<512x128xbf16>, vector<16x128xf32> -> vector<16x128xf32>
    %c0_70 = arith.constant 0 : index
    %c0_71 = arith.constant 0 : index
    %92 = vector.load %arg26[%c0_70, %c0_71] : memref<1x128xf32, #tpu.memory_space<vmem>>, vector<1x128xf32>
    %93 = vector.broadcast %92 : vector<1x128xf32> to vector<16x128xf32>
    %94 = arith.addf %91, %93 : vector<16x128xf32>
    %c0_72 = arith.constant 0 : index
    %c0_73 = arith.constant 0 : index
    %95 = vector.load %arg27[%c0_72, %c0_73] : memref<16x128xf32, #tpu.memory_space<vmem>>, vector<16x128xf32>
    tpu.vector_store %arg27[%c0_72, %c0_73], %94 {strides = array<i32>} : memref<16x128xf32, #tpu.memory_space<vmem>>, vector<16x128xf32>,
    return
  }
  func.func @transform_0(%arg0: i32) -> (i32, i32) {
    %c0_i32 = arith.constant 0 : i32
    %c0_i32_0 = arith.constant 0 : i32
    return %arg0, %c0_i32 : i32, i32
  }
  func.func @transform_1(%arg0: i32) -> (i32, i32) {
    %c0_i32 = arith.constant 0 : i32
    %c0_i32_0 = arith.constant 0 : i32
    return %arg0, %c0_i32 : i32, i32
  }
  func.func @transform_2(%arg0: i32) -> (i32, i32) {
    %c0_i32 = arith.constant 0 : i32
    %c0_i32_0 = arith.constant 0 : i32
    return %arg0, %c0_i32 : i32, i32
  }
  func.func @transform_3(%arg0: i32) -> (i32, i32) {
    %c0_i32 = arith.constant 0 : i32
    %c0_i32_0 = arith.constant 0 : i32
    %c0_i32_1 = arith.constant 0 : i32
    return %c0_i32, %c0_i32_0 : i32, i32
  }
  func.func @transform_4(%arg0: i32) -> (i32, i32) {
    %c0_i32 = arith.constant 0 : i32
    %c0_i32_0 = arith.constant 0 : i32
    %c0_i32_1 = arith.constant 0 : i32
    return %c0_i32, %c0_i32_0 : i32, i32
  }
  func.func @transform_5(%arg0: i32) -> (i32, i32) {
    %c0_i32 = arith.constant 0 : i32
    %c0_i32_0 = arith.constant 0 : i32
    %c0_i32_1 = arith.constant 0 : i32
    return %c0_i32, %c0_i32_0 : i32, i32
  }
  func.func @transform_6(%arg0: i32) -> (i32, i32) {
    %c0_i32 = arith.constant 0 : i32
    %c0_i32_0 = arith.constant 0 : i32
    %c0_i32_1 = arith.constant 0 : i32
    return %c0_i32, %c0_i32_0 : i32, i32
  }
  func.func @transform_7(%arg0: i32) -> (i32, i32) {
    %c0_i32 = arith.constant 0 : i32
    %c0_i32_0 = arith.constant 0 : i32
    %c0_i32_1 = arith.constant 0 : i32
    return %c0_i32, %c0_i32_0 : i32, i32
  }
  func.func @transform_8(%arg0: i32) -> (i32, i32) {
    %c0_i32 = arith.constant 0 : i32
    %c0_i32_0 = arith.constant 0 : i32
    %c0_i32_1 = arith.constant 0 : i32
    return %c0_i32, %c0_i32_0 : i32, i32
  }
  func.func @transform_9(%arg0: i32) -> (i32, i32) {
    %c0_i32 = arith.constant 0 : i32
    %c0_i32_0 = arith.constant 0 : i32
    %c0_i32_1 = arith.constant 0 : i32
    return %c0_i32, %c0_i32_0 : i32, i32
  }
  func.func @transform_10(%arg0: i32) -> (i32, i32) {
    %c0_i32 = arith.constant 0 : i32
    %c0_i32_0 = arith.constant 0 : i32
    %c0_i32_1 = arith.constant 0 : i32
    return %c0_i32, %c0_i32_0 : i32, i32
  }
  func.func @transform_11(%arg0: i32) -> (i32, i32) {
    %c0_i32 = arith.constant 0 : i32
    %c0_i32_0 = arith.constant 0 : i32
    %c0_i32_1 = arith.constant 0 : i32
    return %c0_i32, %c0_i32_0 : i32, i32
  }
  func.func @transform_12(%arg0: i32) -> (i32, i32) {
    %c0_i32 = arith.constant 0 : i32
    %c0_i32_0 = arith.constant 0 : i32
    %c0_i32_1 = arith.constant 0 : i32
    return %c0_i32, %c0_i32_0 : i32, i32
  }
  func.func @transform_13(%arg0: i32) -> (i32, i32) {
    %c0_i32 = arith.constant 0 : i32
    %c0_i32_0 = arith.constant 0 : i32
    %c0_i32_1 = arith.constant 0 : i32
    return %c0_i32, %c0_i32_0 : i32, i32
  }
  func.func @transform_14(%arg0: i32) -> (i32, i32) {
    %c0_i32 = arith.constant 0 : i32
    %c0_i32_0 = arith.constant 0 : i32
    %c0_i32_1 = arith.constant 0 : i32
    return %c0_i32, %c0_i32_0 : i32, i32
  }
  func.func @transform_15(%arg0: i32) -> (i32, i32) {
    %c0_i32 = arith.constant 0 : i32
    %c0_i32_0 = arith.constant 0 : i32
    %c0_i32_1 = arith.constant 0 : i32
    return %c0_i32, %c0_i32_0 : i32, i32
  }
  func.func @transform_16(%arg0: i32) -> (i32, i32) {
    %c0_i32 = arith.constant 0 : i32
    %c0_i32_0 = arith.constant 0 : i32
    %c0_i32_1 = arith.constant 0 : i32
    return %c0_i32, %c0_i32_0 : i32, i32
  }
  func.func @transform_17(%arg0: i32) -> (i32, i32) {
    %c0_i32 = arith.constant 0 : i32
    %c0_i32_0 = arith.constant 0 : i32
    %c0_i32_1 = arith.constant 0 : i32
    return %c0_i32, %c0_i32_0 : i32, i32
  }
  func.func @transform_18(%arg0: i32) -> (i32, i32) {
    %c0_i32 = arith.constant 0 : i32
    %c0_i32_0 = arith.constant 0 : i32
    %c0_i32_1 = arith.constant 0 : i32
    return %c0_i32, %c0_i32_0 : i32, i32
  }
  func.func @transform_19(%arg0: i32) -> (i32, i32) {
    %c0_i32 = arith.constant 0 : i32
    %c0_i32_0 = arith.constant 0 : i32
    %c0_i32_1 = arith.constant 0 : i32
    return %c0_i32, %c0_i32_0 : i32, i32
  }
  func.func @transform_20(%arg0: i32) -> (i32, i32) {
    %c0_i32 = arith.constant 0 : i32
    %c0_i32_0 = arith.constant 0 : i32
    %c0_i32_1 = arith.constant 0 : i32
    return %c0_i32, %c0_i32_0 : i32, i32
  }
  func.func @transform_21(%arg0: i32) -> (i32, i32) {
    %c0_i32 = arith.constant 0 : i32
    %c0_i32_0 = arith.constant 0 : i32
    %c0_i32_1 = arith.constant 0 : i32
    return %c0_i32, %c0_i32_0 : i32, i32
  }
  func.func @transform_22(%arg0: i32) -> (i32, i32) {
    %c0_i32 = arith.constant 0 : i32
    %c0_i32_0 = arith.constant 0 : i32
    %c0_i32_1 = arith.constant 0 : i32
    return %c0_i32, %c0_i32_0 : i32, i32
  }
  func.func @transform_23(%arg0: i32) -> (i32, i32) {
    %c0_i32 = arith.constant 0 : i32
    %c0_i32_0 = arith.constant 0 : i32
    %c0_i32_1 = arith.constant 0 : i32
    return %c0_i32, %c0_i32_0 : i32, i32
  }
  func.func @transform_24(%arg0: i32) -> (i32, i32) {
    %c0_i32 = arith.constant 0 : i32
    %c0_i32_0 = arith.constant 0 : i32
    %c0_i32_1 = arith.constant 0 : i32
    return %c0_i32, %c0_i32_0 : i32, i32
  }
  func.func @transform_25(%arg0: i32) -> (i32, i32) {
    %c0_i32 = arith.constant 0 : i32
    %c0_i32_0 = arith.constant 0 : i32
    %c0_i32_1 = arith.constant 0 : i32
    return %c0_i32, %c0_i32_0 : i32, i32
  }
  func.func @transform_26(%arg0: i32) -> (i32, i32) {
    %c0_i32 = arith.constant 0 : i32
    %c0_i32_0 = arith.constant 0 : i32
    return %arg0, %c0_i32 : i32, i32
  }
}

</mosaic_0001>

<bundles_post_ra>
// kernel: prekg_forward.1
= control target key start
LH: loop header
LB: loop body
LE: loop exit
PB: predicated region body
PF: predicated region fallthrough
CT: control target
= control target key end

     0   :  { %s13416_s0 = inlined_call_operand.vmem [shape: bf16[16,160], index: 0, kind: input, shape index: {}]   ;;  %s13417_s1 = inlined_call_operand.hbm [shape: bf16[16,768], index: 1, kind: input, shape index: {}]   ;;  %s13418_s2 = inlined_call_operand.vmem [shape: s32[16,1], index: 2, kind: input, shape index: {}]   ;;  %s13419_s3 = inlined_call_operand.hbm [shape: bf16[64,256], index: 3, kind: input, shape index: {}]   ;;  %s13420_s4 = inlined_call_operand.hbm [shape: bf16[160,512], index: 4, kind: input, shape index: {}]   ;;  %s13421_s5 = inlined_call_operand.vmem [shape: f32[1,512], index: 5, kind: input, shape index: {}]   ;;  %s13422_s6 = inlined_call_operand.hbm [shape: bf16[512,256], index: 6, kind: input, shape index: {}]   ;;  %s13423_s7 = inlined_call_operand.hbm [shape: f32[1,256], index: 7, kind: input, shape index: {}]   ;;  %s13424_s8 = inlined_call_operand.hbm [shape: bf16[256,128], index: 8, kind: input, shape index: {}]   ;;  %s13425_s9 = inlined_call_operand.vmem [shape: f32[1,128], index: 9, kind: input, shape index: {}]   ;;  %s13426_s10 = inlined_call_operand.hbm [shape: bf16[768,512], index: 10, kind: input, shape index: {}]   ;;  %s13427_s11 = inlined_call_operand.vmem [shape: f32[1,512], index: 11, kind: input, shape index: {}]   ;;  %s13428_s12 = inlined_call_operand.hbm [shape: bf16[512,256], index: 12, kind: input, shape index: {}]   ;;  %s13429_s13 = inlined_call_operand.hbm [shape: f32[1,256], index: 13, kind: input, shape index: {}]   ;;  %s13430_s14 = inlined_call_operand.hbm [shape: bf16[256,128], index: 14, kind: input, shape index: {}]   ;;  %s13431_s15 = inlined_call_operand.hbm [shape: f32[1,128], index: 15, kind: input, shape index: {}]   ;;  %s13432_s16 = inlined_call_operand.hbm [shape: bf16[256,128], index: 16, kind: input, shape index: {}]   ;;  %s13433_s17 = inlined_call_operand.vmem [shape: f32[1,128], index: 17, kind: input, shape index: {}]   ;;  %s13434_s18 = inlined_call_operand.hbm [shape: bf16[128,1024], index: 18, kind: input, shape index: {}]   ;;  %s13435_s19 = inlined_call_operand.hbm [shape: bf16[128,1024], index: 19, kind: input, shape index: {}]   ;;  %s13436_s20 = inlined_call_operand.hbm [shape: bf16[128,1024], index: 20, kind: input, shape index: {}]   ;;  %s13437_s21 = inlined_call_operand.vmem [shape: f32[1,1024], index: 21, kind: input, shape index: {}]   ;;  %s13438_s22 = inlined_call_operand.hbm [shape: bf16[1024,512], index: 22, kind: input, shape index: {}]   ;;  %s13439_s23 = inlined_call_operand.hbm [shape: f32[1,512], index: 23, kind: input, shape index: {}]   ;;  %s13440_s24 = inlined_call_operand.hbm [shape: bf16[512,128], index: 24, kind: input, shape index: {}]   ;;  %s13441_s25 = inlined_call_operand.vmem [shape: f32[1,128], index: 25, kind: input, shape index: {}]   ;;  %s13442_s26 = inlined_call_operand.vmem [shape: f32[16,128], index: 26, kind: output, shape index: {}]  }
   0x1   :  { %13447 = sst [smem:[#allocation40_spill]] %s13416_s0 }
   0x2   :  { %13448 = sst [smem:[#allocation41_spill]] %s13417_s1 }
   0x3   :  { %13449 = sst [smem:[#allocation42_spill]] %s13418_s2 }
   0x4   :  { %13450 = sst [smem:[#allocation43_spill]] %s13419_s3 }
   0x5   :  { %13451 = sst [smem:[#allocation44_spill]] %s13420_s4 }
   0x6   :  { %13452 = sst [smem:[#allocation45_spill]] %s13421_s5 }
   0x7   :  { %13453 = sst [smem:[#allocation46_spill]] %s13422_s6 }
   0x8   :  { %13454 = sst [smem:[#allocation47_spill]] %s13423_s7 }
   0x9   :  { %13455 = sst [smem:[#allocation48_spill]] %s13424_s8 }
   0xa   :  { %13456 = sst [smem:[#allocation49_spill]] %s13425_s9 }
   0xb   :  { %13457 = sst [smem:[#allocation50_spill]] %s13426_s10 }
   0xc   :  { %13458 = sst [smem:[#allocation51_spill]] %s13437_s21 }
   0xd   :  { %13459 = sst [smem:[#allocation52_spill]] %s13441_s25 }
   0xe   :  { %13460 = sst [smem:[#allocation53_spill]] %s13442_s26 }
   0xf   :  { %31 = vsyncpa [#allocation3], 0 }
  0x10   :  { %32 = vsyncpa [#allocation5], 0 }
  0x11   :  { %33 = vsyncpa [#allocation8], 0 }
  0x12   :  { %34 = vsyncpa [#allocation11], 0 }
  0x13   :  { %35 = vsyncpa [#allocation14], 0 }
  0x14   :  { %36 = vsyncpa [#allocation17], 0 }
  0x15   :  { %37 = vsyncpa [#allocation20], 0 }
  0x16   :  { %38 = vsyncpa [#allocation23], 0 }
  0x17   :  { %39 = vsyncpa [#allocation26], 0  ;;  %s13461_s7 = sld [smem:[#allocation43_spill]] }
  0x1d   :  { %s62_s28 = sshll.u32 %s13461_s7, 4  ;;  %s63_s28 = int_to_ptr.hbm [resolvable:$true] %s62_s28 }
  0x1e   :  { %40 = vsyncpa [#allocation29], 0  ;;  %s12811_s8 = smov [#allocation4]   ;;  %s13462_s9 = sld [smem:[#allocation46_spill]] }
  0x1f   :  { %s64_s4 = sshll.u32 %s12811_s8, 4  ;;  %s12812_s2 = smov 128   ;;  %s65_s4 = int_to_ptr.vmem [resolvable:$true] %s64_s4 }
  0x20   :  { %s12813_s5 = smov 8   ;;  %s12814_s10 = smov [#allocation7]  }
  0x21   :  { %70 = dma.hbm_to_vmem [thread:$0]  %s63_s28, 1024, %s65_s4, [#allocation5], %s12812_s2, %s12812_s2, %s12813_s5  }
  0x22   :  { %s92_s6 = sshll.u32 %s12814_s10, 4  ;;  %s13463_s25 = sld [smem:[#allocation48_spill]]  ;;  %s93_s6 = int_to_ptr.vmem [resolvable:$true] %s92_s6 }
  0x23   :  { %s12815_s3 = smov [#allocation10]   ;;  %s144_s29 = sshll.u32 %s13428_s12, 4  ;;  %s145_s29 = int_to_ptr.hbm [resolvable:$true] %s144_s29 }
  0x24   :  { %s90_s30 = sshll.u32 %s13462_s9, 4  ;;  %s116_s7 = sshll.u32 %s12815_s3, 4  ;;  %s91_s30 = int_to_ptr.hbm [resolvable:$true] %s90_s30  ;;  %s117_s7 = int_to_ptr.vmem [resolvable:$true] %s116_s7 }
  0x25   :  { %98 = dma.hbm_to_vmem [thread:$0]  %s91_s30, 8192, %s93_s6, [#allocation8], %s12812_s2, %s12812_s2, %s12813_s5  }
  0x26   :  { %s12816_s0 = smov 64   ;;  %s12817_s9 = smov 4  }
  0x27   :  { %s12818_s28 = smov [#allocation13]   ;;  %s168_s30 = sshll.u32 %s13430_s14, 4  ;;  %s169_s30 = int_to_ptr.hbm [resolvable:$true] %s168_s30 }
  0x28   :  { %s114_s27 = sshll.u32 %s13463_s25, 4  ;;  %s146_s26 = sshll.u32 %s12818_s28, 4  ;;  %s115_s27 = int_to_ptr.hbm [resolvable:$true] %s114_s27  ;;  %s147_s26 = int_to_ptr.vmem [resolvable:$true] %s146_s26 }
  0x29   :  { %122 = dma.hbm_to_vmem [thread:$0]  %s115_s27, 2048, %s117_s7, [#allocation11], %s12816_s0, %s12816_s0, %s12817_s9  }
  0x2a   :  { %152 = dma.hbm_to_vmem [thread:$0]  %s145_s29, 8192, %s147_s26, [#allocation14], %s12812_s2, %s12812_s2, %s12813_s5  }
  0x2b   :  { %s192_s12 = sshll.u32 %s13432_s16, 4  ;;  %s12819_s21 = smov [#allocation16]   ;;  %s193_s12 = int_to_ptr.hbm [resolvable:$true] %s192_s12 }
  0x2c   :  { %s170_s1 = sshll.u32 %s12819_s21, 4  ;;  %s12820_s27 = smov [#allocation19]   ;;  %s171_s1 = int_to_ptr.vmem [resolvable:$true] %s170_s1 }
  0x2d   :  { %176 = dma.hbm_to_vmem [thread:$0]  %s169_s30, 2048, %s171_s1, [#allocation17], %s12816_s0, %s12816_s0, %s12817_s9  }
  0x2e   :  { %s194_s3 = sshll.u32 %s12820_s27, 4  ;;  %s220_s5 = sshll.u32 %s13435_s19, 4  ;;  %s195_s3 = int_to_ptr.vmem [resolvable:$true] %s194_s3  ;;  %s221_s5 = int_to_ptr.hbm [resolvable:$true] %s220_s5 }
  0x2f   :  { %200 = dma.hbm_to_vmem [thread:$0]  %s193_s12, 2048, %s195_s3, [#allocation20], %s12816_s0, %s12816_s0, %s12817_s9  }
  0x30   :  { %s12821_s16 = smov [#allocation22]   ;;  %s12822_s8 = smov 512  }
  0x31   :  { %s222_s7 = sshll.u32 %s12821_s16, 4  ;;  %s12823_s29 = smov 32   ;;  %s223_s7 = int_to_ptr.vmem [resolvable:$true] %s222_s7 }
  0x32   :  { %228 = dma.hbm_to_vmem [thread:$0]  %s221_s5, 8192, %s223_s7, [#allocation23], %s12822_s8, %s12822_s8, %s12823_s29  }
  0x33   :  { %s248_s25 = sshll.u32 %s13438_s22, 4  ;;  %s12824_s4 = smov [#allocation25]   ;;  %s249_s25 = int_to_ptr.hbm [resolvable:$true] %s248_s25 }
  0x34   :  { %s250_s30 = sshll.u32 %s12824_s4, 4  ;;  %s13464_s19 = sld [smem:[#allocation41_spill]]  ;;  %s251_s30 = int_to_ptr.vmem [resolvable:$true] %s250_s30 }
  0x35   :  { %s12825_s21 = smov 256   ;;  %s12826_s1 = smov 16  }
  0x36   :  { %256 = dma.hbm_to_vmem [thread:$0]  %s249_s25, 32768, %s251_s30, [#allocation26], %s12825_s21, %s12825_s21, %s12826_s1  }
  0x37   :  { %s12827_s27 = smov [#allocation2]   ;;  %s13465_s2 = sld [smem:[#allocation44_spill]] }
  0x38   :  { %s49_s3 = sshll.u32 %s12827_s27, 4  ;;  %s12828_s16 = smov 384   ;;  %s50_s3 = int_to_ptr.vmem [resolvable:$true] %s49_s3 }
  0x39   :  { %s12829_s7 = smov 24   ;;  %s12830_s28 = smov [#allocation6]  }
  0x3a   :  { %s47_s12 = sshll.u32 %s13464_s19, 4  ;;  %s77_s26 = sshll.u32 %s12830_s28, 4  ;;  %s48_s12 = int_to_ptr.hbm [resolvable:$true] %s47_s12  ;;  %s78_s26 = int_to_ptr.vmem [resolvable:$true] %s77_s26 }
  0x3b   :  { %55 = dma.hbm_to_vmem [thread:$0]  %s48_s12, 768, %s50_s3, [#allocation3], %s12828_s16, %s12828_s16, %s12829_s7  }
  0x3c   :  { %s13466_s6 = sld [smem:[#allocation47_spill]]  ;;  %s12831_s22 = smov [#allocation9]  }
  0x3d   :  { %s75_s5 = sshll.u32 %s13465_s2, 4  ;;  %s13467_s27 = sld [smem:[#allocation50_spill]]  ;;  %s76_s5 = int_to_ptr.hbm [resolvable:$true] %s75_s5 }
  0x3e   :  { %83 = dma.hbm_to_vmem [thread:$0]  %s76_s5, 5120, %s78_s26, [#allocation5], %s12825_s21, %s12825_s21, %s12826_s1  }
  0x3f   :  { %s106_s2 = sshll.u32 %s12831_s22, 4  ;;  %s12832_s12 = smov [#allocation12]   ;;  %s107_s2 = int_to_ptr.vmem [resolvable:$true] %s106_s2 }
  0x40   :  { %s131_s3 = sshll.u32 %s12832_s12, 4  ;;  %s158_s28 = sshll.u32 %s13429_s13, 4  ;;  %s132_s3 = int_to_ptr.vmem [resolvable:$true] %s131_s3  ;;  %s159_s28 = int_to_ptr.hbm [resolvable:$true] %s158_s28 }
  0x41   :  { %s182_s4 = sshll.u32 %s13431_s15, 4  ;;  %s12833_s10 = smov [#allocation15]   ;;  %s183_s4 = int_to_ptr.hbm [resolvable:$true] %s182_s4 }
  0x42   :  { %s104_s19 = sshll.u32 %s13466_s6, 4  ;;  %s160_s6 = sshll.u32 %s12833_s10, 4  ;;  %s105_s19 = int_to_ptr.hbm [resolvable:$true] %s104_s19  ;;  %s161_s6 = int_to_ptr.vmem [resolvable:$true] %s160_s6 }
  0x43   :  { %s129_s14 = sshll.u32 %s13467_s27, 4  ;;  %s207_s13 = sshll.u32 %s13434_s18, 4  ;;  %s130_s14 = int_to_ptr.hbm [resolvable:$true] %s129_s14  ;;  %s208_s13 = int_to_ptr.hbm [resolvable:$true] %s207_s13 }
  0x44   :  { %109 = dma.hbm_to_vmem [thread:$0]  %s105_s19, 32, %s107_s2, [#allocation8]  }
  0x45   :  { %137 = dma.hbm_to_vmem [thread:$0]  %s130_s14, 24576, %s132_s3, [#allocation11], %s12825_s21, %s12825_s21, %s12826_s1  }
  0x46   :  { %163 = dma.hbm_to_vmem [thread:$0]  %s159_s28, 32, %s161_s6, [#allocation14]  }
  0x47   :  { %s12834_s19 = smov [#allocation18]   ;;  %s233_s1 = sshll.u32 %s13436_s20, 4  ;;  %s234_s1 = int_to_ptr.hbm [resolvable:$true] %s233_s1 }
  0x48   :  { %s184_s25 = sshll.u32 %s12834_s19, 4  ;;  %s12835_s14 = smov [#allocation21]   ;;  %s185_s25 = int_to_ptr.vmem [resolvable:$true] %s184_s25 }
  0x49   :  { %187 = dma.hbm_to_vmem [thread:$0]  %s183_s4, 16, %s185_s25, [#allocation17]  }
  0x4a   :  { %s209_s15 = sshll.u32 %s12835_s14, 4  ;;  %s12836_s2 = smov [#allocation24]   ;;  %s210_s15 = int_to_ptr.vmem [resolvable:$true] %s209_s15 }
  0x4b   :  { %215 = dma.hbm_to_vmem [thread:$0]  %s208_s13, 8192, %s210_s15, [#allocation20], %s12822_s8, %s12822_s8, %s12823_s29  }
  0x4c   :  { %s235_s12 = sshll.u32 %s12836_s2, 4  ;;  %s262_s18 = sshll.u32 %s13439_s23, 4  ;;  %s236_s12 = int_to_ptr.vmem [resolvable:$true] %s235_s12  ;;  %s263_s18 = int_to_ptr.hbm [resolvable:$true] %s262_s18 }
  0x4d   :  { %241 = dma.hbm_to_vmem [thread:$0]  %s234_s1, 8192, %s236_s12, [#allocation23], %s12822_s8, %s12822_s8, %s12823_s29  }
  0x4e   :  { %s272_s28 = sshll.u32 %s13440_s24, 4  ;;  %s12837_s5 = smov [#allocation27]   ;;  %s273_s28 = int_to_ptr.hbm [resolvable:$true] %s272_s28 }
  0x4f   :  { %s264_s26 = sshll.u32 %s12837_s5, 4  ;;  %s12838_s4 = smov [#allocation28]   ;;  %s265_s26 = int_to_ptr.vmem [resolvable:$true] %s264_s26 }
  0x50   :  { %267 = dma.hbm_to_vmem [thread:$0]  %s263_s18, 64, %s265_s26, [#allocation26]  }
  0x51   :  { %s274_s10 = sshll.u32 %s12838_s4, 4  ;;  %s275_s10 = int_to_ptr.vmem [resolvable:$true] %s274_s10 }
  0x52   :  { %280 = dma.hbm_to_vmem [thread:$0]  %s273_s28, 4096, %s275_s10, [#allocation29], %s12816_s0, %s12816_s0, %s12817_s9  }
  0x53   :  { %12791 = dma.done.wait [#allocation3], 768  }
  0x54   :  { %12792 = vsyncadd [#allocation3], 4294966528 }
  0x55   :  { %12793 = dma.done.wait [#allocation5], 6144  }
  0x56   :  { %12794 = vsyncadd [#allocation5], 4294961152 }
  0x57   :  { %12795 = dma.done.wait [#allocation8], 8224  }
  0x58   :  { %12796 = vsyncadd [#allocation8], 4294959072 }
  0x59   :  { %12797 = dma.done.wait [#allocation11], 26624  }
  0x5a   :  { %12798 = vsyncadd [#allocation11], 4294940672 }
  0x5b   :  { %12799 = dma.done.wait [#allocation14], 8224  }
  0x5c   :  { %12800 = vsyncadd [#allocation14], 4294959072 }
  0x5d   :  { %12801 = dma.done.wait [#allocation17], 2064  }
  0x5e   :  { %12802 = vsyncadd [#allocation17], 4294965232 }
  0x5f   :  { %12803 = dma.done.wait [#allocation20], 10240  }
  0x60   :  { %12804 = vsyncadd [#allocation20], 4294957056 }
  0x61   :  { %12805 = dma.done.wait [#allocation23], 16384  }
  0x62   :  { %12806 = vsyncadd [#allocation23], 4294950912 }
  0x63   :  { %12807 = dma.done.wait [#allocation26], 32832  }
  0x64   :  { %12808 = vsyncadd [#allocation26], 4294934464 }
  0x65   :  { %12809 = dma.done.wait [#allocation29], 4096  }
  0x66   :  { %12810 = vsyncadd [#allocation29], 4294963200  ;;  %v7917_v0 = vld [vmem:[#allocation6 + $0xe0] sm:$0xf]  ;;  %v11451_v1 = vld [vmem:[#allocation6 + $0xec] sm:$0xf0] }
  0x67   :  { %v7949_v2 = vld [vmem:[#allocation6 + $0x120] sm:$0xf]  ;;  %v7918_v3 = vor.u32 %v11451_v1, %v7917_v0  ;;  %v11459_v4 = vld [vmem:[#allocation6 + $0x12c] sm:$0xf0]  ;;  %v11449_v5 = vld [vmem:[#allocation6 + $0xe4] sm:$0xf] }
  0x68   :  { %v7919_v6 = vld [vmem:[#allocation6 + $0xf0] sm:$0xf0]  ;;  %vm617_vm0 = vcmask 261120   ;;  %v7950_v7 = vor.u32 %v11459_v4, %v7949_v2  ;;  %v11457_v9 = vld [vmem:[#allocation6 + $0x124] sm:$0xf]  ;;  %s13468_s0 = sld [smem:[#allocation40_spill]] }
  0x69   :  { %v7922_v8 = vor.u32 %v11449_v5, %v7919_v6  ;;  %v7951_v10 = vld [vmem:[#allocation6 + $0x130] sm:$0xf0]  ;;  %v7901_v11 = vld [vmem:[#allocation6 + $0xc0] sm:$0xf]  ;;  %621 = vmatpush.bf16.msra.mxu0 %v7918_v3  ;;  %v11447_v13 = vld [vmem:[#allocation6 + $0xcc] sm:$0xf0] }
  0x6a   :  { %v7954_v12 = vor.u32 %v11457_v9, %v7951_v10  ;;  %v7933_v14 = vld [vmem:[#allocation6 + $0x100] sm:$0xf]  ;;  %v11455_v15 = vld [vmem:[#allocation6 + $0x10c] sm:$0xf0]  ;;  %641 = vmatpush.bf16.msra.mxu1 %v7950_v7  ;;  %v7902_v16 = vor.u32 %v11447_v13, %v7901_v11  ;;  %v11445_v18 = vld [vmem:[#allocation6 + $0xc4] sm:$0xf] }
  0x6b   :  { %649 = vmatpush.bf16.msra.mxu2 %v7922_v8  ;;  %v7934_v17 = vor.u32 %v11455_v15, %v7933_v14  ;;  %v7903_v19 = vld [vmem:[#allocation6 + $0xd0] sm:$0xf0]  ;;  %v11453_v20 = vld [vmem:[#allocation6 + $0x104] sm:$0xf]  ;;  %v7925_v23 = vld [vmem:[#allocation6 + $0xe8] sm:$0xf] }
  0x6c   :  { %669 = vmatpush.bf16.msra.mxu3 %v7954_v12  ;;  %v7906_v21 = vor.u32 %v11445_v18, %v7903_v19  ;;  %v7935_v22 = vld [vmem:[#allocation6 + $0x110] sm:$0xf0]  ;;  %v11452_v24 = vld [vmem:[#allocation6 + $0xf4] sm:$0xf0]  ;;  %v7957_v27 = vld [vmem:[#allocation6 + $0x128] sm:$0xf] }
  0x6d   :  { %v7938_v25 = vor.u32 %v11453_v20, %v7935_v22  ;;  %v7926_v26 = vor.u32 %v11452_v24, %v7925_v23  ;;  %v11460_v28 = vld [vmem:[#allocation6 + $0x134] sm:$0xf0]  ;;  %622 = vmatpush.bf16.msra.mxu0 %v7902_v16  ;;  %v7885_v32 = vld [vmem:[#allocation6 + $0xa0] sm:$0xf]  ;;  %v11443_v33 = vld [vmem:[#allocation6 + $0xac] sm:$0xf0] }
  0x6e   :  { %v11419_v29 = vld [vmem:[%s13468_s0 + $0x4] sm:$0xf]  ;;  %v7958_v30 = vor.u32 %v11460_v28, %v7957_v27  ;;  %v7799_v31 = vld [vmem:[%s13468_s0 + $0x8] sm:$0xf0]  ;;  %642 = vmatpush.bf16.msra.mxu1 %v7934_v17  ;;  %v7886_v35 = vor.u32 %v11443_v33, %v7885_v32  ;;  %v11441_v36 = vld [vmem:[#allocation6 + $0xa4] sm:$0xf] }
  0x6f   :  { %650 = vmatpush.bf16.msra.mxu2 %v7906_v21  ;;  %v13066_v34 = vor.u32 %v11419_v29, %v7799_v31  ;;  %v7887_v37 = vld [vmem:[#allocation6 + $0xb0] sm:$0xf0]  ;;  %v7909_v38 = vld [vmem:[#allocation6 + $0xc8] sm:$0xf]  ;;  %v11448_v40 = vld [vmem:[#allocation6 + $0xd4] sm:$0xf0] }
  0x70   :  { %670 = vmatpush.bf16.msra.mxu3 %v7938_v25  ;;  %v7890_v39 = vor.u32 %v11441_v36, %v7887_v37  ;;  %v7941_v41 = vld [vmem:[#allocation6 + $0x108] sm:$0xf]  ;;  %v11456_v42 = vld [vmem:[#allocation6 + $0x114] sm:$0xf0]  ;;  %v7910_v43 = vor.u32 %v11448_v40, %v7909_v38  ;;  %v11450_v45 = vld [vmem:[#allocation6 + $0xec] sm:$0xf] }
  0x71   :  { %v7942_v44 = vor.u32 %v11456_v42, %v7941_v41  ;;  %v7927_v46 = vld [vmem:[#allocation6 + $0xf8] sm:$0xf0]  ;;  %v7869_v47 = vld [vmem:[#allocation6 + $0x80] sm:$0xf]  ;;  %623 = vmatpush.bf16.msra.mxu0 %v7886_v35  ;;  %v11439_v49 = vld [vmem:[#allocation6 + $0x8c] sm:$0xf0]  ;;  %7963 = vmatmul.msk.bf16.vlgmr.msra.gmra.mxu1 %vm617_vm0, %v13066_v34 }
  0x72   :  { %677 = vmatpush.bf16.msrb.mxu1 %v7926_v26  ;;  %v7930_v48 = vor.u32 %v11450_v45, %v7927_v46  ;;  %v11437_v50 = vld [vmem:[#allocation6 + $0x84] sm:$0xf]  ;;  %v7871_v51 = vld [vmem:[#allocation6 + $0x90] sm:$0xf0]  ;;  %v7870_v52 = vor.u32 %v11439_v49, %v7869_v47  ;;  %v7893_v54 = vld [vmem:[#allocation6 + $0xa8] sm:$0xf] }
  0x73   :  { %7964 = vmatmul.msk.bf16.vlgmr.msra.gmra.mxu3 %vm617_vm0, %v13066_v34  ;;  %651 = vmatpush.bf16.msra.mxu2 %v7890_v39  ;;  %v7874_v53 = vor.u32 %v11437_v50, %v7871_v51  ;;  %v11444_v55 = vld [vmem:[#allocation6 + $0xb4] sm:$0xf0]  ;;  %v11446_v56 = vld [vmem:[#allocation6 + $0xcc] sm:$0xf]  ;;  %v7911_v58 = vld [vmem:[#allocation6 + $0xd8] sm:$0xf0] }
  0x74   :  { %697 = vmatpush.bf16.msrb.mxu3 %v7958_v30  ;;  %v7894_v57 = vor.u32 %v11444_v55, %v7893_v54  ;;  %v7853_v59 = vld [vmem:[#allocation6 + $0x60] sm:$0xf]  ;;  %v11435_v60 = vld [vmem:[#allocation6 + $0x6c] sm:$0xf0]  ;;  %v11433_v61 = vld [vmem:[#allocation6 + $0x64] sm:$0xf]  ;;  %v7914_v0 = vor.u32 %v11446_v56, %v7911_v58 }
  0x75   :  { %v7855_v62 = vld [vmem:[#allocation6 + $0x70] sm:$0xf0]  ;;  %v7877_v63 = vld [vmem:[#allocation6 + $0x88] sm:$0xf]  ;;  %624 = vmatpush.bf16.msra.mxu0 %v7870_v52  ;;  %v7854_v1 = vor.u32 %v11435_v60, %v7853_v59  ;;  %v11440_v2 = vld [vmem:[#allocation6 + $0x94] sm:$0xf0] }
  0x76   :  { %678 = vmatpush.bf16.msrb.mxu1 %v7910_v43  ;;  %v11442_v3 = vld [vmem:[#allocation6 + $0xac] sm:$0xf]  ;;  %v7858_v4 = vor.u32 %v11433_v61, %v7855_v62  ;;  %v7895_v5 = vld [vmem:[#allocation6 + $0xb8] sm:$0xf0]  ;;  %v7837_v6 = vld [vmem:[#allocation6 + $0x40] sm:$0xf]  ;;  %v7878_v8 = vor.u32 %v11440_v2, %v7877_v63 }
  0x77   :  { %652 = vmatpush.bf16.msra.mxu2 %v7874_v53  ;;  %v11431_v7 = vld [vmem:[#allocation6 + $0x4c] sm:$0xf0]  ;;  %v11429_v9 = vld [vmem:[#allocation6 + $0x44] sm:$0xf]  ;;  %v7839_v10 = vld [vmem:[#allocation6 + $0x50] sm:$0xf0]  ;;  %v7898_v13 = vor.u32 %v11442_v3, %v7895_v5 }
  0x78   :  { %698 = vmatpush.bf16.msrb.mxu3 %v7942_v44  ;;  %v7861_v11 = vld [vmem:[#allocation6 + $0x68] sm:$0xf]  ;;  %v11436_v12 = vld [vmem:[#allocation6 + $0x74] sm:$0xf0]  ;;  %v7838_v14 = vor.u32 %v11431_v7, %v7837_v6  ;;  %v11438_v15 = vld [vmem:[#allocation6 + $0x8c] sm:$0xf]  ;;  %v7842_v16 = vor.u32 %v11429_v9, %v7839_v10 }
  0x79   :  { %625 = vmatpush.bf16.msra.mxu0 %v7854_v1  ;;  %v7879_v17 = vld [vmem:[#allocation6 + $0x98] sm:$0xf0]  ;;  %v7821_v18 = vld [vmem:[#allocation6 + $0x20] sm:$0xf]  ;;  %v11427_v19 = vld [vmem:[#allocation6 + $0x2c] sm:$0xf0]  ;;  %v7862_v20 = vor.u32 %v11436_v12, %v7861_v11 }
  0x7a   :  { %679 = vmatpush.bf16.msrb.mxu1 %v7894_v57  ;;  %v11425_v21 = vld [vmem:[#allocation6 + $0x24] sm:$0xf]  ;;  %v7823_v22 = vld [vmem:[#allocation6 + $0x30] sm:$0xf0]  ;;  %v7845_v23 = vld [vmem:[#allocation6 + $0x48] sm:$0xf]  ;;  %v7882_v25 = vor.u32 %v11438_v15, %v7879_v17  ;;  %v7822_v26 = vor.u32 %v11427_v19, %v7821_v18 }
  0x7b   :  { %653 = vmatpush.bf16.msra.mxu2 %v7858_v4  ;;  %v11432_v24 = vld [vmem:[#allocation6 + $0x54] sm:$0xf0]  ;;  %v11434_v27 = vld [vmem:[#allocation6 + $0x6c] sm:$0xf]  ;;  %v7826_v28 = vor.u32 %v11425_v21, %v7823_v22  ;;  %v7863_v29 = vld [vmem:[#allocation6 + $0x78] sm:$0xf0] }
  0x7c   :  { %705 = vmatpush.bf16.msra.mxu3 %v7930_v48  ;;  %v7805_v30 = vld [vmem:[#allocation6] sm:$0xf]  ;;  %v11423_v31 = vld [vmem:[#allocation6 + $0xc] sm:$0xf0]  ;;  %v7846_v32 = vor.u32 %v11432_v24, %v7845_v23  ;;  %v11421_v33 = vld [vmem:[#allocation6 + $0x4] sm:$0xf]  ;;  %v7866_v39 = vor.u32 %v11434_v27, %v7863_v29 }
  0x7d   :  { %626 = vmatpush.bf16.msra.mxu0 %v7838_v14  ;;  %v7807_v35 = vld [vmem:[#allocation6 + $0x10] sm:$0xf0]  ;;  %v7829_v36 = vld [vmem:[#allocation6 + $0x28] sm:$0xf]  ;;  %v11428_v37 = vld [vmem:[#allocation6 + $0x34] sm:$0xf0]  ;;  %v7806_v40 = vor.u32 %v11423_v31, %v7805_v30 }
  0x7e   :  { %680 = vmatpush.bf16.msrb.mxu1 %v7878_v8  ;;  %v11430_v38 = vld [vmem:[#allocation6 + $0x4c] sm:$0xf]  ;;  %v7847_v41 = vld [vmem:[#allocation6 + $0x58] sm:$0xf0]  ;;  %v7797_v42 = vld [vmem:[%s13468_s0] sm:$0xf]  ;;  %v7810_v44 = vor.u32 %v11421_v33, %v7807_v35  ;;  %v7830_v49 = vor.u32 %v11428_v37, %v7829_v36 }
  0x7f   :  { %654 = vmatpush.bf16.msra.mxu2 %v7842_v16  ;;  %v11420_v43 = vld [vmem:[%s13468_s0 + $0x4] sm:$0xf0]  ;;  %v7813_v45 = vld [vmem:[#allocation6 + $0x8] sm:$0xf]  ;;  %v8025_v47 = vld [vmem:[#allocation7 + $0x70] sm:$0xf]  ;;  %v7850_v59 = vor.u32 %v11430_v38, %v7847_v41 }
  0x80   :  { %706 = vmatpush.bf16.msra.mxu3 %v7914_v0  ;;  %v11424_v46 = vld [vmem:[#allocation6 + $0x14] sm:$0xf0]  ;;  %v11458_v50 = vld [vmem:[#allocation6 + $0x12c] sm:$0xf]  ;;  %v7959_v51 = vld [vmem:[#allocation6 + $0x138] sm:$0xf0]  ;;  %v7798_v55 = vor.u32 %v11420_v43, %v7797_v42 }
  0x81   :  { %627 = vmatpush.bf16.msra.mxu0 %v7822_v26  ;;  %v11476_v48 = vld [vmem:[#allocation7 + $0x74] sm:$0xf0]  ;;  %v8153_v53 = vld [vmem:[#allocation7 + $0x170] sm:$0xf]  ;;  %v8017_v56 = vld [vmem:[#allocation7 + $0x60] sm:$0xf]  ;;  %v7814_v62 = vor.u32 %v11424_v46, %v7813_v45  ;;  %v7962_v0 = vor.u32 %v11458_v50, %v7959_v51 }
  0x82   :  { %681 = vmatpush.bf16.msrb.mxu1 %v7862_v20  ;;  %v8026_v52 = vor.u32 %v11476_v48, %v8025_v47  ;;  %v11508_v54 = vld [vmem:[#allocation7 + $0x174] sm:$0xf0]  ;;  %v11474_v57 = vld [vmem:[#allocation7 + $0x64] sm:$0xf0]  ;;  %v11426_v60 = vld [vmem:[#allocation6 + $0x2c] sm:$0xf] }
  0x83   :  { %7965 = vmatmul.msk.bf16.vlgmr.msrb.gmra.mxu3 %vm617_vm0, %v13066_v34  ;;  %655 = vmatpush.bf16.msra.mxu2 %v7826_v28  ;;  %v8154_v58 = vor.u32 %v11508_v54, %v8153_v53  ;;  %v7831_v61 = vld [vmem:[#allocation6 + $0x38] sm:$0xf0]  ;;  %v8018_v63 = vor.u32 %v11474_v57, %v8017_v56  ;;  %v11422_v2 = vld [vmem:[#allocation6 + $0xc] sm:$0xf]  ;;  %v8089_v6 = vld [vmem:[#allocation7 + $0xf0] sm:$0xf] }
  0x84   :  { %707 = vmatpush.bf16.msra.mxu3 %v7898_v13  ;;  %v7834_v1 = vor.u32 %v11426_v60, %v7831_v61  ;;  %v11454_v3 = vld [vmem:[#allocation6 + $0x10c] sm:$0xf]  ;;  %v7943_v4 = vld [vmem:[#allocation6 + $0x118] sm:$0xf0]  ;;  %v11492_v7 = vld [vmem:[#allocation7 + $0xf4] sm:$0xf0] }
  0x85   :  { %628 = vmatpush.bf16.msra.mxu0 %v7806_v40  ;;  %v7815_v5 = vld [vmem:[#allocation6 + $0x18] sm:$0xf0]  ;;  %v7946_v8 = vor.u32 %v11454_v3, %v7943_v4  ;;  %v8090_v10 = vor.u32 %v11492_v7, %v8089_v6  ;;  %v8009_v11 = vld [vmem:[#allocation7 + $0x50] sm:$0xf]  ;;  %v11472_v12 = vld [vmem:[#allocation7 + $0x54] sm:$0xf0] }
  0x86   :  { %682 = vmatpush.bf16.msrb.mxu1 %v7846_v32  ;;  %v7818_v9 = vor.u32 %v11422_v2, %v7815_v5  ;;  %v8010_v13 = vor.u32 %v11472_v12, %v8009_v11  ;;  %v8145_v14 = vld [vmem:[#allocation7 + $0x160] sm:$0xf]  ;;  %v11506_v15 = vld [vmem:[#allocation7 + $0x164] sm:$0xf0]  ;;  %v8137_v22 = vld [vmem:[#allocation7 + $0x150] sm:$0xf] }
  0x87   :  { %656 = vmatpush.bf16.msra.mxu2 %v7810_v44  ;;  %v8146_v16 = vor.u32 %v11506_v15, %v8145_v14  ;;  %v8081_v17 = vld [vmem:[#allocation7 + $0xe0] sm:$0xf]  ;;  %v11490_v18 = vld [vmem:[#allocation7 + $0xe4] sm:$0xf0]  ;;  %v11504_v24 = vld [vmem:[#allocation7 + $0x154] sm:$0xf0] }
  0x88   :  { %708 = vmatpush.bf16.msra.mxu3 %v7882_v25  ;;  %629 = vmatmul.bf16.vlgmr.msra.gmra.mxu0 %v7798_v55  ;;  %v8082_v19 = vor.u32 %v11490_v18, %v8081_v17  ;;  %v8001_v20 = vld [vmem:[#allocation7 + $0x40] sm:$0xf]  ;;  %v11470_v21 = vld [vmem:[#allocation7 + $0x44] sm:$0xf0]  ;;  %v8073_v25 = vld [vmem:[#allocation7 + $0xd0] sm:$0xf] }
  0x89   :  { %1163 = vmatpush.bf16.msrb.mxu0 %v8154_v58  ;;  %v8002_v23 = vor.u32 %v11470_v21, %v8001_v20  ;;  %v11488_v26 = vld [vmem:[#allocation7 + $0xd4] sm:$0xf0]  ;;  %v7993_v28 = vld [vmem:[#allocation7 + $0x30] sm:$0xf]  ;;  %v8129_v31 = vld [vmem:[#allocation7 + $0x140] sm:$0xf] }
  0x8a   :  { %683 = vmatpush.bf16.msrb.mxu1 %v7830_v49  ;;  %657 = vmatmul.bf16.vlgmr.msra.gmra.mxu2 %v7798_v55  ;;  %v8074_v27 = vor.u32 %v11488_v26, %v8073_v25  ;;  %v11468_v29 = vld [vmem:[#allocation7 + $0x34] sm:$0xf0]  ;;  %v11502_v32 = vld [vmem:[#allocation7 + $0x144] sm:$0xf0]  ;;  %v8065_v35 = vld [vmem:[#allocation7 + $0xc0] sm:$0xf] }
  0x8b   :  { %1135 = vmatpush.bf16.msrb.mxu2 %v8026_v52  ;;  %v7994_v30 = vor.u32 %v11468_v29, %v7993_v28  ;;  %v8130_v33 = vor.u32 %v11502_v32, %v8129_v31  ;;  %v11486_v36 = vld [vmem:[#allocation7 + $0xc4] sm:$0xf0]  ;;  %v8217_v38 = vld [vmem:[#allocation7 + $0x1f0] sm:$0xf]  ;;  %v7985_v41 = vld [vmem:[#allocation7 + $0x20] sm:$0xf] }
  0x8c   :  { %709 = vmatpush.bf16.msra.mxu3 %v7866_v39  ;;  %v8066_v37 = vor.u32 %v11486_v36, %v8065_v35  ;;  %v11524_v39 = vld [vmem:[#allocation7 + $0x1f4] sm:$0xf0]  ;;  %v11466_v42 = vld [vmem:[#allocation7 + $0x24] sm:$0xf0]  ;;  %v8121_v43 = vld [vmem:[#allocation7 + $0x130] sm:$0xf] }
  0x8d   :  { %1164 = vmatpush.bf16.msrb.mxu0 %v8146_v16  ;;  %v8218_v40 = vor.u32 %v11524_v39, %v8217_v38  ;;  %v7986_v44 = vor.u32 %v11466_v42, %v7985_v41  ;;  %v11500_v45 = vld [vmem:[#allocation7 + $0x134] sm:$0xf0]  ;;  %v8057_v46 = vld [vmem:[#allocation7 + $0xb0] sm:$0xf]  ;;  %v8209_v50 = vld [vmem:[#allocation7 + $0x1e0] sm:$0xf] }
  0x8e   :  { %684 = vmatpush.bf16.msrb.mxu1 %v7814_v62  ;;  %v11484_v47 = vld [vmem:[#allocation7 + $0xb4] sm:$0xf0]  ;;  %v8122_v48 = vor.u32 %v11500_v45, %v8121_v43  ;;  %v11522_v51 = vld [vmem:[#allocation7 + $0x1e4] sm:$0xf0]  ;;  %v7977_v52 = vld [vmem:[#allocation7 + $0x10] sm:$0xf] }
  0x8f   :  { %1136 = vmatpush.bf16.msrb.mxu2 %v8018_v63  ;;  %v8058_v49 = vor.u32 %v11484_v47, %v8057_v46  ;;  %v8210_v53 = vor.u32 %v11522_v51, %v8209_v50  ;;  %v11464_v54 = vld [vmem:[#allocation7 + $0x14] sm:$0xf0]  ;;  %v8113_v56 = vld [vmem:[#allocation7 + $0x120] sm:$0xf]  ;;  %v11498_v57 = vld [vmem:[#allocation7 + $0x124] sm:$0xf0] }
  0x90   :  { %710 = vmatpush.bf16.msra.mxu3 %v7850_v59  ;;  %v8114_v58 = vor.u32 %v11498_v57, %v8113_v56  ;;  %v8049_v59 = vld [vmem:[#allocation7 + $0xa0] sm:$0xf]  ;;  %v11482_v60 = vld [vmem:[#allocation7 + $0xa4] sm:$0xf0]  ;;  %v8201_v62 = vld [vmem:[#allocation7 + $0x1d0] sm:$0xf] }
  0x91   :  { %685 = vmatmul.bf16.vlgmr.msrb.gmra.mxu1 %v7798_v55  ;;  %v8050_v61 = vor.u32 %v11482_v60, %v8049_v59  ;;  %v11520_v63 = vld [vmem:[#allocation7 + $0x1d4] sm:$0xf0]  ;;  %v11462_v2 = vld [vmem:[#allocation7 + $0x4] sm:$0xf0]  ;;  %v8105_v4 = vld [vmem:[#allocation7 + $0x110] sm:$0xf] }
  0x92   :  { %725 = vmatpush.bf16.msra.mxu1 %v7962_v0  ;;  %v8202_v0 = vor.u32 %v11520_v63, %v8201_v62  ;;  %v11496_v5 = vld [vmem:[#allocation7 + $0x114] sm:$0xf0]  ;;  %v11475_v7 = vld [vmem:[#allocation7 + $0x74] sm:$0xf]  ;;  %v8193_v12 = vld [vmem:[#allocation7 + $0x1c0] sm:$0xf] }
  0x93   :  { %1137 = vmatpush.bf16.msrb.mxu2 %v8010_v13  ;;  %v8106_v6 = vor.u32 %v11496_v5, %v8105_v4  ;;  %v11480_v11 = vld [vmem:[#allocation7 + $0x94] sm:$0xf0]  ;;  %v11518_v13 = vld [vmem:[#allocation7 + $0x1c4] sm:$0xf0]  ;;  %v8097_v16 = vld [vmem:[#allocation7 + $0x100] sm:$0xf] }
  0x94   :  { %711 = vmatpush.bf16.msra.mxu3 %v7834_v1  ;;  %v7969_v1 = vld [vmem:[#allocation7] sm:$0xf]  ;;  %v8194_v15 = vor.u32 %v11518_v13, %v8193_v12  ;;  %v11494_v17 = vld [vmem:[#allocation7 + $0x104] sm:$0xf0]  ;;  %v8019_v20 = vld [vmem:[#allocation7 + $0x68] sm:$0xf0] }
  0x95   :  { %v7970_v3 = vor.u32 %v11462_v2, %v7969_v1  ;;  %v8098_v18 = vor.u32 %v11494_v17, %v8097_v16  ;;  %v8033_v21 = vld [vmem:[#allocation7 + $0x80] sm:$0xf]  ;;  %v8155_v26 = vld [vmem:[#allocation7 + $0x178] sm:$0xf0]  ;;  %v11471_v32 = vld [vmem:[#allocation7 + $0x54] sm:$0xf] }
  0x96   :  { %726 = vmatpush.bf16.msra.mxu1 %v7946_v8  ;;  %v8027_v8 = vld [vmem:[#allocation7 + $0x78] sm:$0xf0]  ;;  %v11505_v36 = vld [vmem:[#allocation7 + $0x164] sm:$0xf]  ;;  %v11514_v41 = vld [vmem:[#allocation7 + $0x1a4] sm:$0xf0] }
  0x97   :  { %1138 = vmatpush.bf16.msrb.mxu2 %v8002_v23  ;;  %v11478_v23 = vld [vmem:[#allocation7 + $0x84] sm:$0xf0]  ;;  %v8091_v31 = vld [vmem:[#allocation7 + $0xf8] sm:$0xf0]  ;;  %v11489_v42 = vld [vmem:[#allocation7 + $0xe4] sm:$0xf] }
  0x98   :  { %712 = vmatpush.bf16.msra.mxu3 %v7818_v9  ;;  %v8041_v9 = vld [vmem:[#allocation7 + $0x90] sm:$0xf]  ;;  %v8034_v25 = vor.u32 %v11478_v23, %v8033_v21  ;;  %v8011_v35 = vld [vmem:[#allocation7 + $0x58] sm:$0xf0]  ;;  %v11469_v46 = vld [vmem:[#allocation7 + $0x44] sm:$0xf] }
  0x99   :  { %v8042_v14 = vor.u32 %v11480_v11, %v8041_v9  ;;  %v8014_v38 = vor.u32 %v11471_v32, %v8011_v35  ;;  %v8003_v47 = vld [vmem:[#allocation7 + $0x48] sm:$0xf0]  ;;  %v8139_v50 = vld [vmem:[#allocation7 + $0x158] sm:$0xf0]  ;;  %v11467_v59 = vld [vmem:[#allocation7 + $0x34] sm:$0xf] }
  0x9a   :  { %1149 = vmatpush.bf16.msrb.mxu1 %v8090_v10  ;;  %v8030_v10 = vor.u32 %v11475_v7, %v8027_v8  ;;  %v8075_v57 = vld [vmem:[#allocation7 + $0xd8] sm:$0xf0]  ;;  %v11501_v62 = vld [vmem:[#allocation7 + $0x144] sm:$0xf]  ;;  %v8131_v63 = vld [vmem:[#allocation7 + $0x148] sm:$0xf0] }
  0x9b   :  { %713 = vmatmul.bf16.vlgmr.msra.gmra.mxu3 %v7798_v55  ;;  %1139 = vmatpush.bf16.msrb.mxu2 %v7994_v30  ;;  %v7978_v55 = vor.u32 %v11464_v54, %v7977_v52  ;;  %v11491_v30 = vld [vmem:[#allocation7 + $0xf4] sm:$0xf]  ;;  %v8169_v52 = vld [vmem:[#allocation7 + $0x190] sm:$0xf]  ;;  %v7995_v60 = vld [vmem:[#allocation7 + $0x38] sm:$0xf0] }
  0x9c   :  { %1177 = vmatpush.bf16.msrb.mxu3 %v8218_v40  ;;  %v8177_v40 = vld [vmem:[#allocation7 + $0x1a0] sm:$0xf]  ;;  %v11487_v54 = vld [vmem:[#allocation7 + $0xd4] sm:$0xf]  ;;  %v11510_v2 = vld [vmem:[#allocation7 + $0x184] sm:$0xf0] }
  0x9d   :  { %v8178_v43 = vor.u32 %v11514_v41, %v8177_v40  ;;  %v8161_v1 = vld [vmem:[#allocation7 + $0x180] sm:$0xf]  ;;  %v11523_v7 = vld [vmem:[#allocation7 + $0x1f4] sm:$0xf]  ;;  %v8219_v9 = vld [vmem:[#allocation7 + $0x1f8] sm:$0xf0] }
  0x9e   :  { %1150 = vmatpush.bf16.msrb.mxu1 %v8082_v19  ;;  %v11473_v19 = vld [vmem:[#allocation7 + $0x64] sm:$0xf]  ;;  %v8162_v5 = vor.u32 %v11510_v2, %v8161_v1  ;;  %v7987_v11 = vld [vmem:[#allocation7 + $0x28] sm:$0xf0]  ;;  %v8222_v12 = vor.u32 %v11523_v7, %v8219_v9  ;;  %v11483_v17 = vld [vmem:[#allocation7 + $0xb4] sm:$0xf] }
  0x9f   :  { %1140 = vmatpush.bf16.msrb.mxu2 %v7986_v44  ;;  %v8083_v44 = vld [vmem:[#allocation7 + $0xe8] sm:$0xf0]  ;;  %v11521_v21 = vld [vmem:[#allocation7 + $0x1e4] sm:$0xf]  ;;  %v11519_v32 = vld [vmem:[#allocation7 + $0x1d4] sm:$0xf] }
  0xa0   :  { %1178 = vmatpush.bf16.msrb.mxu3 %v8210_v53  ;;  %v8086_v45 = vor.u32 %v11489_v42, %v8083_v44  ;;  %v11512_v53 = vld [vmem:[#allocation7 + $0x194] sm:$0xf0]  ;;  %s13469_s13 = sld [smem:[#allocation45_spill]]  ;;  %v11495_v41 = vld [vmem:[#allocation7 + $0x114] sm:$0xf]  ;;  %vm3698_vm3 = vcmask 523264  }
  0xa1   :  { %7966 = vmatmul.msk.bf16.vlgmr.msra.gmra.mxu1 %vm617_vm0, %v13066_v34  ;;  %v8138_v34 = vor.u32 %v11504_v24, %v8137_v22  ;;  %v8022_v22 = vor.u32 %v11473_v19, %v8019_v20  ;;  %v11507_v24 = vld [vmem:[#allocation7 + $0x174] sm:$0xf]  ;;  %v8170_v56 = vor.u32 %v11512_v53, %v8169_v52  ;;  %v8107_v42 = vld [vmem:[#allocation7 + $0x118] sm:$0xf0]  ;;  %v11493_v53 = vld [vmem:[#allocation7 + $0x104] sm:$0xf] }
  0xa2   :  { %1151 = vmatpush.bf16.msrb.mxu1 %v8074_v27  ;;  %v11516_v27 = vld [vmem:[#allocation7 + $0x1b4] sm:$0xf0]  ;;  %v8158_v28 = vor.u32 %v11507_v24, %v8155_v26  ;;  %v11463_v24 = vld [vmem:[#allocation7 + $0x14] sm:$0xf]  ;;  %v8179_v7 = vld [vmem:[#allocation7 + $0x1a8] sm:$0xf0] }
  0xa3   :  { %1165 = vmatpush.bf16.msrb.mxu0 %v8138_v34  ;;  %1141 = vmatpush.bf16.msrb.mxu2 %v7978_v55  ;;  %v8185_v34 = vld [vmem:[#allocation7 + $0x1b0] sm:$0xf]  ;;  %v11479_v44 = vld [vmem:[#allocation7 + $0x94] sm:$0xf]  ;;  %s13470_s1 = sld [smem:[#allocation49_spill]] }
  0xa4   :  { %1179 = vmatpush.bf16.msrb.mxu3 %v8202_v0  ;;  %v8186_v29 = vor.u32 %v11516_v27, %v8185_v34  ;;  %v8134_v0 = vor.u32 %v11501_v62, %v8131_v63  ;;  %v11497_v34 = vld [vmem:[#allocation7 + $0x124] sm:$0xf]  ;;  %v8115_v27 = vld [vmem:[#allocation7 + $0x128] sm:$0xf0]  ;;  %s13471_s12 = sld [smem:[#allocation42_spill]] }
  0xa5   :  { %s13472_s26 = sld [smem:[#allocation51_spill]] }
  0xa6   :  { %1152 = vmatpush.bf16.msrb.mxu1 %v8066_v37  ;;  %v8147_v37 = vld [vmem:[#allocation7 + $0x168] sm:$0xf0]  ;;  %s13473_s23 = sld [smem:[#allocation52_spill]] }
  0xa7   :  { %1166 = vmatpush.bf16.msrb.mxu0 %v8130_v33  ;;  %1142 = vmatpush.bf16.msrb.mxu2 %v7970_v3  ;;  %v8094_v33 = vor.u32 %v11491_v30, %v8091_v31  ;;  %v8150_v39 = vor.u32 %v11505_v36, %v8147_v37  ;;  %v11485_v3 = vld [vmem:[#allocation7 + $0xc4] sm:$0xf]  ;;  %v8051_v30 = vld [vmem:[#allocation7 + $0xa8] sm:$0xf0]  ;;  %s13474_s9 = sld [smem:[#allocation53_spill]] }
  0xa8   :  { %1180 = vmatpush.bf16.msrb.mxu3 %v8194_v15  ;;  %v8123_v15 = vld [vmem:[#allocation7 + $0x138] sm:$0xf0]  ;;  %v11461_v36 = vld [vmem:[#allocation7 + $0x4] sm:$0xf]  ;;  %v7971_v37 = vld [vmem:[#allocation7 + $0x8] sm:$0xf0] }
  0xa9   :  { %v7974_v40 = vor.u32 %v11461_v36, %v7971_v37 }
  0xaa   :  { %1153 = vmatpush.bf16.msrb.mxu1 %v8058_v49  ;;  %v11503_v49 = vld [vmem:[#allocation7 + $0x154] sm:$0xf] }
  0xab   :  { %1167 = vmatpush.bf16.msrb.mxu0 %v8122_v48  ;;  %1191 = vmatpush.bf16.msra.mxu2 %v8030_v10  ;;  %v8006_v48 = vor.u32 %v11469_v46, %v8003_v47  ;;  %v8142_v51 = vor.u32 %v11503_v49, %v8139_v50  ;;  %v11465_v10 = vld [vmem:[#allocation7 + $0x24] sm:$0xf]  ;;  %v8195_v50 = vld [vmem:[#allocation7 + $0x1c8] sm:$0xf0] }
  0xac   :  { %1181 = vmatpush.bf16.msrb.mxu3 %v8186_v29  ;;  %v7990_v13 = vor.u32 %v11465_v10, %v7987_v11  ;;  %v11481_v29 = vld [vmem:[#allocation7 + $0xa4] sm:$0xf]  ;;  %v11511_v11 = vld [vmem:[#allocation7 + $0x194] sm:$0xf] }
  0xad   :  { %v8054_v31 = vor.u32 %v11481_v29, %v8051_v30  ;;  %v11517_v49 = vld [vmem:[#allocation7 + $0x1c4] sm:$0xf] }
  0xae   :  { %1154 = vmatpush.bf16.msrb.mxu1 %v8050_v61  ;;  %v7998_v61 = vor.u32 %v11467_v59, %v7995_v60  ;;  %v8198_v52 = vor.u32 %v11517_v49, %v8195_v50  ;;  %v11515_v60 = vld [vmem:[#allocation7 + $0x1b4] sm:$0xf] }
  0xaf   :  { %1168 = vmatpush.bf16.msrb.mxu0 %v8114_v58  ;;  %1192 = vmatpush.bf16.msra.mxu2 %v8022_v22  ;;  %v8078_v58 = vor.u32 %v11487_v54, %v8075_v57  ;;  %v8211_v22 = vld [vmem:[#allocation7 + $0x1e8] sm:$0xf0]  ;;  %v11477_v57 = vld [vmem:[#allocation7 + $0x84] sm:$0xf]  ;;  %v11573_v50 = vld [vmem:[#allocation12 + $0xcc] sm:$0xf0] }
  0xb0   :  { %1182 = vmatpush.bf16.msrb.mxu3 %v8178_v43  ;;  %v8214_v23 = vor.u32 %v11521_v21, %v8211_v22  ;;  %v8110_v43 = vor.u32 %v11495_v41, %v8107_v42  ;;  %v8099_v54 = vld [vmem:[#allocation7 + $0x108] sm:$0xf0]  ;;  %v11509_v21 = vld [vmem:[#allocation7 + $0x184] sm:$0xf] }
  0xb1   :  { %v8163_v22 = vld [vmem:[#allocation7 + $0x188] sm:$0xf0] }
  0xb2   :  { %1155 = vmatpush.bf16.msrb.mxu1 %v8042_v14  ;;  %v11499_v14 = vld [vmem:[#allocation7 + $0x134] sm:$0xf] }
  0xb3   :  { %1169 = vmatpush.bf16.msrb.mxu0 %v8106_v6  ;;  %1193 = vmatpush.bf16.msra.mxu2 %v8014_v38  ;;  %v8067_v6 = vld [vmem:[#allocation7 + $0xc8] sm:$0xf0]  ;;  %v8126_v16 = vor.u32 %v11499_v14, %v8123_v15 }
  0xb4   :  { %1183 = vmatpush.bf16.msrb.mxu3 %v8170_v56  ;;  %v8070_v8 = vor.u32 %v11485_v3, %v8067_v6  ;;  %v8102_v56 = vor.u32 %v11493_v53, %v8099_v54  ;;  %v11513_v6 = vld [vmem:[#allocation7 + $0x1a4] sm:$0xf] }
  0xb5   :  { %v8182_v10 = vor.u32 %v11513_v6, %v8179_v7  ;;  %v8521_v6 = vld [vmem:[#allocation12 + $0x1a0] sm:$0xf]  ;;  %v11601_v7 = vld [vmem:[#allocation12 + $0x1ac] sm:$0xf0] }
  0xb6   :  { %1156 = vmatpush.bf16.msrb.mxu1 %v8034_v25  ;;  %v7979_v25 = vld [vmem:[#allocation7 + $0x18] sm:$0xf0] }
  0xb7   :  { %1170 = vmatpush.bf16.msrb.mxu0 %v8098_v18  ;;  %1194 = vmatpush.bf16.msra.mxu2 %v8006_v48  ;;  %v8059_v18 = vld [vmem:[#allocation7 + $0xb8] sm:$0xf0]  ;;  %v7982_v26 = vor.u32 %v11463_v24, %v7979_v25 }
  0xb8   :  { %1184 = vmatpush.bf16.msrb.mxu3 %v8162_v5  ;;  %v8062_v20 = vor.u32 %v11483_v17, %v8059_v18 }
  0xba   :  { %1205 = vmatpush.bf16.msra.mxu1 %v8094_v33  ;;  %v8203_v33 = vld [vmem:[#allocation7 + $0x1d8] sm:$0xf0] }
  0xbb   :  { %1219 = vmatpush.bf16.msra.mxu0 %v8158_v28  ;;  %1195 = vmatpush.bf16.msra.mxu2 %v7998_v61  ;;  %v8118_v28 = vor.u32 %v11497_v34, %v8115_v27  ;;  %v8206_v35 = vor.u32 %v11519_v32, %v8203_v33  ;;  %v8187_v61 = vld [vmem:[#allocation7 + $0x1b8] sm:$0xf0] }
  0xbc   :  { %1233 = vmatpush.bf16.msra.mxu3 %v8222_v12  ;;  %v8190_v63 = vor.u32 %v11515_v60, %v8187_v61  ;;  %v8171_v12 = vld [vmem:[#allocation7 + $0x198] sm:$0xf0] }
  0xbd   :  { %v8174_v17 = vor.u32 %v11511_v11, %v8171_v12  ;;  %v11526_v11 = vld [vmem:[#allocation10 + $0x8] sm:$0xff] }
  0xbe   :  { %1206 = vmatpush.bf16.msra.mxu1 %v8086_v45  ;;  %v8043_v45 = vld [vmem:[#allocation7 + $0x98] sm:$0xf0]  ;;  %v11538_v12 = vld [vmem:[#allocation10 + $0x68] sm:$0xff] }
  0xbf   :  { %1220 = vmatpush.bf16.msra.mxu0 %v8150_v39  ;;  %1196 = vmatpush.bf16.msra.mxu2 %v7990_v13  ;;  %v13091_v39 = vld [vmem:[%s13469_s13] sm:$0xf]  ;;  %v8046_v48 = vor.u32 %v11479_v44, %v8043_v45  ;;  %v8425_v44 = vld [vmem:[#allocation12 + $0xe0] sm:$0xf] }
  0xc0   :  { %1234 = vmatpush.bf16.msra.mxu3 %v8214_v23  ;;  %v402_v1 = vperm.slane %v13091_v39, 2  ;;  %v401_v3 = vperm.slane %v13091_v39, 1  ;;  %v403_v37 = vperm.slane %v13091_v39, 3  ;;  %v11577_v45 = vld [vmem:[#allocation12 + $0xec] sm:$0xf0] }
  0xc2   :  { %1207 = vmatpush.bf16.msra.mxu1 %v8078_v58  ;;  %v8035_v58 = vld [vmem:[#allocation7 + $0x88] sm:$0xf0] }
  0xc3   :  { %1221 = vmatpush.bf16.msra.mxu0 %v8142_v51  ;;  %1197 = vmatpush.bf16.msra.mxu2 %v7982_v26  ;;  %v400_v51 = vperm.slane %v13091_v39, 0  ;;  %v8038_v59 = vor.u32 %v11477_v57, %v8035_v58  ;;  %v11530_v39 = vld [vmem:[#allocation10 + $0x28] sm:$0xff]  ;;  %v11529_v57 = vld [vmem:[#allocation10 + $0x20] sm:$0xff] }
  0xc4   :  { %1235 = vmatpush.bf16.msra.mxu3 %v8206_v35  ;;  %v8553_v58 = vld [vmem:[#allocation12 + $0x1e0] sm:$0xf] }
  0xc6   :  { %1208 = vmatpush.bf16.msra.mxu1 %v8070_v8 }
  0xc7   :  { %1222 = vmatpush.bf16.msra.mxu0 %v8134_v0  ;;  %1198 = vmatpush.bf16.msra.mxu2 %v7974_v40  ;;  %v11532_v40 = vld [vmem:[#allocation10 + $0x38] sm:$0xff] }
  0xc8   :  { %1236 = vmatpush.bf16.msra.mxu3 %v8198_v52 }
  0xca   :  { %1209 = vmatpush.bf16.msra.mxu1 %v8062_v20 }
  0xcb   :  { %1223 = vmatpush.bf16.msra.mxu0 %v8126_v16 }
  0xcc   :  { %1237 = vmatpush.bf16.msra.mxu3 %v8190_v63 }
  0xce   :  { %1210 = vmatpush.bf16.msra.mxu1 %v8054_v31 }
  0xcf   :  { %1224 = vmatpush.bf16.msra.mxu0 %v8118_v28  ;;  %v8166_v28 = vor.u32 %v11509_v21, %v8163_v22  ;;  %v11565_v21 = vld [vmem:[#allocation12 + $0x8c] sm:$0xf0]  ;;  %v8681_v22 = vld [vmem:[#allocation12 + $0x2e0] sm:$0xf] }
  0xd0   :  { %1238 = vmatpush.bf16.msra.mxu3 %v8182_v10  ;;  %v11569_v10 = vld [vmem:[#allocation12 + $0xac] sm:$0xf0] }
  0xd2   :  { %1211 = vmatpush.bf16.msra.mxu1 %v8046_v48  ;;  %v8409_v48 = vld [vmem:[#allocation12 + $0xc0] sm:$0xf] }
  0xd3   :  { %1225 = vmatpush.bf16.msra.mxu0 %v8110_v43  ;;  %v11540_v43 = vld [vmem:[#allocation10 + $0x78] sm:$0xff] }
  0xd4   :  { %1239 = vmatpush.bf16.msra.mxu3 %v8174_v17  ;;  %v11525_v17 = vld [vmem:[#allocation10] sm:$0xff] }
  0xd6   :  { %1212 = vmatpush.bf16.msra.mxu1 %v8038_v59  ;;  %v11609_v59 = vld [vmem:[#allocation12 + $0x1ec] sm:$0xf0] }
  0xd7   :  { %1226 = vmatpush.bf16.msra.mxu0 %v8102_v56 }
  0xd8   :  { %1240 = vmatpush.bf16.msra.mxu3 %v8166_v28  ;;  %v11561_v28 = vld [vmem:[#allocation12 + $0x6c] sm:$0xf0] }
  0xee   :  { %v13084_v4 = vpop.f32.mrf.mxu1 }
  0xf6   :  { %v13082_v55 = vpop.f32.mrf.mxu3  ;;  %v646_v38 = vpop.f32.mrf.mxu1 }
  0xfe   :  { %v13086_v19 = vpop.f32.mrf.mxu3 }
 0x105   :  { %v630_v47 = vpop.f32.mrf.mxu0 }
 0x106   :  { %v700_v46 = vpop.f32.mrf.mxu3  ;;  %v631_v62 = vadd.f32 %v630_v47, %v400_v51  ;;  %v11539_v47 = vld [vmem:[#allocation10 + $0x70] sm:$0xff] }
 0x108   :  { %v645_v8 = vadd.f32 %v13084_v4, %v631_v62  ;;  %v8554_v62 = vor.u32 %v11609_v59, %v8553_v58  ;;  %v11737_v58 = vld [vmem:[#allocation12 + $0x5ec] sm:$0xf0] }
 0x10a   :  { %v733_v18 = vmax.f32 %v645_v8, 0.0  ;;  %v8522_v8 = vor.u32 %v11601_v7, %v8521_v6  ;;  %v8937_v6 = vld [vmem:[#allocation12 + $0x4e0] sm:$0xf] }
 0x10d   :  { %v658_v2 = vpop.f32.mrf.mxu2  ;;  %v632_v5 = vpop.f32.mrf.mxu0 }
 0x10e   :  { %v686_v0 = vpop.f32.mrf.mxu1  ;;  %v633_v9 = vadd.f32 %v632_v5, %v400_v51  ;;  %v702_v13 = vpop.f32.mrf.mxu3  ;;  %v659_v16 = vadd.f32 %v658_v2, %v401_v3  ;;  %v8410_v51 = vor.u32 %v11573_v50, %v8409_v48  ;;  %v11605_v2 = vld [vmem:[#allocation12 + $0x1cc] sm:$0xf0] }
 0x10f   :  { %v687_v14 = vadd.f32 %v686_v0, %v402_v1  ;;  %v11528_v0 = vld [vmem:[#allocation10 + $0x18] sm:$0xff]  ;;  %v11527_v5 = vld [vmem:[#allocation10 + $0x10] sm:$0xff] }
 0x110   :  { %v647_v15 = vadd.f32 %v646_v38, %v633_v9  ;;  %v673_v4 = vadd.f32 %v13082_v55, %v659_v16  ;;  %v11531_v55 = vld [vmem:[#allocation10 + $0x30] sm:$0xff]  ;;  %v8393_v9 = vld [vmem:[#allocation12 + $0xa0] sm:$0xf] }
 0x111   :  { %v701_v24 = vadd.f32 %v700_v46, %v687_v14  ;;  %v8426_v46 = vor.u32 %v11577_v45, %v8425_v44  ;;  %v8505_v14 = vld [vmem:[#allocation12 + $0x180] sm:$0xf]  ;;  %v11553_v48 = vld [vmem:[#allocation12 + $0x2c] sm:$0xf0] }
 0x112   :  { %v737_v20 = vmax.f32 %v647_v15, 0.0  ;;  %v734_v35 = vmax.f32 %v673_v4, 0.0  ;;  %v11597_v15 = vld [vmem:[#allocation12 + $0x18c] sm:$0xf0]  ;;  %v8457_v44 = vld [vmem:[#allocation12 + $0x120] sm:$0xf] }
 0x113   :  { %v735_v32 = vmax.f32 %v701_v24, 0.0  ;;  %v8506_v16 = vor.u32 %v11597_v15, %v8505_v14  ;;  %v11621_v14 = vld [vmem:[#allocation12 + $0x24c] sm:$0xf0]  ;;  %v8793_v15 = vld [vmem:[#allocation12 + $0x3c0] sm:$0xf] }
 0x114   :  { %v741_v34 = vpack.c.bf16 %v737_v20, %v733_v18  ;;  %v11537_v18 = vld [vmem:[#allocation10 + $0x60] sm:$0xff] }
 0x115   :  { %v660_v26 = vpop.f32.mrf.mxu2  ;;  %v8377_v20 = vld [vmem:[#allocation12 + $0x80] sm:$0xf] }
 0x116   :  { %v688_v23 = vpop.f32.mrf.mxu1  ;;  %v661_v27 = vadd.f32 %v660_v26, %v401_v3  ;;  %1143 = vmatmul.bf16.vlgmr.msrb.gmra.mxu2 %v741_v34  ;;  %v8378_v24 = vor.u32 %v11565_v21, %v8377_v20  ;;  %v8489_v26 = vld [vmem:[#allocation12 + $0x160] sm:$0xf]  ;;  %v11701_v20 = vld [vmem:[#allocation12 + $0x4cc] sm:$0xf0] }
 0x117   :  { %v689_v25 = vadd.f32 %v688_v23, %v402_v1  ;;  %1385 = vmatpush.bf16.msrb.mxu2 %v11532_v40  ;;  %v8537_v1 = vld [vmem:[#allocation12 + $0x1c0] sm:$0xf]  ;;  %v11641_v23 = vld [vmem:[#allocation12 + $0x2ec] sm:$0xf0] }
 0x118   :  { %v675_v30 = vadd.f32 %v13086_v19, %v661_v27  ;;  %v8538_v3 = vor.u32 %v11605_v2, %v8537_v1  ;;  %v8361_v27 = vld [vmem:[#allocation12 + $0x60] sm:$0xf]  ;;  %v11625_v1 = vld [vmem:[#allocation12 + $0x26c] sm:$0xf0] }
 0x119   :  { %v703_v29 = vadd.f32 %v702_v13, %v689_v25  ;;  %v8394_v13 = vor.u32 %v11569_v10, %v8393_v9  ;;  %v8682_v25 = vor.u32 %v11641_v23, %v8681_v22  ;;  %v8345_v40 = vld [vmem:[#allocation12 + $0x40] sm:$0xf]  ;;  %v11733_v10 = vld [vmem:[#allocation12 + $0x5cc] sm:$0xf0] }
 0x11a   :  { %v738_v36 = vmax.f32 %v675_v30, 0.0  ;;  %v8362_v30 = vor.u32 %v11561_v28, %v8361_v27  ;;  %v9049_v9 = vld [vmem:[#allocation12 + $0x5c0] sm:$0xf]  ;;  %v11665_v28 = vld [vmem:[#allocation12 + $0x3ac] sm:$0xf0] }
 0x11b   :  { %v739_v33 = vmax.f32 %v703_v29, 0.0  ;;  %1386 = vmatpush.bf16.msrb.mxu2 %v11531_v55  ;;  %v11536_v29 = vld [vmem:[#allocation10 + $0x58] sm:$0xff]  ;;  %v8649_v55 = vld [vmem:[#allocation12 + $0x2a0] sm:$0xf] }
 0x11c   :  { %v742_v41 = vpack.c.bf16 %v738_v36, %v734_v35  ;;  %v8473_v35 = vld [vmem:[#allocation12 + $0x140] sm:$0xf]  ;;  %v11589_v36 = vld [vmem:[#allocation12 + $0x14c] sm:$0xf0] }
 0x11d   :  { %v743_v38 = vpack.c.bf16 %v739_v33, %v735_v32  ;;  %v11637_v32 = vld [vmem:[#allocation12 + $0x2cc] sm:$0xf0]  ;;  %v9033_v23 = vld [vmem:[#allocation12 + $0x5a0] sm:$0xf] }
 0x11e   :  { %v714_v31 = vpop.f32.mrf.mxu3  ;;  %v728_v42 = vpop.f32.mrf.mxu1  ;;  %1157 = vmatmul.bf16.vlgmr.msrb.gmra.mxu1 %v742_v41 }
 0x11f   :  { %1171 = vmatmul.bf16.vlgmr.msrb.gmra.mxu0 %v743_v38  ;;  %v715_v19 = vadd.f32 %v714_v31, %v403_v37  ;;  %1399 = vmatpush.bf16.msrb.mxu1 %v11540_v43  ;;  %v8665_v31 = vld [vmem:[#allocation12 + $0x2c0] sm:$0xf]  ;;  %v11633_v43 = vld [vmem:[#allocation12 + $0x2ac] sm:$0xf0] }
 0x120   :  { %2614 = vmatpush.bf16.msrb.mxu0 %v8426_v46  ;;  %1387 = vmatpush.bf16.msrb.mxu2 %v11530_v39  ;;  %v8666_v33 = vor.u32 %v11637_v32, %v8665_v31  ;;  %v8650_v45 = vor.u32 %v11633_v43, %v8649_v55  ;;  %v8633_v39 = vld [vmem:[#allocation12 + $0x280] sm:$0xf]  ;;  %v11693_v43 = vld [vmem:[#allocation12 + $0x48c] sm:$0xf0] }
 0x121   :  { %v729_v52 = vadd.f32 %v728_v42, %v715_v19  ;;  %v11585_v19 = vld [vmem:[#allocation12 + $0x12c] sm:$0xf0]  ;;  %v8889_v55 = vld [vmem:[#allocation12 + $0x480] sm:$0xf] }
 0x122   :  { %v8458_v46 = vor.u32 %v11585_v19, %v8457_v44  ;;  %v8890_v19 = vor.u32 %v11693_v43, %v8889_v55 }
 0x123   :  { %1400 = vmatpush.bf16.msrb.mxu1 %v11539_v47  ;;  %v736_v60 = vmax.f32 %v729_v52, 0.0  ;;  %v8329_v47 = vld [vmem:[#allocation12 + $0x20] sm:$0xf] }
 0x124   :  { %2615 = vmatpush.bf16.msrb.mxu0 %v8410_v51  ;;  %1388 = vmatpush.bf16.msrb.mxu2 %v11529_v57  ;;  %v8330_v50 = vor.u32 %v11553_v48, %v8329_v47  ;;  %v11629_v51 = vld [vmem:[#allocation12 + $0x28c] sm:$0xf0]  ;;  %v9065_v57 = vld [vmem:[#allocation12 + $0x5e0] sm:$0xf] }
 0x125   :  { %v8634_v52 = vor.u32 %v11629_v51, %v8633_v39  ;;  %v9066_v59 = vor.u32 %v11737_v58, %v9065_v57  ;;  %v11721_v47 = vld [vmem:[#allocation12 + $0x56c] sm:$0xf0]  ;;  %v8873_v39 = vld [vmem:[#allocation12 + $0x460] sm:$0xf] }
 0x126   :  { %v716_v49 = vpop.f32.mrf.mxu3  ;;  %v730_v54 = vpop.f32.mrf.mxu1  ;;  %1199 = vmatmul.bf16.vlgmr.msra.gmra.mxu2 %v741_v34  ;;  %v11593_v34 = vld [vmem:[#allocation12 + $0x16c] sm:$0xf0] }
 0x127   :  { %v717_v53 = vadd.f32 %v716_v49, %v403_v37  ;;  %1401 = vmatpush.bf16.msrb.mxu1 %v11538_v12  ;;  %v8490_v4 = vor.u32 %v11593_v34, %v8489_v26  ;;  %v8474_v37 = vor.u32 %v11589_v36, %v8473_v35  ;;  %v11534_v49 = vld [vmem:[#allocation10 + $0x48] sm:$0xff]  ;;  %v9050_v12 = vor.u32 %v11733_v10, %v9049_v9  ;;  %v8585_v26 = vld [vmem:[#allocation12 + $0x220] sm:$0xf]  ;;  %v11617_v34 = vld [vmem:[#allocation12 + $0x22c] sm:$0xf0] }
 0x128   :  { %1389 = vmatpush.bf16.msrb.mxu2 %v11528_v0  ;;  %2616 = vmatpush.bf16.msrb.mxu0 %v8394_v13  ;;  %v8617_v0 = vld [vmem:[#allocation12 + $0x260] sm:$0xf]  ;;  %v8586_v27 = vor.u32 %v11617_v34, %v8585_v26  ;;  %v11725_v35 = vld [vmem:[#allocation12 + $0x58c] sm:$0xf0] }
 0x129   :  { %v731_v56 = vadd.f32 %v730_v54, %v717_v53  ;;  %v8441_v53 = vld [vmem:[#allocation12 + $0x100] sm:$0xf]  ;;  %v11581_v54 = vld [vmem:[#allocation12 + $0x10c] sm:$0xf0]  ;;  %v8618_v2 = vor.u32 %v11625_v1, %v8617_v0  ;;  %v13100_v0 = vld [vmem:[#allocation9] sm:$0x3] }
 0x12a   :  { %v8601_v13 = vld [vmem:[#allocation12 + $0x240] sm:$0xf]  ;;  %v11649_v9 = vld [vmem:[#allocation12 + $0x32c] sm:$0xf0] }
 0x12b   :  { %v740_v61 = vmax.f32 %v731_v56, 0.0  ;;  %1402 = vmatpush.bf16.msrb.mxu1 %v11537_v18  ;;  %v8442_v56 = vor.u32 %v11581_v54, %v8441_v53  ;;  %v8921_v18 = vld [vmem:[#allocation12 + $0x4c0] sm:$0xf] }
 0x12c   :  { %1390 = vmatpush.bf16.msrb.mxu2 %v11527_v5  ;;  %2617 = vmatpush.bf16.msrb.mxu0 %v8378_v24  ;;  %v11673_v5 = vld [vmem:[#allocation12 + $0x3ec] sm:$0xf0]  ;;  %v8922_v22 = vor.u32 %v11701_v20, %v8921_v18  ;;  %v8985_v54 = vld [vmem:[#allocation12 + $0x540] sm:$0xf]  ;;  %v8291_v20 = vld [vmem:[#allocation2 + $0x18] sm:$0xf0] }
 0x12d   :  { %v744_v63 = vpack.c.bf16 %v740_v61, %v736_v60  ;;  %v8313_v60 = vld [vmem:[#allocation12] sm:$0xf]  ;;  %v11549_v61 = vld [vmem:[#allocation12 + $0xc] sm:$0xf0] }
 0x12e   :  { %1213 = vmatmul.bf16.vlgmr.msra.gmra.mxu1 %v742_v41  ;;  %v11557_v41 = vld [vmem:[#allocation12 + $0x4c] sm:$0xf0]  ;;  %v8841_v10 = vld [vmem:[#allocation12 + $0x420] sm:$0xf] }
 0x12f   :  { %1185 = vmatmul.bf16.vlgmr.msrb.gmra.mxu3 %v744_v63  ;;  %1227 = vmatmul.bf16.vlgmr.msra.gmra.mxu0 %v743_v38  ;;  %v11535_v38 = vld [vmem:[#allocation10 + $0x50] sm:$0xff]  ;;  %v8346_v42 = vor.u32 %v11557_v41, %v8345_v40  ;;  %v8761_v40 = vld [vmem:[#allocation12 + $0x380] sm:$0xf] }
 0x130   :  { %2628 = vmatpush.bf16.msrb.mxu3 %v8554_v62  ;;  %1391 = vmatpush.bf16.msrb.mxu2 %v11526_v11  ;;  %v11533_v62 = vld [vmem:[#allocation10 + $0x40] sm:$0xff]  ;;  %v11729_v24 = vld [vmem:[#allocation12 + $0x5ac] sm:$0xf0] }
 0x131   :  { %1403 = vmatpush.bf16.msrb.mxu1 %v11536_v29  ;;  %2618 = vmatpush.bf16.msrb.mxu0 %v8362_v30  ;;  %v8905_v29 = vld [vmem:[#allocation12 + $0x4a0] sm:$0xf]  ;;  %v11697_v30 = vld [vmem:[#allocation12 + $0x4ac] sm:$0xf0] }
 0x132   :  { %v8906_v32 = vor.u32 %v11697_v30, %v8905_v29  ;;  %v11541_v18 = vld [vmem:[#allocation2 + $0x4] sm:$0xf]  ;;  %v8289_v29 = vld [vmem:[#allocation2] sm:$0xf] }
 0x134   :  { %2629 = vmatpush.bf16.msrb.mxu3 %v8538_v3  ;;  %1392 = vmatpush.bf16.msrb.mxu2 %v11525_v17  ;;  %v8809_v3 = vld [vmem:[#allocation12 + $0x3e0] sm:$0xf]  ;;  %v11669_v17 = vld [vmem:[#allocation12 + $0x3cc] sm:$0xf0] }
 0x135   :  { %1404 = vmatpush.bf16.msrb.mxu1 %v11535_v38  ;;  %2619 = vmatpush.bf16.msrb.mxu0 %v8346_v42  ;;  %v8810_v7 = vor.u32 %v11673_v5, %v8809_v3  ;;  %v8794_v21 = vor.u32 %v11669_v17, %v8793_v15  ;;  %v11613_v38 = vld [vmem:[#allocation12 + $0x20c] sm:$0xf0]  ;;  %v8953_v15 = vld [vmem:[#allocation12 + $0x500] sm:$0xf] }
 0x136   :  { %v11661_v42 = vld [vmem:[#allocation12 + $0x38c] sm:$0xf0] }
 0x137   :  { %v11713_v3 = vld [vmem:[#allocation12 + $0x52c] sm:$0xf0] }
 0x138   :  { %2630 = vmatpush.bf16.msrb.mxu3 %v8522_v8  ;;  %2642 = vmatpush.bf16.msra.mxu2 %v8682_v25  ;;  %v11705_v8 = vld [vmem:[#allocation12 + $0x4ec] sm:$0xf0]  ;;  %v9034_v25 = vor.u32 %v11729_v24, %v9033_v23  ;;  %v8811_v23 = vld [vmem:[#allocation12 + $0x3f0] sm:$0xf0]  ;;  %v8697_v24 = vld [vmem:[#allocation12 + $0x300] sm:$0xf] }
 0x139   :  { %1405 = vmatpush.bf16.msrb.mxu1 %v11534_v49  ;;  %2620 = vmatpush.bf16.msrb.mxu0 %v8330_v50  ;;  %v8938_v11 = vor.u32 %v11705_v8, %v8937_v6  ;;  %v8745_v49 = vld [vmem:[#allocation12 + $0x360] sm:$0xf]  ;;  %v11657_v50 = vld [vmem:[#allocation12 + $0x36c] sm:$0xf0] }
 0x13a   :  { %v8746_v51 = vor.u32 %v11657_v50, %v8745_v49  ;;  %v8713_v8 = vld [vmem:[#allocation12 + $0x320] sm:$0xf]  ;;  %v11663_v49 = vld [vmem:[#allocation12 + $0x3a4] sm:$0xf]  ;;  %v8779_v50 = vld [vmem:[#allocation12 + $0x3b0] sm:$0xf0] }
 0x13c   :  { %2631 = vmatpush.bf16.msrb.mxu3 %v8506_v16  ;;  %2643 = vmatpush.bf16.msra.mxu2 %v8666_v33  ;;  %v8602_v16 = vor.u32 %v11621_v14, %v8601_v13  ;;  %v9017_v33 = vld [vmem:[#allocation12 + $0x580] sm:$0xf]  ;;  %v11681_v13 = vld [vmem:[#allocation12 + $0x42c] sm:$0xf0] }
 0x13d   :  { %1406 = vmatpush.bf16.msrb.mxu1 %v11533_v62  ;;  %v9018_v36 = vor.u32 %v11725_v35, %v9017_v33  ;;  %v8842_v14 = vor.u32 %v11681_v13, %v8841_v10  ;;  %v11543_v10 = vld [vmem:[#allocation2 + $0x14] sm:$0xf] }
 0x13f   :  { %1241 = vmatmul.bf16.vlgmr.msra.gmra.mxu3 %v744_v63  ;;  %v8314_v63 = vor.u32 %v11549_v61, %v8313_v60  ;;  %v11653_v60 = vld [vmem:[#allocation12 + $0x34c] sm:$0xf0]  ;;  %v8857_v61 = vld [vmem:[#allocation12 + $0x440] sm:$0xf] }
 0x140   :  { %2632 = vmatpush.bf16.msrb.mxu3 %v8490_v4  ;;  %2644 = vmatpush.bf16.msra.mxu2 %v8650_v45  ;;  %v8777_v4 = vld [vmem:[#allocation12 + $0x3a0] sm:$0xf]  ;;  %v8762_v45 = vor.u32 %v11661_v42, %v8761_v40  ;;  %v11667_v40 = vld [vmem:[#allocation12 + $0x3c4] sm:$0xf] }
 0x141   :  { %2621 = vmatpush.bf16.msrb.mxu0 %v8314_v63  ;;  %2656 = vmatpush.bf16.msra.mxu1 %v8810_v7  ;;  %v8778_v31 = vor.u32 %v11665_v28, %v8777_v4  ;;  %v11685_v63 = vld [vmem:[#allocation12 + $0x44c] sm:$0xf0] }
 0x142   :  { %v8858_v1 = vor.u32 %v11685_v63, %v8857_v61  ;;  %v11677_v28 = vld [vmem:[#allocation12 + $0x40c] sm:$0xf0] }
 0x144   :  { %2633 = vmatpush.bf16.msrb.mxu3 %v8474_v37  ;;  %2645 = vmatpush.bf16.msra.mxu2 %v8634_v52  ;;  %v8569_v37 = vld [vmem:[#allocation12 + $0x200] sm:$0xf]  ;;  %v11689_v52 = vld [vmem:[#allocation12 + $0x46c] sm:$0xf0] }
 0x145   :  { %2670 = vmatpush.bf16.msra.mxu0 %v8938_v11  ;;  %2657 = vmatpush.bf16.msra.mxu1 %v8794_v21  ;;  %v8570_v41 = vor.u32 %v11613_v38, %v8569_v37  ;;  %v8874_v53 = vor.u32 %v11689_v52, %v8873_v39  ;;  %v811_v11 = vperm.slane %v13100_v0, 0  ;;  %v11671_v21 = vld [vmem:[#allocation12 + $0x3e4] sm:$0xf]  ;;  %v8683_v38 = vld [vmem:[#allocation12 + $0x2f0] sm:$0xf0]  ;;  %v8782_v39 = vor.u32 %v11663_v49, %v8779_v50 }
 0x146   :  { %v8814_v34 = vor.u32 %v11671_v21, %v8811_v23  ;;  %v11631_v52 = vld [vmem:[#allocation12 + $0x2a4] sm:$0xf]  ;;  %v8411_v21 = vld [vmem:[#allocation12 + $0xd0] sm:$0xf0] }
 0x147   :  { %v11615_v50 = vld [vmem:[#allocation12 + $0x224] sm:$0xf] }
 0x148   :  { %2634 = vmatpush.bf16.msrb.mxu3 %v8458_v46  ;;  %2646 = vmatpush.bf16.msra.mxu2 %v8618_v2  ;;  %v9001_v46 = vld [vmem:[#allocation12 + $0x560] sm:$0xf] }
 0x149   :  { %2671 = vmatpush.bf16.msra.mxu0 %v8922_v22  ;;  %2658 = vmatpush.bf16.msra.mxu1 %v8778_v31  ;;  %v9002_v48 = vor.u32 %v11721_v47, %v9001_v46  ;;  %v8969_v2 = vld [vmem:[#allocation12 + $0x520] sm:$0xf]  ;;  %v13103_v22 = vor.u32 %v11541_v18, %v8291_v20  ;;  %v8667_v46 = vld [vmem:[#allocation12 + $0x2d0] sm:$0xf0]  ;;  %v11571_v20 = vld [vmem:[#allocation12 + $0xc4] sm:$0xf] }
 0x14a   :  { %v8970_v5 = vor.u32 %v11713_v3, %v8969_v2  ;;  %v11575_v2 = vld [vmem:[#allocation12 + $0xe4] sm:$0xf]  ;;  %v8427_v3 = vld [vmem:[#allocation12 + $0xf0] sm:$0xf0] }
 0x14c   :  { %2635 = vmatpush.bf16.msrb.mxu3 %v8442_v56  ;;  %2647 = vmatpush.bf16.msra.mxu2 %v8602_v16  ;;  %v11717_v56 = vld [vmem:[#allocation12 + $0x54c] sm:$0xf0] }
 0x14d   :  { %2672 = vmatpush.bf16.msra.mxu0 %v8906_v32  ;;  %2659 = vmatpush.bf16.msra.mxu1 %v8762_v45  ;;  %v8986_v57 = vor.u32 %v11717_v56, %v8985_v54  ;;  %v11709_v16 = vld [vmem:[#allocation12 + $0x50c] sm:$0xf0]  ;;  %v11544_v32 = vld [vmem:[#allocation2 + $0x14] sm:$0xf0] }
 0x14e   :  { %v8954_v17 = vor.u32 %v11709_v16, %v8953_v15  ;;  %v13106_v35 = vor.u32 %v11544_v32, %v8289_v29  ;;  %v11655_v15 = vld [vmem:[#allocation12 + $0x364] sm:$0xf]  ;;  %v8747_v16 = vld [vmem:[#allocation12 + $0x370] sm:$0xf0] }
 0x14f   :  { %2636 = vmatmul.bf16.vlgmr.msrb.gmra.mxu3 %v13103_v22  ;;  %v8750_v23 = vor.u32 %v11655_v15, %v8747_v16  ;;  %v11546_v29 = vld [vmem:[#allocation2 + $0x24] sm:$0xf0]  ;;  %v11542_v16 = vld [vmem:[#allocation2 + $0xc] sm:$0xf] }
 0x150   :  { %2684 = vmatpush.bf16.msra.mxu3 %v9066_v59  ;;  %2648 = vmatpush.bf16.msra.mxu2 %v8586_v27  ;;  %v8729_v59 = vld [vmem:[#allocation12 + $0x340] sm:$0xf] }
 0x151   :  { %2673 = vmatpush.bf16.msra.mxu0 %v8890_v19  ;;  %2660 = vmatpush.bf16.msra.mxu1 %v8746_v51  ;;  %v8730_v62 = vor.u32 %v11653_v60, %v8729_v59  ;;  %v8825_v27 = vld [vmem:[#allocation12 + $0x400] sm:$0xf]  ;;  %v11635_v19 = vld [vmem:[#allocation12 + $0x2c4] sm:$0xf]  ;;  %v8763_v59 = vld [vmem:[#allocation12 + $0x390] sm:$0xf0] }
 0x152   :  { %v8826_v31 = vor.u32 %v11677_v28, %v8825_v27  ;;  %2622 = vmatmul.bf16.vlgmr.msrb.gmra.mxu0 %v13106_v35  ;;  %v812_v60 = vperm.slane %v13100_v0, 1  ;;  %v8414_v28 = vor.u32 %v11571_v20, %v8411_v21  ;;  %v8433_v21 = vld [vmem:[#allocation12 + $0xe8] sm:$0xf] }
 0x154   :  { %2685 = vmatpush.bf16.msra.mxu3 %v9050_v12  ;;  %2649 = vmatpush.bf16.msra.mxu2 %v8570_v41  ;;  %v8714_v12 = vor.u32 %v11649_v9, %v8713_v8  ;;  %v8795_v41 = vld [vmem:[#allocation12 + $0x3d0] sm:$0xf0] }
 0x155   :  { %2674 = vmatpush.bf16.msra.mxu0 %v8874_v53  ;;  %2661 = vmatpush.bf16.msra.mxu1 %v8730_v62  ;;  %v8798_v43 = vor.u32 %v11667_v40, %v8795_v41  ;;  %v8651_v53 = vld [vmem:[#allocation12 + $0x2b0] sm:$0xf0]  ;;  %v11619_v40 = vld [vmem:[#allocation12 + $0x244] sm:$0xf] }
 0x158   :  { %2686 = vmatpush.bf16.msra.mxu3 %v9034_v25  ;;  %v11645_v25 = vld [vmem:[#allocation12 + $0x30c] sm:$0xf0] }
 0x159   :  { %2675 = vmatpush.bf16.msra.mxu0 %v8858_v1  ;;  %2662 = vmatpush.bf16.msra.mxu1 %v8714_v12  ;;  %v8698_v4 = vor.u32 %v11645_v25, %v8697_v24  ;;  %v11623_v24 = vld [vmem:[#allocation12 + $0x264] sm:$0xf]  ;;  %v8619_v25 = vld [vmem:[#allocation12 + $0x270] sm:$0xf0] }
 0x15c   :  { %2687 = vmatpush.bf16.msra.mxu3 %v9018_v36  ;;  %v11639_v36 = vld [vmem:[#allocation12 + $0x2e4] sm:$0xf] }
 0x15d   :  { %2676 = vmatpush.bf16.msra.mxu0 %v8842_v14  ;;  %2663 = vmatpush.bf16.msra.mxu1 %v8698_v4  ;;  %v8686_v55 = vor.u32 %v11639_v36, %v8683_v38  ;;  %v8430_v14 = vor.u32 %v11575_v2, %v8427_v3  ;;  %v8305_v4 = vld [vmem:[#allocation2 + $0x10] sm:$0xf]  ;;  %v8395_v36 = vld [vmem:[#allocation12 + $0xb0] sm:$0xf0] }
 0x15e   :  { %v8363_v3 = vld [vmem:[#allocation12 + $0x70] sm:$0xf0] }
 0x160   :  { %2688 = vmatpush.bf16.msra.mxu3 %v9002_v48  ;;  %v8670_v48 = vor.u32 %v11635_v19, %v8667_v46 }
 0x161   :  { %2677 = vmatpush.bf16.msra.mxu0 %v8826_v31  ;;  %v8731_v31 = vld [vmem:[#allocation12 + $0x350] sm:$0xf0] }
 0x164   :  { %2689 = vmatpush.bf16.msra.mxu3 %v8986_v57  ;;  %v8654_v57 = vor.u32 %v11631_v52, %v8651_v53 }
 0x165   :  { %2726 = vmatpush.bf16.msrb.mxu0 %v8686_v55 }
 0x168   :  { %2690 = vmatpush.bf16.msra.mxu3 %v8970_v5  ;;  %v11627_v5 = vld [vmem:[#allocation12 + $0x284] sm:$0xf] }
 0x169   :  { %2727 = vmatpush.bf16.msrb.mxu0 %v8670_v48  ;;  %v8379_v48 = vld [vmem:[#allocation12 + $0x90] sm:$0xf0] }
 0x16c   :  { %2691 = vmatpush.bf16.msra.mxu3 %v8954_v17 }
 0x16d   :  { %2728 = vmatpush.bf16.msrb.mxu0 %v8654_v57 }
 0x170   :  { %2740 = vmatpush.bf16.msrb.mxu3 %v8814_v34  ;;  %v8622_v34 = vor.u32 %v11623_v24, %v8619_v25  ;;  %v8545_v24 = vld [vmem:[#allocation12 + $0x1c8] sm:$0xf] }
 0x174   :  { %2741 = vmatpush.bf16.msrb.mxu3 %v8798_v43 }
 0x178   :  { %2742 = vmatpush.bf16.msrb.mxu3 %v8782_v39 }
 0x199   :  { %v1144_v44 = vpop.f32.mrf.mxu2 }
 0x19a   :  { %v1145_v26 = vadd.f32 %v1144_v44, %v811_v11 }
 0x19b   :  { %v1158_v58 = vpop.f32.mrf.mxu1 }
 0x19c   :  { %v1172_v6 = vpop.f32.mrf.mxu0  ;;  %v1159_v42 = vadd.f32 %v1158_v58, %v1145_v26  ;;  %v11659_v58 = vld [vmem:[#allocation12 + $0x384] sm:$0xf] }
 0x19d   :  { %v8766_v63 = vor.u32 %v11659_v58, %v8763_v59  ;;  %v11643_v58 = vld [vmem:[#allocation12 + $0x304] sm:$0xf]  ;;  %v8699_v59 = vld [vmem:[#allocation12 + $0x310] sm:$0xf0] }
 0x19e   :  { %v1173_v51 = vadd.f32 %v1172_v6, %v1159_v42  ;;  %v8603_v42 = vld [vmem:[#allocation12 + $0x250] sm:$0xf0] }
 0x19f   :  { %2743 = vmatpush.bf16.msrb.mxu3 %v8766_v63  ;;  %v8606_v43 = vor.u32 %v11619_v40, %v8603_v42  ;;  %v8561_v63 = vld [vmem:[#allocation12 + $0x1e8] sm:$0xf]  ;;  %v8331_v42 = vld [vmem:[#allocation12 + $0x30] sm:$0xf0] }
 0x1a0   :  { %v8529_v40 = vld [vmem:[#allocation12 + $0x1a8] sm:$0xf] }
 0x1a1   :  { %v1146_v7 = vpop.f32.mrf.mxu2 }
 0x1a2   :  { %v1147_v33 = vadd.f32 %v1146_v7, %v811_v11  ;;  %v8635_v7 = vld [vmem:[#allocation12 + $0x290] sm:$0xf0]  ;;  %v8307_v11 = vld [vmem:[#allocation2 + $0x28] sm:$0xf0] }
 0x1a3   :  { %v1160_v30 = vpop.f32.mrf.mxu1  ;;  %v8638_v9 = vor.u32 %v11627_v5, %v8635_v7  ;;  %v13110_v0 = vor.u32 %v11543_v10, %v8307_v11  ;;  %2744 = vmatpush.bf16.msrb.mxu3 %v8750_v23  ;;  %v11607_v5 = vld [vmem:[#allocation12 + $0x1e4] sm:$0xf]  ;;  %v8555_v7 = vld [vmem:[#allocation12 + $0x1f0] sm:$0xf0]  ;;  %v11578_v23 = vld [vmem:[#allocation12 + $0xf4] sm:$0xf0] }
 0x1a4   :  { %v1174_v44 = vpop.f32.mrf.mxu0  ;;  %v1161_v47 = vadd.f32 %v1160_v30, %v1147_v33  ;;  %v11651_v30 = vld [vmem:[#allocation12 + $0x344] sm:$0xf]  ;;  %v8571_v10 = vld [vmem:[#allocation12 + $0x210] sm:$0xf0]  ;;  %v8558_v20 = vor.u32 %v11607_v5, %v8555_v7 }
 0x1a5   :  { %2729 = vmatpush.bf16.msrb.mxu0 %v8638_v9  ;;  %2692 = vmatmul.bf16.vlgmr.msra.gmra.mxu3 %v13110_v0  ;;  %v11567_v33 = vld [vmem:[#allocation12 + $0xa4] sm:$0xf]  ;;  %v8734_v38 = vor.u32 %v11651_v30, %v8731_v31  ;;  %v8417_v31 = vld [vmem:[#allocation12 + $0xc8] sm:$0xf]  ;;  %v8491_v5 = vld [vmem:[#allocation12 + $0x170] sm:$0xf0] }
 0x1a6   :  { %v1175_v56 = vadd.f32 %v1174_v44, %v1161_v47  ;;  %v11647_v44 = vld [vmem:[#allocation12 + $0x324] sm:$0xf]  ;;  %v8398_v19 = vor.u32 %v11567_v33, %v8395_v36 }
 0x1a7   :  { %v11563_v47 = vld [vmem:[#allocation12 + $0x84] sm:$0xf]  ;;  %2745 = vmatpush.bf16.msrb.mxu3 %v8734_v38 }
 0x1a8   :  { %v11611_v9 = vld [vmem:[#allocation12 + $0x204] sm:$0xf] }
 0x1a9   :  { %v1200_v45 = vpop.f32.mrf.mxu2  ;;  %2730 = vmatpush.bf16.msrb.mxu0 %v8622_v34  ;;  %v8539_v34 = vld [vmem:[#allocation12 + $0x1d0] sm:$0xf0]  ;;  %v11551_v38 = vld [vmem:[#allocation12 + $0x24] sm:$0xf] }
 0x1aa   :  { %v1201_v17 = vadd.f32 %v1200_v45, %v812_v60  ;;  %v8715_v45 = vld [vmem:[#allocation12 + $0x330] sm:$0xf0]  ;;  %v11699_v7 = vld [vmem:[#allocation12 + $0x4c4] sm:$0xf] }
 0x1ab   :  { %v1214_v61 = vpop.f32.mrf.mxu1  ;;  %v8718_v49 = vor.u32 %v11647_v44, %v8715_v45 }
 0x1ac   :  { %v1228_v12 = vpop.f32.mrf.mxu0  ;;  %v1215_v32 = vadd.f32 %v1214_v61, %v1201_v17  ;;  %v8382_v61 = vor.u32 %v11563_v47, %v8379_v48  ;;  %v8299_v17 = vld [vmem:[#allocation2 + $0x20] sm:$0xf0]  ;;  %v8334_v47 = vor.u32 %v11551_v38, %v8331_v42  ;;  %v11554_v42 = vld [vmem:[#allocation12 + $0x34] sm:$0xf0] }
 0x1ad   :  { %2731 = vmatpush.bf16.msrb.mxu0 %v8606_v43  ;;  %2746 = vmatpush.bf16.msrb.mxu3 %v8718_v49  ;;  %v13119_v30 = vor.u32 %v11542_v16, %v8299_v17  ;;  %v8523_v43 = vld [vmem:[#allocation12 + $0x1b0] sm:$0xf0]  ;;  %v11547_v49 = vld [vmem:[#allocation12 + $0x4] sm:$0xf] }
 0x1ae   :  { %v1229_v46 = vadd.f32 %v1228_v12, %v1215_v32  ;;  %v11574_v32 = vld [vmem:[#allocation12 + $0xd4] sm:$0xf0]  ;;  %v11587_v17 = vld [vmem:[#allocation12 + $0x144] sm:$0xf] }
 0x1af   :  { %v8418_v44 = vor.u32 %v11574_v32, %v8417_v31  ;;  %v8459_v31 = vld [vmem:[#allocation12 + $0x130] sm:$0xf0]  ;;  %v11691_v32 = vld [vmem:[#allocation12 + $0x484] sm:$0xf] }
 0x1b1   :  { %v1202_v13 = vpop.f32.mrf.mxu2 }
 0x1b2   :  { %v1186_v37 = vpop.f32.mrf.mxu3  ;;  %v1203_v26 = vadd.f32 %v1202_v13, %v812_v60  ;;  %v11555_v13 = vld [vmem:[#allocation12 + $0x44] sm:$0xf] }
 0x1b3   :  { %v1187_v54 = vadd.f32 %v1186_v37, %v1173_v51  ;;  %v13113_v37 = vor.u32 %v11546_v29, %v8305_v4  ;;  %v1216_v41 = vpop.f32.mrf.mxu1  ;;  %v8587_v51 = vld [vmem:[#allocation12 + $0x230] sm:$0xf0]  ;;  %v8574_v4 = vor.u32 %v11611_v9, %v8571_v10  ;;  %v8369_v10 = vld [vmem:[#allocation12 + $0x68] sm:$0xf] }
 0x1b4   :  { %v1217_v55 = vadd.f32 %v1216_v41, %v1203_v26  ;;  %v1230_v39 = vpop.f32.mrf.mxu0  ;;  %v8590_v57 = vor.u32 %v11615_v50, %v8587_v51  ;;  %v11603_v26 = vld [vmem:[#allocation12 + $0x1c4] sm:$0xf]  ;;  %v11602_v41 = vld [vmem:[#allocation12 + $0x1b4] sm:$0xf0]  ;;  %v8513_v50 = vld [vmem:[#allocation12 + $0x188] sm:$0xf] }
 0x1b5   :  { %v1247_v6 = vmax.f32 %v1187_v54, 0.0  ;;  %2678 = vmatmul.bf16.vlgmr.msra.gmra.mxu0 %v13113_v37  ;;  %v11559_v54 = vld [vmem:[#allocation12 + $0x64] sm:$0xf]  ;;  %v8542_v36 = vor.u32 %v11603_v26, %v8539_v34  ;;  %v8530_v45 = vor.u32 %v11602_v41, %v8529_v40  ;;  %v8315_v51 = vld [vmem:[#allocation12 + $0x10] sm:$0xf0] }
 0x1b6   :  { %v1231_v53 = vadd.f32 %v1230_v39, %v1217_v55  ;;  %2732 = vmatpush.bf16.msrb.mxu0 %v8590_v57  ;;  %v11599_v55 = vld [vmem:[#allocation12 + $0x1a4] sm:$0xf]  ;;  %v11598_v39 = vld [vmem:[#allocation12 + $0x194] sm:$0xf0]  ;;  %v8337_v41 = vld [vmem:[#allocation12 + $0x28] sm:$0xf] }
 0x1b7   :  { %v8526_v48 = vor.u32 %v11599_v55, %v8523_v43  ;;  %v11558_v26 = vld [vmem:[#allocation12 + $0x54] sm:$0xf0]  ;;  %v11579_v40 = vld [vmem:[#allocation12 + $0x104] sm:$0xf]  ;;  %v8443_v43 = vld [vmem:[#allocation12 + $0x110] sm:$0xf0] }
 0x1ba   :  { %v1188_v62 = vpop.f32.mrf.mxu3  ;;  %2733 = vmatpush.bf16.msrb.mxu0 %v8574_v4  ;;  %v8465_v4 = vld [vmem:[#allocation12 + $0x128] sm:$0xf] }
 0x1bb   :  { %v1189_v1 = vadd.f32 %v1188_v62, %v1175_v56  ;;  %v8297_v56 = vld [vmem:[#allocation2 + $0x8] sm:$0xf]  ;;  %v11545_v62 = vld [vmem:[#allocation2 + $0x1c] sm:$0xf0] }
 0x1bc   :  { %v13116_v15 = vor.u32 %v11545_v62, %v8297_v56  ;;  %v8939_v56 = vld [vmem:[#allocation12 + $0x4f0] sm:$0xf0] }
 0x1bd   :  { %v1249_v8 = vmax.f32 %v1189_v1, 0.0  ;;  %v11610_v1 = vld [vmem:[#allocation12 + $0x1f4] sm:$0xf0] }
 0x1bf   :  { %v1251_v18 = vpack.c.bf16 %v1249_v8, %v1247_v6  ;;  %v8702_v6 = vor.u32 %v11643_v58, %v8699_v59  ;;  %v8562_v8 = vor.u32 %v11610_v1, %v8561_v63  ;;  %v8514_v58 = vor.u32 %v11598_v39, %v8513_v50  ;;  %v8385_v59 = vld [vmem:[#allocation12 + $0x88] sm:$0xf]  ;;  %v11594_v1 = vld [vmem:[#allocation12 + $0x174] sm:$0xf0]  ;;  %v11735_v50 = vld [vmem:[#allocation12 + $0x5e4] sm:$0xf] }
 0x1c0   :  { %v8497_v63 = vld [vmem:[#allocation12 + $0x168] sm:$0xf]  ;;  %v9067_v39 = vld [vmem:[#allocation12 + $0x5f0] sm:$0xf0] }
 0x1c1   :  { %1393 = vmatmul.bf16.vlgmr.msrb.gmra.mxu2 %v1251_v18  ;;  %v8366_v18 = vor.u32 %v11559_v54, %v8363_v3  ;;  %2747 = vmatpush.bf16.msrb.mxu3 %v8702_v6  ;;  %v11703_v54 = vld [vmem:[#allocation12 + $0x4e4] sm:$0xf]  ;;  %v8923_v6 = vld [vmem:[#allocation12 + $0x4d0] sm:$0xf0]  ;;  %v8498_v9 = vor.u32 %v11594_v1, %v8497_v63  ;;  %v9057_v63 = vld [vmem:[#allocation12 + $0x5c8] sm:$0xf] }
 0x1c2   :  { %2698 = vmatpush.bf16.msrb.mxu2 %v8430_v14  ;;  %v1242_v27 = vpop.f32.mrf.mxu3  ;;  %v8347_v14 = vld [vmem:[#allocation12 + $0x50] sm:$0xf0]  ;;  %v11591_v3 = vld [vmem:[#allocation12 + $0x164] sm:$0xf]  ;;  %v8926_v16 = vor.u32 %v11699_v7, %v8923_v6  ;;  %v11734_v1 = vld [vmem:[#allocation12 + $0x5d4] sm:$0xf0] }
 0x1c3   :  { %v1243_v52 = vadd.f32 %v1242_v27, %v1229_v46  ;;  %v11606_v27 = vld [vmem:[#allocation12 + $0x1d4] sm:$0xf0]  ;;  %v8350_v33 = vor.u32 %v11555_v13, %v8347_v14  ;;  %v8481_v13 = vld [vmem:[#allocation12 + $0x148] sm:$0xf] }
 0x1c4   :  { %v8546_v29 = vor.u32 %v11606_v27, %v8545_v24  ;;  %2748 = vmatmul.bf16.vlgmr.msrb.gmra.mxu3 %v13119_v30  ;;  %v11570_v46 = vld [vmem:[#allocation12 + $0xb4] sm:$0xf0] }
 0x1c5   :  { %v1248_v11 = vmax.f32 %v1243_v52, 0.0  ;;  %2796 = vmatpush.bf16.msra.mxu3 %v8562_v8  ;;  %v11595_v52 = vld [vmem:[#allocation12 + $0x184] sm:$0xf]  ;;  %2734 = vmatmul.bf16.vlgmr.msrb.gmra.mxu0 %v13116_v15  ;;  %v11590_v14 = vld [vmem:[#allocation12 + $0x154] sm:$0xf0] }
 0x1c6   :  { %2699 = vmatpush.bf16.msrb.mxu2 %v8414_v28  ;;  %v8434_v28 = vor.u32 %v11578_v23, %v8433_v21  ;;  %v8907_v21 = vld [vmem:[#allocation12 + $0x4b0] sm:$0xf0]  ;;  %v8482_v24 = vor.u32 %v11590_v14, %v8481_v13  ;;  %v11586_v27 = vld [vmem:[#allocation12 + $0x134] sm:$0xf0]  ;;  %v11679_v13 = vld [vmem:[#allocation12 + $0x424] sm:$0xf] }
 0x1c7   :  { %v8466_v38 = vor.u32 %v11586_v27, %v8465_v4  ;;  %v9041_v14 = vld [vmem:[#allocation12 + $0x5a8] sm:$0xf]  ;;  %v11675_v4 = vld [vmem:[#allocation12 + $0x404] sm:$0xf] }
 0x1c8   :  { %2782 = vmatpush.bf16.msra.mxu0 %v8434_v28  ;;  %v9025_v27 = vld [vmem:[#allocation12 + $0x588] sm:$0xf] }
 0x1c9   :  { %2797 = vmatpush.bf16.msra.mxu3 %v8546_v29  ;;  %v11583_v29 = vld [vmem:[#allocation12 + $0x124] sm:$0xf] }
 0x1ca   :  { %2700 = vmatpush.bf16.msrb.mxu2 %v8398_v19  ;;  %v1244_v60 = vpop.f32.mrf.mxu3  ;;  %v8401_v19 = vld [vmem:[#allocation12 + $0xa8] sm:$0xf]  ;;  %v8462_v55 = vor.u32 %v11583_v29, %v8459_v31  ;;  %v8827_v29 = vld [vmem:[#allocation12 + $0x410] sm:$0xf0]  ;;  %v11723_v31 = vld [vmem:[#allocation12 + $0x584] sm:$0xf] }
 0x1cb   :  { %v1245_v2 = vadd.f32 %v1244_v60, %v1231_v53  ;;  %v8507_v53 = vld [vmem:[#allocation12 + $0x190] sm:$0xf0]  ;;  %v8402_v57 = vor.u32 %v11570_v46, %v8401_v19  ;;  %v11566_v60 = vld [vmem:[#allocation12 + $0x94] sm:$0xf0]  ;;  %v11687_v46 = vld [vmem:[#allocation12 + $0x464] sm:$0xf] }
 0x1cc   :  { %2783 = vmatpush.bf16.msra.mxu0 %v8418_v44  ;;  %v8510_v62 = vor.u32 %v11595_v52, %v8507_v53  ;;  %v8386_v8 = vor.u32 %v11566_v60, %v8385_v59  ;;  %v8449_v44 = vld [vmem:[#allocation12 + $0x108] sm:$0xf] }
 0x1cd   :  { %v1250_v12 = vmax.f32 %v1245_v2, 0.0  ;;  %2798 = vmatpush.bf16.msra.mxu3 %v8530_v45  ;;  %v8942_v2 = vor.u32 %v11703_v54, %v8939_v56  ;;  %v11582_v45 = vld [vmem:[#allocation12 + $0x114] sm:$0xf0]  ;;  %v8321_v54 = vld [vmem:[#allocation12 + $0x8] sm:$0xf] }
 0x1ce   :  { %2701 = vmatpush.bf16.msrb.mxu2 %v8382_v61  ;;  %v8318_v61 = vor.u32 %v11547_v49, %v8315_v51  ;;  %v8875_v49 = vld [vmem:[#allocation12 + $0x470] sm:$0xf0]  ;;  %v8338_v51 = vor.u32 %v11554_v42, %v8337_v41  ;;  %v8450_v52 = vor.u32 %v11582_v45, %v8449_v44  ;;  %v11550_v56 = vld [vmem:[#allocation12 + $0x14] sm:$0xf0]  ;;  %v8945_v59 = vld [vmem:[#allocation12 + $0x4e8] sm:$0xf] }
 0x1cf   :  { %v1252_v25 = vpack.c.bf16 %v1250_v12, %v1248_v11  ;;  %v11562_v11 = vld [vmem:[#allocation12 + $0x74] sm:$0xf0]  ;;  %v8494_v12 = vor.u32 %v11591_v3, %v8491_v5  ;;  %v8878_v60 = vor.u32 %v11687_v46, %v8875_v49  ;;  %v11731_v3 = vld [vmem:[#allocation12 + $0x5c4] sm:$0xf]  ;;  %v9051_v5 = vld [vmem:[#allocation12 + $0x5d0] sm:$0xf0]  ;;  %v8322_v7 = vor.u32 %v11550_v56, %v8321_v54 }
 0x1d0   :  { %2784 = vmatpush.bf16.msra.mxu0 %v8402_v57  ;;  %v8370_v23 = vor.u32 %v11562_v11, %v8369_v10  ;;  %v8446_v57 = vor.u32 %v11579_v40, %v8443_v43  ;;  %v11702_v10 = vld [vmem:[#allocation12 + $0x4d4] sm:$0xf0]  ;;  %v8897_v41 = vld [vmem:[#allocation12 + $0x488] sm:$0xf]  ;;  %v11719_v46 = vld [vmem:[#allocation12 + $0x564] sm:$0xf] }
 0x1d1   :  { %1407 = vmatmul.bf16.vlgmr.msrb.gmra.mxu1 %v1252_v25  ;;  %2650 = vmatmul.bf16.vlgmr.msra.gmra.mxu2 %v13116_v15  ;;  %v8353_v25 = vld [vmem:[#allocation12 + $0x48] sm:$0xf]  ;;  %v11694_v42 = vld [vmem:[#allocation12 + $0x494] sm:$0xf0] }
 0x1d2   :  { %2702 = vmatpush.bf16.msrb.mxu2 %v8366_v18  ;;  %2712 = vmatpush.bf16.msrb.mxu1 %v8558_v20  ;;  %v8475_v18 = vld [vmem:[#allocation12 + $0x150] sm:$0xf0]  ;;  %v11695_v20 = vld [vmem:[#allocation12 + $0x4a4] sm:$0xf]  ;;  %v9009_v44 = vld [vmem:[#allocation12 + $0x568] sm:$0xf] }
 0x1d3   :  { %2799 = vmatpush.bf16.msra.mxu3 %v8514_v58  ;;  %v8478_v34 = vor.u32 %v11587_v17, %v8475_v18  ;;  %v8910_v28 = vor.u32 %v11695_v20, %v8907_v21  ;;  %v11683_v58 = vld [vmem:[#allocation12 + $0x444] sm:$0xf]  ;;  %v8843_v17 = vld [vmem:[#allocation12 + $0x430] sm:$0xf0]  ;;  %v11722_v45 = vld [vmem:[#allocation12 + $0x574] sm:$0xf0] }
 0x1d4   :  { %2785 = vmatpush.bf16.msra.mxu0 %v8386_v8  ;;  %v9058_v8 = vor.u32 %v11734_v1, %v9057_v63  ;;  %v11727_v18 = vld [vmem:[#allocation12 + $0x5a4] sm:$0xf]  ;;  %v9035_v20 = vld [vmem:[#allocation12 + $0x5b0] sm:$0xf0]  ;;  %v11638_v49 = vld [vmem:[#allocation12 + $0x2d4] sm:$0xf0] }
 0x1d5   :  { %v8993_v54 = vld [vmem:[#allocation12 + $0x548] sm:$0xf]  ;;  %v11718_v56 = vld [vmem:[#allocation12 + $0x554] sm:$0xf0] }
 0x1d6   :  { %2703 = vmatpush.bf16.msrb.mxu2 %v8350_v33  ;;  %2713 = vmatpush.bf16.msrb.mxu1 %v8542_v36  ;;  %v8891_v33 = vld [vmem:[#allocation12 + $0x490] sm:$0xf0]  ;;  %v8354_v36 = vor.u32 %v11558_v26, %v8353_v25  ;;  %v11698_v25 = vld [vmem:[#allocation12 + $0x4b4] sm:$0xf0]  ;;  %v8846_v26 = vor.u32 %v11679_v13, %v8843_v17  ;;  %v8994_v63 = vor.u32 %v11718_v56, %v8993_v54  ;;  %v8865_v1 = vld [vmem:[#allocation12 + $0x448] sm:$0xf] }
 0x1d7   :  { %2800 = vmatpush.bf16.msra.mxu3 %v8498_v9  ;;  %v8894_v19 = vor.u32 %v11691_v32, %v8891_v33  ;;  %v8929_v9 = vld [vmem:[#allocation12 + $0x4c8] sm:$0xf]  ;;  %v9019_v32 = vld [vmem:[#allocation12 + $0x590] sm:$0xf0]  ;;  %v11666_v54 = vld [vmem:[#allocation12 + $0x3b4] sm:$0xf0] }
 0x1d8   :  { %2786 = vmatpush.bf16.msra.mxu0 %v8370_v23  ;;  %v8930_v21 = vor.u32 %v11702_v10, %v8929_v9  ;;  %v8689_v33 = vld [vmem:[#allocation12 + $0x2e8] sm:$0xf]  ;;  %v9022_v43 = vor.u32 %v11723_v31, %v9019_v32  ;;  %v8971_v9 = vld [vmem:[#allocation12 + $0x530] sm:$0xf0]  ;;  %v11678_v31 = vld [vmem:[#allocation12 + $0x414] sm:$0xf0] }
 0x1d9   :  { %v8641_v10 = vld [vmem:[#allocation12 + $0x288] sm:$0xf]  ;;  %v11668_v56 = vld [vmem:[#allocation12 + $0x3cc] sm:$0xf] }
 0x1da   :  { %2704 = vmatpush.bf16.msrb.mxu2 %v8334_v47  ;;  %2714 = vmatpush.bf16.msrb.mxu1 %v8526_v48  ;;  %v9073_v47 = vld [vmem:[#allocation12 + $0x5e8] sm:$0xf]  ;;  %v11738_v48 = vld [vmem:[#allocation12 + $0x5f4] sm:$0xf0] }
 0x1db   :  { %2801 = vmatpush.bf16.msra.mxu3 %v8482_v24  ;;  %v9074_v53 = vor.u32 %v11738_v48, %v9073_v47  ;;  %v8913_v24 = vld [vmem:[#allocation12 + $0x4a8] sm:$0xf]  ;;  %v9003_v47 = vld [vmem:[#allocation12 + $0x570] sm:$0xf0] }
 0x1dc   :  { %2787 = vmatpush.bf16.msra.mxu0 %v8354_v36  ;;  %v11642_v36 = vld [vmem:[#allocation12 + $0x2f4] sm:$0xf0]  ;;  %v8673_v48 = vld [vmem:[#allocation12 + $0x2c8] sm:$0xf] }
 0x1de   :  { %2705 = vmatpush.bf16.msrb.mxu2 %v8318_v61  ;;  %2715 = vmatpush.bf16.msrb.mxu1 %v8510_v62  ;;  %v9070_v61 = vor.u32 %v11735_v50, %v9067_v39  ;;  %v11706_v62 = vld [vmem:[#allocation12 + $0x4f4] sm:$0xf0]  ;;  %v8898_v50 = vor.u32 %v11694_v42, %v8897_v41  ;;  %v9010_v39 = vor.u32 %v11722_v45, %v9009_v44  ;;  %v8801_v42 = vld [vmem:[#allocation12 + $0x3c8] sm:$0xf]  ;;  %v11672_v45 = vld [vmem:[#allocation12 + $0x3ec] sm:$0xf] }
 0x1df   :  { %2802 = vmatpush.bf16.msra.mxu3 %v8466_v38  ;;  %v8946_v6 = vor.u32 %v11706_v62, %v8945_v59  ;;  %v8914_v38 = vor.u32 %v11698_v25, %v8913_v24  ;;  %v8987_v59 = vld [vmem:[#allocation12 + $0x550] sm:$0xf0]  ;;  %v8625_v25 = vld [vmem:[#allocation12 + $0x268] sm:$0xf]  ;;  %v11622_v41 = vld [vmem:[#allocation12 + $0x254] sm:$0xf0] }
 0x1e0   :  { %2788 = vmatpush.bf16.msra.mxu0 %v8338_v51  ;;  %v8881_v51 = vld [vmem:[#allocation12 + $0x468] sm:$0xf]  ;;  %v8955_v24 = vld [vmem:[#allocation12 + $0x510] sm:$0xf0] }
 0x1e1   :  { %2664 = vmatmul.bf16.vlgmr.msra.gmra.mxu1 %v13119_v30  ;;  %2706 = vmatmul.bf16.vlgmr.msrb.gmra.mxu2 %v13106_v35 }
 0x1e2   :  { %2754 = vmatpush.bf16.msra.mxu2 %v8942_v2  ;;  %2716 = vmatpush.bf16.msrb.mxu1 %v8494_v12  ;;  %v8859_v2 = vld [vmem:[#allocation12 + $0x450] sm:$0xf0]  ;;  %v9054_v12 = vor.u32 %v11731_v3, %v9051_v5  ;;  %v8977_v5 = vld [vmem:[#allocation12 + $0x528] sm:$0xf] }
 0x1e3   :  { %2803 = vmatpush.bf16.msra.mxu3 %v8450_v52  ;;  %v8862_v11 = vor.u32 %v11683_v58, %v8859_v2  ;;  %v11690_v52 = vld [vmem:[#allocation12 + $0x474] sm:$0xf0]  ;;  %v11715_v58 = vld [vmem:[#allocation12 + $0x544] sm:$0xf] }
 0x1e4   :  { %2789 = vmatpush.bf16.msra.mxu0 %v8322_v7  ;;  %v8882_v62 = vor.u32 %v11690_v52, %v8881_v51  ;;  %v11686_v2 = vld [vmem:[#allocation12 + $0x454] sm:$0xf0]  ;;  %v8990_v3 = vor.u32 %v11715_v58, %v8987_v59  ;;  %v8593_v51 = vld [vmem:[#allocation12 + $0x228] sm:$0xf] }
 0x1e5   :  { %v11714_v7 = vld [vmem:[#allocation12 + $0x534] sm:$0xf0] }
 0x1e6   :  { %2755 = vmatpush.bf16.msra.mxu2 %v8926_v16  ;;  %2717 = vmatpush.bf16.msrb.mxu1 %v8478_v34  ;;  %v11730_v16 = vld [vmem:[#allocation12 + $0x5b4] sm:$0xf0]  ;;  %v9038_v34 = vor.u32 %v11727_v18, %v9035_v20  ;;  %v8978_v13 = vor.u32 %v11714_v7, %v8977_v5  ;;  %v8961_v18 = vld [vmem:[#allocation12 + $0x508] sm:$0xf]  ;;  %v11664_v7 = vld [vmem:[#allocation12 + $0x3ac] sm:$0xf] }
 0x1e7   :  { %2852 = vmatpush.bf16.msrb.mxu3 %v9074_v53  ;;  %v9042_v23 = vor.u32 %v11730_v16, %v9041_v14  ;;  %2790 = vmatmul.bf16.vlgmr.msra.gmra.mxu0 %v13106_v35  ;;  %v9006_v53 = vor.u32 %v11719_v46, %v9003_v47  ;;  %v8849_v14 = vld [vmem:[#allocation12 + $0x428] sm:$0xf]  ;;  %v11682_v16 = vld [vmem:[#allocation12 + $0x434] sm:$0xf0] }
 0x1e8   :  { %2804 = vmatmul.bf16.vlgmr.msra.gmra.mxu3 %v13103_v22  ;;  %2838 = vmatpush.bf16.msrb.mxu0 %v8946_v6  ;;  %v11710_v20 = vld [vmem:[#allocation12 + $0x514] sm:$0xf0] }
 0x1e9   :  { %v11618_v52 = vld [vmem:[#allocation12 + $0x234] sm:$0xf0] }
 0x1ea   :  { %2756 = vmatpush.bf16.msra.mxu2 %v8910_v28  ;;  %2718 = vmatpush.bf16.msrb.mxu1 %v8462_v55  ;;  %v11726_v28 = vld [vmem:[#allocation12 + $0x594] sm:$0xf0]  ;;  %v8830_v55 = vor.u32 %v11675_v4, %v8827_v29  ;;  %v8833_v29 = vld [vmem:[#allocation12 + $0x408] sm:$0xf] }
 0x1eb   :  { %2853 = vmatpush.bf16.msrb.mxu3 %v9058_v8  ;;  %v9026_v40 = vor.u32 %v11726_v28, %v9025_v27  ;;  %v11711_v8 = vld [vmem:[#allocation12 + $0x524] sm:$0xf]  ;;  %v11674_v4 = vld [vmem:[#allocation12 + $0x3f4] sm:$0xf0]  ;;  %v8850_v27 = vor.u32 %v11682_v16, %v8849_v14  ;;  %v8962_v28 = vor.u32 %v11710_v20, %v8961_v18  ;;  %v8834_v44 = vor.u32 %v11678_v31, %v8833_v29  ;;  %v8737_v29 = vld [vmem:[#allocation12 + $0x348] sm:$0xf] }
 0x1ec   :  { %2839 = vmatpush.bf16.msrb.mxu0 %v8930_v21  ;;  %v8974_v17 = vor.u32 %v11711_v8, %v8971_v9  ;;  %v11662_v5 = vld [vmem:[#allocation12 + $0x394] sm:$0xf0]  ;;  %v11576_v8 = vld [vmem:[#allocation12 + $0xec] sm:$0xf]  ;;  %v8435_v9 = vld [vmem:[#allocation12 + $0xf8] sm:$0xf0] }
 0x1ed   :  { %v8438_v18 = vor.u32 %v11576_v8, %v8435_v9  ;;  %v11658_v20 = vld [vmem:[#allocation12 + $0x374] sm:$0xf0]  ;;  %v11556_v8 = vld [vmem:[#allocation12 + $0x4c] sm:$0xf]  ;;  %v8355_v9 = vld [vmem:[#allocation12 + $0x58] sm:$0xf0] }
 0x1ee   :  { %2757 = vmatpush.bf16.msra.mxu2 %v8894_v19  ;;  %2719 = vmatpush.bf16.msrb.mxu1 %v8446_v57  ;;  %v8690_v19 = vor.u32 %v11642_v36, %v8689_v33  ;;  %v8674_v57 = vor.u32 %v11638_v49, %v8673_v48  ;;  %v8609_v33 = vld [vmem:[#allocation12 + $0x248] sm:$0xf]  ;;  %v11640_v36 = vld [vmem:[#allocation12 + $0x2ec] sm:$0xf]  ;;  %v8675_v49 = vld [vmem:[#allocation12 + $0x2d8] sm:$0xf0] }
 0x1ef   :  { %2854 = vmatpush.bf16.msrb.mxu3 %v9042_v23  ;;  %v11707_v23 = vld [vmem:[#allocation12 + $0x504] sm:$0xf]  ;;  %v11636_v48 = vld [vmem:[#allocation12 + $0x2cc] sm:$0xf] }
 0x1f0   :  { %2840 = vmatpush.bf16.msrb.mxu0 %v8914_v38  ;;  %v8958_v32 = vor.u32 %v11707_v23, %v8955_v24  ;;  %v8678_v58 = vor.u32 %v11636_v48, %v8675_v49  ;;  %v8771_v23 = vld [vmem:[#allocation12 + $0x398] sm:$0xf0]  ;;  %v11572_v24 = vld [vmem:[#allocation12 + $0xcc] sm:$0xf] }
 0x1f1   :  { %2720 = vmatmul.bf16.vlgmr.msrb.gmra.mxu1 %v13103_v22  ;;  %v8739_v48 = vld [vmem:[#allocation12 + $0x358] sm:$0xf0]  ;;  %v11564_v49 = vld [vmem:[#allocation12 + $0x8c] sm:$0xf] }
 0x1f2   :  { %2758 = vmatpush.bf16.msra.mxu2 %v8878_v60  ;;  %2768 = vmatpush.bf16.msra.mxu1 %v9070_v61  ;;  %v8657_v60 = vld [vmem:[#allocation12 + $0x2a8] sm:$0xf]  ;;  %v11634_v61 = vld [vmem:[#allocation12 + $0x2b4] sm:$0xf0] }
 0x1f3   :  { %2855 = vmatpush.bf16.msrb.mxu3 %v9026_v40  ;;  %v8658_v6 = vor.u32 %v11634_v61, %v8657_v60  ;;  %v11632_v60 = vld [vmem:[#allocation12 + $0x2ac] sm:$0xf]  ;;  %v8659_v61 = vld [vmem:[#allocation12 + $0x2b8] sm:$0xf0] }
 0x1f4   :  { %2841 = vmatpush.bf16.msrb.mxu0 %v8898_v50  ;;  %v8610_v50 = vor.u32 %v11622_v41, %v8609_v33  ;;  %v11656_v33 = vld [vmem:[#allocation12 + $0x36c] sm:$0xf] }
 0x1f6   :  { %2759 = vmatpush.bf16.msra.mxu2 %v8862_v11  ;;  %2769 = vmatpush.bf16.msra.mxu1 %v9054_v12  ;;  %v11630_v11 = vld [vmem:[#allocation12 + $0x294] sm:$0xf0]  ;;  %v8866_v12 = vor.u32 %v11686_v2, %v8865_v1  ;;  %v8577_v1 = vld [vmem:[#allocation12 + $0x208] sm:$0xf] }
 0x1f7   :  { %2856 = vmatpush.bf16.msrb.mxu3 %v9010_v39  ;;  %v8642_v21 = vor.u32 %v11630_v11, %v8641_v10  ;;  %v11614_v2 = vld [vmem:[#allocation12 + $0x214] sm:$0xf0]  ;;  %v8662_v10 = vor.u32 %v11632_v60, %v8659_v61  ;;  %v11648_v60 = vld [vmem:[#allocation12 + $0x32c] sm:$0xf]  ;;  %v8723_v61 = vld [vmem:[#allocation12 + $0x338] sm:$0xf0] }
 0x1f8   :  { %2842 = vmatpush.bf16.msrb.mxu0 %v8882_v62  ;;  %v8594_v62 = vor.u32 %v11618_v52, %v8593_v51  ;;  %v8578_v14 = vor.u32 %v11614_v2, %v8577_v1  ;;  %v11616_v52 = vld [vmem:[#allocation12 + $0x22c] sm:$0xf]  ;;  %v8563_v1 = vld [vmem:[#allocation12 + $0x1f8] sm:$0xf0] }
 0x1fa   :  { %2760 = vmatpush.bf16.msra.mxu2 %v8846_v26  ;;  %2770 = vmatpush.bf16.msra.mxu1 %v9038_v34  ;;  %v11626_v26 = vld [vmem:[#allocation12 + $0x274] sm:$0xf0]  ;;  %v8817_v34 = vld [vmem:[#allocation12 + $0x3e8] sm:$0xf] }
 0x1fb   :  { %2857 = vmatpush.bf16.msrb.mxu3 %v8994_v63  ;;  %v8626_v38 = vor.u32 %v11626_v26, %v8625_v25  ;;  %v8818_v40 = vor.u32 %v11674_v4, %v8817_v34  ;;  %v8419_v25 = vld [vmem:[#allocation12 + $0xd8] sm:$0xf0]  ;;  %v11624_v4 = vld [vmem:[#allocation12 + $0x26c] sm:$0xf] }
 0x1fc   :  { %2843 = vmatpush.bf16.msrb.mxu0 %v8866_v12  ;;  %v11628_v12 = vld [vmem:[#allocation12 + $0x28c] sm:$0xf]  ;;  %v8422_v31 = vor.u32 %v11572_v24, %v8419_v25  ;;  %v9129_v24 = vld [vmem:[#allocation13 + $0x60] sm:$0xf]  ;;  %v11752_v25 = vld [vmem:[#allocation13 + $0x64] sm:$0xf0] }
 0x1fe   :  { %2761 = vmatpush.bf16.msra.mxu2 %v8830_v55  ;;  %2771 = vmatpush.bf16.msra.mxu1 %v9022_v43  ;;  %v8691_v55 = vld [vmem:[#allocation12 + $0x2f8] sm:$0xf0]  ;;  %v11670_v43 = vld [vmem:[#allocation12 + $0x3d4] sm:$0xf0] }
 0x1ff   :  { %2858 = vmatpush.bf16.msrb.mxu3 %v8978_v13  ;;  %v8694_v46 = vor.u32 %v11640_v36, %v8691_v55  ;;  %v8802_v39 = vor.u32 %v11670_v43, %v8801_v42  ;;  %v8643_v13 = vld [vmem:[#allocation12 + $0x298] sm:$0xf0]  ;;  %v11620_v55 = vld [vmem:[#allocation12 + $0x24c] sm:$0xf] }
 0x200   :  { %2844 = vmatpush.bf16.msrb.mxu0 %v8850_v27  ;;  %v8646_v26 = vor.u32 %v11628_v12, %v8643_v13  ;;  %v8627_v27 = vld [vmem:[#allocation12 + $0x278] sm:$0xf0]  ;;  %v9137_v12 = vld [vmem:[#allocation13 + $0x70] sm:$0xf]  ;;  %v11754_v13 = vld [vmem:[#allocation13 + $0x74] sm:$0xf0] }
 0x201   :  { %2762 = vmatmul.bf16.vlgmr.msra.gmra.mxu2 %v13113_v37  ;;  %v8755_v36 = vld [vmem:[#allocation12 + $0x378] sm:$0xf0]  ;;  %v8630_v41 = vor.u32 %v11624_v4, %v8627_v27  ;;  %v11552_v4 = vld [vmem:[#allocation12 + $0x2c] sm:$0xf] }
 0x202   :  { %2810 = vmatpush.bf16.msrb.mxu2 %v8690_v19  ;;  %2772 = vmatpush.bf16.msra.mxu1 %v9006_v53  ;;  %v8819_v19 = vld [vmem:[#allocation12 + $0x3f8] sm:$0xf0]  ;;  %v8785_v53 = vld [vmem:[#allocation12 + $0x3a8] sm:$0xf]  ;;  %v8758_v42 = vor.u32 %v11656_v33, %v8755_v36  ;;  %v11750_v33 = vld [vmem:[#allocation13 + $0x54] sm:$0xf0] }
 0x203   :  { %2859 = vmatpush.bf16.msrb.mxu3 %v8962_v28  ;;  %v8822_v47 = vor.u32 %v11672_v45, %v8819_v19  ;;  %v8786_v63 = vor.u32 %v11666_v54, %v8785_v53  ;;  %v8611_v43 = vld [vmem:[#allocation12 + $0x258] sm:$0xf0]  ;;  %v8721_v45 = vld [vmem:[#allocation12 + $0x328] sm:$0xf] }
 0x204   :  { %2845 = vmatpush.bf16.msrb.mxu0 %v8834_v44  ;;  %v8595_v53 = vld [vmem:[#allocation12 + $0x238] sm:$0xf0] }
 0x205   :  { %v8598_v2 = vor.u32 %v11616_v52, %v8595_v53  ;;  %v8339_v27 = vld [vmem:[#allocation12 + $0x38] sm:$0xf0] }
 0x206   :  { %2811 = vmatpush.bf16.msrb.mxu2 %v8674_v57  ;;  %2773 = vmatpush.bf16.msra.mxu1 %v8990_v3  ;;  %v8803_v57 = vld [vmem:[#allocation12 + $0x3d8] sm:$0xf0]  ;;  %v8769_v3 = vld [vmem:[#allocation12 + $0x388] sm:$0xf]  ;;  %v8342_v36 = vor.u32 %v11552_v4, %v8339_v27  ;;  %v11684_v27 = vld [vmem:[#allocation12 + $0x44c] sm:$0xf] }
 0x207   :  { %2860 = vmatmul.bf16.vlgmr.msrb.gmra.mxu3 %v13110_v0  ;;  %v8806_v59 = vor.u32 %v11668_v56, %v8803_v57  ;;  %2846 = vmatmul.bf16.vlgmr.msrb.gmra.mxu0 %v13113_v37  ;;  %v8770_v16 = vor.u32 %v11662_v5, %v8769_v3  ;;  %v8705_v56 = vld [vmem:[#allocation12 + $0x308] sm:$0xf]  ;;  %v11646_v57 = vld [vmem:[#allocation12 + $0x314] sm:$0xf0]  ;;  %v8726_v3 = vor.u32 %v11648_v60, %v8723_v61  ;;  %v11612_v5 = vld [vmem:[#allocation12 + $0x20c] sm:$0xf] }
 0x208   :  { %2894 = vmatpush.bf16.msra.mxu0 %v8694_v46  ;;  %2908 = vmatpush.bf16.msra.mxu3 %v8822_v47  ;;  %v11650_v46 = vld [vmem:[#allocation12 + $0x334] sm:$0xf0]  ;;  %v11652_v47 = vld [vmem:[#allocation12 + $0x34c] sm:$0xf]  ;;  %v8931_v52 = vld [vmem:[#allocation12 + $0x4d8] sm:$0xf0] }
 0x209   :  { %v8742_v51 = vor.u32 %v11652_v47, %v8739_v48  ;;  %v8722_v54 = vor.u32 %v11650_v46, %v8721_v45  ;;  %v11748_v46 = vld [vmem:[#allocation13 + $0x44] sm:$0xf0]  ;;  %v8915_v60 = vld [vmem:[#allocation12 + $0x4b8] sm:$0xf0] }
 0x20a   :  { %2812 = vmatpush.bf16.msrb.mxu2 %v8658_v6  ;;  %2774 = vmatpush.bf16.msra.mxu1 %v8974_v17  ;;  %v8787_v6 = vld [vmem:[#allocation12 + $0x3b8] sm:$0xf0]  ;;  %v8753_v17 = vld [vmem:[#allocation12 + $0x368] sm:$0xf] }
 0x20b   :  { %v8790_v11 = vor.u32 %v11664_v7, %v8787_v6  ;;  %v8754_v28 = vor.u32 %v11658_v20, %v8753_v17  ;;  %v8579_v7 = vld [vmem:[#allocation12 + $0x218] sm:$0xf0]  ;;  %v8706_v6 = vor.u32 %v11646_v57, %v8705_v56  ;;  %v11588_v57 = vld [vmem:[#allocation12 + $0x14c] sm:$0xf] }
 0x20c   :  { %2895 = vmatpush.bf16.msra.mxu0 %v8678_v58  ;;  %2909 = vmatpush.bf16.msra.mxu3 %v8806_v59  ;;  %v11560_v59 = vld [vmem:[#allocation12 + $0x6c] sm:$0xf]  ;;  %v8547_v17 = vld [vmem:[#allocation12 + $0x1d8] sm:$0xf0] }
 0x20d   :  { %v8707_v20 = vld [vmem:[#allocation12 + $0x318] sm:$0xf0] }
 0x20e   :  { %2813 = vmatpush.bf16.msrb.mxu2 %v8642_v21  ;;  %2775 = vmatpush.bf16.msra.mxu1 %v8958_v32  ;;  %v11660_v21 = vld [vmem:[#allocation12 + $0x38c] sm:$0xf]  ;;  %v11654_v32 = vld [vmem:[#allocation12 + $0x354] sm:$0xf0] }
 0x20f   :  { %v8774_v34 = vor.u32 %v11660_v21, %v8771_v23  ;;  %v8738_v44 = vor.u32 %v11654_v32, %v8737_v29  ;;  %v9138_v21 = vor.u32 %v11754_v13, %v9137_v12  ;;  %v8531_v29 = vld [vmem:[#allocation12 + $0x1b8] sm:$0xf0]  ;;  %v9121_v32 = vld [vmem:[#allocation13 + $0x50] sm:$0xf]  ;;  %v11580_v13 = vld [vmem:[#allocation12 + $0x10c] sm:$0xf] }
 0x210   :  { %2896 = vmatpush.bf16.msra.mxu0 %v8662_v10  ;;  %2910 = vmatpush.bf16.msra.mxu3 %v8790_v11  ;;  %v9122_v45 = vor.u32 %v11750_v33, %v9121_v32 }
 0x211   :  { %2776 = vmatmul.bf16.vlgmr.msra.gmra.mxu1 %v13110_v0 }
 0x212   :  { %2814 = vmatpush.bf16.msrb.mxu2 %v8626_v38  ;;  %2824 = vmatpush.bf16.msrb.mxu1 %v8818_v40  ;;  %v11568_v38 = vld [vmem:[#allocation12 + $0xac] sm:$0xf]  ;;  %v8403_v40 = vld [vmem:[#allocation12 + $0xb8] sm:$0xf0] }
 0x213   :  { %v8406_v19 = vor.u32 %v11568_v38, %v8403_v40  ;;  %v11548_v40 = vld [vmem:[#allocation12 + $0xc] sm:$0xf] }
 0x214   :  { %2897 = vmatpush.bf16.msra.mxu0 %v8646_v26  ;;  %2911 = vmatpush.bf16.msra.mxu3 %v8774_v34  ;;  %v8358_v26 = vor.u32 %v11556_v8, %v8355_v9  ;;  %v9089_v9 = vld [vmem:[#allocation13 + $0x10] sm:$0xf] }
 0x216   :  { %2815 = vmatpush.bf16.msrb.mxu2 %v8610_v50  ;;  %2825 = vmatpush.bf16.msrb.mxu1 %v8802_v39  ;;  %v8387_v50 = vld [vmem:[#allocation12 + $0x98] sm:$0xf0]  ;;  %v8614_v39 = vor.u32 %v11620_v55, %v8611_v43  ;;  %v11704_v43 = vld [vmem:[#allocation12 + $0x4ec] sm:$0xf] }
 0x217   :  { %v8390_v58 = vor.u32 %v11564_v49, %v8387_v50  ;;  %v8515_v55 = vld [vmem:[#allocation12 + $0x198] sm:$0xf0]  ;;  %v11592_v50 = vld [vmem:[#allocation12 + $0x16c] sm:$0xf] }
 0x218   :  { %2898 = vmatpush.bf16.msra.mxu0 %v8630_v41  ;;  %2912 = vmatpush.bf16.msra.mxu3 %v8758_v42  ;;  %v8323_v41 = vld [vmem:[#allocation12 + $0x18] sm:$0xf0]  ;;  %v11596_v42 = vld [vmem:[#allocation12 + $0x18c] sm:$0xf] }
 0x219   :  { %v8326_v47 = vor.u32 %v11548_v40, %v8323_v41  ;;  %v8518_v48 = vor.u32 %v11596_v42, %v8515_v55  ;;  %v9131_v40 = vld [vmem:[#allocation13 + $0x68] sm:$0xf0] }
 0x21a   :  { %2816 = vmatpush.bf16.msrb.mxu2 %v8594_v62  ;;  %2826 = vmatpush.bf16.msrb.mxu1 %v8786_v63  ;;  %v8371_v62 = vld [vmem:[#allocation12 + $0x78] sm:$0xf0]  ;;  %v11608_v63 = vld [vmem:[#allocation12 + $0x1ec] sm:$0xf] }
 0x21b   :  { %v8374_v10 = vor.u32 %v11560_v59, %v8371_v62  ;;  %v8566_v11 = vor.u32 %v11608_v63, %v8563_v1  ;;  %v11696_v59 = vld [vmem:[#allocation12 + $0x4ac] sm:$0xf]  ;;  %v9097_v62 = vld [vmem:[#allocation13 + $0x20] sm:$0xf]  ;;  %v11744_v63 = vld [vmem:[#allocation13 + $0x24] sm:$0xf0] }
 0x21c   :  { %2899 = vmatpush.bf16.msra.mxu0 %v8614_v39  ;;  %2913 = vmatpush.bf16.msra.mxu3 %v8742_v51  ;;  %v8499_v39 = vld [vmem:[#allocation12 + $0x178] sm:$0xf0]  ;;  %v11700_v51 = vld [vmem:[#allocation12 + $0x4cc] sm:$0xf]  ;;  %v9098_v8 = vor.u32 %v11744_v63, %v9097_v62 }
 0x21d   :  { %v8502_v56 = vor.u32 %v11592_v50, %v8499_v39  ;;  %v11680_v55 = vld [vmem:[#allocation12 + $0x42c] sm:$0xf]  ;;  %v9123_v50 = vld [vmem:[#allocation13 + $0x58] sm:$0xf0] }
 0x21e   :  { %2817 = vmatpush.bf16.msrb.mxu2 %v8578_v14  ;;  %2827 = vmatpush.bf16.msrb.mxu1 %v8770_v16  ;;  %v11644_v14 = vld [vmem:[#allocation12 + $0x30c] sm:$0xf] }
 0x21f   :  { %v11604_v16 = vld [vmem:[#allocation12 + $0x1cc] sm:$0xf]  ;;  %v8710_v23 = vor.u32 %v11644_v14, %v8707_v20 }
 0x220   :  { %2900 = vmatpush.bf16.msra.mxu0 %v8598_v2  ;;  %2914 = vmatpush.bf16.msra.mxu3 %v8726_v3  ;;  %v8550_v34 = vor.u32 %v11604_v16, %v8547_v17  ;;  %v8918_v2 = vor.u32 %v11696_v59, %v8915_v60  ;;  %v11584_v3 = vld [vmem:[#allocation12 + $0x12c] sm:$0xf]  ;;  %v8883_v16 = vld [vmem:[#allocation12 + $0x478] sm:$0xf0]  ;;  %v11747_v60 = vld [vmem:[#allocation13 + $0x44] sm:$0xf] }
 0x221   :  { %2818 = vmatmul.bf16.vlgmr.msrb.gmra.mxu2 %v13116_v15  ;;  %v11688_v14 = vld [vmem:[#allocation12 + $0x46c] sm:$0xf] }
 0x222   :  { %2866 = vmatpush.bf16.msra.mxu2 %v8438_v18  ;;  %2828 = vmatpush.bf16.msrb.mxu1 %v8754_v28  ;;  %v8582_v18 = vor.u32 %v11612_v5, %v8579_v7  ;;  %v11600_v28 = vld [vmem:[#allocation12 + $0x1ac] sm:$0xf]  ;;  %v8467_v5 = vld [vmem:[#allocation12 + $0x138] sm:$0xf0] }
 0x223   :  { %v8534_v38 = vor.u32 %v11600_v28, %v8531_v29  ;;  %v11692_v7 = vld [vmem:[#allocation12 + $0x48c] sm:$0xf]  ;;  %v8867_v28 = vld [vmem:[#allocation12 + $0x458] sm:$0xf0] }
 0x224   :  { %2901 = vmatpush.bf16.msra.mxu0 %v8582_v18  ;;  %2915 = vmatpush.bf16.msra.mxu3 %v8710_v23  ;;  %v11736_v17 = vld [vmem:[#allocation12 + $0x5ec] sm:$0xf]  ;;  %v9075_v18 = vld [vmem:[#allocation12 + $0x5f8] sm:$0xf0]  ;;  %v11740_v23 = vld [vmem:[#allocation13 + $0x4] sm:$0xf0]  ;;  %v8870_v41 = vor.u32 %v11684_v27, %v8867_v28 }
 0x225   :  { %v9078_v4 = vor.u32 %v11736_v17, %v9075_v18  ;;  %v11732_v29 = vld [vmem:[#allocation12 + $0x5cc] sm:$0xf] }
 0x226   :  { %2867 = vmatpush.bf16.msra.mxu2 %v8422_v31  ;;  %2829 = vmatpush.bf16.msrb.mxu1 %v8738_v44  ;;  %v9130_v31 = vor.u32 %v11752_v25, %v9129_v24  ;;  %v8947_v44 = vld [vmem:[#allocation12 + $0x4f8] sm:$0xf0]  ;;  %v11753_v25 = vld [vmem:[#allocation13 + $0x74] sm:$0xf]  ;;  %v9099_v27 = vld [vmem:[#allocation13 + $0x28] sm:$0xf0] }
 0x227   :  { %2902 = vmatmul.bf16.vlgmr.msra.gmra.mxu0 %v13116_v15  ;;  %2916 = vmatmul.bf16.vlgmr.msra.gmra.mxu3 %v13119_v30  ;;  %v8950_v49 = vor.u32 %v11704_v43, %v8947_v44  ;;  %v9105_v15 = vld [vmem:[#allocation13 + $0x30] sm:$0xf]  ;;  %v8851_v43 = vld [vmem:[#allocation12 + $0x438] sm:$0xf0]  ;;  %v11728_v44 = vld [vmem:[#allocation12 + $0x5ac] sm:$0xf] }
 0x228   :  { %3352 = vmatpush.bf16.msrb.mxu0 %v9138_v21  ;;  %v9081_v21 = vld [vmem:[#allocation13] sm:$0xf]  ;;  %v8854_v39 = vor.u32 %v11680_v55, %v8851_v43  ;;  %v11741_v55 = vld [vmem:[#allocation13 + $0x14] sm:$0xf]  ;;  %v9091_v43 = vld [vmem:[#allocation13 + $0x18] sm:$0xf0] }
 0x229   :  { %v9082_v32 = vor.u32 %v11740_v23, %v9081_v21  ;;  %v8995_v21 = vld [vmem:[#allocation12 + $0x558] sm:$0xf0] }
 0x22a   :  { %2868 = vmatpush.bf16.msra.mxu2 %v8406_v19  ;;  %2830 = vmatpush.bf16.msrb.mxu1 %v8722_v54  ;;  %v9113_v19 = vld [vmem:[#allocation13 + $0x40] sm:$0xf]  ;;  %v11746_v54 = vld [vmem:[#allocation13 + $0x34] sm:$0xf0] }
 0x22b   :  { %v9114_v53 = vor.u32 %v11748_v46, %v9113_v19  ;;  %v9106_v61 = vor.u32 %v11746_v54, %v9105_v15  ;;  %v12354_v19 = vld [vmem:[%s13470_s1] ss:$0 sm:$0xff]  ;;  %v2623_v46 = vpop.f32.mrf.mxu0  ;;  %v9027_v15 = vld [vmem:[#allocation12 + $0x598] sm:$0xf0]  ;;  %v2637_v54 = vpop.f32.mrf.mxu3 }
 0x22c   :  { %3353 = vmatpush.bf16.msrb.mxu0 %v9130_v31  ;;  %v9059_v31 = vld [vmem:[#allocation12 + $0x5d8] sm:$0xf0] }
 0x22d   :  { %v9062_v42 = vor.u32 %v11732_v29, %v9059_v31 }
 0x22e   :  { %2869 = vmatpush.bf16.msra.mxu2 %v8390_v58  ;;  %2831 = vmatpush.bf16.msrb.mxu1 %v8706_v6  ;;  %v8483_v58 = vld [vmem:[#allocation12 + $0x158] sm:$0xf0] }
 0x22f   :  { %v8486_v1 = vor.u32 %v11588_v57, %v8483_v58  ;;  %v8899_v6 = vld [vmem:[#allocation12 + $0x498] sm:$0xf0] }
 0x230   :  { %3354 = vmatpush.bf16.msrb.mxu0 %v9122_v45  ;;  %v8902_v12 = vor.u32 %v11692_v7, %v8899_v6  ;;  %v9043_v45 = vld [vmem:[#allocation12 + $0x5b8] sm:$0xf0] }
 0x231   :  { %2832 = vmatmul.bf16.vlgmr.msrb.gmra.mxu1 %v13119_v30  ;;  %v8934_v30 = vor.u32 %v11700_v51, %v8931_v52  ;;  %v9046_v51 = vor.u32 %v11728_v44, %v9043_v45  ;;  %v8835_v52 = vld [vmem:[#allocation12 + $0x418] sm:$0xf0] }
 0x232   :  { %2870 = vmatpush.bf16.msra.mxu2 %v8374_v10  ;;  %2880 = vmatpush.bf16.msra.mxu1 %v8566_v11  ;;  %v11742_v10 = vld [vmem:[#allocation13 + $0x14] sm:$0xf0]  ;;  %v8470_v11 = vor.u32 %v11584_v3, %v8467_v5  ;;  %v11720_v5 = vld [vmem:[#allocation12 + $0x56c] sm:$0xf]  ;;  %v9011_v6 = vld [vmem:[#allocation12 + $0x578] sm:$0xf0] }
 0x233   :  { %v9090_v20 = vor.u32 %v11742_v10, %v9089_v9  ;;  %v11768_v9 = vld [vmem:[#allocation13 + $0xe4] sm:$0xf0]  ;;  %v2625_v17 = vpop.f32.mrf.mxu0 }
 0x234   :  { %3355 = vmatpush.bf16.msrb.mxu0 %v9114_v53  ;;  %v11724_v53 = vld [vmem:[#allocation12 + $0x58c] sm:$0xf] }
 0x235   :  { %v9030_v3 = vor.u32 %v11724_v53, %v9027_v15 }
 0x236   :  { %2871 = vmatpush.bf16.msra.mxu2 %v8358_v26  ;;  %2881 = vmatpush.bf16.msra.mxu1 %v8550_v34  ;;  %v9139_v26 = vld [vmem:[#allocation13 + $0x78] sm:$0xf0]  ;;  %v8886_v34 = vor.u32 %v11688_v14, %v8883_v16  ;;  %v11766_v14 = vld [vmem:[#allocation13 + $0xd4] sm:$0xf0]  ;;  %v9014_v16 = vor.u32 %v11720_v5, %v9011_v6  ;;  %v11756_v5 = vld [vmem:[#allocation13 + $0x84] sm:$0xf0] }
 0x238   :  { %3356 = vmatpush.bf16.msrb.mxu0 %v9106_v61  ;;  %v9115_v61 = vld [vmem:[#allocation13 + $0x48] sm:$0xf0] }
 0x239   :  { %v9118_v10 = vor.u32 %v11747_v60, %v9115_v61  ;;  %v9153_v60 = vld [vmem:[#allocation13 + $0x90] sm:$0xf]  ;;  %v11758_v61 = vld [vmem:[#allocation13 + $0x94] sm:$0xf0] }
 0x23a   :  { %2872 = vmatpush.bf16.msra.mxu2 %v8342_v36  ;;  %2882 = vmatpush.bf16.msra.mxu1 %v8534_v38  ;;  %v9142_v36 = vor.u32 %v11753_v25, %v9139_v26  ;;  %v11751_v38 = vld [vmem:[#allocation13 + $0x64] sm:$0xf]  ;;  %v9177_v26 = vld [vmem:[#allocation13 + $0xc0] sm:$0xf] }
 0x23c   :  { %3357 = vmatpush.bf16.msrb.mxu0 %v9098_v8  ;;  %v9193_v8 = vld [vmem:[#allocation13 + $0xe0] sm:$0xf] }
 0x23e   :  { %2873 = vmatpush.bf16.msra.mxu2 %v8326_v47  ;;  %2883 = vmatpush.bf16.msra.mxu1 %v8518_v48  ;;  %v9134_v47 = vor.u32 %v11751_v38, %v9131_v40  ;;  %v11676_v48 = vld [vmem:[#allocation12 + $0x40c] sm:$0xf] }
 0x240   :  { %3358 = vmatpush.bf16.msrb.mxu0 %v9090_v20  ;;  %v11716_v20 = vld [vmem:[#allocation12 + $0x54c] sm:$0xf] }
 0x241   :  { %2874 = vmatmul.bf16.vlgmr.msra.gmra.mxu2 %v13106_v35  ;;  %v8451_v35 = vld [vmem:[#allocation12 + $0x118] sm:$0xf0]  ;;  %v8998_v29 = vor.u32 %v11716_v20, %v8995_v21  ;;  %v9265_v20 = vld [vmem:[#allocation13 + $0x170] sm:$0xf]  ;;  %v11786_v21 = vld [vmem:[#allocation13 + $0x174] sm:$0xf0] }
 0x242   :  { %2922 = vmatpush.bf16.msrb.mxu2 %v8950_v49  ;;  %2884 = vmatpush.bf16.msra.mxu1 %v8502_v56  ;;  %v8454_v24 = vor.u32 %v11580_v13, %v8451_v35  ;;  %v11749_v49 = vld [vmem:[#allocation13 + $0x54] sm:$0xf]  ;;  %v13144_v56 = vld [vmem:[%s13427_s11] sm:$0xf]  ;;  %v9107_v13 = vld [vmem:[#allocation13 + $0x38] sm:$0xf0] }
 0x243   :  { %v9126_v57 = vor.u32 %v11749_v49, %v9123_v50  ;;  %v9185_v35 = vld [vmem:[#allocation13 + $0xd0] sm:$0xf]  ;;  %v9094_v49 = vor.u32 %v11741_v55, %v9091_v43  ;;  %v9161_v50 = vld [vmem:[#allocation13 + $0xa0] sm:$0xf]  ;;  %v9179_v55 = vld [vmem:[#allocation13 + $0xc8] sm:$0xf0] }
 0x244   :  { %v1394_v33 = vpop.f32.mrf.mxu2  ;;  %3359 = vmatpush.bf16.msrb.mxu0 %v9082_v32  ;;  %v9186_v23 = vor.u32 %v11766_v14, %v9185_v35  ;;  %v9203_v35 = vld [vmem:[#allocation13 + $0xf8] sm:$0xf0] }
 0x245   :  { %v1395_v59 = vadd.f32 %v12354_v19, %v1394_v33  ;;  %v11712_v33 = vld [vmem:[#allocation12 + $0x52c] sm:$0xf] }
 0x246   :  { %2923 = vmatpush.bf16.msrb.mxu2 %v8934_v30  ;;  %2885 = vmatpush.bf16.msra.mxu1 %v8486_v1  ;;  %v11770_v30 = vld [vmem:[#allocation13 + $0xf4] sm:$0xf0]  ;;  %v1616_v1 = vperm.slane %v13144_v56, 0  ;;  %v11708_v19 = vld [vmem:[#allocation12 + $0x50c] sm:$0xf] }
 0x248   :  { %3408 = vmatpush.bf16.msra.mxu0 %v9142_v36  ;;  %v2624_v18 = vadd.f32 %v2623_v46, %v1616_v1  ;;  %v8979_v36 = vld [vmem:[#allocation12 + $0x538] sm:$0xf0]  ;;  %v2626_v44 = vadd.f32 %v2625_v17, %v1616_v1 }
 0x249   :  { %v8963_v46 = vld [vmem:[#allocation12 + $0x518] sm:$0xf0] }
 0x24a   :  { %2924 = vmatpush.bf16.msrb.mxu2 %v8918_v2  ;;  %2886 = vmatpush.bf16.msra.mxu1 %v8470_v11  ;;  %v8838_v2 = vor.u32 %v11676_v48, %v8835_v52  ;;  %v9194_v11 = vor.u32 %v11768_v9, %v9193_v8  ;;  %v2638_v32 = vadd.f32 %v2637_v54, %v2624_v18  ;;  %v2679_v48 = vpop.f32.mrf.mxu0  ;;  %v9083_v52 = vld [vmem:[#allocation13 + $0x8] sm:$0xf0] }
 0x24b   :  { %v8966_v15 = vor.u32 %v11708_v19, %v8963_v46  ;;  %v1617_v19 = vperm.slane %v13144_v56, 1 }
 0x24c   :  { %3409 = vmatpush.bf16.msra.mxu0 %v9134_v47  ;;  %v13146_v62 = vpop.f32.mrf.mxu2 }
 0x24e   :  { %2925 = vmatpush.bf16.msrb.mxu2 %v8902_v12  ;;  %2887 = vmatpush.bf16.msra.mxu1 %v8454_v24  ;;  %v1408_v63 = vpop.f32.mrf.mxu1  ;;  %v11745_v12 = vld [vmem:[#allocation13 + $0x34] sm:$0xf]  ;;  %v2639_v24 = vpop.f32.mrf.mxu3 }
 0x24f   :  { %v13149_v7 = vadd.f32 %v1408_v63, %v1395_v59  ;;  %v9110_v25 = vor.u32 %v11745_v12, %v9107_v13  ;;  %v11769_v13 = vld [vmem:[#allocation13 + $0xf4] sm:$0xf] }
 0x250   :  { %3410 = vmatpush.bf16.msra.mxu0 %v9126_v57 }
 0x251   :  { %2888 = vmatmul.bf16.vlgmr.msra.gmra.mxu1 %v13103_v22  ;;  %v9201_v22 = vld [vmem:[#allocation13 + $0xf0] sm:$0xf] }
 0x252   :  { %2926 = vmatpush.bf16.msrb.mxu2 %v8886_v34  ;;  %2936 = vmatpush.bf16.msrb.mxu1 %v9078_v4  ;;  %v9202_v58 = vor.u32 %v11770_v30, %v9201_v22  ;;  %v11764_v34 = vld [vmem:[#allocation13 + $0xc4] sm:$0xf0]  ;;  %v11743_v4 = vld [vmem:[#allocation13 + $0x24] sm:$0xf]  ;;  %v2640_v22 = vadd.f32 %v2639_v24, %v2626_v44  ;;  %v2681_v8 = vpop.f32.mrf.mxu0  ;;  %v9241_v44 = vld [vmem:[#allocation13 + $0x140] sm:$0xf] }
 0x253   :  { %v9178_v38 = vor.u32 %v11764_v34, %v9177_v26  ;;  %v9102_v40 = vor.u32 %v11743_v4, %v9099_v27  ;;  %v9257_v4 = vld [vmem:[#allocation13 + $0x160] sm:$0xf]  ;;  %v11784_v27 = vld [vmem:[#allocation13 + $0x164] sm:$0xf0] }
 0x254   :  { %3366 = vmatpush.bf16.msrb.mxu3 %v9202_v58  ;;  %3411 = vmatpush.bf16.msra.mxu0 %v9118_v10  ;;  %v2651_v31 = vpop.f32.mrf.mxu2 }
 0x255   :  { %v2652_v45 = vadd.f32 %v2651_v31, %v2638_v32  ;;  %v9258_v32 = vor.u32 %v11784_v27, %v9257_v4  ;;  %v11783_v4 = vld [vmem:[#allocation13 + $0x164] sm:$0xf]  ;;  %v9259_v27 = vld [vmem:[#allocation13 + $0x168] sm:$0xf0] }
 0x256   :  { %2927 = vmatpush.bf16.msrb.mxu2 %v8870_v41  ;;  %2937 = vmatpush.bf16.msrb.mxu1 %v9062_v42  ;;  %v13152_v28 = vpop.f32.mrf.mxu1  ;;  %v9169_v41 = vld [vmem:[#allocation13 + $0xb0] sm:$0xf]  ;;  %v11762_v42 = vld [vmem:[#allocation13 + $0xb4] sm:$0xf0]  ;;  %v2693_v54 = vpop.f32.mrf.mxu3 }
 0x257   :  { %v9170_v47 = vor.u32 %v11762_v42, %v9169_v41  ;;  %v11763_v41 = vld [vmem:[#allocation13 + $0xc4] sm:$0xf] }
 0x258   :  { %3367 = vmatpush.bf16.msrb.mxu3 %v9194_v11  ;;  %3412 = vmatpush.bf16.msra.mxu0 %v9110_v25  ;;  %v9195_v25 = vld [vmem:[#allocation13 + $0xe8] sm:$0xf0]  ;;  %v9182_v43 = vor.u32 %v11763_v41, %v9179_v55 }
 0x25a   :  { %2928 = vmatpush.bf16.msrb.mxu2 %v8854_v39  ;;  %2938 = vmatpush.bf16.msrb.mxu1 %v9046_v51  ;;  %v11760_v39 = vld [vmem:[#allocation13 + $0xa4] sm:$0xf0]  ;;  %v11739_v51 = vld [vmem:[#allocation13 + $0x4] sm:$0xf] }
 0x25b   :  { %v9162_v57 = vor.u32 %v11760_v39, %v9161_v50  ;;  %v9086_v59 = vor.u32 %v11739_v51, %v9083_v52  ;;  %v9233_v50 = vld [vmem:[#allocation13 + $0x130] sm:$0xf]  ;;  %v11778_v39 = vld [vmem:[#allocation13 + $0x134] sm:$0xf0]  ;;  %v11759_v51 = vld [vmem:[#allocation13 + $0xa4] sm:$0xf] }
 0x25c   :  { %3368 = vmatpush.bf16.msrb.mxu3 %v9186_v23  ;;  %3413 = vmatpush.bf16.msra.mxu0 %v9102_v40  ;;  %v2653_v58 = vpop.f32.mrf.mxu2  ;;  %v11767_v23 = vld [vmem:[#allocation13 + $0xe4] sm:$0xf]  ;;  %v11782_v40 = vld [vmem:[#allocation13 + $0x154] sm:$0xf0] }
 0x25d   :  { %v2654_v1 = vadd.f32 %v2653_v58, %v2640_v22  ;;  %v9198_v26 = vor.u32 %v11767_v23, %v9195_v25  ;;  %v9225_v22 = vld [vmem:[#allocation13 + $0x120] sm:$0xf]  ;;  %v11757_v58 = vld [vmem:[#allocation13 + $0x94] sm:$0xf]  ;;  %v9267_v23 = vld [vmem:[#allocation13 + $0x178] sm:$0xf0] }
 0x25e   :  { %2929 = vmatpush.bf16.msrb.mxu2 %v8838_v2  ;;  %2939 = vmatpush.bf16.msrb.mxu1 %v9030_v3  ;;  %v2665_v53 = vpop.f32.mrf.mxu1  ;;  %v9154_v2 = vor.u32 %v11758_v61, %v9153_v60  ;;  %v9145_v3 = vld [vmem:[#allocation13 + $0x80] sm:$0xf]  ;;  %v2695_v12 = vpop.f32.mrf.mxu3 }
 0x25f   :  { %v2666_v30 = vadd.f32 %v2665_v53, %v2652_v45  ;;  %v9146_v11 = vor.u32 %v11756_v5, %v9145_v3  ;;  %v11780_v45 = vld [vmem:[#allocation13 + $0x144] sm:$0xf0]  ;;  %v9234_v53 = vor.u32 %v11778_v39, %v9233_v50  ;;  %v1618_v50 = vperm.slane %v13144_v56, 2  ;;  %v11777_v39 = vld [vmem:[#allocation13 + $0x134] sm:$0xf] }
 0x260   :  { %3369 = vmatpush.bf16.msrb.mxu3 %v9178_v38  ;;  %3414 = vmatpush.bf16.msra.mxu0 %v9094_v49  ;;  %v9249_v38 = vld [vmem:[#allocation13 + $0x150] sm:$0xf]  ;;  %v9242_v46 = vor.u32 %v11780_v45, %v9241_v44  ;;  %v11779_v45 = vld [vmem:[#allocation13 + $0x144] sm:$0xf] }
 0x261   :  { %2930 = vmatmul.bf16.vlgmr.msrb.gmra.mxu2 %v13113_v37  ;;  %v8982_v37 = vor.u32 %v11712_v33, %v8979_v36  ;;  %v2680_v63 = vadd.f32 %v2679_v48, %v2666_v30  ;;  %v9187_v33 = vld [vmem:[#allocation13 + $0xd8] sm:$0xf0]  ;;  %v9250_v42 = vor.u32 %v11782_v40, %v9249_v38  ;;  %v11776_v30 = vld [vmem:[#allocation13 + $0x124] sm:$0xf0] }
 0x262   :  { %2940 = vmatpush.bf16.msrb.mxu1 %v9014_v16  ;;  %v9206_v16 = vor.u32 %v11769_v13, %v9203_v35  ;;  %v9171_v48 = vld [vmem:[#allocation13 + $0xb8] sm:$0xf0]  ;;  %v9226_v61 = vor.u32 %v11776_v30, %v9225_v22  ;;  %v9329_v30 = vld [vmem:[#allocation13 + $0x1f0] sm:$0xf] }
 0x263   :  { %v2694_v9 = vadd.f32 %v2693_v54, %v2680_v63  ;;  %v9251_v38 = vld [vmem:[#allocation13 + $0x158] sm:$0xf0] }
 0x264   :  { %3370 = vmatpush.bf16.msrb.mxu3 %v9170_v47  ;;  %3415 = vmatpush.bf16.msra.mxu0 %v9086_v59  ;;  %v2707_v31 = vpop.f32.mrf.mxu2  ;;  %v11761_v47 = vld [vmem:[#allocation13 + $0xb4] sm:$0xf]  ;;  %v9155_v59 = vld [vmem:[#allocation13 + $0x98] sm:$0xf0] }
 0x265   :  { %v2950_v17 = vmax.f32 %v2694_v9, 0.0  ;;  %v9174_v49 = vor.u32 %v11761_v47, %v9171_v48  ;;  %v2708_v60 = vadd.f32 %v2707_v31, %v1617_v19  ;;  %v9158_v63 = vor.u32 %v11757_v58, %v9155_v59  ;;  %v11773_v59 = vld [vmem:[#allocation13 + $0x114] sm:$0xf] }
 0x266   :  { %2941 = vmatpush.bf16.msrb.mxu1 %v8998_v29  ;;  %v2667_v6 = vpop.f32.mrf.mxu1  ;;  %v11765_v29 = vld [vmem:[#allocation13 + $0xd4] sm:$0xf]  ;;  %v2749_v5 = vpop.f32.mrf.mxu3 }
 0x267   :  { %v2668_v10 = vadd.f32 %v2667_v6, %v2654_v1  ;;  %v9190_v36 = vor.u32 %v11765_v29, %v9187_v33  ;;  %v9217_v1 = vld [vmem:[#allocation13 + $0x110] sm:$0xf]  ;;  %v11755_v6 = vld [vmem:[#allocation13 + $0x84] sm:$0xf] }
 0x268   :  { %3371 = vmatpush.bf16.msrb.mxu3 %v9162_v57  ;;  %v2735_v57 = vpop.f32.mrf.mxu0 }
 0x269   :  { %v2682_v14 = vadd.f32 %v2681_v8, %v2668_v10  ;;  %v9147_v8 = vld [vmem:[#allocation13 + $0x88] sm:$0xf0] }
 0x26a   :  { %2942 = vmatpush.bf16.msrb.mxu1 %v8982_v37 }
 0x26b   :  { %v2696_v18 = vadd.f32 %v2695_v12, %v2682_v14  ;;  %v9150_v12 = vor.u32 %v11755_v6, %v9147_v8 }
 0x26c   :  { %3372 = vmatpush.bf16.msrb.mxu3 %v9154_v2  ;;  %v2709_v52 = vpop.f32.mrf.mxu2  ;;  %v11774_v2 = vld [vmem:[#allocation13 + $0x114] sm:$0xf0] }
 0x26d   :  { %v2954_v24 = vmax.f32 %v2696_v18, 0.0  ;;  %v2710_v10 = vadd.f32 %v2709_v52, %v1617_v19  ;;  %v11772_v18 = vld [vmem:[#allocation13 + $0x104] sm:$0xf0]  ;;  %v9243_v19 = vld [vmem:[#allocation13 + $0x148] sm:$0xf0] }
 0x26e   :  { %2943 = vmatpush.bf16.msrb.mxu1 %v8966_v15  ;;  %v2721_v37 = vpop.f32.mrf.mxu1  ;;  %v9163_v15 = vld [vmem:[#allocation13 + $0xa8] sm:$0xf0]  ;;  %v9246_v48 = vor.u32 %v11779_v45, %v9243_v19 }
 0x26f   :  { %v2958_v34 = vpack.c.bf16 %v2954_v24, %v2950_v17  ;;  %v9166_v54 = vor.u32 %v11759_v51, %v9163_v15  ;;  %v2722_v9 = vadd.f32 %v2721_v37, %v2708_v60  ;;  %v9209_v17 = vld [vmem:[#allocation13 + $0x100] sm:$0xf]  ;;  %v9235_v51 = vld [vmem:[#allocation13 + $0x138] sm:$0xf0]  ;;  %v9227_v15 = vld [vmem:[#allocation13 + $0x128] sm:$0xf0] }
 0x270   :  { %3373 = vmatpush.bf16.msrb.mxu3 %v9146_v11  ;;  %v9218_v11 = vor.u32 %v11774_v2, %v9217_v1  ;;  %v9238_v52 = vor.u32 %v11777_v39, %v9235_v51  ;;  %v9219_v60 = vld [vmem:[#allocation13 + $0x118] sm:$0xf0]  ;;  %v9321_v1 = vld [vmem:[#allocation13 + $0x1e0] sm:$0xf]  ;;  %v11800_v2 = vld [vmem:[#allocation13 + $0x1e4] sm:$0xf0] }
 0x271   :  { %2944 = vmatmul.bf16.vlgmr.msrb.gmra.mxu1 %v13110_v0  ;;  %v9266_v0 = vor.u32 %v11786_v21, %v9265_v20  ;;  %3360 = vmatmul.bf16.vlgmr.msrb.gmra.mxu0 %v2958_v34  ;;  %v2736_v14 = vadd.f32 %v2735_v57, %v2722_v9  ;;  %v9210_v20 = vor.u32 %v11772_v18, %v9209_v17  ;;  %v11785_v21 = vld [vmem:[#allocation13 + $0x174] sm:$0xf]  ;;  %v11802_v57 = vld [vmem:[#allocation13 + $0x1f4] sm:$0xf0]  ;;  %v11771_v9 = vld [vmem:[#allocation13 + $0x104] sm:$0xf] }
 0x272   :  { %v9270_v25 = vor.u32 %v11785_v21, %v9267_v23  ;;  %v9222_v6 = vor.u32 %v11773_v59, %v9219_v60  ;;  %v9313_v21 = vld [vmem:[#allocation13 + $0x1d0] sm:$0xf]  ;;  %v11798_v23 = vld [vmem:[#allocation13 + $0x1d4] sm:$0xf0]  ;;  %v11801_v51 = vld [vmem:[#allocation13 + $0x1f4] sm:$0xf] }
 0x273   :  { %3380 = vmatpush.bf16.msra.mxu2 %v9266_v0  ;;  %v2750_v24 = vadd.f32 %v2749_v5, %v2736_v14  ;;  %v11795_v60 = vld [vmem:[#allocation13 + $0x1c4] sm:$0xf] }
 0x274   :  { %3422 = vmatpush.bf16.msra.mxu3 %v9206_v16  ;;  %v2737_v16 = vpop.f32.mrf.mxu0 }
 0x276   :  { %v2723_v3 = vpop.f32.mrf.mxu1 }
 0x277   :  { %3381 = vmatpush.bf16.msra.mxu2 %v9258_v32  ;;  %v2724_v35 = vadd.f32 %v2723_v3, %v2710_v10  ;;  %v9262_v32 = vor.u32 %v11783_v4, %v9259_v27  ;;  %v9322_v3 = vor.u32 %v11800_v2, %v9321_v1  ;;  %v9211_v10 = vld [vmem:[#allocation13 + $0x108] sm:$0xf0]  ;;  %v11793_v1 = vld [vmem:[#allocation13 + $0x1b4] sm:$0xf]  ;;  %v9299_v2 = vld [vmem:[#allocation13 + $0x1b8] sm:$0xf0] }
 0x278   :  { %3423 = vmatpush.bf16.msra.mxu3 %v9198_v26 }
 0x279   :  { %v2738_v0 = vadd.f32 %v2737_v16, %v2724_v35 }
 0x27b   :  { %3382 = vmatpush.bf16.msra.mxu2 %v9250_v42 }
 0x27c   :  { %3424 = vmatpush.bf16.msra.mxu3 %v9190_v36  ;;  %v11781_v36 = vld [vmem:[#allocation13 + $0x154] sm:$0xf]  ;;  %v2791_v42 = vpop.f32.mrf.mxu0 }
 0x27d   :  { %v9254_v55 = vor.u32 %v11781_v36, %v9251_v38  ;;  %v2792_v58 = vadd.f32 %v2791_v42, %v1618_v50 }
 0x27f   :  { %3383 = vmatpush.bf16.msra.mxu2 %v9242_v46 }
 0x280   :  { %3425 = vmatpush.bf16.msra.mxu3 %v9182_v43 }
 0x281   :  { %3416 = vmatmul.bf16.vlgmr.msra.gmra.mxu0 %v2958_v34  ;;  %v2751_v34 = vpop.f32.mrf.mxu3 }
 0x282   :  { %v2752_v31 = vadd.f32 %v2751_v34, %v2738_v0  ;;  %v9305_v0 = vld [vmem:[#allocation13 + $0x1c0] sm:$0xf] }
 0x283   :  { %3384 = vmatpush.bf16.msra.mxu2 %v9234_v53  ;;  %v11775_v53 = vld [vmem:[#allocation13 + $0x124] sm:$0xf] }
 0x284   :  { %3426 = vmatpush.bf16.msra.mxu3 %v9174_v49  ;;  %v2763_v13 = vpop.f32.mrf.mxu2  ;;  %v9230_v22 = vor.u32 %v11775_v53, %v9227_v15  ;;  %v11799_v15 = vld [vmem:[#allocation13 + $0x1e4] sm:$0xf] }
 0x285   :  { %v2764_v29 = vadd.f32 %v2763_v13, %v2750_v24  ;;  %v9314_v24 = vor.u32 %v11798_v23, %v9313_v21  ;;  %v9275_v21 = vld [vmem:[#allocation13 + $0x188] sm:$0xf0] }
 0x287   :  { %3385 = vmatpush.bf16.msra.mxu2 %v9226_v61  ;;  %v9330_v61 = vor.u32 %v11802_v57, %v9329_v30  ;;  %v11797_v30 = vld [vmem:[#allocation13 + $0x1d4] sm:$0xf]  ;;  %v9315_v57 = vld [vmem:[#allocation13 + $0x1d8] sm:$0xf0] }
 0x288   :  { %3427 = vmatpush.bf16.msra.mxu3 %v9166_v54  ;;  %v2793_v54 = vpop.f32.mrf.mxu0  ;;  %v9318_v59 = vor.u32 %v11797_v30, %v9315_v57  ;;  %v9421_v57 = vld [vmem:[#allocation4 + $0x28] sm:$0xf0] }
 0x289   :  { %v2805_v44 = vpop.f32.mrf.mxu3  ;;  %3394 = vmatpush.bf16.msra.mxu1 %v9330_v61  ;;  %v9307_v61 = vld [vmem:[#allocation13 + $0x1c8] sm:$0xf0] }
 0x28a   :  { %v2806_v8 = vadd.f32 %v2805_v44, %v2792_v58 }
 0x28b   :  { %3386 = vmatpush.bf16.msra.mxu2 %v9218_v11  ;;  %v9214_v11 = vor.u32 %v11771_v9, %v9211_v10 }
 0x28c   :  { %3428 = vmatpush.bf16.msra.mxu3 %v9158_v63  ;;  %v2765_v33 = vpop.f32.mrf.mxu2 }
 0x28d   :  { %v2766_v41 = vadd.f32 %v2765_v33, %v2752_v31  ;;  %3395 = vmatpush.bf16.msra.mxu1 %v9322_v3  ;;  %v9297_v31 = vld [vmem:[#allocation13 + $0x1b0] sm:$0xf] }
 0x28e   :  { %v2777_v26 = vpop.f32.mrf.mxu1 }
 0x28f   :  { %3387 = vmatpush.bf16.msra.mxu2 %v9210_v20  ;;  %v2778_v40 = vadd.f32 %v2777_v26, %v2764_v29 }
 0x290   :  { %3429 = vmatpush.bf16.msra.mxu3 %v9150_v12  ;;  %v2794_v12 = vadd.f32 %v2793_v54, %v1618_v50  ;;  %v2847_v35 = vpop.f32.mrf.mxu0  ;;  %v11788_v50 = vld [vmem:[#allocation13 + $0x184] sm:$0xf0]  ;;  %v9323_v54 = vld [vmem:[#allocation13 + $0x1e8] sm:$0xf0] }
 0x291   :  { %v2951_v46 = vmax.f32 %v2778_v40, 0.0  ;;  %v2807_v63 = vpop.f32.mrf.mxu3  ;;  %3396 = vmatpush.bf16.msra.mxu1 %v9314_v24 }
 0x292   :  { %v2808_v17 = vadd.f32 %v2807_v63, %v2794_v12  ;;  %v9310_v63 = vor.u32 %v11795_v60, %v9307_v61  ;;  %v11817_v60 = vld [vmem:[#allocation16 + $0x70] sm:$0xff] }
 0x293   :  { %3436 = vmatpush.bf16.msrb.mxu2 %v9270_v25  ;;  %v11796_v25 = vld [vmem:[#allocation13 + $0x1c4] sm:$0xf0]  ;;  %v11821_v61 = vld [vmem:[#allocation4 + $0x14] sm:$0xf] }
 0x294   :  { %v9306_v4 = vor.u32 %v11796_v25, %v9305_v0 }
 0x296   :  { %v2779_v43 = vpop.f32.mrf.mxu1  ;;  %3397 = vmatpush.bf16.msra.mxu1 %v9306_v4 }
 0x297   :  { %3437 = vmatpush.bf16.msrb.mxu2 %v9262_v32  ;;  %v2780_v37 = vadd.f32 %v2779_v43, %v2766_v41  ;;  %v11794_v32 = vld [vmem:[#allocation13 + $0x1b4] sm:$0xf0]  ;;  %v9289_v43 = vld [vmem:[#allocation13 + $0x1a0] sm:$0xf] }
 0x298   :  { %v2849_v29 = vpop.f32.mrf.mxu0  ;;  %v9298_v38 = vor.u32 %v11794_v32, %v9297_v31 }
 0x299   :  { %v2955_v47 = vmax.f32 %v2780_v37, 0.0  ;;  %v2861_v16 = vpop.f32.mrf.mxu3  ;;  %v11792_v37 = vld [vmem:[#allocation13 + $0x1a4] sm:$0xf0] }
 0x29a   :  { %3398 = vmatpush.bf16.msra.mxu1 %v9298_v38  ;;  %v9290_v45 = vor.u32 %v11792_v37, %v9289_v43 }
 0x29b   :  { %3438 = vmatpush.bf16.msrb.mxu2 %v9254_v55  ;;  %v2959_v49 = vpack.c.bf16 %v2955_v47, %v2951_v46  ;;  %v9281_v46 = vld [vmem:[#allocation13 + $0x190] sm:$0xf]  ;;  %v11790_v47 = vld [vmem:[#allocation13 + $0x194] sm:$0xf0] }
 0x29d   :  { %3374 = vmatmul.bf16.vlgmr.msrb.gmra.mxu3 %v2959_v49 }
 0x29e   :  { %3399 = vmatpush.bf16.msra.mxu1 %v9290_v45 }
 0x29f   :  { %3439 = vmatpush.bf16.msrb.mxu2 %v9246_v48  ;;  %v9282_v48 = vor.u32 %v11790_v47, %v9281_v46  ;;  %v11810_v46 = vld [vmem:[#allocation16 + $0x38] sm:$0xff]  ;;  %v11825_v47 = vld [vmem:[#allocation4 + $0x34] sm:$0xf] }
 0x2a0   :  { %3602 = vmatpush.bf16.msrb.mxu0 %v11810_v46 }
 0x2a1   :  { %v2863_v40 = vpop.f32.mrf.mxu3 }
 0x2a2   :  { %3400 = vmatpush.bf16.msra.mxu1 %v9282_v48  ;;  %v9429_v48 = vld [vmem:[#allocation4 + $0x38] sm:$0xf0] }
 0x2a3   :  { %3440 = vmatpush.bf16.msrb.mxu2 %v9238_v52  ;;  %v9331_v52 = vld [vmem:[#allocation13 + $0x1f8] sm:$0xf0] }
 0x2a4   :  { %v2819_v5 = vpop.f32.mrf.mxu2  ;;  %v9334_v53 = vor.u32 %v11801_v51, %v9331_v52  ;;  %v2903_v12 = vpop.f32.mrf.mxu0  ;;  %v11807_v51 = vld [vmem:[#allocation16 + $0x20] sm:$0xff]  ;;  %v3635_v52 = vlaneseq }
 0x2a5   :  { %v2820_v13 = vadd.f32 %v2819_v5, %v2806_v8  ;;  %v9302_v5 = vor.u32 %v11793_v1, %v9299_v2  ;;  %v9291_v8 = vld [vmem:[#allocation13 + $0x1a8] sm:$0xf0]  ;;  %v12840_v2 = vmov 0.0  }
 0x2a6   :  { %v3636_v30 = vand.u32 127, %v3635_v52 }
 0x2a7   :  { %3441 = vmatpush.bf16.msrb.mxu2 %v9230_v22  ;;  %v9326_v22 = vor.u32 %v11799_v15, %v9323_v54  ;;  %v11806_v15 = vld [vmem:[#allocation16 + $0x18] sm:$0xff] }
 0x2a8   :  { %v11818_v54 = vld [vmem:[#allocation16 + $0x78] sm:$0xff] }
 0x2a9   :  { %3616 = vmatpush.bf16.msrb.mxu3 %v11818_v54 }
 0x2aa   :  { %v2917_v23 = vpop.f32.mrf.mxu3 }
 0x2ab   :  { %3442 = vmatpush.bf16.msrb.mxu2 %v9222_v6  ;;  %v11791_v6 = vld [vmem:[#allocation13 + $0x1a4] sm:$0xf] }
 0x2ac   :  { %v2821_v20 = vpop.f32.mrf.mxu2  ;;  %v9294_v10 = vor.u32 %v11791_v6, %v9291_v8  ;;  %v11804_v6 = vld [vmem:[#allocation16 + $0x8] sm:$0xff] }
 0x2ad   :  { %3430 = vmatmul.bf16.vlgmr.msra.gmra.mxu3 %v2959_v49  ;;  %v2822_v34 = vadd.f32 %v2821_v20, %v2808_v17  ;;  %v9273_v49 = vld [vmem:[#allocation13 + $0x180] sm:$0xf]  ;;  %v12839_v17 = vmov 0   ;;  %v11787_v20 = vld [vmem:[#allocation13 + $0x184] sm:$0xf]  ;;  %v11816_v8 = vld [vmem:[#allocation16 + $0x68] sm:$0xff] }
 0x2ae   :  { %v2833_v14 = vpop.f32.mrf.mxu1  ;;  %v9274_v39 = vor.u32 %v11788_v50, %v9273_v49  ;;  %12353 = vset.pattern.permute.xlu0 %v12839_v17  ;;  %v9278_v0 = vor.u32 %v11787_v20, %v9275_v21  ;;  %v11809_v49 = vld [vmem:[#allocation16 + $0x30] sm:$0xff]  ;;  %v9432_v50 = vor.u32 %v11825_v47, %v9429_v48  ;;  %3617 = vmatpush.bf16.msrb.mxu3 %v11817_v60 }
 0x2af   :  { %3443 = vmatpush.bf16.msrb.mxu2 %v9214_v11  ;;  %v2834_v18 = vadd.f32 %v2833_v14, %v2820_v13  ;;  %v1619_v11 = vperm.slane %v13144_v56, 3  ;;  %v9283_v14 = vld [vmem:[#allocation13 + $0x198] sm:$0xf0]  ;;  %3603 = vmatpush.bf16.msrb.mxu0 %v11809_v49  ;;  %v11841_v60 = vld [vmem:[#allocation19 + $0x70] sm:$0xff] }
 0x2b0   :  { %3401 = vmatpush.bf16.msra.mxu1 %v9274_v39  ;;  %v11808_v39 = vld [vmem:[#allocation16 + $0x28] sm:$0xff] }
 0x2b1   :  { %v2848_v26 = vadd.f32 %v2847_v35, %v2834_v18  ;;  %v11789_v35 = vld [vmem:[#allocation13 + $0x194] sm:$0xf] }
 0x2b2   :  { %v9286_v18 = vor.u32 %v11789_v35, %v9283_v14  ;;  %3618 = vmatpush.bf16.msrb.mxu3 %v11816_v8  ;;  %v11803_v35 = vld [vmem:[#allocation16] sm:$0xff] }
 0x2b3   :  { %v2862_v33 = vadd.f32 %v2861_v16, %v2848_v26  ;;  %v3633_v16 = vld [vmem:[%s13471_s12] sm:$0xff]  ;;  %3604 = vmatpush.bf16.msrb.mxu0 %v11808_v39  ;;  %v11815_v14 = vld [vmem:[#allocation16 + $0x60] sm:$0xff] }
 0x2b4   :  { %3450 = vmatpush.bf16.msrb.mxu1 %v9334_v53  ;;  %3638 = vperm.xlu0 %12353, %v3633_v16   ;;  %v11814_v16 = vld [vmem:[#allocation16 + $0x58] sm:$0xff]  ;;  %v9693_v8 = vld [vmem:[#allocation22 + $0x180] sm:$0xf] }
 0x2b5   :  { %v2952_v42 = vmax.f32 %v2862_v33, 0.0 }
 0x2b6   :  { %v2835_v27 = vpop.f32.mrf.mxu1  ;;  %3619 = vmatpush.bf16.msrb.mxu3 %v11815_v14  ;;  %v9661_v14 = vld [vmem:[#allocation22 + $0x140] sm:$0xf] }
 0x2b7   :  { %v2836_v36 = vadd.f32 %v2835_v27, %v2822_v34  ;;  %v2905_v27 = vpop.f32.mrf.mxu0  ;;  %3605 = vmatpush.bf16.msrb.mxu0 %v11807_v51 }
 0x2b8   :  { %3451 = vmatpush.bf16.msrb.mxu1 %v9326_v22  ;;  %v11823_v22 = vld [vmem:[#allocation4 + $0x24] sm:$0xf] }
 0x2b9   :  { %v2850_v41 = vadd.f32 %v2849_v29, %v2836_v36  ;;  %v3634_v29 = vld [vmem:[%s13471_s12 + $0x8] sm:$0xff]  ;;  %v2919_v36 = vpop.f32.mrf.mxu3 }
 0x2ba   :  { %3620 = vmatpush.bf16.msrb.mxu3 %v11814_v16  ;;  %v11951_v16 = vld [vmem:[#allocation22 + $0x15c] sm:$0xf0] }
 0x2bb   :  { %v2864_v55 = vadd.f32 %v2863_v40, %v2850_v41  ;;  %3606 = vmatpush.bf16.msrb.mxu0 %v11806_v15 }
 0x2bc   :  { %3452 = vmatpush.bf16.msrb.mxu1 %v9318_v59  ;;  %3641 = vperm.xlu0 %12353, %v3634_v29   ;;  %v11805_v59 = vld [vmem:[#allocation16 + $0x10] sm:$0xff]  ;;  %v9419_v29 = vld [vmem:[#allocation4 + $0x20] sm:$0xf] }
 0x2bd   :  { %v2956_v44 = vmax.f32 %v2864_v55, 0.0 }
 0x2bf   :  { %v2960_v19 = vpack.c.bf16 %v2956_v44, %v2952_v42  ;;  %3607 = vmatpush.bf16.msrb.mxu0 %v11805_v59 }
 0x2c0   :  { %3453 = vmatpush.bf16.msrb.mxu1 %v9310_v63  ;;  %v9413_v63 = vld [vmem:[#allocation4 + $0x18] sm:$0xf0] }
 0x2c1   :  { %3388 = vmatmul.bf16.vlgmr.msra.gmra.mxu2 %v2960_v19  ;;  %v9416_v1 = vor.u32 %v11821_v61, %v9413_v63  ;;  %v9725_v61 = vld [vmem:[#allocation22 + $0x1c0] sm:$0xf] }
 0x2c3   :  { %3608 = vmatpush.bf16.msrb.mxu0 %v11804_v6 }
 0x2c4   :  { %v2875_v58 = vpop.f32.mrf.mxu2  ;;  %3454 = vmatpush.bf16.msrb.mxu1 %v9302_v5 }
 0x2c5   :  { %v2876_v13 = vadd.f32 %v2875_v58, %v1619_v11  ;;  %v9424_v58 = vor.u32 %v11823_v22, %v9421_v57 }
 0x2c7   :  { %3609 = vmatpush.bf16.msrb.mxu0 %v11803_v35 }
 0x2c8   :  { %3455 = vmatpush.bf16.msrb.mxu1 %v9294_v10  ;;  %v9405_v10 = vld [vmem:[#allocation4 + $0x8] sm:$0xf0] }
 0x2cc   :  { %v2877_v9 = vpop.f32.mrf.mxu2  ;;  %3456 = vmatpush.bf16.msrb.mxu1 %v9286_v18  ;;  %v11813_v18 = vld [vmem:[#allocation16 + $0x50] sm:$0xff] }
 0x2cd   :  { %v2878_v25 = vadd.f32 %v2877_v9, %v1619_v11  ;;  %v11819_v9 = vld [vmem:[#allocation4 + $0x4] sm:$0xf]  ;;  %3621 = vmatpush.bf16.msrb.mxu3 %v11813_v18 }
 0x2ce   :  { %v2889_v3 = vpop.f32.mrf.mxu1 }
 0x2cf   :  { %v2890_v56 = vadd.f32 %v2889_v3, %v2876_v13 }
 0x2d0   :  { %3457 = vmatpush.bf16.msrb.mxu1 %v9278_v0  ;;  %v11811_v0 = vld [vmem:[#allocation16 + $0x40] sm:$0xff] }
 0x2d1   :  { %3444 = vmatmul.bf16.vlgmr.msrb.gmra.mxu2 %v2960_v19  ;;  %v2904_v34 = vadd.f32 %v2903_v12, %v2890_v56  ;;  %v9408_v12 = vor.u32 %v11819_v9, %v9405_v10  ;;  %v11959_v9 = vld [vmem:[#allocation22 + $0x19c] sm:$0xf0] }
 0x2d2   :  { %v9694_v35 = vor.u32 %v11959_v9, %v9693_v8  ;;  %v9565_v8 = vld [vmem:[#allocation22 + $0x80] sm:$0xf] }
 0x2d3   :  { %v2918_v32 = vadd.f32 %v2917_v23, %v2904_v34  ;;  %v11812_v23 = vld [vmem:[#allocation16 + $0x48] sm:$0xff]  ;;  %v11826_v34 = vld [vmem:[#allocation4 + $0x34] sm:$0xf0]  ;;  %v11927_v9 = vld [vmem:[#allocation22 + $0x9c] sm:$0xf0] }
 0x2d4   :  { %3622 = vmatpush.bf16.msrb.mxu3 %v11812_v23 }
 0x2d6   :  { %v2891_v24 = vpop.f32.mrf.mxu1 }
 0x2d7   :  { %v2892_v4 = vadd.f32 %v2891_v24, %v2878_v25  ;;  %v3026_v24 = vld [vmem:[#allocation15] sm:$0x3] }
 0x2d8   :  { %3623 = vmatpush.bf16.msrb.mxu3 %v11811_v0  ;;  %v3028_v25 = vperm.slane %v3026_v24, 0  ;;  %v3029_v54 = vperm.slane %v3026_v24, 1  ;;  %v11839_v24 = vld [vmem:[#allocation19 + $0x60] sm:$0xff] }
 0x2d9   :  { %v2906_v33 = vadd.f32 %v2905_v27, %v2892_v4  ;;  %v11963_v0 = vld [vmem:[#allocation22 + $0x1c4] sm:$0xf] }
 0x2db   :  { %v2920_v40 = vadd.f32 %v2919_v36, %v2906_v33 }
 0x2e4   :  { %v2931_v26 = vpop.f32.mrf.mxu2 }
 0x2e5   :  { %v2932_v41 = vadd.f32 %v2931_v26, %v2918_v32  ;;  %v9427_v26 = vld [vmem:[#allocation4 + $0x30] sm:$0xf] }
 0x2e6   :  { %v9428_v27 = vor.u32 %v11826_v34, %v9427_v26  ;;  %v9629_v26 = vld [vmem:[#allocation22 + $0x100] sm:$0xf] }
 0x2e7   :  { %v11943_v34 = vld [vmem:[#allocation22 + $0x11c] sm:$0xf0] }
 0x2e8   :  { %3706 = vmatpush.bf16.msra.mxu3 %v9428_v27 }
 0x2ec   :  { %v2933_v38 = vpop.f32.mrf.mxu2 }
 0x2ed   :  { %v2934_v42 = vadd.f32 %v2933_v38, %v2920_v40  ;;  %v9411_v40 = vld [vmem:[#allocation4 + $0x10] sm:$0xf] }
 0x2ee   :  { %v2945_v31 = vpop.f32.mrf.mxu1  ;;  %v3361_v17 = vpop.f32.mrf.mxu0 }
 0x2ef   :  { %v2946_v55 = vadd.f32 %v2945_v31, %v2932_v41  ;;  %v11824_v31 = vld [vmem:[#allocation4 + $0x24] sm:$0xf0]  ;;  %v3362_v38 = vadd.f32 %v3361_v17, %v3028_v25  ;;  %v11822_v41 = vld [vmem:[#allocation4 + $0x14] sm:$0xf0] }
 0x2f0   :  { %v9420_v36 = vor.u32 %v11824_v31, %v9419_v29 }
 0x2f1   :  { %v2953_v44 = vmax.f32 %v2946_v55, 0.0 }
 0x2f2   :  { %3707 = vmatpush.bf16.msra.mxu3 %v9420_v36  ;;  %v11955_v36 = vld [vmem:[#allocation22 + $0x184] sm:$0xf] }
 0x2f6   :  { %v2947_v43 = vpop.f32.mrf.mxu1  ;;  %v3363_v56 = vpop.f32.mrf.mxu0 }
 0x2f7   :  { %v2948_v37 = vadd.f32 %v2947_v43, %v2934_v42  ;;  %v3364_v42 = vadd.f32 %v3363_v56, %v3028_v25  ;;  %v9412_v43 = vor.u32 %v11822_v41, %v9411_v40  ;;  %v9727_v56 = vld [vmem:[#allocation22 + $0x1e0] sm:$0xf0]  ;;  %v9662_v25 = vor.u32 %v11951_v16, %v9661_v14  ;;  %v9597_v41 = vld [vmem:[#allocation22 + $0xc0] sm:$0xf]  ;;  %v9575_v14 = vld [vmem:[#allocation22 + $0xa8] sm:$0xf0] }
 0x2f8   :  { %v9730_v31 = vor.u32 %v11963_v0, %v9727_v56  ;;  %v9630_v40 = vor.u32 %v11943_v34, %v9629_v26  ;;  %v9535_v0 = vld [vmem:[#allocation22 + $0x60] sm:$0xf0]  ;;  %v11916_v56 = vld [vmem:[#allocation22 + $0x4c] sm:$0xf]  ;;  %v11830_v34 = vld [vmem:[#allocation19 + $0x18] sm:$0xff] }
 0x2f9   :  { %v2957_v45 = vmax.f32 %v2948_v37, 0.0  ;;  %3708 = vmatpush.bf16.msra.mxu3 %v9412_v43  ;;  %v11837_v43 = vld [vmem:[#allocation19 + $0x50] sm:$0xff]  ;;  %v9543_v26 = vld [vmem:[#allocation22 + $0x68] sm:$0xf0] }
 0x2fb   :  { %v2961_v19 = vpack.c.bf16 %v2957_v45, %v2953_v44  ;;  %v9403_v45 = vld [vmem:[#allocation4] sm:$0xf] }
 0x2fd   :  { %3402 = vmatmul.bf16.vlgmr.msra.gmra.mxu1 %v2961_v19 }
 0x2fe   :  { %3720 = vmatpush.bf16.msra.mxu1 %v9432_v50  ;;  %v3417_v46 = vpop.f32.mrf.mxu0 }
 0x2ff   :  { %v3418_v59 = vadd.f32 %v3417_v46, %v3029_v54  ;;  %v11836_v46 = vld [vmem:[#allocation19 + $0x48] sm:$0xff] }
 0x302   :  { %3721 = vmatpush.bf16.msra.mxu1 %v9424_v58 }
 0x306   :  { %3722 = vmatpush.bf16.msra.mxu1 %v9416_v1  ;;  %v3419_v57 = vpop.f32.mrf.mxu0  ;;  %v11967_v1 = vld [vmem:[#allocation22 + $0x1dc] sm:$0xf0] }
 0x30a   :  { %3723 = vmatpush.bf16.msra.mxu1 %v9408_v12  ;;  %v11840_v12 = vld [vmem:[#allocation19 + $0x68] sm:$0xff] }
 0x30d   :  { %3458 = vmatmul.bf16.vlgmr.msrb.gmra.mxu1 %v2961_v19  ;;  %v11820_v19 = vld [vmem:[#allocation4 + $0x4] sm:$0xf0] }
 0x30e   :  { %v9404_v39 = vor.u32 %v11820_v19, %v9403_v45 }
 0x310   :  { %3709 = vmatpush.bf16.msra.mxu3 %v9404_v39 }
 0x320   :  { %v3375_v20 = vpop.f32.mrf.mxu3 }
 0x321   :  { %v3376_v55 = vadd.f32 %v3375_v20, %v3362_v38  ;;  %v9695_v38 = vld [vmem:[#allocation22 + $0x1a0] sm:$0xf0] }
 0x326   :  { %v3639_v53 = vpop.permute.xlu0 %3638 }
 0x327   :  { %vm3643_vm1 = vcmp.eq.s32.totalorder %v3636_v30, %v3639_v53 }
 0x328   :  { %v9399_v3 = vsel %vm3643_vm1, 1.0, %v12840_v2  ;;  %v3377_v4 = vpop.f32.mrf.mxu3 }
 0x329   :  { %v3378_v37 = vadd.f32 %v3377_v4, %v3364_v42  ;;  %v11833_v4 = vld [vmem:[#allocation19 + $0x30] sm:$0xff]  ;;  %v11935_v42 = vld [vmem:[#allocation22 + $0xdc] sm:$0xf0] }
 0x32a   :  { %v9598_v45 = vor.u32 %v11935_v42, %v9597_v41  ;;  %v9741_v42 = vld [vmem:[#allocation22 + $0x1d0] sm:$0xf] }
 0x32e   :  { %v3642_v5 = vpop.permute.xlu0 %3641 }
 0x32f   :  { %vm3644_vm2 = vcmp.eq.s32.totalorder %v3636_v30, %v3642_v5  ;;  %v11842_v30 = vld [vmem:[#allocation19 + $0x78] sm:$0xff]  ;;  %v9726_v5 = vor.u32 %v11967_v1, %v9725_v61  ;;  %v11940_v61 = vld [vmem:[#allocation22 + $0x10c] sm:$0xf] }
 0x330   :  { %v9400_v11 = vsel %vm3644_vm2, 1.0, %v12840_v2  ;;  %v3431_v49 = vpop.f32.mrf.mxu3  ;;  %3878 = vmatpush.bf16.msra.mxu2 %v11842_v30  ;;  %v3420_v2 = vadd.f32 %v3419_v57, %v3029_v54  ;;  %v11956_v54 = vld [vmem:[#allocation22 + $0x18c] sm:$0xf] }
 0x331   :  { %v13164_v13 = vpack.c.bf16 %v9400_v11, %v9399_v3  ;;  %v3432_v3 = vadd.f32 %v3431_v49, %v3418_v59  ;;  %4343 = vmatpush.bf16.msrb.mxu1 %v9726_v5  ;;  %v11964_v49 = vld [vmem:[#allocation22 + $0x1cc] sm:$0xf] }
 0x332   :  { %v9671_v59 = vld [vmem:[#allocation22 + $0x168] sm:$0xf0] }
 0x333   :  { %9434 = vmatmul.msk.bf16.vlgmr.msra.gmra.mxu1 %vm3698_vm3, %v13164_v13 }
 0x334   :  { %3879 = vmatpush.bf16.msra.mxu2 %v11841_v60 }
 0x335   :  { %4344 = vmatpush.bf16.msrb.mxu1 %v9694_v35 }
 0x338   :  { %v3433_v63 = vpop.f32.mrf.mxu3  ;;  %3880 = vmatpush.bf16.msra.mxu2 %v11840_v12  ;;  %v11924_v12 = vld [vmem:[#allocation22 + $0x8c] sm:$0xf] }
 0x339   :  { %v3434_v10 = vadd.f32 %v3433_v63, %v3420_v2  ;;  %4345 = vmatpush.bf16.msrb.mxu1 %v9662_v25  ;;  %v9639_v63 = vld [vmem:[#allocation22 + $0x128] sm:$0xf0]  ;;  %v9578_v16 = vor.u32 %v11924_v12, %v9575_v14  ;;  %v11941_v12 = vld [vmem:[#allocation22 + $0x114] sm:$0xf] }
 0x33a   :  { %v9642_v1 = vor.u32 %v11940_v61, %v9639_v63  ;;  %v11932_v2 = vld [vmem:[#allocation22 + $0xcc] sm:$0xf]  ;;  %v11949_v61 = vld [vmem:[#allocation22 + $0x154] sm:$0xf] }
 0x33b   :  { %v9679_v63 = vld [vmem:[#allocation22 + $0x170] sm:$0xf0] }
 0x33c   :  { %3881 = vmatpush.bf16.msra.mxu2 %v11839_v24 }
 0x33d   :  { %4346 = vmatpush.bf16.msrb.mxu1 %v9630_v40  ;;  %v9511_v40 = vld [vmem:[#allocation22 + $0x28] sm:$0xf0] }
 0x341   :  { %4347 = vmatpush.bf16.msrb.mxu1 %v9598_v45  ;;  %v9743_v45 = vld [vmem:[#allocation22 + $0x1f0] sm:$0xf0] }
 0x344   :  { %v3389_v21 = vpop.f32.mrf.mxu2 }
 0x345   :  { %v3390_v44 = vadd.f32 %v3389_v21, %v3376_v55  ;;  %v11834_v21 = vld [vmem:[#allocation19 + $0x38] sm:$0xff]  ;;  %v9698_v55 = vor.u32 %v11955_v36, %v9695_v38  ;;  %v11908_v38 = vld [vmem:[#allocation22 + $0xc] sm:$0xf] }
 0x346   :  { %3864 = vmatpush.bf16.msra.mxu0 %v11834_v21  ;;  %v11915_v21 = vld [vmem:[#allocation22 + $0x44] sm:$0xf]  ;;  %v9514_v41 = vor.u32 %v11908_v38, %v9511_v40  ;;  %v9581_v38 = vld [vmem:[#allocation22 + $0x90] sm:$0xf] }
 0x347   :  { %v9538_v25 = vor.u32 %v11915_v21, %v9535_v0  ;;  %v9613_v0 = vld [vmem:[#allocation22 + $0xd0] sm:$0xf] }
 0x34a   :  { %3865 = vmatpush.bf16.msra.mxu0 %v11833_v4  ;;  %v9501_v4 = vld [vmem:[#allocation22] sm:$0xf] }
 0x34c   :  { %v3391_v32 = vpop.f32.mrf.mxu2 }
 0x34d   :  { %v3392_v47 = vadd.f32 %v3391_v32, %v3378_v37  ;;  %v11947_v37 = vld [vmem:[#allocation22 + $0x144] sm:$0xf] }
 0x354   :  { %v3445_v52 = vpop.f32.mrf.mxu2 }
 0x355   :  { %v3446_v11 = vadd.f32 %v3445_v52, %v3432_v3  ;;  %v11931_v52 = vld [vmem:[#allocation22 + $0xc4] sm:$0xf]  ;;  %v9607_v3 = vld [vmem:[#allocation22 + $0xe8] sm:$0xf0] }
 0x356   :  { %v9610_v5 = vor.u32 %v11932_v2, %v9607_v3  ;;  %v9682_v2 = vor.u32 %v11949_v61, %v9679_v63  ;;  %v11950_v3 = vld [vmem:[#allocation22 + $0x15c] sm:$0xf]  ;;  %v11909_v61 = vld [vmem:[#allocation22 + $0x14] sm:$0xf] }
 0x357   :  { %v9519_v63 = vld [vmem:[#allocation22 + $0x30] sm:$0xf0] }
 0x35c   :  { %v3447_v6 = vpop.f32.mrf.mxu2 }
 0x35d   :  { %v3448_v17 = vadd.f32 %v3447_v6, %v3434_v10  ;;  %v11832_v6 = vld [vmem:[#allocation19 + $0x28] sm:$0xff]  ;;  %v9566_v10 = vor.u32 %v11927_v9, %v9565_v8 }
 0x35e   :  { %3866 = vmatpush.bf16.msra.mxu0 %v11832_v6  ;;  %v11827_v6 = vld [vmem:[#allocation19] sm:$0xff]  ;;  %v9733_v8 = vld [vmem:[#allocation22 + $0x1c8] sm:$0xf] }
 0x35f   :  { %4348 = vmatpush.bf16.msrb.mxu1 %v9566_v10  ;;  %v11968_v9 = vld [vmem:[#allocation22 + $0x1e4] sm:$0xf0]  ;;  %v9645_v10 = vld [vmem:[#allocation22 + $0x110] sm:$0xf] }
 0x360   :  { %v9734_v14 = vor.u32 %v11968_v9, %v9733_v8  ;;  %v9573_v8 = vld [vmem:[#allocation22 + $0x88] sm:$0xf] }
 0x361   :  { %v11928_v9 = vld [vmem:[#allocation22 + $0xa4] sm:$0xf0] }
 0x37a   :  { %v3403_v33 = vpop.f32.mrf.mxu1 }
 0x37b   :  { %v3404_v48 = vadd.f32 %v3403_v33, %v3390_v44  ;;  %v11838_v33 = vld [vmem:[#allocation19 + $0x58] sm:$0xff]  ;;  %v9663_v44 = vld [vmem:[#allocation22 + $0x160] sm:$0xf0] }
 0x37c   :  { %3882 = vmatpush.bf16.msra.mxu2 %v11838_v33  ;;  %v9666_v19 = vor.u32 %v11947_v37, %v9663_v44 }
 0x37d   :  { %v3464_v53 = vmax.f32 %v3404_v48, 0.0  ;;  %v9631_v48 = vld [vmem:[#allocation22 + $0x120] sm:$0xf0] }
 0x380   :  { %3883 = vmatpush.bf16.msra.mxu2 %v11837_v43  ;;  %v11965_v43 = vld [vmem:[#allocation22 + $0x1d4] sm:$0xf] }
 0x382   :  { %v3405_v50 = vpop.f32.mrf.mxu1 }
 0x383   :  { %v3406_v51 = vadd.f32 %v3405_v50, %v3392_v47  ;;  %v11939_v47 = vld [vmem:[#allocation22 + $0x104] sm:$0xf]  ;;  %v9735_v50 = vld [vmem:[#allocation22 + $0x1e8] sm:$0xf0] }
 0x384   :  { %v9634_v39 = vor.u32 %v11939_v47, %v9631_v48  ;;  %3884 = vmatpush.bf16.msra.mxu2 %v11836_v46  ;;  %v9751_v46 = vld [vmem:[#allocation22 + $0x1f8] sm:$0xf0]  ;;  %v9746_v48 = vor.u32 %v11965_v43, %v9743_v45 }
 0x385   :  { %v3466_v15 = vmax.f32 %v3406_v51, 0.0  ;;  %v11835_v51 = vld [vmem:[#allocation19 + $0x40] sm:$0xff]  ;;  %v9591_v45 = vld [vmem:[#allocation22 + $0xb8] sm:$0xf0] }
 0x387   :  { %v3468_v22 = vpack.c.bf16 %v3466_v15, %v3464_v53  ;;  %v9599_v53 = vld [vmem:[#allocation22 + $0xe0] sm:$0xf0]  ;;  %v9738_v15 = vor.u32 %v11964_v49, %v9735_v50  ;;  %v11829_v50 = vld [vmem:[#allocation19 + $0x10] sm:$0xff] }
 0x388   :  { %v9602_v30 = vor.u32 %v11931_v52, %v9599_v53  ;;  %3885 = vmatpush.bf16.msra.mxu2 %v11835_v51  ;;  %v11961_v51 = vld [vmem:[#allocation22 + $0x1ac] sm:$0xf0]  ;;  %v11957_v53 = vld [vmem:[#allocation22 + $0x194] sm:$0xf] }
 0x389   :  { %3610 = vmatmul.bf16.vlgmr.msrb.gmra.mxu0 %v3468_v22  ;;  %v9703_v22 = vld [vmem:[#allocation22 + $0x1a8] sm:$0xf0] }
 0x38a   :  { %v3459_v58 = vpop.f32.mrf.mxu1  ;;  %v9706_v57 = vor.u32 %v11956_v54, %v9703_v22  ;;  %v11958_v54 = vld [vmem:[#allocation22 + $0x19c] sm:$0xf] }
 0x38b   :  { %v3460_v18 = vadd.f32 %v3459_v58, %v3446_v11  ;;  %v11948_v58 = vld [vmem:[#allocation22 + $0x14c] sm:$0xf]  ;;  %v11923_v11 = vld [vmem:[#allocation22 + $0x84] sm:$0xf] }
 0x38c   :  { %4385 = vmatpush.bf16.msrb.mxu2 %v9738_v15  ;;  %v9674_v60 = vor.u32 %v11948_v58, %v9671_v59  ;;  %v9711_v15 = vld [vmem:[#allocation22 + $0x1b0] sm:$0xf0]  ;;  %v9677_v58 = vld [vmem:[#allocation22 + $0x150] sm:$0xf] }
 0x38d   :  { %v3465_v27 = vmax.f32 %v3460_v18, 0.0  ;;  %v9533_v18 = vld [vmem:[#allocation22 + $0x40] sm:$0xf]  ;;  %v9714_v22 = vor.u32 %v11957_v53, %v9711_v15  ;;  %v11918_v15 = vld [vmem:[#allocation22 + $0x5c] sm:$0xf] }
 0x390   :  { %4386 = vmatpush.bf16.msrb.mxu2 %v9706_v57  ;;  %v11828_v57 = vld [vmem:[#allocation19 + $0x8] sm:$0xff] }
 0x392   :  { %v3461_v20 = vpop.f32.mrf.mxu1 }
 0x393   :  { %v3462_v23 = vadd.f32 %v3461_v20, %v3448_v17  ;;  %v11919_v20 = vld [vmem:[#allocation22 + $0x5c] sm:$0xf0] }
 0x394   :  { %4387 = vmatpush.bf16.msrb.mxu2 %v9674_v60  ;;  %v9534_v24 = vor.u32 %v11919_v20, %v9533_v18  ;;  %v11953_v60 = vld [vmem:[#allocation22 + $0x16c] sm:$0xf0]  ;;  %v9655_v18 = vld [vmem:[#allocation22 + $0x138] sm:$0xf0] }
 0x395   :  { %v3467_v29 = vmax.f32 %v3462_v23, 0.0  ;;  %v11831_v23 = vld [vmem:[#allocation19 + $0x20] sm:$0xff] }
 0x396   :  { %3867 = vmatpush.bf16.msra.mxu0 %v11831_v23  ;;  %4349 = vmatpush.bf16.msrb.mxu1 %v9534_v24  ;;  %v9701_v23 = vld [vmem:[#allocation22 + $0x188] sm:$0xf] }
 0x397   :  { %v3469_v32 = vpack.c.bf16 %v3467_v29, %v3465_v27  ;;  %v9546_v27 = vor.u32 %v11916_v56, %v9543_v26  ;;  %v11911_v29 = vld [vmem:[#allocation22 + $0x1c] sm:$0xf0]  ;;  %v11960_v24 = vld [vmem:[#allocation22 + $0x1a4] sm:$0xf0]  ;;  %v11933_v26 = vld [vmem:[#allocation22 + $0xd4] sm:$0xf] }
 0x398   :  { %4388 = vmatpush.bf16.msrb.mxu2 %v9642_v1  ;;  %v9502_v33 = vor.u32 %v11911_v29, %v9501_v4  ;;  %v9678_v1 = vor.u32 %v11953_v60, %v9677_v58  ;;  %v9702_v56 = vor.u32 %v11960_v24, %v9701_v23  ;;  %v11934_v29 = vld [vmem:[#allocation22 + $0xdc] sm:$0xf]  ;;  %v9517_v58 = vld [vmem:[#allocation22 + $0x10] sm:$0xf] }
 0x399   :  { %3624 = vmatmul.bf16.vlgmr.msrb.gmra.mxu3 %v3469_v32  ;;  %v9503_v32 = vld [vmem:[#allocation22 + $0x20] sm:$0xf0]  ;;  %v11913_v60 = vld [vmem:[#allocation22 + $0x2c] sm:$0xf0] }
 0x39a   :  { %4357 = vmatpush.bf16.msrb.mxu3 %v9730_v31  ;;  %v11907_v31 = vld [vmem:[#allocation22 + $0x4] sm:$0xf]  ;;  %3868 = vmatpush.bf16.msra.mxu0 %v11830_v34  ;;  %v9615_v34 = vld [vmem:[#allocation22 + $0xf0] sm:$0xf0] }
 0x39b   :  { %v9506_v36 = vor.u32 %v11907_v31, %v9503_v32  ;;  %4350 = vmatpush.bf16.msrb.mxu1 %v9502_v33  ;;  %v9623_v31 = vld [vmem:[#allocation22 + $0xf8] sm:$0xf0]  ;;  %v9669_v33 = vld [vmem:[#allocation22 + $0x148] sm:$0xf] }
 0x39c   :  { %4389 = vmatpush.bf16.msrb.mxu2 %v9610_v5  ;;  %v9687_v5 = vld [vmem:[#allocation22 + $0x178] sm:$0xf0]  ;;  %v9626_v32 = vor.u32 %v11934_v29, %v9623_v31  ;;  %v11900_v29 = vld [vmem:[#allocation21 + $0x1cc] sm:$0xf] }
 0x39d   :  { %v9991_v31 = vld [vmem:[#allocation21 + $0x1e8] sm:$0xf0] }
 0x39e   :  { %4358 = vmatpush.bf16.msrb.mxu3 %v9698_v55  ;;  %v11969_v55 = vld [vmem:[#allocation22 + $0x1ec] sm:$0xf0]  ;;  %3869 = vmatpush.bf16.msra.mxu0 %v11829_v50 }
 0x39f   :  { %v9742_v44 = vor.u32 %v11969_v55, %v9741_v42  ;;  %v11925_v42 = vld [vmem:[#allocation22 + $0x94] sm:$0xf]  ;;  %v11921_v50 = vld [vmem:[#allocation22 + $0x6c] sm:$0xf0] }
 0x3a0   :  { %4390 = vmatpush.bf16.msrb.mxu2 %v9578_v16  ;;  %v9583_v55 = vld [vmem:[#allocation22 + $0xb0] sm:$0xf0] }
 0x3a1   :  { %4399 = vmatpush.bf16.msra.mxu1 %v9742_v44  ;;  %v11926_v44 = vld [vmem:[#allocation22 + $0x9c] sm:$0xf] }
 0x3a2   :  { %4359 = vmatpush.bf16.msrb.mxu3 %v9666_v19  ;;  %v11966_v19 = vld [vmem:[#allocation22 + $0x1dc] sm:$0xf]  ;;  %3870 = vmatpush.bf16.msra.mxu0 %v11828_v57  ;;  %v11936_v57 = vld [vmem:[#allocation22 + $0xe4] sm:$0xf0] }
 0x3a3   :  { %v9754_v49 = vor.u32 %v11966_v19, %v9751_v46  ;;  %v9594_v19 = vor.u32 %v11926_v44, %v9591_v45  ;;  %v9637_v46 = vld [vmem:[#allocation22 + $0x108] sm:$0xf]  ;;  %v11892_v44 = vld [vmem:[#allocation21 + $0x18c] sm:$0xf] }
 0x3a4   :  { %4391 = vmatpush.bf16.msrb.mxu2 %v9546_v27  ;;  %v9618_v27 = vor.u32 %v11933_v26, %v9615_v34  ;;  %v9981_v26 = vld [vmem:[#allocation21 + $0x1c0] sm:$0xf]  ;;  %v9959_v45 = vld [vmem:[#allocation21 + $0x1a8] sm:$0xf0] }
 0x3a5   :  { %v11903_v34 = vld [vmem:[#allocation21 + $0x1dc] sm:$0xf0] }
 0x3a6   :  { %4360 = vmatpush.bf16.msrb.mxu3 %v9634_v39  ;;  %v9709_v39 = vld [vmem:[#allocation22 + $0x190] sm:$0xf]  ;;  %3871 = vmatpush.bf16.msra.mxu0 %v11827_v6 }
 0x3a7   :  { %v9710_v52 = vor.u32 %v11961_v51, %v9709_v39  ;;  %v11917_v39 = vld [vmem:[#allocation22 + $0x54] sm:$0xf] }
 0x3a8   :  { %4392 = vmatpush.bf16.msrb.mxu2 %v9514_v41  ;;  %v11929_v41 = vld [vmem:[#allocation22 + $0xac] sm:$0xf0]  ;;  %v9551_v51 = vld [vmem:[#allocation22 + $0x70] sm:$0xf0] }
 0x3a9   :  { %9433 = vmatmul.msk.bf16.vlgmr.msra.gmra.mxu3 %vm3698_vm3, %v13164_v13  ;;  %v9567_v13 = vld [vmem:[#allocation22 + $0xa0] sm:$0xf0]  ;;  %4400 = vmatpush.bf16.msra.mxu1 %v9710_v52  ;;  %v9582_v43 = vor.u32 %v11929_v41, %v9581_v38  ;;  %v9554_v53 = vor.u32 %v11917_v39, %v9551_v51  ;;  %v9994_v41 = vor.u32 %v11900_v29, %v9991_v31 }
 0x3aa   :  { %4361 = vmatpush.bf16.msrb.mxu3 %v9602_v30  ;;  %v9570_v35 = vor.u32 %v11923_v11, %v9567_v13  ;;  %v9719_v30 = vld [vmem:[#allocation22 + $0x1b8] sm:$0xf0]  ;;  %v9690_v11 = vor.u32 %v11950_v3, %v9687_v5  ;;  %v11945_v13 = vld [vmem:[#allocation22 + $0x12c] sm:$0xf0]  ;;  %4371 = vmatpush.bf16.msrb.mxu0 %v9734_v14  ;;  %v11912_v14 = vld [vmem:[#allocation22 + $0x24] sm:$0xf0] }
 0x3ab   :  { %v9722_v59 = vor.u32 %v11958_v54, %v9719_v30  ;;  %v9646_v16 = vor.u32 %v11945_v13, %v9645_v10  ;;  %v9559_v54 = vld [vmem:[#allocation22 + $0x78] sm:$0xf0]  ;;  %v9605_v30 = vld [vmem:[#allocation22 + $0xc8] sm:$0xf]  ;;  %v9574_v10 = vor.u32 %v11928_v9, %v9573_v8  ;;  %v11883_v39 = vld [vmem:[#allocation21 + $0x144] sm:$0xf] }
 0x3ac   :  { %v11910_v3 = vld [vmem:[#allocation22 + $0x1c] sm:$0xf]  ;;  %v11920_v13 = vld [vmem:[#allocation22 + $0x64] sm:$0xf0]  ;;  %v9919_v51 = vld [vmem:[#allocation21 + $0x160] sm:$0xf0] }
 0x3ad   :  { %4401 = vmatpush.bf16.msra.mxu1 %v9678_v1  ;;  %v9518_v1 = vor.u32 %v11913_v60, %v9517_v58  ;;  %v9527_v5 = vld [vmem:[#allocation22 + $0x38] sm:$0xf0]  ;;  %v9885_v58 = vld [vmem:[#allocation21 + $0x100] sm:$0xf]  ;;  %v11875_v60 = vld [vmem:[#allocation21 + $0x104] sm:$0xf] }
 0x3ae   :  { %4362 = vmatpush.bf16.msrb.mxu3 %v9570_v35  ;;  %v9647_v35 = vld [vmem:[#allocation22 + $0x130] sm:$0xf0]  ;;  %4372 = vmatpush.bf16.msrb.mxu0 %v9702_v56  ;;  %v9530_v6 = vor.u32 %v11910_v3, %v9527_v5 }
 0x3af   :  { %v9650_v20 = vor.u32 %v11941_v12, %v9647_v35  ;;  %v9509_v35 = vld [vmem:[#allocation22 + $0x8] sm:$0xf] }
 0x3b0   :  { %v3725_v17 = vpop.f32.mrf.mxu1 }
 0x3b1   :  { %4402 = vmatpush.bf16.msra.mxu1 %v9646_v16 }
 0x3b2   :  { %4363 = vmatpush.bf16.msrb.mxu3 %v9538_v25  ;;  %v11937_v25 = vld [vmem:[#allocation22 + $0xec] sm:$0xf0] }
 0x3b3   :  { %v9614_v4 = vor.u32 %v11937_v25, %v9613_v0 }
 0x3b5   :  { %4403 = vmatpush.bf16.msra.mxu1 %v9614_v4  ;;  %v11899_v4 = vld [vmem:[#allocation21 + $0x1c4] sm:$0xf] }
 0x3b6   :  { %4364 = vmatpush.bf16.msrb.mxu3 %v9506_v36  ;;  %v11952_v36 = vld [vmem:[#allocation22 + $0x164] sm:$0xf0] }
 0x3b7   :  { %v9670_v40 = vor.u32 %v11952_v36, %v9669_v33  ;;  %v9982_v36 = vor.u32 %v11903_v34, %v9981_v26  ;;  %v11859_v26 = vld [vmem:[#allocation21 + $0x84] sm:$0xf] }
 0x3b8   :  { %v3727_v37 = vpop.f32.mrf.mxu1  ;;  %v9823_v34 = vld [vmem:[#allocation21 + $0xa0] sm:$0xf0] }
 0x3b9   :  { %v3731_v47 = vpack.c.bf16 %v3727_v37, %v3725_v17  ;;  %v11942_v17 = vld [vmem:[#allocation22 + $0x11c] sm:$0xf]  ;;  %v9586_v37 = vor.u32 %v11925_v42, %v9583_v55  ;;  %4373 = vmatpush.bf16.msrb.mxu0 %v9670_v40  ;;  %4404 = vmatpush.bf16.msra.mxu1 %v9582_v43  ;;  %v9949_v42 = vld [vmem:[#allocation21 + $0x180] sm:$0xf]  ;;  %v11891_v43 = vld [vmem:[#allocation21 + $0x184] sm:$0xf] }
 0x3ba   :  { %4413 = vmatpush.bf16.msra.mxu3 %v9746_v48  ;;  %v9658_v21 = vor.u32 %v11942_v17, %v9655_v18  ;;  %v9549_v48 = vld [vmem:[#allocation22 + $0x50] sm:$0xf]  ;;  %v9510_v17 = vor.u32 %v11912_v14, %v9509_v35  ;;  %v11895_v55 = vld [vmem:[#allocation21 + $0x19c] sm:$0xf0]  ;;  %v11867_v35 = vld [vmem:[#allocation21 + $0xc4] sm:$0xf] }
 0x3bb   :  { %3886 = vmatmul.bf16.vlgmr.msra.gmra.mxu2 %v3731_v47  ;;  %v11944_v47 = vld [vmem:[#allocation22 + $0x124] sm:$0xf0]  ;;  %v9550_v52 = vor.u32 %v11921_v50, %v9549_v48  ;;  %v9962_v48 = vor.u32 %v11892_v44, %v9959_v45  ;;  %v11887_v50 = vld [vmem:[#allocation21 + $0x15c] sm:$0xf0]  ;;  %v9855_v14 = vld [vmem:[#allocation21 + $0xe0] sm:$0xf0] }
 0x3bc   :  { %4441 = vmatpush.bf16.msra.mxu2 %v9754_v49  ;;  %v9638_v49 = vor.u32 %v11944_v47, %v9637_v46  ;;  %v9950_v46 = vor.u32 %v11895_v55, %v9949_v42  ;;  %v11855_v42 = vld [vmem:[#allocation21 + $0x5c] sm:$0xf0]  ;;  %v11851_v55 = vld [vmem:[#allocation21 + $0x44] sm:$0xf]  ;;  %v9799_v44 = vld [vmem:[#allocation21 + $0x68] sm:$0xf0] }
 0x3bd   :  { %4405 = vmatpush.bf16.msra.mxu1 %v9550_v52  ;;  %v11884_v52 = vld [vmem:[#allocation21 + $0x14c] sm:$0xf]  ;;  %v12358_v45 = vld [vmem:[%s13470_s1] ss:$0 sm:$0xff] }
 0x3be   :  { %4414 = vmatpush.bf16.msra.mxu3 %v9714_v22  ;;  %4374 = vmatpush.bf16.msrb.mxu0 %v9638_v49  ;;  %v9562_v22 = vor.u32 %v11918_v15, %v9559_v54  ;;  %v9917_v49 = vld [vmem:[#allocation21 + $0x140] sm:$0xf]  ;;  %v9749_v54 = vld [vmem:[#allocation22 + $0x1d8] sm:$0xf] }
 0x3bf   :  { %v9918_v15 = vor.u32 %v11887_v50, %v9917_v49 }
 0x3c0   :  { %4442 = vmatpush.bf16.msra.mxu2 %v9722_v59  ;;  %v9606_v59 = vor.u32 %v11936_v57, %v9605_v30  ;;  %v9922_v30 = vor.u32 %v11883_v39, %v9919_v51  ;;  %v9757_v39 = vld [vmem:[#allocation21] sm:$0xf] }
 0x3c1   :  { %4406 = vmatpush.bf16.msra.mxu1 %v9518_v1  ;;  %v9895_v1 = vld [vmem:[#allocation21 + $0x128] sm:$0xf0]  ;;  %v11847_v51 = vld [vmem:[#allocation21 + $0x1c] sm:$0xf0] }
 0x3c2   :  { %4415 = vmatpush.bf16.msra.mxu3 %v9682_v2  ;;  %v9522_v2 = vor.u32 %v11909_v61, %v9519_v63  ;;  %4375 = vmatpush.bf16.msrb.mxu0 %v9606_v59  ;;  %v11879_v59 = vld [vmem:[#allocation21 + $0x11c] sm:$0xf0]  ;;  %v9887_v61 = vld [vmem:[#allocation21 + $0x120] sm:$0xf0]  ;;  %v11876_v63 = vld [vmem:[#allocation21 + $0x10c] sm:$0xf] }
 0x3c3   :  { %v9886_v5 = vor.u32 %v11879_v59, %v9885_v58  ;;  %v9890_v8 = vor.u32 %v11875_v60, %v9887_v61  ;;  %v9898_v9 = vor.u32 %v11876_v63, %v9895_v1  ;;  %v11901_v58 = vld [vmem:[#allocation21 + $0x1d4] sm:$0xf]  ;;  %v11902_v61 = vld [vmem:[#allocation21 + $0x1dc] sm:$0xf]  ;;  %v9758_v1 = vor.u32 %v11847_v51, %v9757_v39 }
 0x3c4   :  { %4443 = vmatpush.bf16.msra.mxu2 %v9690_v11  ;;  %v9541_v11 = vld [vmem:[#allocation22 + $0x48] sm:$0xf]  ;;  %v9999_v60 = vld [vmem:[#allocation21 + $0x1f0] sm:$0xf0]  ;;  %v10007_v63 = vld [vmem:[#allocation21 + $0x1f8] sm:$0xf0] }
 0x3c5   :  { %v9542_v12 = vor.u32 %v11920_v13, %v9541_v11  ;;  %v11962_v11 = vld [vmem:[#allocation22 + $0x1b4] sm:$0xf0]  ;;  %v9853_v13 = vld [vmem:[#allocation21 + $0xc0] sm:$0xf] }
 0x3c6   :  { %4416 = vmatpush.bf16.msra.mxu3 %v9650_v20  ;;  %4376 = vmatpush.bf16.msrb.mxu0 %v9574_v10  ;;  %v12355_v20 = vld [vmem:[#allocation18] ss:$0 sm:$0xff]  ;;  %v9717_v10 = vld [vmem:[#allocation22 + $0x198] sm:$0xf] }
 0x3c8   :  { %4444 = vmatpush.bf16.msra.mxu2 %v9658_v21 }
 0x3ca   :  { %4417 = vmatpush.bf16.msra.mxu3 %v9618_v27  ;;  %4377 = vmatpush.bf16.msrb.mxu0 %v9542_v12  ;;  %v9983_v27 = vld [vmem:[#allocation21 + $0x1e0] sm:$0xf0]  ;;  %v11871_v12 = vld [vmem:[#allocation21 + $0xdc] sm:$0xf0] }
 0x3cb   :  { %v9986_v40 = vor.u32 %v11899_v4, %v9983_v27  ;;  %v11860_v4 = vld [vmem:[#allocation21 + $0x8c] sm:$0xf] }
 0x3cc   :  { %4445 = vmatpush.bf16.msra.mxu2 %v9626_v32  ;;  %v9831_v27 = vld [vmem:[#allocation21 + $0xa8] sm:$0xf0] }
 0x3ce   :  { %4418 = vmatpush.bf16.msra.mxu3 %v9586_v37  ;;  %4378 = vmatpush.bf16.msrb.mxu0 %v9510_v17  ;;  %v9951_v37 = vld [vmem:[#allocation21 + $0x1a0] sm:$0xf0]  ;;  %v9863_v17 = vld [vmem:[#allocation21 + $0xe8] sm:$0xf0] }
 0x3cf   :  { %v9954_v47 = vor.u32 %v11891_v43, %v9951_v37  ;;  %v9791_v43 = vld [vmem:[#allocation21 + $0x60] sm:$0xf0]  ;;  %v11852_v37 = vld [vmem:[#allocation21 + $0x4c] sm:$0xf] }
 0x3d0   :  { %4446 = vmatpush.bf16.msra.mxu2 %v9594_v19  ;;  %v9794_v50 = vor.u32 %v11851_v55, %v9791_v43  ;;  %v9901_v55 = vld [vmem:[#allocation21 + $0x110] sm:$0xf] }
 0x3d1   :  { %v11881_v43 = vld [vmem:[#allocation21 + $0x12c] sm:$0xf0] }
 0x3d2   :  { %4419 = vmatpush.bf16.msra.mxu3 %v9554_v53  ;;  %v9927_v53 = vld [vmem:[#allocation21 + $0x168] sm:$0xf0] }
 0x3d3   :  { %v9930_v57 = vor.u32 %v11884_v52, %v9927_v53  ;;  %v11843_v52 = vld [vmem:[#allocation21 + $0x4] sm:$0xf] }
 0x3d4   :  { %4447 = vmatpush.bf16.msra.mxu2 %v9562_v22  ;;  %v11970_v22 = vld [vmem:[#allocation22 + $0x1f4] sm:$0xf0] }
 0x3d5   :  { %v9750_v3 = vor.u32 %v11970_v22, %v9749_v54  ;;  %v9759_v54 = vld [vmem:[#allocation21 + $0x20] sm:$0xf0]  ;;  %v11844_v22 = vld [vmem:[#allocation21 + $0xc] sm:$0xf] }
 0x3d6   :  { %4420 = vmatpush.bf16.msra.mxu3 %v9522_v2 }
 0x3d8   :  { %4448 = vmatpush.bf16.msra.mxu2 %v9530_v6 }
 0x406   :  { %v3611_v16 = vpop.f32.mrf.mxu0 }
 0x407   :  { %v3612_v23 = vadd.f32 %v12355_v20, %v3611_v16  ;;  %v11868_v16 = vld [vmem:[#allocation21 + $0xcc] sm:$0xf] }
 0x40e   :  { %v3613_v21 = vpop.f32.mrf.mxu0 }
 0x40f   :  { %v3614_v24 = vadd.f32 %v12355_v20, %v3613_v21  ;;  %v9854_v20 = vor.u32 %v11871_v12, %v9853_v13  ;;  %v9858_v21 = vor.u32 %v11867_v35, %v9855_v14  ;;  %v9965_v13 = vld [vmem:[#allocation21 + $0x190] sm:$0xf]  ;;  %v11893_v35 = vld [vmem:[#allocation21 + $0x194] sm:$0xf] }
 0x410   :  { %v11897_v12 = vld [vmem:[#allocation21 + $0x1ac] sm:$0xf0] }
 0x41c   :  { %v3625_v18 = vpop.f32.mrf.mxu3 }
 0x41d   :  { %v3626_v0 = vadd.f32 %v3625_v18, %v3612_v23  ;;  %v9718_v18 = vor.u32 %v11962_v11, %v9717_v10  ;;  %v9685_v23 = vld [vmem:[#allocation22 + $0x158] sm:$0xf]  ;;  %v10002_v10 = vor.u32 %v11901_v58, %v9999_v60  ;;  %v10010_v11 = vor.u32 %v11902_v61, %v10007_v63  ;;  %v9925_v58 = vld [vmem:[#allocation21 + $0x148] sm:$0xf]  ;;  %v9837_v63 = vld [vmem:[#allocation21 + $0x90] sm:$0xf] }
 0x41f   :  { %v3630_v32 = vmax.f32 %v3626_v0, 0.0  ;;  %v9821_v0 = vld [vmem:[#allocation21 + $0x80] sm:$0xf] }
 0x424   :  { %v3627_v56 = vpop.f32.mrf.mxu3 }
 0x425   :  { %v3628_v25 = vadd.f32 %v3627_v56, %v3614_v24  ;;  %v11954_v24 = vld [vmem:[#allocation22 + $0x174] sm:$0xf0]  ;;  %v9866_v56 = vor.u32 %v11868_v16, %v9863_v17  ;;  %v9967_v16 = vld [vmem:[#allocation21 + $0x1b0] sm:$0xf0]  ;;  %v11894_v17 = vld [vmem:[#allocation21 + $0x19c] sm:$0xf] }
 0x426   :  { %v9686_v29 = vor.u32 %v11954_v24, %v9685_v23  ;;  %v9966_v23 = vor.u32 %v11897_v12, %v9965_v13  ;;  %v9970_v24 = vor.u32 %v11893_v35, %v9967_v16  ;;  %v9805_v12 = vld [vmem:[#allocation21 + $0x50] sm:$0xf]  ;;  %v9807_v16 = vld [vmem:[#allocation21 + $0x70] sm:$0xf0] }
 0x427   :  { %v3631_v33 = vmax.f32 %v3628_v25, 0.0  ;;  %v11863_v25 = vld [vmem:[#allocation21 + $0x9c] sm:$0xf0]  ;;  %v11857_v35 = vld [vmem:[#allocation21 + $0x6c] sm:$0xf0] }
 0x428   :  { %v9822_v31 = vor.u32 %v11863_v25, %v9821_v0  ;;  %v11889_v25 = vld [vmem:[#allocation21 + $0x16c] sm:$0xf0] }
 0x429   :  { %v13170_v38 = vpack.c.bf16 %v3631_v33, %v3630_v32  ;;  %v9826_v32 = vor.u32 %v11859_v26, %v9823_v34  ;;  %v9653_v33 = vld [vmem:[#allocation22 + $0x118] sm:$0xf]  ;;  %v11885_v26 = vld [vmem:[#allocation21 + $0x154] sm:$0xf] }
 0x42b   :  { %4351 = vmatmul.bf16.vlgmr.msrb.gmra.mxu1 %v13170_v38  ;;  %4365 = vmatmul.bf16.vlgmr.msrb.gmra.mxu3 %v13170_v38 }
 0x42c   :  { %4393 = vmatmul.bf16.vlgmr.msrb.gmra.mxu2 %v13170_v38  ;;  %4775 = vmatpush.bf16.msrb.mxu1 %v9982_v36  ;;  %v3711_v19 = vpop.f32.mrf.mxu3  ;;  %v11946_v36 = vld [vmem:[#allocation22 + $0x134] sm:$0xf0] }
 0x42d   :  { %4789 = vmatpush.bf16.msrb.mxu3 %v9986_v40  ;;  %4817 = vmatpush.bf16.msrb.mxu2 %v9994_v41  ;;  %v9789_v40 = vld [vmem:[#allocation21 + $0x40] sm:$0xf]  ;;  %v9834_v41 = vor.u32 %v11860_v4, %v9831_v27  ;;  %v9935_v4 = vld [vmem:[#allocation21 + $0x170] sm:$0xf0]  ;;  %v11886_v27 = vld [vmem:[#allocation21 + $0x15c] sm:$0xf] }
 0x42e   :  { %v9790_v49 = vor.u32 %v11855_v42, %v9789_v40  ;;  %v11904_v40 = vld [vmem:[#allocation21 + $0x1e4] sm:$0xf0] }
 0x430   :  { %4776 = vmatpush.bf16.msrb.mxu1 %v9950_v46  ;;  %v9654_v46 = vor.u32 %v11946_v36, %v9653_v33  ;;  %v9989_v36 = vld [vmem:[#allocation21 + $0x1c8] sm:$0xf] }
 0x431   :  { %4790 = vmatpush.bf16.msrb.mxu3 %v9954_v47  ;;  %4818 = vmatpush.bf16.msrb.mxu2 %v9962_v48  ;;  %v9621_v47 = vld [vmem:[#allocation22 + $0xd8] sm:$0xf] }
 0x432   :  { %v11938_v48 = vld [vmem:[#allocation22 + $0xf4] sm:$0xf0] }
 0x433   :  { %v9622_v59 = vor.u32 %v11938_v48, %v9621_v47  ;;  %v9990_v47 = vor.u32 %v11904_v40, %v9989_v36  ;;  %v9902_v48 = vor.u32 %v11881_v43, %v9901_v55  ;;  %v11856_v55 = vld [vmem:[#allocation21 + $0x64] sm:$0xf0] }
 0x434   :  { %4777 = vmatpush.bf16.msrb.mxu1 %v9918_v15  ;;  %v3713_v2 = vpop.f32.mrf.mxu3  ;;  %v9802_v15 = vor.u32 %v11852_v37, %v9799_v44  ;;  %v11877_v37 = vld [vmem:[#allocation21 + $0x114] sm:$0xf] }
 0x435   :  { %4791 = vmatpush.bf16.msrb.mxu3 %v9922_v30  ;;  %4819 = vmatpush.bf16.msrb.mxu2 %v9930_v57  ;;  %v3730_v6 = vpack.c.bf16 %v3713_v2, %v3711_v19  ;;  %v1397_v19 = vadd.f32 %v12358_v45, %v13146_v62  ;;  %v9767_v30 = vld [vmem:[#allocation21 + $0x28] sm:$0xf0]  ;;  %v9997_v57 = vld [vmem:[#allocation21 + $0x1d0] sm:$0xf]  ;;  %v9762_v2 = vor.u32 %v11843_v52, %v9759_v54  ;;  %v9903_v45 = vld [vmem:[#allocation21 + $0x130] sm:$0xf0] }
 0x436   :  { %v11905_v62 = vld [vmem:[#allocation21 + $0x1ec] sm:$0xf0]  ;;  %v9906_v39 = vor.u32 %v11877_v37, %v9903_v45  ;;  %v9871_v54 = vld [vmem:[#allocation21 + $0xf0] sm:$0xf0]  ;;  %v9765_v37 = vld [vmem:[#allocation21 + $0x8] sm:$0xf] }
 0x437   :  { %3872 = vmatmul.bf16.vlgmr.msra.gmra.mxu0 %v3730_v6  ;;  %v1411_v53 = vadd.f32 %v13152_v28, %v1397_v19  ;;  %v1413_v28 = vmax.f32 %v13149_v7, 0.0  ;;  %v11922_v7 = vld [vmem:[#allocation22 + $0x74] sm:$0xf0]  ;;  %v11878_v19 = vld [vmem:[#allocation21 + $0x11c] sm:$0xf] }
 0x438   :  { %4427 = vmatpush.bf16.msra.mxu0 %v9750_v3  ;;  %4778 = vmatpush.bf16.msrb.mxu1 %v9886_v5  ;;  %v9589_v3 = vld [vmem:[#allocation22 + $0x98] sm:$0xf]  ;;  %v9869_v52 = vld [vmem:[#allocation21 + $0xd0] sm:$0xf] }
 0x439   :  { %4792 = vmatpush.bf16.msrb.mxu3 %v9890_v8  ;;  %4820 = vmatpush.bf16.msrb.mxu2 %v9898_v9  ;;  %v11930_v5 = vld [vmem:[#allocation22 + $0xb4] sm:$0xf0]  ;;  %v1414_v6 = vmax.f32 %v1411_v53, 0.0  ;;  %v9770_v8 = vor.u32 %v11844_v22, %v9767_v30  ;;  %v9998_v9 = vor.u32 %v11905_v62, %v9997_v57  ;;  %v11873_v53 = vld [vmem:[#allocation21 + $0xec] sm:$0xf0] }
 0x43a   :  { %v9590_v14 = vor.u32 %v11930_v5, %v9589_v3  ;;  %v11870_v22 = vld [vmem:[#allocation21 + $0xdc] sm:$0xf]  ;;  %v9870_v62 = vor.u32 %v11873_v53, %v9869_v52  ;;  %v9839_v3 = vld [vmem:[#allocation21 + $0xb0] sm:$0xf0]  ;;  %v10005_v45 = vld [vmem:[#allocation21 + $0x1d8] sm:$0xf] }
 0x43b   :  { %4407 = vmatmul.bf16.vlgmr.msra.gmra.mxu1 %v13170_v38  ;;  %4421 = vmatmul.bf16.vlgmr.msra.gmra.mxu3 %v13170_v38  ;;  %v9879_v30 = vld [vmem:[#allocation21 + $0xf8] sm:$0xf0]  ;;  %v9941_v53 = vld [vmem:[#allocation21 + $0x158] sm:$0xf] }
 0x43c   :  { %4428 = vmatpush.bf16.msra.mxu0 %v9718_v18  ;;  %4449 = vmatmul.bf16.vlgmr.msra.gmra.mxu2 %v13170_v38  ;;  %v9975_v18 = vld [vmem:[#allocation21 + $0x1b8] sm:$0xf0]  ;;  %v9882_v61 = vor.u32 %v11870_v22, %v9879_v30  ;;  %v10239_v22 = vld [vmem:[#allocation24 + $0x1e0] sm:$0xf0] }
 0x43d   :  { %4779 = vmatpush.bf16.msrb.mxu1 %v9854_v20  ;;  %4793 = vmatpush.bf16.msrb.mxu3 %v9858_v21  ;;  %v9557_v20 = vld [vmem:[#allocation22 + $0x58] sm:$0xf]  ;;  %v13185_v21 = vpack.c.bf16 %v1414_v6, %v1413_v28  ;;  %v9978_v0 = vor.u32 %v11894_v17, %v9975_v18  ;;  %v11862_v5 = vld [vmem:[#allocation21 + $0x9c] sm:$0xf] }
 0x43e   :  { %4821 = vmatpush.bf16.msrb.mxu2 %v9866_v56  ;;  %v9933_v56 = vld [vmem:[#allocation21 + $0x150] sm:$0xf]  ;;  %v9558_v34 = vor.u32 %v11922_v7, %v9557_v20  ;;  %v9847_v28 = vld [vmem:[#allocation21 + $0xb8] sm:$0xf0]  ;;  %v9806_v20 = vor.u32 %v11857_v35, %v9805_v12  ;;  %v9861_v7 = vld [vmem:[#allocation21 + $0xc8] sm:$0xf] }
 0x43f   :  { %v9934_v33 = vor.u32 %v11889_v25, %v9933_v56  ;;  %v9850_v13 = vor.u32 %v11862_v5, %v9847_v28  ;;  %v11854_v17 = vld [vmem:[#allocation21 + $0x5c] sm:$0xf]  ;;  %v9773_v56 = vld [vmem:[#allocation21 + $0x10] sm:$0xf]  ;;  %v12020_v5 = vld [vmem:[#allocation24 + $0x18c] sm:$0xf] }
 0x440   :  { %4429 = vmatpush.bf16.msra.mxu0 %v9686_v29  ;;  %v9943_v29 = vld [vmem:[#allocation21 + $0x178] sm:$0xf0]  ;;  %v11849_v25 = vld [vmem:[#allocation21 + $0x2c] sm:$0xf0]  ;;  %v10175_v12 = vld [vmem:[#allocation24 + $0x160] sm:$0xf0] }
 0x441   :  { %4780 = vmatpush.bf16.msrb.mxu1 %v9822_v31  ;;  %4794 = vmatpush.bf16.msrb.mxu3 %v9826_v32  ;;  %v9525_v31 = vld [vmem:[#allocation22 + $0x18] sm:$0xf]  ;;  %v9946_v42 = vor.u32 %v11886_v27, %v9943_v29  ;;  %v9815_v18 = vld [vmem:[#allocation21 + $0x78] sm:$0xf0] }
 0x442   :  { %4822 = vmatpush.bf16.msrb.mxu2 %v9834_v41  ;;  %v11914_v32 = vld [vmem:[#allocation22 + $0x34] sm:$0xf0]  ;;  %v9938_v41 = vor.u32 %v11885_v26, %v9935_v4  ;;  %v11845_v26 = vld [vmem:[#allocation21 + $0x14] sm:$0xf]  ;;  %v11846_v4 = vld [vmem:[#allocation21 + $0x1c] sm:$0xf] }
 0x443   :  { %v9526_v44 = vor.u32 %v11914_v32, %v9525_v31  ;;  %v9783_v27 = vld [vmem:[#allocation21 + $0x38] sm:$0xf0]  ;;  %v9774_v31 = vor.u32 %v11849_v25, %v9773_v56  ;;  %v9829_v32 = vld [vmem:[#allocation21 + $0x88] sm:$0xf]  ;;  %v11874_v56 = vld [vmem:[#allocation21 + $0xf4] sm:$0xf0] }
 0x444   :  { %4430 = vmatpush.bf16.msra.mxu0 %v9654_v46  ;;  %v9911_v46 = vld [vmem:[#allocation21 + $0x138] sm:$0xf0]  ;;  %v9786_v40 = vor.u32 %v11846_v4, %v9783_v27  ;;  %v12004_v25 = vld [vmem:[#allocation24 + $0x10c] sm:$0xf] }
 0x445   :  { %4781 = vmatpush.bf16.msrb.mxu1 %v9790_v49  ;;  %4795 = vmatpush.bf16.msrb.mxu3 %v9794_v50  ;;  %v9957_v49 = vld [vmem:[#allocation21 + $0x188] sm:$0xf]  ;;  %v9914_v51 = vor.u32 %v11878_v19, %v9911_v46  ;;  %v11906_v19 = vld [vmem:[#allocation21 + $0x1f4] sm:$0xf0] }
 0x446   :  { %4823 = vmatpush.bf16.msrb.mxu2 %v9802_v15  ;;  %v11896_v50 = vld [vmem:[#allocation21 + $0x1a4] sm:$0xf0]  ;;  %v11869_v15 = vld [vmem:[#allocation21 + $0xd4] sm:$0xf] }
 0x447   :  { %4379 = vmatmul.bf16.vlgmr.msrb.gmra.mxu0 %v13170_v38  ;;  %v9958_v57 = vor.u32 %v11896_v50, %v9957_v49  ;;  %v9874_v60 = vor.u32 %v11869_v15, %v9871_v54  ;;  %v11898_v49 = vld [vmem:[#allocation21 + $0x1b4] sm:$0xf0]  ;;  %v10237_v50 = vld [vmem:[#allocation24 + $0x1c0] sm:$0xf] }
 0x448   :  { %4431 = vmatpush.bf16.msra.mxu0 %v9622_v59  ;;  %v11888_v59 = vld [vmem:[#allocation21 + $0x164] sm:$0xf0]  ;;  %v11890_v15 = vld [vmem:[#allocation21 + $0x174] sm:$0xf0] }
 0x449   :  { %4782 = vmatpush.bf16.msrb.mxu1 %v9758_v1  ;;  %4796 = vmatpush.bf16.msrb.mxu3 %v9762_v2  ;;  %v11865_v1 = vld [vmem:[#allocation21 + $0xac] sm:$0xf0]  ;;  %v11861_v2 = vld [vmem:[#allocation21 + $0x94] sm:$0xf]  ;;  %v9926_v6 = vor.u32 %v11888_v59, %v9925_v58  ;;  %v10205_v58 = vld [vmem:[#allocation24 + $0x180] sm:$0xf]  ;;  %v9942_v28 = vor.u32 %v11890_v15, %v9941_v53 }
 0x44a   :  { %4824 = vmatpush.bf16.msrb.mxu2 %v9770_v8  ;;  %v9838_v8 = vor.u32 %v11865_v1, %v9837_v63  ;;  %v10207_v63 = vld [vmem:[#allocation24 + $0x1a0] sm:$0xf0]  ;;  %v9909_v1 = vld [vmem:[#allocation21 + $0x118] sm:$0xf]  ;;  %v11991_v15 = vld [vmem:[#allocation24 + $0x9c] sm:$0xf0] }
 0x44c   :  { %4432 = vmatpush.bf16.msra.mxu0 %v9590_v14  ;;  %4783 = vmatmul.bf16.vlgmr.msrb.gmra.mxu1 %v13185_v21  ;;  %v11853_v14 = vld [vmem:[#allocation21 + $0x54] sm:$0xf] }
 0x44d   :  { %4831 = vmatpush.bf16.msra.mxu1 %v9998_v9  ;;  %4845 = vmatpush.bf16.msra.mxu3 %v10002_v10  ;;  %v9893_v9 = vld [vmem:[#allocation21 + $0x108] sm:$0xf] }
 0x44e   :  { %4873 = vmatpush.bf16.msra.mxu2 %v10010_v11  ;;  %4797 = vmatmul.bf16.vlgmr.msrb.gmra.mxu3 %v13185_v21  ;;  %v11880_v10 = vld [vmem:[#allocation21 + $0x124] sm:$0xf0]  ;;  %v9842_v11 = vor.u32 %v11861_v2, %v9839_v3 }
 0x44f   :  { %4825 = vmatmul.bf16.vlgmr.msrb.gmra.mxu2 %v13185_v21 }
 0x450   :  { %4433 = vmatpush.bf16.msra.mxu0 %v9558_v34  ;;  %v9775_v34 = vld [vmem:[#allocation21 + $0x30] sm:$0xf0] }
 0x451   :  { %4832 = vmatpush.bf16.msra.mxu1 %v9966_v23  ;;  %4846 = vmatpush.bf16.msra.mxu3 %v9970_v24  ;;  %v11872_v23 = vld [vmem:[#allocation21 + $0xe4] sm:$0xf0]  ;;  %v9810_v24 = vor.u32 %v11853_v14, %v9807_v16  ;;  %v9778_v36 = vor.u32 %v11845_v26, %v9775_v34  ;;  %v12012_v14 = vld [vmem:[#allocation24 + $0x14c] sm:$0xf] }
 0x452   :  { %4874 = vmatpush.bf16.msra.mxu2 %v9978_v0  ;;  %v9818_v0 = vor.u32 %v11854_v17, %v9815_v18  ;;  %v9862_v29 = vor.u32 %v11872_v23, %v9861_v7  ;;  %v10183_v16 = vld [vmem:[#allocation24 + $0x168] sm:$0xf0]  ;;  %v10141_v18 = vld [vmem:[#allocation24 + $0x100] sm:$0xf]  ;;  %v9877_v7 = vld [vmem:[#allocation21 + $0xd8] sm:$0xf] }
 0x453   :  { %v10186_v23 = vor.u32 %v12012_v14, %v10183_v16  ;;  %v10151_v26 = vld [vmem:[#allocation24 + $0x128] sm:$0xf0]  ;;  %v9878_v27 = vor.u32 %v11874_v56, %v9877_v7  ;;  %v12008_v14 = vld [vmem:[#allocation24 + $0x124] sm:$0xf0]  ;;  %v10013_v16 = vld [vmem:[#allocation24] sm:$0xf] }
 0x454   :  { %4434 = vmatpush.bf16.msra.mxu0 %v9526_v44  ;;  %v11848_v44 = vld [vmem:[#allocation21 + $0x24] sm:$0xf0]  ;;  %v10015_v7 = vld [vmem:[#allocation24 + $0x20] sm:$0xf0]  ;;  %v10023_v56 = vld [vmem:[#allocation24 + $0x28] sm:$0xf0] }
 0x455   :  { %4833 = vmatpush.bf16.msra.mxu1 %v9934_v33  ;;  %4847 = vmatpush.bf16.msra.mxu3 %v9938_v41  ;;  %v11864_v33 = vld [vmem:[#allocation21 + $0xa4] sm:$0xf0]  ;;  %v9766_v46 = vor.u32 %v11848_v44, %v9765_v37  ;;  %v10109_v44 = vld [vmem:[#allocation24 + $0xc0] sm:$0xf] }
 0x456   :  { %4875 = vmatpush.bf16.msra.mxu2 %v9946_v42  ;;  %v9830_v41 = vor.u32 %v11864_v33, %v9829_v32  ;;  %v9797_v42 = vld [vmem:[#allocation21 + $0x48] sm:$0xf]  ;;  %v11866_v32 = vld [vmem:[#allocation21 + $0xb4] sm:$0xf0] }
 0x457   :  { %4435 = vmatmul.bf16.vlgmr.msra.gmra.mxu0 %v13170_v38  ;;  %v9894_v38 = vor.u32 %v11880_v10, %v9893_v9  ;;  %v9798_v43 = vor.u32 %v11856_v55, %v9797_v42  ;;  %v12015_v9 = vld [vmem:[#allocation24 + $0x15c] sm:$0xf0]  ;;  %v11882_v10 = vld [vmem:[#allocation21 + $0x134] sm:$0xf0]  ;;  %v12032_v37 = vld [vmem:[#allocation24 + $0x1e4] sm:$0xf0] }
 0x458   :  { %4803 = vmatpush.bf16.msrb.mxu0 %v9990_v47  ;;  %v10006_v47 = vor.u32 %v11906_v19, %v10005_v45  ;;  %v9781_v42 = vld [vmem:[#allocation21 + $0x18] sm:$0xf]  ;;  %v11999_v45 = vld [vmem:[#allocation24 + $0xdc] sm:$0xf0]  ;;  %v11995_v19 = vld [vmem:[#allocation24 + $0xc4] sm:$0xf] }
 0x459   :  { %4834 = vmatpush.bf16.msra.mxu1 %v9902_v48  ;;  %4848 = vmatpush.bf16.msra.mxu3 %v9906_v39  ;;  %v9973_v48 = vld [vmem:[#allocation21 + $0x198] sm:$0xf]  ;;  %v12031_v39 = vld [vmem:[#allocation24 + $0x1dc] sm:$0xf0] }
 0x45a   :  { %4876 = vmatpush.bf16.msra.mxu2 %v9914_v51  ;;  %v12027_v51 = vld [vmem:[#allocation24 + $0x1c4] sm:$0xf]  ;;  %v9974_v52 = vor.u32 %v11898_v49, %v9973_v48  ;;  %v10238_v54 = vor.u32 %v12031_v39, %v10237_v50  ;;  %v11850_v55 = vld [vmem:[#allocation21 + $0x34] sm:$0xf0]  ;;  %v11996_v50 = vld [vmem:[#allocation24 + $0xcc] sm:$0xf] }
 0x45b   :  { %v10242_v30 = vor.u32 %v12027_v51, %v10239_v22  ;;  %v9782_v48 = vor.u32 %v11850_v55, %v9781_v42  ;;  %v10119_v39 = vld [vmem:[#allocation24 + $0xe8] sm:$0xf0]  ;;  %v10077_v51 = vld [vmem:[#allocation24 + $0x80] sm:$0xf]  ;;  %v10079_v22 = vld [vmem:[#allocation24 + $0xa0] sm:$0xf0] }
 0x45c   :  { %4804 = vmatpush.bf16.msrb.mxu0 %v9958_v57  ;;  %v12028_v57 = vld [vmem:[#allocation24 + $0x1cc] sm:$0xf]  ;;  %v10122_v53 = vor.u32 %v11996_v50, %v10119_v39  ;;  %v10085_v42 = vld [vmem:[#allocation24 + $0x88] sm:$0xf]  ;;  %v12017_v50 = vld [vmem:[#allocation24 + $0x16c] sm:$0xf0] }
 0x45d   :  { %4835 = vmatpush.bf16.msra.mxu1 %v9870_v62  ;;  %4849 = vmatpush.bf16.msra.mxu3 %v9874_v60  ;;  %v10247_v62 = vld [vmem:[#allocation24 + $0x1e8] sm:$0xf0]  ;;  %v12023_v60 = vld [vmem:[#allocation24 + $0x19c] sm:$0xf0]  ;;  %v12013_v39 = vld [vmem:[#allocation24 + $0x154] sm:$0xf] }
 0x45e   :  { %4877 = vmatpush.bf16.msra.mxu2 %v9882_v61  ;;  %v10250_v59 = vor.u32 %v12028_v57, %v10247_v62  ;;  %v12019_v61 = vld [vmem:[#allocation24 + $0x184] sm:$0xf]  ;;  %v10206_v2 = vor.u32 %v12023_v60, %v10205_v58  ;;  %v12024_v57 = vld [vmem:[#allocation24 + $0x1a4] sm:$0xf0]  ;;  %v10078_v62 = vor.u32 %v11991_v15, %v10077_v51  ;;  %v10087_v60 = vld [vmem:[#allocation24 + $0xa8] sm:$0xf0] }
 0x45f   :  { %v10210_v3 = vor.u32 %v12019_v61, %v10207_v63  ;;  %v10191_v15 = vld [vmem:[#allocation24 + $0x170] sm:$0xf0] }
 0x460   :  { %4805 = vmatpush.bf16.msrb.mxu0 %v9926_v6  ;;  %v10215_v6 = vld [vmem:[#allocation24 + $0x1a8] sm:$0xf0] }
 0x461   :  { %4836 = vmatpush.bf16.msra.mxu1 %v9838_v8  ;;  %4850 = vmatpush.bf16.msra.mxu3 %v9842_v11  ;;  %v10173_v8 = vld [vmem:[#allocation24 + $0x140] sm:$0xf]  ;;  %v10218_v11 = vor.u32 %v12020_v5, %v10215_v6 }
 0x462   :  { %4878 = vmatpush.bf16.msra.mxu2 %v9850_v13  ;;  %v12011_v13 = vld [vmem:[#allocation24 + $0x144] sm:$0xf]  ;;  %v10174_v35 = vor.u32 %v12015_v9, %v10173_v8  ;;  %v11983_v5 = vld [vmem:[#allocation24 + $0x5c] sm:$0xf0] }
 0x463   :  { %v10178_v17 = vor.u32 %v12011_v13, %v10175_v12  ;;  %v10047_v8 = vld [vmem:[#allocation24 + $0x60] sm:$0xf0] }
 0x464   :  { %4806 = vmatpush.bf16.msrb.mxu0 %v9894_v38  ;;  %v12007_v38 = vld [vmem:[#allocation24 + $0x11c] sm:$0xf0] }
 0x465   :  { %4837 = vmatpush.bf16.msra.mxu1 %v9806_v20  ;;  %4851 = vmatpush.bf16.msra.mxu3 %v9810_v24  ;;  %v9910_v20 = vor.u32 %v11882_v10, %v9909_v1  ;;  %v12003_v24 = vld [vmem:[#allocation24 + $0x104] sm:$0xf]  ;;  %v10142_v34 = vor.u32 %v12007_v38, %v10141_v18  ;;  %v10181_v1 = vld [vmem:[#allocation24 + $0x148] sm:$0xf]  ;;  %v11980_v10 = vld [vmem:[#allocation24 + $0x4c] sm:$0xf] }
 0x466   :  { %4879 = vmatpush.bf16.msra.mxu2 %v9818_v0  ;;  %v10143_v0 = vld [vmem:[#allocation24 + $0x120] sm:$0xf0]  ;;  %v10117_v38 = vld [vmem:[#allocation24 + $0xc8] sm:$0xf] }
 0x467   :  { %v10146_v4 = vor.u32 %v12003_v24, %v10143_v0  ;;  %v11971_v18 = vld [vmem:[#allocation24 + $0x4] sm:$0xf]  ;;  %v11972_v0 = vld [vmem:[#allocation24 + $0xc] sm:$0xf] }
 0x468   :  { %4807 = vmatpush.bf16.msrb.mxu0 %v9862_v29  ;;  %v10154_v29 = vor.u32 %v12004_v25, %v10151_v26  ;;  %v10018_v24 = vor.u32 %v11971_v18, %v10015_v7  ;;  %v10253_v25 = vld [vmem:[#allocation24 + $0x1d0] sm:$0xf]  ;;  %v10026_v26 = vor.u32 %v11972_v0, %v10023_v56  ;;  %v12026_v7 = vld [vmem:[#allocation24 + $0x1b4] sm:$0xf0]  ;;  %v11989_v56 = vld [vmem:[#allocation24 + $0x94] sm:$0xf] }
 0x469   :  { %4838 = vmatpush.bf16.msra.mxu1 %v9774_v31  ;;  %4852 = vmatpush.bf16.msra.mxu3 %v9778_v36  ;;  %v9845_v31 = vld [vmem:[#allocation21 + $0x98] sm:$0xf]  ;;  %v11993_v0 = vld [vmem:[#allocation24 + $0xac] sm:$0xf0] }
 0x46a   :  { %4880 = vmatpush.bf16.msra.mxu2 %v9786_v40  ;;  %v9846_v33 = vor.u32 %v11866_v32, %v9845_v31  ;;  %v9813_v36 = vld [vmem:[#allocation21 + $0x58] sm:$0xf]  ;;  %v12030_v32 = vld [vmem:[#allocation24 + $0x1dc] sm:$0xf] }
 0x46b   :  { %v11858_v40 = vld [vmem:[#allocation21 + $0x74] sm:$0xf0] }
 0x46c   :  { %4839 = vmatmul.bf16.vlgmr.msra.gmra.mxu1 %v13185_v21  ;;  %4808 = vmatpush.bf16.msrb.mxu0 %v9830_v41  ;;  %v9814_v41 = vor.u32 %v11858_v40, %v9813_v36  ;;  %v10221_v36 = vld [vmem:[#allocation24 + $0x190] sm:$0xf] }
 0x46d   :  { %4853 = vmatmul.bf16.vlgmr.msra.gmra.mxu3 %v13185_v21  ;;  %4881 = vmatmul.bf16.vlgmr.msra.gmra.mxu2 %v13185_v21  ;;  %v12025_v40 = vld [vmem:[#allocation24 + $0x1ac] sm:$0xf0] }
 0x46e   :  { %5271 = vmatpush.bf16.msrb.mxu1 %v10238_v54  ;;  %5285 = vmatpush.bf16.msrb.mxu3 %v10242_v30  ;;  %v11987_v54 = vld [vmem:[#allocation24 + $0x84] sm:$0xf]  ;;  %v10213_v30 = vld [vmem:[#allocation24 + $0x188] sm:$0xf] }
 0x46f   :  { %5313 = vmatpush.bf16.msrb.mxu2 %v10250_v59  ;;  %v10082_v58 = vor.u32 %v11987_v54, %v10079_v22  ;;  %v11988_v59 = vld [vmem:[#allocation24 + $0x8c] sm:$0xf]  ;;  %v10214_v63 = vor.u32 %v12024_v57, %v10213_v30  ;;  %v11984_v54 = vld [vmem:[#allocation24 + $0x64] sm:$0xf0]  ;;  %v10194_v22 = vor.u32 %v12013_v39, %v10191_v15  ;;  %v12014_v30 = vld [vmem:[#allocation24 + $0x15c] sm:$0xf] }
 0x470   :  { %4809 = vmatpush.bf16.msrb.mxu0 %v9798_v43  ;;  %v10245_v43 = vld [vmem:[#allocation24 + $0x1c8] sm:$0xf]  ;;  %v10090_v61 = vor.u32 %v11988_v59, %v10087_v60  ;;  %v10199_v57 = vld [vmem:[#allocation24 + $0x178] sm:$0xf0]  ;;  %v12009_v59 = vld [vmem:[#allocation24 + $0x12c] sm:$0xf0] }
 0x471   :  { %v12005_v60 = vld [vmem:[#allocation24 + $0x114] sm:$0xf] }
 0x472   :  { %5272 = vmatpush.bf16.msrb.mxu1 %v10206_v2  ;;  %5286 = vmatpush.bf16.msrb.mxu3 %v10210_v3  ;;  %v12016_v2 = vld [vmem:[#allocation24 + $0x164] sm:$0xf0]  ;;  %v10045_v3 = vld [vmem:[#allocation24 + $0x40] sm:$0xf] }
 0x473   :  { %5314 = vmatpush.bf16.msrb.mxu2 %v10218_v11  ;;  %v10046_v6 = vor.u32 %v11983_v5, %v10045_v3  ;;  %v10055_v11 = vld [vmem:[#allocation24 + $0x68] sm:$0xf0]  ;;  %v10182_v13 = vor.u32 %v12016_v2, %v10181_v1  ;;  %v10159_v2 = vld [vmem:[#allocation24 + $0x130] sm:$0xf0]  ;;  %v11976_v3 = vld [vmem:[#allocation24 + $0x24] sm:$0xf0] }
 0x474   :  { %4810 = vmatpush.bf16.msrb.mxu0 %v9766_v46  ;;  %v10110_v46 = vor.u32 %v11999_v45, %v10109_v44  ;;  %v10058_v12 = vor.u32 %v11980_v10, %v10055_v11  ;;  %v10223_v44 = vld [vmem:[#allocation24 + $0x1b0] sm:$0xf0]  ;;  %v11992_v45 = vld [vmem:[#allocation24 + $0xa4] sm:$0xf0]  ;;  %v10162_v5 = vor.u32 %v12005_v60, %v10159_v2  ;;  %v10125_v11 = vld [vmem:[#allocation24 + $0xd0] sm:$0xf] }
 0x475   :  { %v10086_v51 = vor.u32 %v11992_v45, %v10085_v42  ;;  %v10071_v45 = vld [vmem:[#allocation24 + $0x78] sm:$0xf0] }
 0x476   :  { %5273 = vmatpush.bf16.msrb.mxu1 %v10174_v35  ;;  %5287 = vmatpush.bf16.msrb.mxu3 %v10178_v17  ;;  %v10149_v35 = vld [vmem:[#allocation24 + $0x108] sm:$0xf]  ;;  %v11975_v17 = vld [vmem:[#allocation24 + $0x1c] sm:$0xf0] }
 0x477   :  { %4811 = vmatmul.bf16.vlgmr.msrb.gmra.mxu0 %v13185_v21  ;;  %5315 = vmatpush.bf16.msrb.mxu2 %v10186_v23  ;;  %v10150_v23 = vor.u32 %v12008_v14, %v10149_v35 }
 0x478   :  { %4859 = vmatpush.bf16.msra.mxu0 %v10006_v47  ;;  %v10111_v47 = vld [vmem:[#allocation24 + $0xe0] sm:$0xf0] }
 0x479   :  { %v10114_v49 = vor.u32 %v11995_v19, %v10111_v47  ;;  %v10231_v47 = vld [vmem:[#allocation24 + $0x1b8] sm:$0xf0] }
 0x47a   :  { %5274 = vmatpush.bf16.msrb.mxu1 %v10142_v34  ;;  %5288 = vmatpush.bf16.msrb.mxu3 %v10146_v4  ;;  %v12033_v34 = vld [vmem:[#allocation24 + $0x1ec] sm:$0xf0]  ;;  %v12029_v4 = vld [vmem:[#allocation24 + $0x1d4] sm:$0xf] }
 0x47b   :  { %5316 = vmatpush.bf16.msrb.mxu2 %v10154_v29  ;;  %v10254_v29 = vor.u32 %v12033_v34, %v10253_v25 }
 0x47c   :  { %4860 = vmatpush.bf16.msra.mxu0 %v9974_v52  ;;  %v10246_v52 = vor.u32 %v12032_v37, %v10245_v43  ;;  %v10222_v43 = vor.u32 %v12025_v40, %v10221_v36  ;;  %v12021_v37 = vld [vmem:[#allocation24 + $0x194] sm:$0xf]  ;;  %v10061_v36 = vld [vmem:[#allocation24 + $0x50] sm:$0xf] }
 0x47d   :  { %v10226_v19 = vor.u32 %v12021_v37, %v10223_v44  ;;  %v11985_v40 = vld [vmem:[#allocation24 + $0x6c] sm:$0xf0]  ;;  %v11982_v44 = vld [vmem:[#allocation24 + $0x5c] sm:$0xf] }
 0x47e   :  { %5275 = vmatpush.bf16.msrb.mxu1 %v10110_v46  ;;  %5289 = vmatpush.bf16.msrb.mxu3 %v10114_v49  ;;  %v12022_v46 = vld [vmem:[#allocation24 + $0x19c] sm:$0xf]  ;;  %v10189_v49 = vld [vmem:[#allocation24 + $0x150] sm:$0xf]  ;;  %v10062_v42 = vor.u32 %v11985_v40, %v10061_v36 }
 0x47f   :  { %5317 = vmatpush.bf16.msrb.mxu2 %v10122_v53  ;;  %v10190_v53 = vor.u32 %v12017_v50, %v10189_v49  ;;  %v11977_v49 = vld [vmem:[#allocation24 + $0x2c] sm:$0xf0]  ;;  %v11973_v50 = vld [vmem:[#allocation24 + $0x14] sm:$0xf] }
 0x480   :  { %4861 = vmatpush.bf16.msra.mxu0 %v9942_v28  ;;  %v11979_v28 = vld [vmem:[#allocation24 + $0x44] sm:$0xf] }
 0x481   :  { %v10050_v9 = vor.u32 %v11979_v28, %v10047_v8  ;;  %v12006_v28 = vld [vmem:[#allocation24 + $0x11c] sm:$0xf]  ;;  %v10261_v8 = vld [vmem:[#allocation24 + $0x1d8] sm:$0xf] }
 0x482   :  { %5276 = vmatpush.bf16.msrb.mxu1 %v10078_v62  ;;  %5290 = vmatpush.bf16.msrb.mxu3 %v10082_v58  ;;  %v10202_v62 = vor.u32 %v12014_v30, %v10199_v57  ;;  %v10157_v58 = vld [vmem:[#allocation24 + $0x110] sm:$0xf]  ;;  %v10039_v30 = vld [vmem:[#allocation24 + $0x38] sm:$0xf0]  ;;  %v12356_v57 = vld [vmem:[%s13433_s17] ss:$0 sm:$0xff] }
 0x483   :  { %5318 = vmatpush.bf16.msrb.mxu2 %v10090_v61  ;;  %v10158_v1 = vor.u32 %v12009_v59, %v10157_v58  ;;  %v12002_v58 = vld [vmem:[#allocation24 + $0xf4] sm:$0xf0] }
 0x484   :  { %4862 = vmatpush.bf16.msra.mxu0 %v9910_v20  ;;  %v12000_v20 = vld [vmem:[#allocation24 + $0xe4] sm:$0xf0] }
 0x486   :  { %5277 = vmatpush.bf16.msrb.mxu1 %v10046_v6  ;;  %5291 = vmatpush.bf16.msrb.mxu3 %v10050_v9  ;;  %v10167_v6 = vld [vmem:[#allocation24 + $0x138] sm:$0xf0]  ;;  %v12034_v9 = vld [vmem:[#allocation24 + $0x1f4] sm:$0xf0] }
 0x487   :  { %5319 = vmatpush.bf16.msrb.mxu2 %v10058_v12  ;;  %v10170_v10 = vor.u32 %v12006_v28, %v10167_v6  ;;  %v11997_v12 = vld [vmem:[#allocation24 + $0xd4] sm:$0xf]  ;;  %v10069_v6 = vld [vmem:[#allocation24 + $0x58] sm:$0xf] }
 0x488   :  { %4863 = vmatpush.bf16.msra.mxu0 %v9878_v27  ;;  %v10255_v27 = vld [vmem:[#allocation24 + $0x1f0] sm:$0xf0] }
 0x489   :  { %v10258_v31 = vor.u32 %v12029_v4, %v10255_v27  ;;  %v11990_v27 = vld [vmem:[#allocation24 + $0x9c] sm:$0xf] }
 0x48a   :  { %5292 = vmatpush.bf16.msrb.mxu3 %v10018_v24  ;;  %v10093_v24 = vld [vmem:[#allocation24 + $0x90] sm:$0xf] }
 0x48b   :  { %5320 = vmatpush.bf16.msrb.mxu2 %v10026_v26  ;;  %v10094_v25 = vor.u32 %v11993_v0, %v10093_v24  ;;  %v10095_v26 = vld [vmem:[#allocation24 + $0xb0] sm:$0xf0]  ;;  %v10365_v24 = vld [vmem:[#allocation25 + $0xc0] sm:$0xf]  ;;  %v12061_v0 = vld [vmem:[#allocation25 + $0xcc] sm:$0xf0] }
 0x48c   :  { %4864 = vmatpush.bf16.msra.mxu0 %v9846_v33  ;;  %v10263_v33 = vld [vmem:[#allocation24 + $0x1f8] sm:$0xf0]  ;;  %v10098_v4 = vor.u32 %v11989_v56, %v10095_v26  ;;  %v10621_v26 = vld [vmem:[#allocation25 + $0x2c0] sm:$0xf] }
 0x48d   :  { %v10266_v55 = vor.u32 %v12030_v32, %v10263_v33  ;;  %v12018_v32 = vld [vmem:[#allocation24 + $0x174] sm:$0xf0] }
 0x48e   :  { %5341 = vmatpush.bf16.msra.mxu3 %v10258_v31  ;;  %v10197_v31 = vld [vmem:[#allocation24 + $0x158] sm:$0xf] }
 0x48f   :  { %5369 = vmatpush.bf16.msra.mxu2 %v10266_v55  ;;  %v10063_v55 = vld [vmem:[#allocation24 + $0x70] sm:$0xf0] }
 0x490   :  { %4865 = vmatpush.bf16.msra.mxu0 %v9814_v41  ;;  %v10118_v41 = vor.u32 %v12000_v20, %v10117_v38  ;;  %v11998_v38 = vld [vmem:[#allocation24 + $0xdc] sm:$0xf] }
 0x491   :  { %v10135_v20 = vld [vmem:[#allocation24 + $0xf8] sm:$0xf0] }
 0x492   :  { %5342 = vmatpush.bf16.msra.mxu3 %v10226_v19  ;;  %v10165_v19 = vld [vmem:[#allocation24 + $0x118] sm:$0xf] }
 0x494   :  { %4866 = vmatpush.bf16.msra.mxu0 %v9782_v48  ;;  %v10234_v48 = vor.u32 %v12022_v46, %v10231_v47  ;;  %v12010_v46 = vld [vmem:[#allocation24 + $0x134] sm:$0xf0]  ;;  %v10074_v47 = vor.u32 %v11982_v44, %v10071_v45  ;;  %v10493_v44 = vld [vmem:[#allocation25 + $0x1c0] sm:$0xf]  ;;  %v12093_v45 = vld [vmem:[#allocation25 + $0x1cc] sm:$0xf0] }
 0x495   :  { %v10166_v15 = vor.u32 %v12010_v46, %v10165_v19  ;;  %v10494_v46 = vor.u32 %v12093_v45, %v10493_v44  ;;  %v10269_v44 = vld [vmem:[#allocation25] sm:$0xf] }
 0x496   :  { %5370 = vmatpush.bf16.msra.mxu2 %v10234_v48  ;;  %5343 = vmatpush.bf16.msra.mxu3 %v10194_v22  ;;  %v10029_v48 = vld [vmem:[#allocation24 + $0x10] sm:$0xf]  ;;  %v11974_v22 = vld [vmem:[#allocation24 + $0x1c] sm:$0xf]  ;;  %v10413_v45 = vld [vmem:[#allocation25 + $0x120] sm:$0xf] }
 0x497   :  { %4867 = vmatmul.bf16.vlgmr.msra.gmra.mxu0 %v13185_v21  ;;  %v10014_v21 = vor.u32 %v11975_v17, %v10013_v16  ;;  %v10127_v16 = vld [vmem:[#allocation24 + $0xf0] sm:$0xf0]  ;;  %v10262_v17 = vor.u32 %v12034_v9, %v10261_v8  ;;  %v10030_v39 = vor.u32 %v11977_v49, %v10029_v48  ;;  %v10042_v59 = vor.u32 %v11974_v22, %v10039_v30  ;;  %v11986_v8 = vld [vmem:[#allocation24 + $0x74] sm:$0xf0]  ;;  %v12157_v48 = vld [vmem:[#allocation25 + $0x3cc] sm:$0xf0] }
 0x498   :  { %5299 = vmatpush.bf16.msrb.mxu0 %v10246_v52  ;;  %v10053_v52 = vld [vmem:[#allocation24 + $0x48] sm:$0xf]  ;;  %v10130_v18 = vor.u32 %v11997_v12, %v10127_v16  ;;  %v10589_v30 = vld [vmem:[#allocation25 + $0x280] sm:$0xf] }
 0x499   :  { %5278 = vmatpush.bf16.msrb.mxu1 %v10014_v21  ;;  %v10054_v61 = vor.u32 %v11984_v54, %v10053_v52  ;;  %v10229_v21 = vld [vmem:[#allocation24 + $0x198] sm:$0xf]  ;;  %v3887_v52 = vpop.f32.mrf.mxu2 }
 0x49a   :  { %5371 = vmatpush.bf16.msra.mxu2 %v10202_v62  ;;  %5344 = vmatpush.bf16.msra.mxu3 %v10162_v5  ;;  %v10230_v34 = vor.u32 %v12026_v7, %v10229_v21  ;;  %v10133_v62 = vld [vmem:[#allocation24 + $0xd8] sm:$0xf]  ;;  %v10637_v21 = vld [vmem:[#allocation25 + $0x2e0] sm:$0xf] }
 0x49b   :  { %v10134_v60 = vor.u32 %v12002_v58, %v10133_v62  ;;  %v12153_v62 = vld [vmem:[#allocation25 + $0x3ac] sm:$0xf0] }
 0x49c   :  { %5300 = vmatpush.bf16.msrb.mxu0 %v10214_v63  ;;  %v10021_v63 = vld [vmem:[#allocation24 + $0x8] sm:$0xf] }
 0x49d   :  { %5327 = vmatpush.bf16.msra.mxu1 %v10254_v29  ;;  %v10022_v35 = vor.u32 %v11976_v3, %v10021_v63  ;;  %v10103_v29 = vld [vmem:[#allocation24 + $0xb8] sm:$0xf0]  ;;  %v10101_v63 = vld [vmem:[#allocation24 + $0x98] sm:$0xf] }
 0x49e   :  { %5372 = vmatpush.bf16.msra.mxu2 %v10170_v10  ;;  %5345 = vmatpush.bf16.msra.mxu3 %v10130_v18  ;;  %v10106_v33 = vor.u32 %v11990_v27, %v10103_v29  ;;  %v10366_v27 = vor.u32 %v12061_v0, %v10365_v24  ;;  %v12097_v29 = vld [vmem:[#allocation25 + $0x1ec] sm:$0xf0] }
 0x49f   :  { %v12109_v24 = vld [vmem:[#allocation25 + $0x24c] sm:$0xf0] }
 0x4a0   :  { %5301 = vmatpush.bf16.msrb.mxu0 %v10182_v13  ;;  %v12001_v13 = vld [vmem:[#allocation24 + $0xec] sm:$0xf0] }
 0x4a1   :  { %5328 = vmatpush.bf16.msra.mxu1 %v10222_v43  ;;  %v10126_v14 = vor.u32 %v12001_v13, %v10125_v11  ;;  %v10198_v43 = vor.u32 %v12018_v32, %v10197_v31  ;;  %v3889_v9 = vpop.f32.mrf.mxu2  ;;  %v10070_v11 = vor.u32 %v11986_v8, %v10069_v6  ;;  %v10765_v31 = vld [vmem:[#allocation25 + $0x3e0] sm:$0xf]  ;;  %v12161_v32 = vld [vmem:[#allocation25 + $0x3ec] sm:$0xf0] }
 0x4a2   :  { %5346 = vmatpush.bf16.msra.mxu3 %v10098_v4  ;;  %v10509_v4 = vld [vmem:[#allocation25 + $0x1e0] sm:$0xf]  ;;  %v10766_v40 = vor.u32 %v12161_v32, %v10765_v31  ;;  %v12049_v6 = vld [vmem:[#allocation25 + $0x6c] sm:$0xf0] }
 0x4a3   :  { %v10510_v36 = vor.u32 %v12097_v29, %v10509_v4  ;;  %v10573_v8 = vld [vmem:[#allocation25 + $0x260] sm:$0xf]  ;;  %v12141_v31 = vld [vmem:[#allocation25 + $0x34c] sm:$0xf0] }
 0x4a4   :  { %5302 = vmatpush.bf16.msrb.mxu0 %v10150_v23  ;;  %v10138_v23 = vor.u32 %v11998_v38, %v10135_v20  ;;  %v10381_v38 = vld [vmem:[#allocation25 + $0xe0] sm:$0xf]  ;;  %v12065_v20 = vld [vmem:[#allocation25 + $0xec] sm:$0xf0] }
 0x4a5   :  { %5329 = vmatpush.bf16.msra.mxu1 %v10190_v53  ;;  %v10382_v7 = vor.u32 %v12065_v20, %v10381_v38  ;;  %v10685_v29 = vld [vmem:[#allocation25 + $0x340] sm:$0xf] }
 0x4a6   :  { %5373 = vmatpush.bf16.msra.mxu2 %v10138_v23  ;;  %v12129_v23 = vld [vmem:[#allocation25 + $0x2ec] sm:$0xf0] }
 0x4a8   :  { %5303 = vmatpush.bf16.msrb.mxu0 %v10118_v41  ;;  %v11981_v41 = vld [vmem:[#allocation24 + $0x54] sm:$0xf]  ;;  %v13199_v18 = vpop.f32.mrf.mxu1 }
 0x4a9   :  { %5330 = vmatpush.bf16.msra.mxu1 %v10158_v1  ;;  %v10066_v37 = vor.u32 %v11981_v41, %v10063_v55  ;;  %v11994_v1 = vld [vmem:[#allocation24 + $0xb4] sm:$0xf0]  ;;  %v10349_v41 = vld [vmem:[#allocation25 + $0xa0] sm:$0xf] }
 0x4aa   :  { %5374 = vmatpush.bf16.msra.mxu2 %v10106_v33  ;;  %v10102_v3 = vor.u32 %v11994_v1, %v10101_v63  ;;  %v10605_v55 = vld [vmem:[#allocation25 + $0x2a0] sm:$0xf]  ;;  %v12085_v63 = vld [vmem:[#allocation25 + $0x18c] sm:$0xf0] }
 0x4ab   :  { %5347 = vmatpush.bf16.msra.mxu3 %v10066_v37  ;;  %v12121_v37 = vld [vmem:[#allocation25 + $0x2ac] sm:$0xf0]  ;;  %v10717_v1 = vld [vmem:[#allocation25 + $0x380] sm:$0xf] }
 0x4ac   :  { %5304 = vmatpush.bf16.msrb.mxu0 %v10086_v51  ;;  %v10031_v51 = vld [vmem:[#allocation24 + $0x30] sm:$0xf0] }
 0x4ad   :  { %5331 = vmatpush.bf16.msra.mxu1 %v10126_v14  ;;  %v10034_v54 = vor.u32 %v11973_v50, %v10031_v51  ;;  %v11978_v14 = vld [vmem:[#allocation24 + $0x34] sm:$0xf0]  ;;  %v12053_v51 = vld [vmem:[#allocation25 + $0x8c] sm:$0xf0] }
 0x4ae   :  { %5375 = vmatpush.bf16.msra.mxu2 %v10074_v47  ;;  %v10749_v47 = vld [vmem:[#allocation25 + $0x3c0] sm:$0xf] }
 0x4af   :  { %5348 = vmatpush.bf16.msra.mxu3 %v10034_v54  ;;  %v13205_v19 = vpop.f32.mrf.mxu2  ;;  %v10750_v50 = vor.u32 %v12157_v48, %v10749_v47  ;;  %v10733_v54 = vld [vmem:[#allocation25 + $0x3a0] sm:$0xf]  ;;  %v12073_v47 = vld [vmem:[#allocation25 + $0x12c] sm:$0xf0] }
 0x4b0   :  { %5305 = vmatpush.bf16.msrb.mxu0 %v10054_v61  ;;  %v13207_v22 = vpop.f32.mrf.mxu1  ;;  %v10669_v48 = vld [vmem:[#allocation25 + $0x320] sm:$0xf] }
 0x4b1   :  { %5332 = vmatpush.bf16.msra.mxu1 %v10094_v25  ;;  %v10638_v25 = vor.u32 %v12129_v23, %v10637_v21  ;;  %v10301_v21 = vld [vmem:[#allocation25 + $0x40] sm:$0xf] }
 0x4b2   :  { %5376 = vmatpush.bf16.msra.mxu2 %v10042_v59  ;;  %v10734_v59 = vor.u32 %v12153_v62, %v10733_v54  ;;  %v10557_v23 = vld [vmem:[#allocation25 + $0x240] sm:$0xf]  ;;  %v12193_v54 = vld [vmem:[#allocation25 + $0x4ec] sm:$0xf0] }
 0x4b3   :  { %v10558_v32 = vor.u32 %v12109_v24, %v10557_v23  ;;  %v12257_v62 = vld [vmem:[#allocation25 + $0x6ec] sm:$0xf0]  ;;  %v11005_v24 = vld [vmem:[#allocation25 + $0x5c0] sm:$0xf] }
 0x4b4   :  { %5306 = vmatpush.bf16.msrb.mxu0 %v10022_v35  ;;  %v3873_v53 = vpop.f32.mrf.mxu0  ;;  %v10037_v35 = vld [vmem:[#allocation24 + $0x18] sm:$0xf] }
 0x4b5   :  { %5333 = vmatpush.bf16.msra.mxu1 %v10062_v42  ;;  %v3874_v61 = vadd.f32 %v12356_v57, %v3873_v53  ;;  %v12057_v42 = vld [vmem:[#allocation25 + $0xac] sm:$0xf0]  ;;  %v10477_v53 = vld [vmem:[#allocation25 + $0x1a0] sm:$0xf] }
 0x4b6   :  { %v10350_v49 = vor.u32 %v12057_v42, %v10349_v41  ;;  %v12105_v41 = vld [vmem:[#allocation25 + $0x22c] sm:$0xf0] }
 0x4b7   :  { %v3888_v5 = vadd.f32 %v3887_v52, %v3874_v61  ;;  %v10606_v52 = vor.u32 %v12121_v37, %v10605_v55  ;;  %v13213_v38 = vpop.f32.mrf.mxu2  ;;  %v10686_v37 = vor.u32 %v12141_v31, %v10685_v29  ;;  %v10861_v31 = vld [vmem:[#allocation25 + $0x4a0] sm:$0xf] }
 0x4b8   :  { %5355 = vmatpush.bf16.msra.mxu0 %v10262_v17  ;;  %v10038_v17 = vor.u32 %v11978_v14, %v10037_v35  ;;  %v12081_v14 = vld [vmem:[#allocation25 + $0x16c] sm:$0xf0] }
 0x4b9   :  { %5334 = vmatpush.bf16.msra.mxu1 %v10030_v39  ;;  %v3892_v13 = vmax.f32 %v3888_v5, 0.0  ;;  %v10333_v39 = vld [vmem:[#allocation25 + $0x80] sm:$0xf] }
 0x4ba   :  { %v10334_v61 = vor.u32 %v12053_v51, %v10333_v39  ;;  %v12037_v39 = vld [vmem:[#allocation25 + $0xc] sm:$0xf0]  ;;  %v10525_v51 = vld [vmem:[#allocation25 + $0x200] sm:$0xf] }
 0x4bc   :  { %5356 = vmatpush.bf16.msra.mxu0 %v10230_v34  ;;  %v3875_v2 = vpop.f32.mrf.mxu0  ;;  %v12125_v34 = vld [vmem:[#allocation25 + $0x2cc] sm:$0xf0] }
 0x4bd   :  { %v3876_v28 = vadd.f32 %v12356_v57, %v3875_v2  ;;  %v10622_v33 = vor.u32 %v12125_v34, %v10621_v26  ;;  %v12117_v57 = vld [vmem:[#allocation25 + $0x28c] sm:$0xf0]  ;;  %v10429_v26 = vld [vmem:[#allocation25 + $0x140] sm:$0xf]  ;;  %v13215_v34 = vpop.f32.mrf.mxu1 }
 0x4be   :  { %v12149_v2 = vld [vmem:[#allocation25 + $0x38c] sm:$0xf0]  ;;  %v10590_v5 = vor.u32 %v12117_v57, %v10589_v30  ;;  %v11149_v30 = vld [vmem:[#allocation25 + $0x6e0] sm:$0xf] }
 0x4bf   :  { %v3890_v10 = vadd.f32 %v3889_v9, %v3876_v28  ;;  %v10317_v28 = vld [vmem:[#allocation25 + $0x60] sm:$0xf]  ;;  %v12113_v9 = vld [vmem:[#allocation25 + $0x26c] sm:$0xf0]  ;;  %v13221_v57 = vpop.f32.mrf.mxu2 }
 0x4c0   :  { %5357 = vmatpush.bf16.msra.mxu0 %v10198_v43  ;;  %v13203_v43 = vpop.f32.mrf.mxu3  ;;  %v10318_v35 = vor.u32 %v12049_v6, %v10317_v28  ;;  %v10574_v20 = vor.u32 %v12113_v9, %v10573_v8  ;;  %v12225_v8 = vld [vmem:[#allocation25 + $0x5ec] sm:$0xf0]  ;;  %v11277_v9 = vld [vmem:[#allocation25 + $0x7e0] sm:$0xf] }
 0x4c1   :  { %v3893_v12 = vmax.f32 %v3890_v10, 0.0 }
 0x4c3   :  { %v3894_v16 = vpack.c.bf16 %v3893_v12, %v3892_v13  ;;  %v10445_v13 = vld [vmem:[#allocation25 + $0x160] sm:$0xf] }
 0x4c4   :  { %5358 = vmatpush.bf16.msra.mxu0 %v10166_v15  ;;  %v13201_v56 = vpop.f32.mrf.mxu0  ;;  %v12089_v15 = vld [vmem:[#allocation25 + $0x1ac] sm:$0xf0]  ;;  %v10446_v0 = vor.u32 %v12081_v14, %v10445_v13  ;;  %v11150_v13 = vor.u32 %v12257_v62, %v11149_v30 }
 0x4c5   :  { %5279 = vmatmul.bf16.vlgmr.msrb.gmra.mxu1 %v3894_v16  ;;  %5293 = vmatmul.bf16.vlgmr.msrb.gmra.mxu3 %v3894_v16  ;;  %v10478_v58 = vor.u32 %v12089_v15, %v10477_v53  ;;  %v10893_v15 = vld [vmem:[#allocation25 + $0x4e0] sm:$0xf]  ;;  %v12189_v14 = vld [vmem:[#allocation25 + $0x4cc] sm:$0xf0] }
 0x4c6   :  { %5307 = vmatmul.bf16.vlgmr.msrb.gmra.mxu0 %v3894_v16  ;;  %5321 = vmatmul.bf16.vlgmr.msrb.gmra.mxu2 %v3894_v16  ;;  %v10894_v6 = vor.u32 %v12193_v54, %v10893_v15  ;;  %v10989_v54 = vld [vmem:[#allocation25 + $0x5a0] sm:$0xf]  ;;  %v12217_v30 = vld [vmem:[#allocation25 + $0x5ac] sm:$0xf0] }
 0x4c7   :  { %7003 = vmatpush.bf16.msrb.mxu1 %v10382_v7  ;;  %7017 = vmatpush.bf16.msrb.mxu3 %v10510_v36  ;;  %v12045_v7 = vld [vmem:[#allocation25 + $0x4c] sm:$0xf0] }
 0x4c8   :  { %5359 = vmatpush.bf16.msra.mxu0 %v10134_v60  ;;  %7045 = vmatpush.bf16.msrb.mxu2 %v10766_v40  ;;  %v10461_v60 = vld [vmem:[#allocation25 + $0x180] sm:$0xf]  ;;  %v13211_v12 = vpop.f32.mrf.mxu3  ;;  %v10302_v4 = vor.u32 %v12045_v7, %v10301_v21  ;;  %v12041_v36 = vld [vmem:[#allocation25 + $0x2c] sm:$0xf0] }
 0x4c9   :  { %v10462_v10 = vor.u32 %v12085_v63, %v10461_v60  ;;  %v10541_v40 = vld [vmem:[#allocation25 + $0x220] sm:$0xf]  ;;  %v10270_v63 = vor.u32 %v12037_v39, %v10269_v44 }
 0x4ca   :  { %v10397_v60 = vld [vmem:[#allocation25 + $0x100] sm:$0xf] }
 0x4cb   :  { %7004 = vmatpush.bf16.msrb.mxu1 %v10366_v27  ;;  %7018 = vmatpush.bf16.msrb.mxu3 %v10494_v46  ;;  %v12077_v27 = vld [vmem:[#allocation25 + $0x14c] sm:$0xf0] }
 0x4cc   :  { %5360 = vmatpush.bf16.msra.mxu0 %v10102_v3  ;;  %7046 = vmatpush.bf16.msrb.mxu2 %v10750_v50  ;;  %v13209_v3 = vpop.f32.mrf.mxu0  ;;  %v10430_v55 = vor.u32 %v12077_v27, %v10429_v26  ;;  %v10542_v50 = vor.u32 %v12105_v41, %v10541_v40  ;;  %v12221_v26 = vld [vmem:[#allocation25 + $0x5cc] sm:$0xf0] }
 0x4cd   :  { %v12285_v27 = vld [vmem:[#allocation25 + $0x7cc] sm:$0xf0]  ;;  %v11006_v41 = vor.u32 %v12221_v26, %v11005_v24  ;;  %v10957_v26 = vld [vmem:[#allocation25 + $0x560] sm:$0xf] }
 0x4ce   :  { %v12237_v24 = vld [vmem:[#allocation25 + $0x64c] sm:$0xf0] }
 0x4cf   :  { %7005 = vmatpush.bf16.msrb.mxu1 %v10350_v49  ;;  %7019 = vmatpush.bf16.msrb.mxu3 %v10478_v58  ;;  %v12137_v49 = vld [vmem:[#allocation25 + $0x32c] sm:$0xf0]  ;;  %v10414_v58 = vor.u32 %v12073_v47, %v10413_v45 }
 0x4d0   :  { %5361 = vmatpush.bf16.msra.mxu0 %v10070_v11  ;;  %7047 = vmatpush.bf16.msrb.mxu2 %v10734_v59  ;;  %v10718_v11 = vor.u32 %v12149_v2, %v10717_v1  ;;  %v13219_v53 = vpop.f32.mrf.mxu3  ;;  %v10670_v59 = vor.u32 %v12137_v49, %v10669_v48  ;;  %v10653_v1 = vld [vmem:[#allocation25 + $0x300] sm:$0xf]  ;;  %v12133_v2 = vld [vmem:[#allocation25 + $0x30c] sm:$0xf0] }
 0x4d1   :  { %v10654_v21 = vor.u32 %v12133_v2, %v10653_v1  ;;  %v10845_v48 = vld [vmem:[#allocation25 + $0x480] sm:$0xf]  ;;  %v12181_v49 = vld [vmem:[#allocation25 + $0x48c] sm:$0xf0] }
 0x4d2   :  { %v10846_v39 = vor.u32 %v12181_v49, %v10845_v48  ;;  %v12177_v1 = vld [vmem:[#allocation25 + $0x46c] sm:$0xf0] }
 0x4d3   :  { %7006 = vmatpush.bf16.msrb.mxu1 %v10334_v61  ;;  %7020 = vmatpush.bf16.msrb.mxu3 %v10462_v10  ;;  %v12069_v61 = vld [vmem:[#allocation25 + $0x10c] sm:$0xf0] }
 0x4d4   :  { %5362 = vmatpush.bf16.msra.mxu0 %v10038_v17  ;;  %v12145_v17 = vld [vmem:[#allocation25 + $0x36c] sm:$0xf0]  ;;  %7048 = vmatpush.bf16.msrb.mxu2 %v10718_v11  ;;  %v13217_v42 = vpop.f32.mrf.mxu0  ;;  %v13223_v11 = vpop.f32.mrf.mxu1 }
 0x4d5   :  { %5335 = vmatmul.bf16.vlgmr.msra.gmra.mxu1 %v3894_v16  ;;  %5349 = vmatmul.bf16.vlgmr.msra.gmra.mxu3 %v3894_v16  ;;  %v12289_v10 = vld [vmem:[#allocation25 + $0x7ec] sm:$0xf0] }
 0x4d6   :  { %5377 = vmatmul.bf16.vlgmr.msra.gmra.mxu2 %v3894_v16  ;;  %v11278_v23 = vor.u32 %v12289_v10, %v11277_v9  ;;  %v10973_v9 = vld [vmem:[#allocation25 + $0x580] sm:$0xf]  ;;  %v12213_v10 = vld [vmem:[#allocation25 + $0x58c] sm:$0xf0] }
 0x4d7   :  { %5363 = vmatmul.bf16.vlgmr.msra.gmra.mxu0 %v3894_v16  ;;  %v10701_v16 = vld [vmem:[#allocation25 + $0x360] sm:$0xf]  ;;  %7007 = vmatpush.bf16.msrb.mxu1 %v10318_v35  ;;  %v12233_v48 = vld [vmem:[#allocation25 + $0x62c] sm:$0xf0] }
 0x4d8   :  { %7031 = vmatpush.bf16.msrb.mxu0 %v10638_v25  ;;  %v10702_v25 = vor.u32 %v12145_v17, %v10701_v16  ;;  %7021 = vmatpush.bf16.msrb.mxu3 %v10446_v0  ;;  %v10877_v35 = vld [vmem:[#allocation25 + $0x4c0] sm:$0xf]  ;;  %v12253_v17 = vld [vmem:[#allocation25 + $0x6cc] sm:$0xf0]  ;;  %v13227_v40 = vpop.f32.mrf.mxu3 }
 0x4d9   :  { %v11133_v16 = vld [vmem:[#allocation25 + $0x6c0] sm:$0xf] }
 0x4da   :  { %7049 = vmatpush.bf16.msrb.mxu2 %v10702_v25  ;;  %v10878_v25 = vor.u32 %v12189_v14, %v10877_v35  ;;  %v11134_v29 = vor.u32 %v12253_v17, %v11133_v16  ;;  %v10974_v14 = vor.u32 %v12213_v10, %v10973_v9  ;;  %v12277_v16 = vld [vmem:[#allocation25 + $0x78c] sm:$0xf0]  ;;  %v11181_v9 = vld [vmem:[#allocation25 + $0x720] sm:$0xf] }
 0x4db   :  { %7008 = vmatpush.bf16.msrb.mxu1 %v10302_v4  ;;  %v11261_v4 = vld [vmem:[#allocation25 + $0x7c0] sm:$0xf]  ;;  %v12265_v10 = vld [vmem:[#allocation25 + $0x72c] sm:$0xf0] }
 0x4dc   :  { %7032 = vmatpush.bf16.msrb.mxu0 %v10622_v33  ;;  %v10285_v33 = vld [vmem:[#allocation25 + $0x20] sm:$0xf]  ;;  %7022 = vmatpush.bf16.msrb.mxu3 %v10430_v55  ;;  %v13225_v0 = vpop.f32.mrf.mxu0  ;;  %v11262_v55 = vor.u32 %v12285_v27, %v11261_v4  ;;  %v12209_v4 = vld [vmem:[#allocation25 + $0x56c] sm:$0xf0] }
 0x4dd   :  { %v10286_v46 = vor.u32 %v12041_v36, %v10285_v33  ;;  %v11117_v33 = vld [vmem:[#allocation25 + $0x6a0] sm:$0xf]  ;;  %v12249_v36 = vld [vmem:[#allocation25 + $0x6ac] sm:$0xf0]  ;;  %v10958_v27 = vor.u32 %v12209_v4, %v10957_v26 }
 0x4de   :  { %7050 = vmatpush.bf16.msrb.mxu2 %v10686_v37  ;;  %v13229_v37 = vpop.f32.mrf.mxu2  ;;  %v11118_v45 = vor.u32 %v12249_v36, %v11117_v33  ;;  %v10797_v36 = vld [vmem:[#allocation25 + $0x420] sm:$0xf] }
 0x4df   :  { %7009 = vmatpush.bf16.msrb.mxu1 %v10286_v46  ;;  %v13231_v46 = vpop.f32.mrf.mxu1 }
 0x4e0   :  { %7033 = vmatpush.bf16.msrb.mxu0 %v10606_v52  ;;  %v12101_v52 = vld [vmem:[#allocation25 + $0x20c] sm:$0xf0]  ;;  %7023 = vmatpush.bf16.msrb.mxu3 %v10414_v58  ;;  %v10990_v58 = vor.u32 %v12217_v30, %v10989_v54 }
 0x4e1   :  { %v10526_v28 = vor.u32 %v12101_v52, %v10525_v51  ;;  %v12245_v51 = vld [vmem:[#allocation25 + $0x68c] sm:$0xf0]  ;;  %v13235_v52 = vpop.f32.mrf.mxu3 }
 0x4e2   :  { %7051 = vmatpush.bf16.msrb.mxu2 %v10670_v59  ;;  %v11245_v59 = vld [vmem:[#allocation25 + $0x7a0] sm:$0xf] }
 0x4e3   :  { %7010 = vmatpush.bf16.msrb.mxu1 %v10270_v63  ;;  %v10829_v63 = vld [vmem:[#allocation25 + $0x460] sm:$0xf] }
 0x4e4   :  { %7034 = vmatpush.bf16.msrb.mxu0 %v10590_v5  ;;  %v11021_v5 = vld [vmem:[#allocation25 + $0x5e0] sm:$0xf]  ;;  %v10830_v2 = vor.u32 %v12177_v1, %v10829_v63 }
 0x4e5   :  { %v11022_v7 = vor.u32 %v12225_v8, %v11021_v5  ;;  %v11085_v5 = vld [vmem:[#allocation25 + $0x660] sm:$0xf] }
 0x4e6   :  { %7052 = vmatpush.bf16.msrb.mxu2 %v10654_v21  ;;  %v13237_v62 = vpop.f32.mrf.mxu2  ;;  %v12173_v21 = vld [vmem:[#allocation25 + $0x44c] sm:$0xf0]  ;;  %v11037_v63 = vld [vmem:[#allocation25 + $0x600] sm:$0xf] }
 0x4e7   :  { %7059 = vmatpush.bf16.msra.mxu1 %v10894_v6  ;;  %v13239_v6 = vpop.f32.mrf.mxu1 }
 0x4e8   :  { %7035 = vmatpush.bf16.msrb.mxu0 %v10574_v20  ;;  %v10398_v20 = vor.u32 %v12069_v61, %v10397_v60  ;;  %v12281_v60 = vld [vmem:[#allocation25 + $0x7ac] sm:$0xf0] }
 0x4e9   :  { %v11246_v61 = vor.u32 %v12281_v60, %v11245_v59  ;;  %v10781_v60 = vld [vmem:[#allocation25 + $0x400] sm:$0xf] }
 0x4ea   :  { %7024 = vmatpush.bf16.msrb.mxu3 %v10398_v20  ;;  %7101 = vmatpush.bf16.msra.mxu2 %v11278_v23  ;;  %v10813_v20 = vld [vmem:[#allocation25 + $0x440] sm:$0xf] }
 0x4eb   :  { %7060 = vmatpush.bf16.msra.mxu1 %v10878_v25  ;;  %v10814_v23 = vor.u32 %v12173_v21, %v10813_v20  ;;  %v10909_v20 = vld [vmem:[#allocation25 + $0x500] sm:$0xf]  ;;  %v12197_v21 = vld [vmem:[#allocation25 + $0x50c] sm:$0xf0] }
 0x4ec   :  { %7036 = vmatpush.bf16.msrb.mxu0 %v10558_v32  ;;  %v12185_v32 = vld [vmem:[#allocation25 + $0x4ac] sm:$0xf0] }
 0x4ed   :  { %v10862_v44 = vor.u32 %v12185_v32, %v10861_v31  ;;  %v12273_v31 = vld [vmem:[#allocation25 + $0x76c] sm:$0xf0]  ;;  %v13243_v32 = vpop.f32.mrf.mxu3 }
 0x4ee   :  { %7073 = vmatpush.bf16.msra.mxu3 %v11022_v7  ;;  %7102 = vmatpush.bf16.msra.mxu2 %v11262_v55  ;;  %v11069_v7 = vld [vmem:[#allocation25 + $0x640] sm:$0xf] }
 0x4ef   :  { %7061 = vmatpush.bf16.msra.mxu1 %v10862_v44  ;;  %v11070_v25 = vor.u32 %v12237_v24, %v11069_v7  ;;  %v11053_v55 = vld [vmem:[#allocation25 + $0x620] sm:$0xf]  ;;  %v13245_v44 = vpop.f32.mrf.mxu2  ;;  %v13247_v49 = vpop.f32.mrf.mxu1  ;;  %v10910_v7 = vor.u32 %v12197_v21, %v10909_v20  ;;  %v12261_v24 = vld [vmem:[#allocation25 + $0x70c] sm:$0xf0] }
 0x4f0   :  { %7037 = vmatpush.bf16.msrb.mxu0 %v10542_v50  ;;  %v11101_v50 = vld [vmem:[#allocation25 + $0x680] sm:$0xf] }
 0x4f1   :  { %v11102_v15 = vor.u32 %v12245_v51, %v11101_v50  ;;  %v11054_v50 = vor.u32 %v12233_v48, %v11053_v55  ;;  %v12205_v51 = vld [vmem:[#allocation25 + $0x54c] sm:$0xf0] }
 0x4f2   :  { %7074 = vmatpush.bf16.msra.mxu3 %v11006_v41  ;;  %7103 = vmatpush.bf16.msra.mxu2 %v11246_v61  ;;  %v12169_v41 = vld [vmem:[#allocation25 + $0x42c] sm:$0xf0] }
 0x4f3   :  { %7062 = vmatpush.bf16.msra.mxu1 %v10846_v39  ;;  %v10941_v39 = vld [vmem:[#allocation25 + $0x540] sm:$0xf]  ;;  %v12165_v61 = vld [vmem:[#allocation25 + $0x40c] sm:$0xf0] }
 0x4f4   :  { %7038 = vmatpush.bf16.msrb.mxu0 %v10526_v28  ;;  %v13233_v47 = vpop.f32.mrf.mxu0  ;;  %v12241_v28 = vld [vmem:[#allocation25 + $0x66c] sm:$0xf0]  ;;  %v10942_v30 = vor.u32 %v12205_v51, %v10941_v39  ;;  %v10782_v1 = vor.u32 %v12165_v61, %v10781_v60  ;;  %v4827_v60 = vadd.f32 %v13237_v62, %v13205_v19  ;;  %v4829_v19 = vadd.f32 %v13245_v44, %v13213_v38 }
 0x4f5   :  { %v11086_v8 = vor.u32 %v12241_v28, %v11085_v5  ;;  %v10925_v28 = vld [vmem:[#allocation25 + $0x520] sm:$0xf]  ;;  %v4813_v55 = vadd.f32 %v13233_v47, %v13201_v56 }
 0x4f6   :  { %7075 = vmatpush.bf16.msra.mxu3 %v10990_v58  ;;  %v12269_v58 = vld [vmem:[#allocation25 + $0x74c] sm:$0xf0] }
 0x4f7   :  { %7063 = vmatpush.bf16.msra.mxu1 %v10830_v2  ;;  %v12229_v2 = vld [vmem:[#allocation25 + $0x60c] sm:$0xf0] }
 0x4f8   :  { %7087 = vmatpush.bf16.msra.mxu0 %v11150_v13  ;;  %v11229_v13 = vld [vmem:[#allocation25 + $0x780] sm:$0xf]  ;;  %v11038_v5 = vor.u32 %v12229_v2, %v11037_v63 }
 0x4f9   :  { %v11230_v17 = vor.u32 %v12277_v16, %v11229_v13  ;;  %v13251_v13 = vpop.f32.mrf.mxu3  ;;  %v11182_v16 = vor.u32 %v12265_v10, %v11181_v9 }
 0x4fa   :  { %7076 = vmatpush.bf16.msra.mxu3 %v10974_v14 }
 0x4fb   :  { %7104 = vmatpush.bf16.msra.mxu2 %v11230_v17  ;;  %7064 = vmatpush.bf16.msra.mxu1 %v10814_v23  ;;  %v13253_v17 = vpop.f32.mrf.mxu2  ;;  %v11165_v23 = vld [vmem:[#allocation25 + $0x700] sm:$0xf] }
 0x4fc   :  { %7088 = vmatpush.bf16.msra.mxu0 %v11134_v29  ;;  %v13241_v35 = vpop.f32.mrf.mxu0  ;;  %v11213_v29 = vld [vmem:[#allocation25 + $0x760] sm:$0xf]  ;;  %v11166_v26 = vor.u32 %v12261_v24, %v11165_v23 }
 0x4fd   :  { %v11214_v33 = vor.u32 %v12273_v31, %v11213_v29 }
 0x4fe   :  { %7077 = vmatpush.bf16.msra.mxu3 %v10958_v27 }
 0x4ff   :  { %7105 = vmatpush.bf16.msra.mxu2 %v11214_v33 }
 0x500   :  { %7089 = vmatpush.bf16.msra.mxu0 %v11118_v45  ;;  %v10798_v45 = vor.u32 %v12169_v41, %v10797_v36  ;;  %v13266_v36 = vld [vmem:[%s13472_s26] sm:$0xff]  ;;  %v4785_v41 = vadd.f32 %v13231_v46, %v13199_v18  ;;  %v4799_v18 = vadd.f32 %v13235_v52, %v13203_v43  ;;  %v10639_v43 = vld [vmem:[#allocation25 + $0x2f0] sm:$0xf0]  ;;  %v4801_v52 = vadd.f32 %v13243_v32, %v13211_v12 }
 0x501   :  { %v13259_v27 = vpop.f32.mrf.mxu3  ;;  %v5401_v48 = vperm.slane %v13266_v36, 0  ;;  %v5403_v39 = vperm.slane %v13266_v36, 2  ;;  %v5402_v2 = vperm.slane %v13266_v36, 1 }
 0x502   :  { %7065 = vmatpush.bf16.msra.mxu1 %v10798_v45  ;;  %7078 = vmatpush.bf16.msra.mxu3 %v10942_v30 }
 0x503   :  { %v13261_v29 = vpop.f32.mrf.mxu2 }
 0x504   :  { %7090 = vmatpush.bf16.msra.mxu0 %v11102_v15  ;;  %v11197_v15 = vld [vmem:[#allocation25 + $0x740] sm:$0xf] }
 0x505   :  { %v11198_v59 = vor.u32 %v12269_v58, %v11197_v15  ;;  %v4787_v15 = vadd.f32 %v13239_v6, %v13207_v22  ;;  %v4815_v58 = vadd.f32 %v13241_v35, %v13209_v3  ;;  %v12063_v6 = vld [vmem:[#allocation25 + $0xe4] sm:$0xf]  ;;  %v5404_v3 = vperm.slane %v13266_v36, 3 }
 0x506   :  { %7066 = vmatpush.bf16.msra.mxu1 %v10782_v1 }
 0x507   :  { %7106 = vmatpush.bf16.msra.mxu2 %v11198_v59 }
 0x508   :  { %7091 = vmatpush.bf16.msra.mxu0 %v11086_v8  ;;  %v12201_v8 = vld [vmem:[#allocation25 + $0x52c] sm:$0xf0] }
 0x509   :  { %v10926_v14 = vor.u32 %v12201_v8, %v10925_v28  ;;  %v12127_v8 = vld [vmem:[#allocation25 + $0x2e4] sm:$0xf] }
 0x50b   :  { %7079 = vmatpush.bf16.msra.mxu3 %v10926_v14  ;;  %7107 = vmatpush.bf16.msra.mxu2 %v11182_v16 }
 0x50c   :  { %7092 = vmatpush.bf16.msra.mxu0 %v11070_v25  ;;  %v13255_v25 = vpop.f32.mrf.mxu1 }
 0x50f   :  { %7080 = vmatpush.bf16.msra.mxu3 %v10910_v7  ;;  %7108 = vmatpush.bf16.msra.mxu2 %v11166_v26  ;;  %v10642_v26 = vor.u32 %v12127_v8, %v10639_v43 }
 0x510   :  { %7093 = vmatpush.bf16.msra.mxu0 %v11054_v50 }
 0x514   :  { %v13249_v54 = vpop.f32.mrf.mxu0  ;;  %7094 = vmatpush.bf16.msra.mxu0 %v11038_v5  ;;  %v10383_v5 = vld [vmem:[#allocation25 + $0xf0] sm:$0xf0] }
 0x515   :  { %v10386_v20 = vor.u32 %v12063_v6, %v10383_v5  ;;  %v10607_v6 = vld [vmem:[#allocation25 + $0x2b0] sm:$0xf0] }
 0x51c   :  { %v13257_v4 = vpop.f32.mrf.mxu0 }
 0x542   :  { %v5280_v31 = vpop.f32.mrf.mxu1 }
 0x543   :  { %v5308_v33 = vpop.f32.mrf.mxu0  ;;  %v5383_v45 = vadd.f32 %v5280_v31, %v4785_v41  ;;  %v12059_v31 = vld [vmem:[#allocation25 + $0xc4] sm:$0xf] }
 0x544   :  { %v5385_v50 = vadd.f32 %v5308_v33, %v4813_v55  ;;  %v10367_v33 = vld [vmem:[#allocation25 + $0xd0] sm:$0xf0] }
 0x545   :  { %v5417_v46 = vadd.f32 %v5401_v48, %v5383_v45  ;;  %v12123_v45 = vld [vmem:[#allocation25 + $0x2c4] sm:$0xf] }
 0x546   :  { %v5419_v61 = vadd.f32 %v5403_v39, %v5385_v50  ;;  %v12095_v50 = vld [vmem:[#allocation25 + $0x1e4] sm:$0xf] }
 0x547   :  { %v5433_v9 = vmax.f32 %v5417_v46, 0.0 }
 0x548   :  { %v5294_v51 = vpop.f32.mrf.mxu3  ;;  %v5435_v62 = vmax.f32 %v5419_v61, 0.0  ;;  %v4869_v61 = vadd.f32 %v13249_v54, %v13217_v42 }
 0x549   :  { %v5322_v30 = vpop.f32.mrf.mxu2  ;;  %v5384_v1 = vadd.f32 %v5294_v51, %v4799_v18 }
 0x54a   :  { %v5282_v59 = vpop.f32.mrf.mxu1  ;;  %v5386_v28 = vadd.f32 %v5322_v30, %v4827_v60  ;;  %v12159_v30 = vld [vmem:[#allocation25 + $0x3e4] sm:$0xf]  ;;  %v10351_v60 = vld [vmem:[#allocation25 + $0xb0] sm:$0xf0] }
 0x54b   :  { %v5391_v56 = vadd.f32 %v5282_v59, %v4787_v15  ;;  %v5310_v47 = vpop.f32.mrf.mxu0  ;;  %v5418_v21 = vadd.f32 %v5402_v2, %v5384_v1  ;;  %v10370_v15 = vor.u32 %v12059_v31, %v10367_v33  ;;  %v4841_v59 = vadd.f32 %v13247_v49, %v13215_v34  ;;  %v12091_v49 = vld [vmem:[#allocation25 + $0x1c4] sm:$0xf]  ;;  %v10591_v31 = vld [vmem:[#allocation25 + $0x290] sm:$0xf0] }
 0x54c   :  { %v5393_v63 = vadd.f32 %v5310_v47, %v4815_v58  ;;  %v5420_v41 = vadd.f32 %v5404_v3, %v5386_v28  ;;  %v10767_v58 = vld [vmem:[#allocation25 + $0x3f0] sm:$0xf0]  ;;  %v12055_v47 = vld [vmem:[#allocation25 + $0xa4] sm:$0xf] }
 0x54d   :  { %v5425_v22 = vadd.f32 %v5401_v48, %v5391_v56  ;;  %v10623_v48 = vld [vmem:[#allocation25 + $0x2d0] sm:$0xf0]  ;;  %v5434_v18 = vmax.f32 %v5418_v21, 0.0  ;;  %v10770_v34 = vor.u32 %v12159_v30, %v10767_v58  ;;  %v10354_v54 = vor.u32 %v12055_v47, %v10351_v60 }
 0x54e   :  { %v5427_v35 = vadd.f32 %v5403_v39, %v5393_v63  ;;  %v10511_v39 = vld [vmem:[#allocation25 + $0x1f0] sm:$0xf0]  ;;  %v10626_v56 = vor.u32 %v12123_v45, %v10623_v48  ;;  %v5436_v63 = vmax.f32 %v5420_v41, 0.0  ;;  %v4871_v21 = vadd.f32 %v13257_v4, %v13225_v0 }
 0x54f   :  { %v5441_v10 = vmax.f32 %v5425_v22, 0.0  ;;  %v12119_v22 = vld [vmem:[#allocation25 + $0x2a4] sm:$0xf]  ;;  %v10479_v45 = vld [vmem:[#allocation25 + $0x1b0] sm:$0xf0]  ;;  %v4883_v0 = vadd.f32 %v13253_v17, %v13221_v57 }
 0x550   :  { %v5443_v14 = vmax.f32 %v5427_v35, 0.0  ;;  %v5296_v16 = vpop.f32.mrf.mxu3  ;;  %v10495_v35 = vld [vmem:[#allocation25 + $0x1d0] sm:$0xf0]  ;;  %v12111_v17 = vld [vmem:[#allocation25 + $0x264] sm:$0xf] }
 0x551   :  { %v13288_v7 = vpack.c.bf16 %v5441_v10, %v5433_v9  ;;  %v5392_v23 = vadd.f32 %v5296_v16, %v4801_v52  ;;  %v5324_v24 = vpop.f32.mrf.mxu2  ;;  %v5407_v52 = vperm.slane %v13266_v36, 6  ;;  %v12155_v9 = vld [vmem:[#allocation25 + $0x3c4] sm:$0xf]  ;;  %v10751_v10 = vld [vmem:[#allocation25 + $0x3d0] sm:$0xf0] }
 0x552   :  { %v13290_v55 = vpack.c.bf16 %v5443_v14, %v5435_v62  ;;  %v5394_v12 = vadd.f32 %v5324_v24, %v4829_v19  ;;  %v5336_v32 = vpop.f32.mrf.mxu1  ;;  %v4843_v19 = vadd.f32 %v13255_v25, %v13223_v11  ;;  %v10610_v14 = vor.u32 %v12119_v22, %v10607_v6  ;;  %v12051_v16 = vld [vmem:[#allocation25 + $0x84] sm:$0xf]  ;;  %v10319_v30 = vld [vmem:[#allocation25 + $0x70] sm:$0xf0] }
 0x553   :  { %v5426_v38 = vadd.f32 %v5402_v2, %v5392_v23  ;;  %7011 = vmatmul.bf16.vlgmr.msrb.gmra.mxu1 %v13288_v7  ;;  %v10514_v2 = vor.u32 %v12095_v50, %v10511_v39  ;;  %v5387_v28 = vadd.f32 %v5336_v32, %v4841_v59  ;;  %v10498_v24 = vor.u32 %v12091_v49, %v10495_v35  ;;  %v12087_v32 = vld [vmem:[#allocation25 + $0x1a4] sm:$0xf]  ;;  %v10735_v50 = vld [vmem:[#allocation25 + $0x3b0] sm:$0xf0] }
 0x554   :  { %v5364_v44 = vpop.f32.mrf.mxu0  ;;  %v5428_v51 = vadd.f32 %v5404_v3, %v5394_v12  ;;  %7039 = vmatmul.bf16.vlgmr.msrb.gmra.mxu0 %v13290_v55  ;;  %7115 = vmatpush.bf16.msrb.mxu1 %v10386_v20  ;;  %v5405_v3 = vperm.slane %v13266_v36, 4  ;;  %v10335_v20 = vld [vmem:[#allocation25 + $0x90] sm:$0xf0]  ;;  %v4855_v11 = vadd.f32 %v13251_v13, %v13219_v53  ;;  %v10754_v12 = vor.u32 %v12155_v9, %v10751_v10  ;;  %v12107_v10 = vld [vmem:[#allocation25 + $0x244] sm:$0xf] }
 0x555   :  { %v5442_v46 = vmax.f32 %v5426_v38, 0.0  ;;  %7143 = vmatpush.bf16.msrb.mxu0 %v10642_v26  ;;  %v5389_v43 = vadd.f32 %v5364_v44, %v4869_v61  ;;  %v12115_v26 = vld [vmem:[#allocation25 + $0x284] sm:$0xf]  ;;  %v10338_v38 = vor.u32 %v12051_v16, %v10335_v20  ;;  %v5408_v59 = vperm.slane %v13266_v36, 7  ;;  %v10447_v20 = vld [vmem:[#allocation25 + $0x170] sm:$0xf0] }
 0x556   :  { %v5444_v1 = vmax.f32 %v5428_v51, 0.0  ;;  %v5421_v25 = vadd.f32 %v5405_v3, %v5387_v28  ;;  %v12151_v44 = vld [vmem:[#allocation25 + $0x3a4] sm:$0xf]  ;;  %v5406_v51 = vperm.slane %v13266_v36, 5  ;;  %v10594_v13 = vor.u32 %v12115_v26, %v10591_v31  ;;  %v10703_v26 = vld [vmem:[#allocation25 + $0x370] sm:$0xf0] }
 0x557   :  { %v13298_v5 = vpack.c.bf16 %v5442_v46, %v5434_v18  ;;  %v5423_v4 = vadd.f32 %v5407_v52, %v5389_v43  ;;  %v10482_v57 = vor.u32 %v12087_v32, %v10479_v45  ;;  %v10575_v46 = vld [vmem:[#allocation25 + $0x270] sm:$0xf0]  ;;  %v10738_v61 = vor.u32 %v12151_v44, %v10735_v50  ;;  %v12079_v16 = vld [vmem:[#allocation25 + $0x164] sm:$0xf] }
 0x558   :  { %v13301_v8 = vpack.c.bf16 %v5444_v1, %v5436_v63  ;;  %7116 = vmatpush.bf16.msrb.mxu1 %v10370_v15  ;;  %v5350_v42 = vpop.f32.mrf.mxu3  ;;  %v12047_v15 = vld [vmem:[#allocation25 + $0x64] sm:$0xf]  ;;  %v5437_v47 = vmax.f32 %v5421_v25, 0.0  ;;  %v10463_v1 = vld [vmem:[#allocation25 + $0x190] sm:$0xf0]  ;;  %v10578_v43 = vor.u32 %v12111_v17, %v10575_v46  ;;  %v10450_v45 = vor.u32 %v12079_v16, %v10447_v20 }
 0x559   :  { %7144 = vmatpush.bf16.msrb.mxu0 %v10626_v56  ;;  %v5378_v62 = vpop.f32.mrf.mxu2  ;;  %7025 = vmatmul.bf16.vlgmr.msrb.gmra.mxu3 %v13298_v5  ;;  %v5388_v39 = vadd.f32 %v5350_v42, %v4855_v11  ;;  %v4857_v56 = vadd.f32 %v13259_v27, %v13227_v40  ;;  %v12083_v63 = vld [vmem:[#allocation25 + $0x184] sm:$0xf]  ;;  %v5439_v22 = vmax.f32 %v5423_v4, 0.0  ;;  %v10322_v28 = vor.u32 %v12047_v15, %v10319_v30  ;;  %v10303_v42 = vld [vmem:[#allocation25 + $0x50] sm:$0xf0] }
 0x55a   :  { %7053 = vmatmul.bf16.vlgmr.msrb.gmra.mxu2 %v13301_v8  ;;  %7129 = vmatpush.bf16.msrb.mxu3 %v10514_v2  ;;  %v5338_v23 = vpop.f32.mrf.mxu1  ;;  %v5390_v58 = vadd.f32 %v5378_v62, %v4883_v0  ;;  %v4885_v2 = vadd.f32 %v13261_v29, %v13229_v37  ;;  %v10466_v29 = vor.u32 %v12083_v63, %v10463_v1  ;;  %v12103_v0 = vld [vmem:[#allocation25 + $0x224] sm:$0xf]  ;;  %v10543_v4 = vld [vmem:[#allocation25 + $0x230] sm:$0xf0] }
 0x55b   :  { %7157 = vmatpush.bf16.msrb.mxu2 %v10770_v34  ;;  %v5395_v33 = vadd.f32 %v5338_v23, %v4843_v19  ;;  %v10719_v34 = vld [vmem:[#allocation25 + $0x390] sm:$0xf0]  ;;  %v5422_v49 = vadd.f32 %v5406_v51, %v5388_v39  ;;  %v12075_v44 = vld [vmem:[#allocation25 + $0x144] sm:$0xf]  ;;  %v10546_v30 = vor.u32 %v12103_v0, %v10543_v4 }
 0x55c   :  { %v5366_v41 = vpop.f32.mrf.mxu0  ;;  %7117 = vmatpush.bf16.msrb.mxu1 %v10354_v54  ;;  %v5424_v54 = vadd.f32 %v5408_v59, %v5390_v58  ;;  %v10559_v19 = vld [vmem:[#allocation25 + $0x250] sm:$0xf0]  ;;  %v12035_v15 = vld [vmem:[#allocation25 + $0x4] sm:$0xf] }
 0x55d   :  { %v5397_v48 = vadd.f32 %v5366_v41, %v4871_v21  ;;  %v5429_v53 = vadd.f32 %v5405_v3, %v5395_v33  ;;  %7145 = vmatpush.bf16.msrb.mxu0 %v10610_v14  ;;  %v12147_v3 = vld [vmem:[#allocation25 + $0x384] sm:$0xf]  ;;  %v5438_v31 = vmax.f32 %v5422_v49, 0.0  ;;  %v10562_v25 = vor.u32 %v12107_v10, %v10559_v19  ;;  %v10287_v41 = vld [vmem:[#allocation25 + $0x30] sm:$0xf0] }
 0x55e   :  { %7130 = vmatpush.bf16.msrb.mxu3 %v10498_v24  ;;  %v10722_v14 = vor.u32 %v12147_v3, %v10719_v34  ;;  %v12143_v24 = vld [vmem:[#allocation25 + $0x364] sm:$0xf]  ;;  %v10431_v50 = vld [vmem:[#allocation25 + $0x150] sm:$0xf0] }
 0x55f   :  { %v5431_v18 = vadd.f32 %v5407_v52, %v5397_v48  ;;  %v5445_v60 = vmax.f32 %v5429_v53, 0.0  ;;  %7158 = vmatpush.bf16.msrb.mxu2 %v10754_v12  ;;  %v12043_v52 = vld [vmem:[#allocation25 + $0x44] sm:$0xf]  ;;  %v5440_v12 = vmax.f32 %v5424_v54, 0.0  ;;  %v10271_v58 = vld [vmem:[#allocation25 + $0x10] sm:$0xf0] }
 0x560   :  { %7118 = vmatpush.bf16.msrb.mxu1 %v10338_v38  ;;  %v5352_v36 = vpop.f32.mrf.mxu3  ;;  %v10306_v23 = vor.u32 %v12043_v52, %v10303_v42  ;;  %v12039_v33 = vld [vmem:[#allocation25 + $0x24] sm:$0xf]  ;;  %v10706_v38 = vor.u32 %v12143_v24, %v10703_v26  ;;  %v10895_v46 = vld [vmem:[#allocation25 + $0x4f0] sm:$0xf0]  ;;  %v10274_v1 = vor.u32 %v12035_v15, %v10271_v58 }
 0x561   :  { %v5447_v6 = vmax.f32 %v5431_v18, 0.0  ;;  %v13320_v35 = vpack.c.bf16 %v5445_v60, %v5437_v47  ;;  %7146 = vmatpush.bf16.msrb.mxu0 %v10594_v13  ;;  %v5396_v40 = vadd.f32 %v5352_v36, %v4857_v56  ;;  %v5380_v27 = vpop.f32.mrf.mxu2  ;;  %v12139_v53 = vld [vmem:[#allocation25 + $0x344] sm:$0xf]  ;;  %v10687_v13 = vld [vmem:[#allocation25 + $0x350] sm:$0xf0] }
 0x562   :  { %v5398_v37 = vadd.f32 %v5380_v27, %v4885_v2  ;;  %7131 = vmatpush.bf16.msrb.mxu3 %v10482_v57  ;;  %v10527_v18 = vld [vmem:[#allocation25 + $0x210] sm:$0xf0]  ;;  %v10434_v57 = vor.u32 %v12075_v44, %v10431_v50  ;;  %v12191_v17 = vld [vmem:[#allocation25 + $0x4e4] sm:$0xf]  ;;  %v10690_v47 = vor.u32 %v12139_v53, %v10687_v13 }
 0x563   :  { %v13322_v9 = vpack.c.bf16 %v5447_v6, %v5439_v22  ;;  %v5430_v62 = vadd.f32 %v5406_v51, %v5396_v40  ;;  %7159 = vmatpush.bf16.msrb.mxu2 %v10738_v61  ;;  %7067 = vmatmul.bf16.vlgmr.msra.gmra.mxu1 %v13320_v35  ;;  %v10290_v51 = vor.u32 %v12039_v33, %v10287_v41  ;;  %v12255_v56 = vld [vmem:[#allocation25 + $0x6e4] sm:$0xf]  ;;  %v11151_v60 = vld [vmem:[#allocation25 + $0x6f0] sm:$0xf0] }
 0x564   :  { %v5432_v21 = vadd.f32 %v5408_v59, %v5398_v37  ;;  %7119 = vmatpush.bf16.msrb.mxu1 %v10322_v28  ;;  %v12099_v59 = vld [vmem:[#allocation25 + $0x204] sm:$0xf]  ;;  %v10415_v63 = vld [vmem:[#allocation25 + $0x130] sm:$0xf0]  ;;  %v10898_v36 = vor.u32 %v12191_v17, %v10895_v46  ;;  %v11154_v3 = vor.u32 %v12255_v56, %v11151_v60 }
 0x565   :  { %7095 = vmatmul.bf16.vlgmr.msra.gmra.mxu0 %v13322_v9  ;;  %v5446_v11 = vmax.f32 %v5430_v62, 0.0  ;;  %v12071_v61 = vld [vmem:[#allocation25 + $0x124] sm:$0xf]  ;;  %v10671_v22 = vld [vmem:[#allocation25 + $0x330] sm:$0xf0]  ;;  %v10530_v6 = vor.u32 %v12099_v59, %v10527_v18 }
 0x566   :  { %7147 = vmatpush.bf16.msrb.mxu0 %v10578_v43  ;;  %v5448_v32 = vmax.f32 %v5432_v21, 0.0  ;;  %7132 = vmatpush.bf16.msrb.mxu3 %v10466_v29  ;;  %v12135_v2 = vld [vmem:[#allocation25 + $0x324] sm:$0xf]  ;;  %v10418_v34 = vor.u32 %v12071_v61, %v10415_v63  ;;  %v10879_v49 = vld [vmem:[#allocation25 + $0x4d0] sm:$0xf0] }
 0x567   :  { %v13326_v48 = vpack.c.bf16 %v5446_v11, %v5438_v31  ;;  %7160 = vmatpush.bf16.msrb.mxu2 %v10722_v14  ;;  %v12187_v28 = vld [vmem:[#allocation25 + $0x4c4] sm:$0xf]  ;;  %v11135_v27 = vld [vmem:[#allocation25 + $0x6d0] sm:$0xf0]  ;;  %v10674_v43 = vor.u32 %v12135_v2, %v10671_v22 }
 0x568   :  { %v13328_v39 = vpack.c.bf16 %v5448_v32, %v5440_v12  ;;  %7120 = vmatpush.bf16.msrb.mxu1 %v10306_v23  ;;  %v12251_v40 = vld [vmem:[#allocation25 + $0x6c4] sm:$0xf]  ;;  %v10399_v42 = vld [vmem:[#allocation25 + $0x110] sm:$0xf0]  ;;  %v10882_v19 = vor.u32 %v12187_v28, %v10879_v49 }
 0x569   :  { %7081 = vmatmul.bf16.vlgmr.msra.gmra.mxu3 %v13326_v48  ;;  %v12067_v52 = vld [vmem:[#allocation25 + $0x104] sm:$0xf]  ;;  %v10655_v37 = vld [vmem:[#allocation25 + $0x310] sm:$0xf0]  ;;  %v11138_v16 = vor.u32 %v12251_v40, %v11135_v27 }
 0x56a   :  { %7148 = vmatpush.bf16.msrb.mxu0 %v10562_v25  ;;  %7109 = vmatmul.bf16.vlgmr.msra.gmra.mxu2 %v13328_v39  ;;  %v12131_v54 = vld [vmem:[#allocation25 + $0x304] sm:$0xf]  ;;  %v11023_v10 = vld [vmem:[#allocation25 + $0x5f0] sm:$0xf0]  ;;  %v10402_v20 = vor.u32 %v12067_v52, %v10399_v42 }
 0x56b   :  { %7133 = vmatpush.bf16.msrb.mxu3 %v10450_v45  ;;  %7161 = vmatpush.bf16.msrb.mxu2 %v10706_v38  ;;  %v12223_v29 = vld [vmem:[#allocation25 + $0x5e4] sm:$0xf]  ;;  %v11279_v14 = vld [vmem:[#allocation25 + $0x7f0] sm:$0xf0]  ;;  %v10658_v24 = vor.u32 %v12131_v54, %v10655_v37 }
 0x56c   :  { %7121 = vmatpush.bf16.msrb.mxu1 %v10290_v51  ;;  %v12287_v62 = vld [vmem:[#allocation25 + $0x7e4] sm:$0xf]  ;;  %v10863_v23 = vld [vmem:[#allocation25 + $0x4b0] sm:$0xf0]  ;;  %v11026_v26 = vor.u32 %v12223_v29, %v11023_v10 }
 0x56d   :  { %v12183_v21 = vld [vmem:[#allocation25 + $0x4a4] sm:$0xf]  ;;  %v11119_v11 = vld [vmem:[#allocation25 + $0x6b0] sm:$0xf0]  ;;  %v11282_v25 = vor.u32 %v12287_v62, %v11279_v14 }
 0x56e   :  { %7149 = vmatpush.bf16.msrb.mxu0 %v10546_v30  ;;  %v12247_v31 = vld [vmem:[#allocation25 + $0x6a4] sm:$0xf]  ;;  %v11007_v41 = vld [vmem:[#allocation25 + $0x5d0] sm:$0xf0]  ;;  %v10866_v12 = vor.u32 %v12183_v21, %v10863_v23 }
 0x56f   :  { %7134 = vmatpush.bf16.msrb.mxu3 %v10434_v57  ;;  %7162 = vmatpush.bf16.msrb.mxu2 %v10690_v47  ;;  %v12219_v33 = vld [vmem:[#allocation25 + $0x5c4] sm:$0xf]  ;;  %v11263_v45 = vld [vmem:[#allocation25 + $0x7d0] sm:$0xf0]  ;;  %v11122_v0 = vor.u32 %v12247_v31, %v11119_v11 }
 0x570   :  { %7122 = vmatpush.bf16.msrb.mxu1 %v10274_v1  ;;  %v12283_v32 = vld [vmem:[#allocation25 + $0x7c4] sm:$0xf]  ;;  %v10847_v38 = vld [vmem:[#allocation25 + $0x490] sm:$0xf0]  ;;  %v11010_v44 = vor.u32 %v12219_v33, %v11007_v41 }
 0x571   :  { %v12179_v4 = vld [vmem:[#allocation25 + $0x484] sm:$0xf]  ;;  %v11103_v51 = vld [vmem:[#allocation25 + $0x690] sm:$0xf0]  ;;  %v11266_v53 = vor.u32 %v12283_v32, %v11263_v45  ;;  %v10389_v32 = vld [vmem:[#allocation25 + $0xe8] sm:$0xf] }
 0x572   :  { %7150 = vmatpush.bf16.msrb.mxu0 %v10530_v6  ;;  %v12243_v50 = vld [vmem:[#allocation25 + $0x684] sm:$0xf]  ;;  %v10991_v15 = vld [vmem:[#allocation25 + $0x5b0] sm:$0xf0]  ;;  %v10850_v30 = vor.u32 %v12179_v4, %v10847_v38  ;;  %v12066_v45 = vld [vmem:[#allocation25 + $0xf4] sm:$0xf0] }
 0x573   :  { %7135 = vmatpush.bf16.msrb.mxu3 %v10418_v34  ;;  %7163 = vmatpush.bf16.msrb.mxu2 %v10674_v43  ;;  %v12215_v13 = vld [vmem:[#allocation25 + $0x5a4] sm:$0xf]  ;;  %v11247_v59 = vld [vmem:[#allocation25 + $0x7b0] sm:$0xf0]  ;;  %v11106_v18 = vor.u32 %v12243_v50, %v11103_v51  ;;  %v12130_v38 = vld [vmem:[#allocation25 + $0x2f4] sm:$0xf0] }
 0x574   :  { %7171 = vmatpush.bf16.msra.mxu1 %v10898_v36  ;;  %v12279_v58 = vld [vmem:[#allocation25 + $0x7a4] sm:$0xf]  ;;  %v10831_v17 = vld [vmem:[#allocation25 + $0x470] sm:$0xf0]  ;;  %v10994_v46 = vor.u32 %v12215_v13, %v10991_v15 }
 0x575   :  { %7123 = vmatmul.bf16.vlgmr.msrb.gmra.mxu1 %v13288_v7  ;;  %7151 = vmatmul.bf16.vlgmr.msrb.gmra.mxu0 %v13290_v55  ;;  %v12175_v57 = vld [vmem:[#allocation25 + $0x464] sm:$0xf]  ;;  %v11087_v47 = vld [vmem:[#allocation25 + $0x670] sm:$0xf0]  ;;  %v11250_v60 = vor.u32 %v12279_v58, %v11247_v59  ;;  %v10373_v58 = vld [vmem:[#allocation25 + $0xc8] sm:$0xf] }
 0x576   :  { %7199 = vmatpush.bf16.msra.mxu0 %v11154_v3  ;;  %v12239_v56 = vld [vmem:[#allocation25 + $0x664] sm:$0xf]  ;;  %v10975_v63 = vld [vmem:[#allocation25 + $0x590] sm:$0xf0]  ;;  %v10834_v1 = vor.u32 %v12175_v57, %v10831_v17  ;;  %v12062_v57 = vld [vmem:[#allocation25 + $0xd4] sm:$0xf0] }
 0x577   :  { %7136 = vmatpush.bf16.msrb.mxu3 %v10402_v20  ;;  %7164 = vmatpush.bf16.msrb.mxu2 %v10658_v24  ;;  %v12211_v61 = vld [vmem:[#allocation25 + $0x584] sm:$0xf]  ;;  %v11231_v22 = vld [vmem:[#allocation25 + $0x790] sm:$0xf0]  ;;  %v11090_v6 = vor.u32 %v12239_v56, %v11087_v47  ;;  %v10629_v17 = vld [vmem:[#allocation25 + $0x2c8] sm:$0xf] }
 0x578   :  { %7172 = vmatpush.bf16.msra.mxu1 %v10882_v19  ;;  %v12275_v2 = vld [vmem:[#allocation25 + $0x784] sm:$0xf]  ;;  %v10815_v28 = vld [vmem:[#allocation25 + $0x450] sm:$0xf0]  ;;  %v10978_v3 = vor.u32 %v12211_v61, %v10975_v63 }
 0x579   :  { %v12171_v36 = vld [vmem:[#allocation25 + $0x444] sm:$0xf]  ;;  %v11071_v49 = vld [vmem:[#allocation25 + $0x650] sm:$0xf0]  ;;  %v11234_v40 = vor.u32 %v12275_v2, %v11231_v22  ;;  %v12098_v2 = vld [vmem:[#allocation25 + $0x1f4] sm:$0xf0]  ;;  %v10374_v22 = vor.u32 %v12062_v57, %v10373_v58 }
 0x57a   :  { %7200 = vmatpush.bf16.msra.mxu0 %v11138_v16  ;;  %7137 = vmatmul.bf16.vlgmr.msrb.gmra.mxu3 %v13298_v5  ;;  %v12235_v34 = vld [vmem:[#allocation25 + $0x644] sm:$0xf]  ;;  %v10959_v43 = vld [vmem:[#allocation25 + $0x570] sm:$0xf0]  ;;  %v10818_v52 = vor.u32 %v12171_v36, %v10815_v28  ;;  %v12162_v36 = vld [vmem:[#allocation25 + $0x3f4] sm:$0xf0] }
 0x57b   :  { %7185 = vmatpush.bf16.msra.mxu3 %v11026_v26  ;;  %7213 = vmatpush.bf16.msra.mxu2 %v11282_v25  ;;  %v12207_v27 = vld [vmem:[#allocation25 + $0x564] sm:$0xf]  ;;  %v11215_v54 = vld [vmem:[#allocation25 + $0x770] sm:$0xf0]  ;;  %v11074_v37 = vor.u32 %v12235_v34, %v11071_v49  ;;  %v10357_v34 = vld [vmem:[#allocation25 + $0xa8] sm:$0xf] }
 0x57c   :  { %7173 = vmatpush.bf16.msra.mxu1 %v10866_v12  ;;  %7165 = vmatmul.bf16.vlgmr.msrb.gmra.mxu2 %v13301_v8  ;;  %v12271_v42 = vld [vmem:[#allocation25 + $0x764] sm:$0xf]  ;;  %v10799_v10 = vld [vmem:[#allocation25 + $0x430] sm:$0xf0]  ;;  %v10962_v19 = vor.u32 %v12207_v27, %v10959_v43  ;;  %v12058_v49 = vld [vmem:[#allocation25 + $0xb4] sm:$0xf0] }
 0x57d   :  { %v12167_v29 = vld [vmem:[#allocation25 + $0x424] sm:$0xf]  ;;  %v11055_v14 = vld [vmem:[#allocation25 + $0x630] sm:$0xf0]  ;;  %v11218_v16 = vor.u32 %v12271_v42, %v11215_v54  ;;  %v10613_v43 = vld [vmem:[#allocation25 + $0x2a8] sm:$0xf] }
 0x57e   :  { %7201 = vmatpush.bf16.msra.mxu0 %v11122_v0  ;;  %v12231_v62 = vld [vmem:[#allocation25 + $0x624] sm:$0xf]  ;;  %v10943_v21 = vld [vmem:[#allocation25 + $0x550] sm:$0xf0]  ;;  %v10802_v23 = vor.u32 %v12167_v29, %v10799_v10  ;;  %v10645_v0 = vld [vmem:[#allocation25 + $0x2e8] sm:$0xf]  ;;  %v10358_v29 = vor.u32 %v12058_v49, %v10357_v34 }
 0x57f   :  { %7186 = vmatpush.bf16.msra.mxu3 %v11010_v44  ;;  %7214 = vmatpush.bf16.msra.mxu2 %v11266_v53  ;;  %v12203_v20 = vld [vmem:[#allocation25 + $0x544] sm:$0xf]  ;;  %v11199_v26 = vld [vmem:[#allocation25 + $0x750] sm:$0xf0]  ;;  %v11058_v11 = vor.u32 %v12231_v62, %v11055_v14  ;;  %v10646_v59 = vor.u32 %v12130_v38, %v10645_v0  ;;  %v10501_v54 = vld [vmem:[#allocation25 + $0x1c8] sm:$0xf] }
 0x580   :  { %7174 = vmatpush.bf16.msra.mxu1 %v10850_v30  ;;  %v12267_v24 = vld [vmem:[#allocation25 + $0x744] sm:$0xf]  ;;  %v10783_v25 = vld [vmem:[#allocation25 + $0x410] sm:$0xf0]  ;;  %v10946_v12 = vor.u32 %v12203_v20, %v10943_v21  ;;  %v10390_v30 = vor.u32 %v12066_v45, %v10389_v32  ;;  %v10757_v10 = vld [vmem:[#allocation25 + $0x3c8] sm:$0xf] }
 0x581   :  { %v12163_v31 = vld [vmem:[#allocation25 + $0x404] sm:$0xf]  ;;  %v11039_v41 = vld [vmem:[#allocation25 + $0x610] sm:$0xf0]  ;;  %v11202_v4 = vor.u32 %v12267_v24, %v11199_v26  ;;  %v10341_v14 = vld [vmem:[#allocation25 + $0x88] sm:$0xf] }
 0x582   :  { %7202 = vmatpush.bf16.msra.mxu0 %v11106_v18  ;;  %v12227_v33 = vld [vmem:[#allocation25 + $0x604] sm:$0xf]  ;;  %v10927_v50 = vld [vmem:[#allocation25 + $0x530] sm:$0xf0]  ;;  %v10786_v51 = vor.u32 %v12163_v31, %v10783_v25  ;;  %v10597_v21 = vld [vmem:[#allocation25 + $0x288] sm:$0xf] }
 0x583   :  { %7187 = vmatpush.bf16.msra.mxu3 %v10994_v46  ;;  %7215 = vmatpush.bf16.msra.mxu2 %v11250_v60  ;;  %v12199_v44 = vld [vmem:[#allocation25 + $0x524] sm:$0xf]  ;;  %v11183_v13 = vld [vmem:[#allocation25 + $0x730] sm:$0xf0]  ;;  %v11042_v15 = vor.u32 %v12227_v33, %v11039_v41  ;;  %v12126_v46 = vld [vmem:[#allocation25 + $0x2d4] sm:$0xf0] }
 0x584   :  { %7175 = vmatpush.bf16.msra.mxu1 %v10834_v1  ;;  %v12263_v53 = vld [vmem:[#allocation25 + $0x724] sm:$0xf]  ;;  %v10930_v18 = vor.u32 %v12199_v44, %v10927_v50  ;;  %v10911_v60 = vld [vmem:[#allocation25 + $0x510] sm:$0xf0]  ;;  %v10517_v1 = vld [vmem:[#allocation25 + $0x1e8] sm:$0xf]  ;;  %v10630_v28 = vor.u32 %v12126_v46, %v10629_v17 }
 0x585   :  { %v11186_v56 = vor.u32 %v12263_v53, %v11183_v13  ;;  %v12195_v47 = vld [vmem:[#allocation25 + $0x504] sm:$0xf]  ;;  %v11167_v63 = vld [vmem:[#allocation25 + $0x710] sm:$0xf0]  ;;  %v10518_v27 = vor.u32 %v12098_v2, %v10517_v1  ;;  %v10485_v26 = vld [vmem:[#allocation25 + $0x1a8] sm:$0xf] }
 0x586   :  { %7203 = vmatpush.bf16.msra.mxu0 %v11090_v6  ;;  %v12259_v61 = vld [vmem:[#allocation25 + $0x704] sm:$0xf]  ;;  %v10773_v6 = vld [vmem:[#allocation25 + $0x3e8] sm:$0xf]  ;;  %v12090_v31 = vld [vmem:[#allocation25 + $0x1b4] sm:$0xf0] }
 0x587   :  { %7188 = vmatpush.bf16.msra.mxu3 %v10978_v3  ;;  %7216 = vmatpush.bf16.msra.mxu2 %v11234_v40  ;;  %v10914_v3 = vor.u32 %v12195_v47, %v10911_v60  ;;  %v11170_v40 = vor.u32 %v12259_v61, %v11167_v63  ;;  %v10774_v42 = vor.u32 %v12162_v36, %v10773_v6  ;;  %v10741_v25 = vld [vmem:[#allocation25 + $0x3a8] sm:$0xf]  ;;  %v12154_v33 = vld [vmem:[#allocation25 + $0x3b4] sm:$0xf0] }
 0x588   :  { %7176 = vmatpush.bf16.msra.mxu1 %v10818_v52  ;;  %v12122_v52 = vld [vmem:[#allocation25 + $0x2b4] sm:$0xf0]  ;;  %v10486_v45 = vor.u32 %v12090_v31, %v10485_v26  ;;  %v10581_v0 = vld [vmem:[#allocation25 + $0x268] sm:$0xf]  ;;  %v10742_v38 = vor.u32 %v12154_v33, %v10741_v25 }
 0x589   :  { %v10614_v62 = vor.u32 %v12122_v52, %v10613_v43  ;;  %v12050_v32 = vld [vmem:[#allocation25 + $0x74] sm:$0xf0]  ;;  %v10469_v44 = vld [vmem:[#allocation25 + $0x188] sm:$0xf] }
 0x58a   :  { %7204 = vmatpush.bf16.msra.mxu0 %v11074_v37  ;;  %v12094_v37 = vld [vmem:[#allocation25 + $0x1d4] sm:$0xf0]  ;;  %v10725_v53 = vld [vmem:[#allocation25 + $0x388] sm:$0xf] }
 0x58b   :  { %7189 = vmatpush.bf16.msra.mxu3 %v10962_v19  ;;  %7217 = vmatpush.bf16.msra.mxu2 %v11218_v16  ;;  %v12158_v19 = vld [vmem:[#allocation25 + $0x3d4] sm:$0xf0]  ;;  %v10502_v20 = vor.u32 %v12094_v37, %v10501_v54  ;;  %v10453_v46 = vld [vmem:[#allocation25 + $0x168] sm:$0xf] }
 0x58c   :  { %7177 = vmatpush.bf16.msra.mxu1 %v10802_v23  ;;  %v12054_v16 = vld [vmem:[#allocation25 + $0x94] sm:$0xf0]  ;;  %v10758_v24 = vor.u32 %v12158_v19, %v10757_v10  ;;  %v10709_v60 = vld [vmem:[#allocation25 + $0x368] sm:$0xf] }
 0x58d   :  { %v12118_v23 = vld [vmem:[#allocation25 + $0x294] sm:$0xf0]  ;;  %v10293_v1 = vld [vmem:[#allocation25 + $0x28] sm:$0xf] }
 0x58e   :  { %7205 = vmatpush.bf16.msra.mxu0 %v11058_v11  ;;  %v10342_v11 = vor.u32 %v12054_v16, %v10341_v14  ;;  %v10598_v41 = vor.u32 %v12118_v23, %v10597_v21  ;;  %v12086_v50 = vld [vmem:[#allocation25 + $0x194] sm:$0xf0]  ;;  %v10549_v6 = vld [vmem:[#allocation25 + $0x228] sm:$0xf] }
 0x58f   :  { %7190 = vmatpush.bf16.msra.mxu3 %v10946_v12  ;;  %7218 = vmatpush.bf16.msra.mxu2 %v11202_v4  ;;  %v10325_v12 = vld [vmem:[#allocation25 + $0x68] sm:$0xf]  ;;  %v12114_v4 = vld [vmem:[#allocation25 + $0x274] sm:$0xf0] }
 0x590   :  { %7178 = vmatpush.bf16.msra.mxu1 %v10786_v51  ;;  %v10326_v51 = vor.u32 %v12050_v32, %v10325_v12  ;;  %v12150_v13 = vld [vmem:[#allocation25 + $0x394] sm:$0xf0]  ;;  %v10277_v43 = vld [vmem:[#allocation25 + $0x8] sm:$0xf] }
 0x591   :  { %v12046_v58 = vld [vmem:[#allocation25 + $0x54] sm:$0xf0]  ;;  %v10726_v17 = vor.u32 %v12150_v13, %v10725_v53  ;;  %v10533_v54 = vld [vmem:[#allocation25 + $0x208] sm:$0xf] }
 0x592   :  { %7206 = vmatpush.bf16.msra.mxu0 %v11042_v15  ;;  %v10582_v15 = vor.u32 %v12114_v4, %v10581_v0  ;;  %v12110_v57 = vld [vmem:[#allocation25 + $0x254] sm:$0xf0]  ;;  %v10901_v10 = vld [vmem:[#allocation25 + $0x4e8] sm:$0xf] }
 0x593   :  { %7191 = vmatpush.bf16.msra.mxu3 %v10930_v18  ;;  %7219 = vmatpush.bf16.msra.mxu2 %v11186_v56  ;;  %v10565_v18 = vld [vmem:[#allocation25 + $0x248] sm:$0xf]  ;;  %v12082_v56 = vld [vmem:[#allocation25 + $0x174] sm:$0xf0] }
 0x594   :  { %7227 = vmatpush.bf16.msrb.mxu1 %v10390_v30  ;;  %v10309_v30 = vld [vmem:[#allocation25 + $0x48] sm:$0xf]  ;;  %v12146_v61 = vld [vmem:[#allocation25 + $0x374] sm:$0xf0]  ;;  %v10566_v63 = vor.u32 %v12110_v57, %v10565_v18 }
 0x595   :  { %7179 = vmatmul.bf16.vlgmr.msra.gmra.mxu1 %v13320_v35  ;;  %7207 = vmatmul.bf16.vlgmr.msra.gmra.mxu0 %v13322_v9  ;;  %v10310_v47 = vor.u32 %v12046_v58, %v10309_v30  ;;  %v12042_v2 = vld [vmem:[#allocation25 + $0x34] sm:$0xf0]  ;;  %v10885_v25 = vld [vmem:[#allocation25 + $0x4c8] sm:$0xf] }
 0x596   :  { %7255 = vmatpush.bf16.msrb.mxu0 %v10646_v59  ;;  %v10470_v59 = vor.u32 %v12086_v50, %v10469_v44  ;;  %v12106_v36 = vld [vmem:[#allocation25 + $0x234] sm:$0xf0]  ;;  %v10294_v49 = vor.u32 %v12042_v2, %v10293_v1  ;;  %v11141_v32 = vld [vmem:[#allocation25 + $0x6c8] sm:$0xf] }
 0x597   :  { %7192 = vmatpush.bf16.msra.mxu3 %v10914_v3  ;;  %7220 = vmatpush.bf16.msra.mxu2 %v11170_v40  ;;  %v10437_v3 = vld [vmem:[#allocation25 + $0x148] sm:$0xf]  ;;  %v12078_v34 = vld [vmem:[#allocation25 + $0x154] sm:$0xf0]  ;;  %v10550_v52 = vor.u32 %v12106_v36, %v10549_v6 }
 0x598   :  { %7228 = vmatpush.bf16.msrb.mxu1 %v10374_v22  ;;  %v10454_v22 = vor.u32 %v12082_v56, %v10453_v46  ;;  %v10693_v40 = vld [vmem:[#allocation25 + $0x348] sm:$0xf]  ;;  %v12102_v37 = vld [vmem:[#allocation25 + $0x214] sm:$0xf0] }
 0x599   :  { %v12194_v19 = vld [vmem:[#allocation25 + $0x4f4] sm:$0xf0]  ;;  %v10534_v31 = vor.u32 %v12102_v37, %v10533_v54  ;;  %v10405_v4 = vld [vmem:[#allocation25 + $0x108] sm:$0xf] }
 0x59a   :  { %7256 = vmatpush.bf16.msrb.mxu0 %v10630_v28  ;;  %7193 = vmatmul.bf16.vlgmr.msra.gmra.mxu3 %v13326_v48  ;;  %v10710_v28 = vor.u32 %v12146_v61, %v10709_v60  ;;  %v12258_v16 = vld [vmem:[#allocation25 + $0x6f4] sm:$0xf0]  ;;  %v10661_v44 = vld [vmem:[#allocation25 + $0x308] sm:$0xf] }
 0x59b   :  { %7241 = vmatpush.bf16.msrb.mxu3 %v10518_v27  ;;  %7269 = vmatpush.bf16.msrb.mxu2 %v10774_v42  ;;  %v12142_v27 = vld [vmem:[#allocation25 + $0x354] sm:$0xf0]  ;;  %v10869_v18 = vld [vmem:[#allocation25 + $0x4a8] sm:$0xf] }
 0x59c   :  { %7229 = vmatpush.bf16.msrb.mxu1 %v10358_v29  ;;  %7221 = vmatmul.bf16.vlgmr.msra.gmra.mxu2 %v13328_v39  ;;  %v12038_v42 = vld [vmem:[#allocation25 + $0x14] sm:$0xf0]  ;;  %v10438_v29 = vor.u32 %v12078_v34, %v10437_v3  ;;  %v10694_v14 = vor.u32 %v12142_v27, %v10693_v40  ;;  %v11125_v56 = vld [vmem:[#allocation25 + $0x6a8] sm:$0xf] }
 0x59d   :  { %v12074_v21 = vld [vmem:[#allocation25 + $0x134] sm:$0xf0]  ;;  %v10278_v23 = vor.u32 %v12038_v42, %v10277_v43  ;;  %v11013_v61 = vld [vmem:[#allocation25 + $0x5c8] sm:$0xf] }
 0x59e   :  { %7257 = vmatpush.bf16.msrb.mxu0 %v10614_v62  ;;  %v11157_v62 = vld [vmem:[#allocation25 + $0x6e8] sm:$0xf]  ;;  %v12138_v26 = vld [vmem:[#allocation25 + $0x334] sm:$0xf0] }
 0x59f   :  { %7242 = vmatpush.bf16.msrb.mxu3 %v10502_v20  ;;  %7270 = vmatpush.bf16.msrb.mxu2 %v10758_v24  ;;  %v10421_v20 = vld [vmem:[#allocation25 + $0x128] sm:$0xf]  ;;  %v11158_v33 = vor.u32 %v12258_v16, %v11157_v62  ;;  %v12190_v12 = vld [vmem:[#allocation25 + $0x4d4] sm:$0xf0] }
 0x5a0   :  { %7230 = vmatpush.bf16.msrb.mxu1 %v10342_v11  ;;  %v10677_v24 = vld [vmem:[#allocation25 + $0x328] sm:$0xf]  ;;  %v10902_v11 = vor.u32 %v12194_v19, %v10901_v10  ;;  %v12134_v50 = vld [vmem:[#allocation25 + $0x314] sm:$0xf0]  ;;  %v10886_v13 = vor.u32 %v12190_v12, %v10885_v25 }
 0x5a1   :  { %v10678_v0 = vor.u32 %v12138_v26, %v10677_v24  ;;  %v12226_v53 = vld [vmem:[#allocation25 + $0x5f4] sm:$0xf0]  ;;  %v11269_v2 = vld [vmem:[#allocation25 + $0x7c8] sm:$0xf] }
 0x5a2   :  { %7258 = vmatpush.bf16.msrb.mxu0 %v10598_v41  ;;  %v10422_v41 = vor.u32 %v12074_v21, %v10421_v20  ;;  %v12290_v30 = vld [vmem:[#allocation25 + $0x7f4] sm:$0xf0]  ;;  %v10853_v36 = vld [vmem:[#allocation25 + $0x488] sm:$0xf] }
 0x5a3   :  { %7243 = vmatpush.bf16.msrb.mxu3 %v10486_v45  ;;  %7271 = vmatpush.bf16.msrb.mxu2 %v10742_v38  ;;  %v12254_v45 = vld [vmem:[#allocation25 + $0x6d4] sm:$0xf0]  ;;  %v11109_v34 = vld [vmem:[#allocation25 + $0x688] sm:$0xf] }
 0x5a4   :  { %7231 = vmatpush.bf16.msrb.mxu1 %v10326_v51  ;;  %v12070_v38 = vld [vmem:[#allocation25 + $0x114] sm:$0xf0]  ;;  %v11029_v51 = vld [vmem:[#allocation25 + $0x5e8] sm:$0xf]  ;;  %v11142_v58 = vor.u32 %v12254_v45, %v11141_v32 }
 0x5a5   :  { %v12186_v57 = vld [vmem:[#allocation25 + $0x4b4] sm:$0xf0]  ;;  %v11030_v46 = vor.u32 %v12226_v53, %v11029_v51  ;;  %v10997_v27 = vld [vmem:[#allocation25 + $0x5a8] sm:$0xf] }
 0x5a6   :  { %7259 = vmatpush.bf16.msrb.mxu0 %v10582_v15  ;;  %v11285_v15 = vld [vmem:[#allocation25 + $0x7e8] sm:$0xf]  ;;  %v10870_v1 = vor.u32 %v12186_v57, %v10869_v18  ;;  %v12218_v43 = vld [vmem:[#allocation25 + $0x5b4] sm:$0xf0] }
 0x5a7   :  { %7244 = vmatpush.bf16.msrb.mxu3 %v10470_v59  ;;  %7272 = vmatpush.bf16.msrb.mxu2 %v10726_v17  ;;  %v10406_v59 = vor.u32 %v12070_v38, %v10405_v4  ;;  %v10662_v17 = vor.u32 %v12134_v50, %v10661_v44  ;;  %v11286_v60 = vor.u32 %v12290_v30, %v11285_v15  ;;  %v11253_v42 = vld [vmem:[#allocation25 + $0x7a8] sm:$0xf]  ;;  %v12282_v54 = vld [vmem:[#allocation25 + $0x7b4] sm:$0xf0] }
 0x5a8   :  { %7232 = vmatpush.bf16.msrb.mxu1 %v10310_v47  ;;  %v12250_v47 = vld [vmem:[#allocation25 + $0x6b4] sm:$0xf0]  ;;  %v10998_v19 = vor.u32 %v12218_v43, %v10997_v27  ;;  %v11093_v62 = vld [vmem:[#allocation25 + $0x668] sm:$0xf]  ;;  %v11254_v16 = vor.u32 %v12282_v54, %v11253_v42  ;;  %v12060_v42 = vld [vmem:[#allocation25 + $0xcc] sm:$0xf] }
 0x5a9   :  { %v11126_v6 = vor.u32 %v12250_v47, %v11125_v56  ;;  %v12178_v10 = vld [vmem:[#allocation25 + $0x474] sm:$0xf0]  ;;  %v10981_v20 = vld [vmem:[#allocation25 + $0x588] sm:$0xf] }
 0x5aa   :  { %7260 = vmatpush.bf16.msrb.mxu0 %v10566_v63  ;;  %v12222_v63 = vld [vmem:[#allocation25 + $0x5d4] sm:$0xf0]  ;;  %v11237_v24 = vld [vmem:[#allocation25 + $0x788] sm:$0xf] }
 0x5ab   :  { %7245 = vmatpush.bf16.msrb.mxu3 %v10454_v22  ;;  %7273 = vmatpush.bf16.msrb.mxu2 %v10710_v28  ;;  %v12286_v22 = vld [vmem:[#allocation25 + $0x7d4] sm:$0xf0]  ;;  %v11014_v3 = vor.u32 %v12222_v63, %v11013_v61  ;;  %v10965_v45 = vld [vmem:[#allocation25 + $0x568] sm:$0xf] }
 0x5ac   :  { %7233 = vmatpush.bf16.msrb.mxu1 %v10294_v49  ;;  %v12182_v28 = vld [vmem:[#allocation25 + $0x494] sm:$0xf0]  ;;  %v11270_v40 = vor.u32 %v12286_v22, %v11269_v2  ;;  %v11221_v38 = vld [vmem:[#allocation25 + $0x768] sm:$0xf]  ;;  %v12064_v2 = vld [vmem:[#allocation25 + $0xec] sm:$0xf] }
 0x5ad   :  { %v12246_v49 = vld [vmem:[#allocation25 + $0x694] sm:$0xf0]  ;;  %v10805_v51 = vld [vmem:[#allocation25 + $0x428] sm:$0xf]  ;;  %v10391_v22 = vld [vmem:[#allocation25 + $0xf8] sm:$0xf0] }
 0x5ae   :  { %7261 = vmatpush.bf16.msrb.mxu0 %v10550_v52  ;;  %v10854_v52 = vor.u32 %v12182_v28, %v10853_v36  ;;  %v11110_v37 = vor.u32 %v12246_v49, %v11109_v34  ;;  %v12214_v21 = vld [vmem:[#allocation25 + $0x594] sm:$0xf0]  ;;  %v11061_v15 = vld [vmem:[#allocation25 + $0x628] sm:$0xf]  ;;  %v10647_v28 = vld [vmem:[#allocation25 + $0x2f8] sm:$0xf0] }
 0x5af   :  { %7246 = vmatpush.bf16.msrb.mxu3 %v10438_v29  ;;  %7274 = vmatpush.bf16.msrb.mxu2 %v10694_v14  ;;  %v10837_v29 = vld [vmem:[#allocation25 + $0x468] sm:$0xf]  ;;  %v12242_v14 = vld [vmem:[#allocation25 + $0x674] sm:$0xf0] }
 0x5b0   :  { %7234 = vmatpush.bf16.msrb.mxu1 %v10278_v23  ;;  %v10838_v23 = vor.u32 %v12178_v10, %v10837_v29  ;;  %v12278_v26 = vld [vmem:[#allocation25 + $0x794] sm:$0xf0]  ;;  %v10789_v56 = vld [vmem:[#allocation25 + $0x408] sm:$0xf]  ;;  %v10375_v29 = vld [vmem:[#allocation25 + $0xd8] sm:$0xf0] }
 0x5b1   :  { %v12174_v25 = vld [vmem:[#allocation25 + $0x454] sm:$0xf0]  ;;  %v11238_v32 = vor.u32 %v12278_v26, %v11237_v24  ;;  %v11045_v61 = vld [vmem:[#allocation25 + $0x608] sm:$0xf]  ;;  %v12124_v10 = vld [vmem:[#allocation25 + $0x2cc] sm:$0xf]  ;;  %v10378_v26 = vor.u32 %v12060_v42, %v10375_v29 }
 0x5b2   :  { %7262 = vmatpush.bf16.msrb.mxu0 %v10534_v31  ;;  %v11094_v31 = vor.u32 %v12242_v14, %v11093_v62  ;;  %v12238_v12 = vld [vmem:[#allocation25 + $0x654] sm:$0xf0]  ;;  %v10917_v14 = vld [vmem:[#allocation25 + $0x508] sm:$0xf]  ;;  %v10519_v24 = vld [vmem:[#allocation25 + $0x1f8] sm:$0xf0] }
 0x5b3   :  { %7247 = vmatpush.bf16.msrb.mxu3 %v10422_v41  ;;  %7275 = vmatpush.bf16.msrb.mxu2 %v10678_v0  ;;  %v11077_v41 = vld [vmem:[#allocation25 + $0x648] sm:$0xf]  ;;  %v12210_v0 = vld [vmem:[#allocation25 + $0x574] sm:$0xf0]  ;;  %v10311_v42 = vld [vmem:[#allocation25 + $0x58] sm:$0xf0] }
 0x5b4   :  { %7283 = vmatpush.bf16.msra.mxu1 %v10902_v11  ;;  %v10821_v11 = vld [vmem:[#allocation25 + $0x448] sm:$0xf]  ;;  %v12274_v44 = vld [vmem:[#allocation25 + $0x774] sm:$0xf0]  ;;  %v11078_v50 = vor.u32 %v12238_v12, %v11077_v41  ;;  %v12056_v41 = vld [vmem:[#allocation25 + $0xac] sm:$0xf] }
 0x5b5   :  { %7235 = vmatmul.bf16.vlgmr.msrb.gmra.mxu1 %v13288_v7  ;;  %7263 = vmatmul.bf16.vlgmr.msrb.gmra.mxu0 %v13290_v55  ;;  %v10822_v4 = vor.u32 %v12174_v25, %v10821_v11  ;;  %v12170_v53 = vld [vmem:[#allocation25 + $0x434] sm:$0xf0]  ;;  %v10775_v11 = vld [vmem:[#allocation25 + $0x3f8] sm:$0xf0] }
 0x5b6   :  { %7311 = vmatpush.bf16.msra.mxu0 %v11158_v33  ;;  %v10982_v33 = vor.u32 %v12214_v21, %v10981_v20  ;;  %v12234_v30 = vld [vmem:[#allocation25 + $0x634] sm:$0xf0]  ;;  %v10806_v57 = vor.u32 %v12170_v53, %v10805_v51  ;;  %v11173_v20 = vld [vmem:[#allocation25 + $0x708] sm:$0xf]  ;;  %v10359_v12 = vld [vmem:[#allocation25 + $0xb8] sm:$0xf0] }
 0x5b7   :  { %7248 = vmatpush.bf16.msrb.mxu3 %v10406_v59  ;;  %7276 = vmatpush.bf16.msrb.mxu2 %v10662_v17  ;;  %v10949_v59 = vld [vmem:[#allocation25 + $0x548] sm:$0xf]  ;;  %v12206_v18 = vld [vmem:[#allocation25 + $0x554] sm:$0xf0]  ;;  %v11062_v47 = vor.u32 %v12234_v30, %v11061_v15  ;;  %v10362_v51 = vor.u32 %v12056_v41, %v10359_v12  ;;  %v12156_v53 = vld [vmem:[#allocation25 + $0x3cc] sm:$0xf] }
 0x5b8   :  { %7284 = vmatpush.bf16.msra.mxu1 %v10886_v13  ;;  %v10966_v13 = vor.u32 %v12210_v0, %v10965_v45  ;;  %v11205_v17 = vld [vmem:[#allocation25 + $0x748] sm:$0xf]  ;;  %v12230_v63 = vld [vmem:[#allocation25 + $0x614] sm:$0xf0]  ;;  %v12120_v0 = vld [vmem:[#allocation25 + $0x2ac] sm:$0xf] }
 0x5b9   :  { %v12202_v34 = vld [vmem:[#allocation25 + $0x534] sm:$0xf0]  ;;  %v11046_v43 = vor.u32 %v12230_v63, %v11045_v61  ;;  %v12052_v30 = vld [vmem:[#allocation25 + $0x8c] sm:$0xf]  ;;  %v10743_v61 = vld [vmem:[#allocation25 + $0x3b8] sm:$0xf0] }
 0x5ba   :  { %7312 = vmatpush.bf16.msra.mxu0 %v11142_v58  ;;  %7249 = vmatmul.bf16.vlgmr.msrb.gmra.mxu3 %v13298_v5  ;;  %v11222_v58 = vor.u32 %v12274_v44, %v11221_v38  ;;  %v12266_v27 = vld [vmem:[#allocation25 + $0x734] sm:$0xf0]  ;;  %v12092_v44 = vld [vmem:[#allocation25 + $0x1cc] sm:$0xf]  ;;  %v10567_v29 = vld [vmem:[#allocation25 + $0x258] sm:$0xf0] }
 0x5bb   :  { %7297 = vmatpush.bf16.msra.mxu3 %v11030_v46  ;;  %7325 = vmatpush.bf16.msra.mxu2 %v11286_v60  ;;  %v12270_v46 = vld [vmem:[#allocation25 + $0x754] sm:$0xf0]  ;;  %v12076_v41 = vld [vmem:[#allocation25 + $0x14c] sm:$0xf]  ;;  %v10439_v12 = vld [vmem:[#allocation25 + $0x158] sm:$0xf0] }
 0x5bc   :  { %7285 = vmatpush.bf16.msra.mxu1 %v10870_v1  ;;  %7277 = vmatmul.bf16.vlgmr.msrb.gmra.mxu2 %v13301_v8  ;;  %v12166_v60 = vld [vmem:[#allocation25 + $0x414] sm:$0xf0]  ;;  %v10950_v1 = vor.u32 %v12206_v18, %v10949_v59  ;;  %v11206_v36 = vor.u32 %v12270_v46, %v11205_v17  ;;  %v12116_v18 = vld [vmem:[#allocation25 + $0x28c] sm:$0xf] }
 0x5bd   :  { %v10790_v49 = vor.u32 %v12166_v60, %v10789_v56  ;;  %v12262_v21 = vld [vmem:[#allocation25 + $0x714] sm:$0xf0]  ;;  %v12088_v46 = vld [vmem:[#allocation25 + $0x1ac] sm:$0xf]  ;;  %v10487_v56 = vld [vmem:[#allocation25 + $0x1b8] sm:$0xf0] }
 0x5be   :  { %7313 = vmatpush.bf16.msra.mxu0 %v11126_v6  ;;  %v12128_v6 = vld [vmem:[#allocation25 + $0x2ec] sm:$0xf] }
 0x5bf   :  { %7298 = vmatpush.bf16.msra.mxu3 %v11014_v3  ;;  %7326 = vmatpush.bf16.msra.mxu2 %v11270_v40  ;;  %v10933_v3 = vld [vmem:[#allocation25 + $0x528] sm:$0xf]  ;;  %v10650_v54 = vor.u32 %v12128_v6, %v10647_v28  ;;  %v12152_v60 = vld [vmem:[#allocation25 + $0x3ac] sm:$0xf] }
 0x5c0   :  { %7286 = vmatpush.bf16.msra.mxu1 %v10854_v52  ;;  %v11189_v40 = vld [vmem:[#allocation25 + $0x728] sm:$0xf]  ;;  %v10394_v52 = vor.u32 %v12064_v2, %v10391_v22  ;;  %v10327_v2 = vld [vmem:[#allocation25 + $0x78] sm:$0xf0]  ;;  %v10490_v22 = vor.u32 %v12088_v46, %v10487_v56  ;;  %v12112_v6 = vld [vmem:[#allocation25 + $0x26c] sm:$0xf]  ;;  %v10746_v28 = vor.u32 %v12152_v60, %v10743_v61 }
 0x5c1   :  { %v11190_v62 = vor.u32 %v12266_v27, %v11189_v40  ;;  %v12148_v40 = vld [vmem:[#allocation25 + $0x38c] sm:$0xf]  ;;  %v10727_v27 = vld [vmem:[#allocation25 + $0x398] sm:$0xf0] }
 0x5c2   :  { %7314 = vmatpush.bf16.msra.mxu0 %v11110_v37  ;;  %v10934_v37 = vor.u32 %v12202_v34, %v10933_v3  ;;  %v12084_v3 = vld [vmem:[#allocation25 + $0x18c] sm:$0xf]  ;;  %v10471_v34 = vld [vmem:[#allocation25 + $0x198] sm:$0xf0] }
 0x5c3   :  { %7299 = vmatpush.bf16.msra.mxu3 %v10998_v19  ;;  %7327 = vmatpush.bf16.msra.mxu2 %v11254_v16  ;;  %v10631_v19 = vld [vmem:[#allocation25 + $0x2d8] sm:$0xf0]  ;;  %v12198_v16 = vld [vmem:[#allocation25 + $0x514] sm:$0xf0] }
 0x5c4   :  { %7287 = vmatpush.bf16.msra.mxu1 %v10838_v23  ;;  %v12096_v23 = vld [vmem:[#allocation25 + $0x1ec] sm:$0xf]  ;;  %v10634_v25 = vor.u32 %v12124_v10, %v10631_v19  ;;  %v10730_v10 = vor.u32 %v12148_v40, %v10727_v27  ;;  %v10423_v46 = vld [vmem:[#allocation25 + $0x138] sm:$0xf0] }
 0x5c5   :  { %v10522_v45 = vor.u32 %v12096_v23, %v10519_v24  ;;  %v12080_v19 = vld [vmem:[#allocation25 + $0x16c] sm:$0xf]  ;;  %v10679_v60 = vld [vmem:[#allocation25 + $0x338] sm:$0xf0] }
 0x5c6   :  { %7315 = vmatpush.bf16.msra.mxu0 %v11094_v31  ;;  %v12160_v31 = vld [vmem:[#allocation25 + $0x3ec] sm:$0xf]  ;;  %v10407_v27 = vld [vmem:[#allocation25 + $0x118] sm:$0xf0] }
 0x5c7   :  { %7300 = vmatpush.bf16.msra.mxu3 %v10982_v33  ;;  %7328 = vmatpush.bf16.msra.mxu2 %v11238_v32  ;;  %v10918_v33 = vor.u32 %v12198_v16, %v10917_v14  ;;  %v11174_v32 = vor.u32 %v12262_v21, %v11173_v20  ;;  %v10778_v38 = vor.u32 %v12160_v31, %v10775_v11  ;;  %v12144_v16 = vld [vmem:[#allocation25 + $0x36c] sm:$0xf]  ;;  %v10711_v20 = vld [vmem:[#allocation25 + $0x378] sm:$0xf0] }
 0x5c8   :  { %7288 = vmatpush.bf16.msra.mxu1 %v10822_v4  ;;  %v10615_v4 = vld [vmem:[#allocation25 + $0x2b8] sm:$0xf0]  ;;  %v12040_v24 = vld [vmem:[#allocation25 + $0x2c] sm:$0xf] }
 0x5c9   :  { %v10618_v15 = vor.u32 %v12120_v0, %v10615_v4  ;;  %v12104_v11 = vld [vmem:[#allocation25 + $0x22c] sm:$0xf]  ;;  %v10695_v0 = vld [vmem:[#allocation25 + $0x358] sm:$0xf0] }
 0x5ca   :  { %7316 = vmatpush.bf16.msra.mxu0 %v11078_v50  ;;  %v10503_v50 = vld [vmem:[#allocation25 + $0x1d8] sm:$0xf0]  ;;  %v12036_v4 = vld [vmem:[#allocation25 + $0xc] sm:$0xf] }
 0x5cb   :  { %7301 = vmatpush.bf16.msra.mxu3 %v10966_v13  ;;  %7329 = vmatpush.bf16.msra.mxu2 %v11222_v58  ;;  %v10759_v13 = vld [vmem:[#allocation25 + $0x3d8] sm:$0xf0]  ;;  %v10506_v59 = vor.u32 %v12092_v44, %v10503_v50  ;;  %v12100_v50 = vld [vmem:[#allocation25 + $0x20c] sm:$0xf] }
 0x5cc   :  { %7289 = vmatpush.bf16.msra.mxu1 %v10806_v57  ;;  %v10343_v58 = vld [vmem:[#allocation25 + $0x98] sm:$0xf0]  ;;  %v10762_v17 = vor.u32 %v12156_v53, %v10759_v13  ;;  %v10442_v53 = vor.u32 %v12076_v41, %v10439_v12  ;;  %v12192_v13 = vld [vmem:[#allocation25 + $0x4ec] sm:$0xf] }
 0x5cd   :  { %v10599_v57 = vld [vmem:[#allocation25 + $0x298] sm:$0xf0]  ;;  %v12068_v40 = vld [vmem:[#allocation25 + $0x10c] sm:$0xf] }
 0x5ce   :  { %7317 = vmatpush.bf16.msra.mxu0 %v11062_v47  ;;  %v10346_v47 = vor.u32 %v12052_v30, %v10343_v58  ;;  %v10602_v63 = vor.u32 %v12116_v18, %v10599_v57  ;;  %v10279_v44 = vld [vmem:[#allocation25 + $0x18] sm:$0xf0]  ;;  %v12256_v30 = vld [vmem:[#allocation25 + $0x6ec] sm:$0xf] }
 0x5cf   :  { %7302 = vmatpush.bf16.msra.mxu3 %v10950_v1  ;;  %7330 = vmatpush.bf16.msra.mxu2 %v11206_v36  ;;  %v12048_v1 = vld [vmem:[#allocation25 + $0x6c] sm:$0xf]  ;;  %v10583_v36 = vld [vmem:[#allocation25 + $0x278] sm:$0xf0]  ;;  %v10282_v56 = vor.u32 %v12036_v4, %v10279_v44 }
 0x5d0   :  { %7290 = vmatpush.bf16.msra.mxu1 %v10790_v49  ;;  %v10330_v49 = vor.u32 %v12048_v1, %v10327_v2  ;;  %v13348_v21 = vpop.f32.mrf.mxu1  ;;  %v11159_v57 = vld [vmem:[#allocation25 + $0x6f8] sm:$0xf0]  ;;  %v12188_v2 = vld [vmem:[#allocation25 + $0x4cc] sm:$0xf] }
 0x5d1   :  { %v13350_v58 = vpop.f32.mrf.mxu0  ;;  %v10855_v4 = vld [vmem:[#allocation25 + $0x498] sm:$0xf0]  ;;  %v12244_v44 = vld [vmem:[#allocation25 + $0x68c] sm:$0xf] }
 0x5d2   :  { %7318 = vmatpush.bf16.msra.mxu0 %v11046_v43  ;;  %v10586_v43 = vor.u32 %v12112_v6, %v10583_v36  ;;  %v10887_v36 = vld [vmem:[#allocation25 + $0x4d8] sm:$0xf0] }
 0x5d3   :  { %7303 = vmatpush.bf16.msra.mxu3 %v10934_v37  ;;  %7331 = vmatpush.bf16.msra.mxu2 %v11190_v62  ;;  %v12108_v37 = vld [vmem:[#allocation25 + $0x24c] sm:$0xf]  ;;  %v10455_v62 = vld [vmem:[#allocation25 + $0x178] sm:$0xf0] }
 0x5d4   :  { %7339 = vmatpush.bf16.msrb.mxu1 %v10394_v52  ;;  %v12044_v52 = vld [vmem:[#allocation25 + $0x4c] sm:$0xf]  ;;  %v10570_v23 = vor.u32 %v12108_v37, %v10567_v29  ;;  %v10458_v31 = vor.u32 %v12080_v19, %v10455_v62  ;;  %v10890_v37 = vor.u32 %v12188_v2, %v10887_v36  ;;  %v10410_v62 = vor.u32 %v12068_v40, %v10407_v27  ;;  %v11239_v36 = vld [vmem:[#allocation25 + $0x798] sm:$0xf0] }
 0x5d5   :  { %7291 = vmatmul.bf16.vlgmr.msra.gmra.mxu1 %v13320_v35  ;;  %7319 = vmatmul.bf16.vlgmr.msra.gmra.mxu0 %v13322_v9  ;;  %v10314_v14 = vor.u32 %v12044_v52, %v10311_v42  ;;  %v10663_v52 = vld [vmem:[#allocation25 + $0x318] sm:$0xf0]  ;;  %v12224_v42 = vld [vmem:[#allocation25 + $0x5ec] sm:$0xf] }
 0x5d6   :  { %7367 = vmatpush.bf16.msrb.mxu0 %v10650_v54  ;;  %v10474_v54 = vor.u32 %v12084_v3, %v10471_v34  ;;  %v11143_v3 = vld [vmem:[#allocation25 + $0x6d8] sm:$0xf0]  ;;  %v12288_v29 = vld [vmem:[#allocation25 + $0x7ec] sm:$0xf] }
 0x5d7   :  { %7304 = vmatpush.bf16.msra.mxu3 %v10918_v33  ;;  %7332 = vmatpush.bf16.msra.mxu2 %v11174_v32  ;;  %v10714_v33 = vor.u32 %v12144_v16, %v10711_v20  ;;  %v10871_v16 = vld [vmem:[#allocation25 + $0x4b8] sm:$0xf0]  ;;  %v12212_v2 = vld [vmem:[#allocation25 + $0x58c] sm:$0xf] }
 0x5d8   :  { %7340 = vmatpush.bf16.msrb.mxu1 %v10378_v26  ;;  %v10295_v26 = vld [vmem:[#allocation25 + $0x38] sm:$0xf0]  ;;  %v13356_v34 = vpop.f32.mrf.mxu1 }
 0x5d9   :  { %v10298_v32 = vor.u32 %v12040_v24, %v10295_v26  ;;  %v12248_v24 = vld [vmem:[#allocation25 + $0x6ac] sm:$0xf]  ;;  %v11127_v26 = vld [vmem:[#allocation25 + $0x6b8] sm:$0xf0] }
 0x5da   :  { %7368 = vmatpush.bf16.msrb.mxu0 %v10634_v25  ;;  %7305 = vmatmul.bf16.vlgmr.msra.gmra.mxu3 %v13326_v48  ;;  %v10551_v25 = vld [vmem:[#allocation25 + $0x238] sm:$0xf0] }
 0x5db   :  { %7353 = vmatpush.bf16.msrb.mxu3 %v10522_v45  ;;  %7381 = vmatpush.bf16.msrb.mxu2 %v10778_v38  ;;  %v12140_v45 = vld [vmem:[#allocation25 + $0x34c] sm:$0xf]  ;;  %v10554_v38 = vor.u32 %v12104_v11, %v10551_v25  ;;  %v11015_v25 = vld [vmem:[#allocation25 + $0x5d8] sm:$0xf0] }
 0x5dc   :  { %7341 = vmatpush.bf16.msrb.mxu1 %v10362_v51  ;;  %7333 = vmatmul.bf16.vlgmr.msra.gmra.mxu2 %v13328_v39  ;;  %v10535_v51 = vld [vmem:[#allocation25 + $0x218] sm:$0xf0]  ;;  %v10698_v18 = vor.u32 %v12140_v45, %v10695_v0  ;;  %v12220_v11 = vld [vmem:[#allocation25 + $0x5cc] sm:$0xf] }
 0x5dd   :  { %v13354_v61 = vpop.f32.mrf.mxu2  ;;  %v11271_v45 = vld [vmem:[#allocation25 + $0x7d8] sm:$0xf0]  ;;  %v12180_v0 = vld [vmem:[#allocation25 + $0x48c] sm:$0xf] }
 0x5de   :  { %7369 = vmatpush.bf16.msrb.mxu0 %v10618_v15  ;;  %v10903_v15 = vld [vmem:[#allocation25 + $0x4f8] sm:$0xf0] }
 0x5df   :  { %7354 = vmatpush.bf16.msrb.mxu3 %v10506_v59  ;;  %7382 = vmatpush.bf16.msrb.mxu2 %v10762_v17  ;;  %v13352_v59 = vpop.f32.mrf.mxu3  ;;  %v12072_v17 = vld [vmem:[#allocation25 + $0x12c] sm:$0xf]  ;;  %v10906_v1 = vor.u32 %v12192_v13, %v10903_v15  ;;  %v10999_v13 = vld [vmem:[#allocation25 + $0x5b8] sm:$0xf0] }
 0x5e0   :  { %7342 = vmatpush.bf16.msrb.mxu1 %v10346_v47  ;;  %v12136_v47 = vld [vmem:[#allocation25 + $0x32c] sm:$0xf]  ;;  %v10426_v6 = vor.u32 %v12072_v17, %v10423_v46  ;;  %v13366_v15 = vpop.f32.mrf.mxu1 }
 0x5e1   :  { %v12176_v46 = vld [vmem:[#allocation25 + $0x46c] sm:$0xf] }
 0x5e2   :  { %7370 = vmatpush.bf16.msrb.mxu0 %v10602_v63  ;;  %v10538_v63 = vor.u32 %v12100_v50, %v10535_v51  ;;  %v11111_v50 = vld [vmem:[#allocation25 + $0x698] sm:$0xf0] }
 0x5e3   :  { %7355 = vmatpush.bf16.msrb.mxu3 %v10490_v22  ;;  %7383 = vmatpush.bf16.msrb.mxu2 %v10746_v28  ;;  %v11162_v22 = vor.u32 %v12256_v30, %v11159_v57  ;;  %v12252_v28 = vld [vmem:[#allocation25 + $0x6cc] sm:$0xf]  ;;  %v10858_v30 = vor.u32 %v12180_v0, %v10855_v4  ;;  %v11255_v57 = vld [vmem:[#allocation25 + $0x7b8] sm:$0xf0]  ;;  %v11114_v17 = vor.u32 %v12244_v44, %v11111_v50  ;;  %v13378_v0 = vld [vmem:[#allocation27] sm:$0xf] }
 0x5e4   :  { %7343 = vmatpush.bf16.msrb.mxu1 %v10330_v49  ;;  %v10682_v49 = vor.u32 %v12136_v47, %v10679_v60  ;;  %v11146_v19 = vor.u32 %v12252_v28, %v11143_v3  ;;  %v12240_v60 = vld [vmem:[#allocation25 + $0x66c] sm:$0xf]  ;;  %v10791_v44 = vld [vmem:[#allocation25 + $0x418] sm:$0xf0] }
 0x5e5   :  { %v12172_v3 = vld [vmem:[#allocation25 + $0x44c] sm:$0xf] }
 0x5e6   :  { %7371 = vmatpush.bf16.msrb.mxu0 %v10586_v43  ;;  %v12132_v43 = vld [vmem:[#allocation25 + $0x30c] sm:$0xf] }
 0x5e7   :  { %7356 = vmatpush.bf16.msrb.mxu3 %v10474_v54  ;;  %7384 = vmatpush.bf16.msrb.mxu2 %v10730_v10  ;;  %v11031_v54 = vld [vmem:[#allocation25 + $0x5f8] sm:$0xf0]  ;;  %v10666_v20 = vor.u32 %v12132_v43, %v10663_v52  ;;  %v13362_v41 = vpop.f32.mrf.mxu3  ;;  %v12236_v43 = vld [vmem:[#allocation25 + $0x64c] sm:$0xf] }
 0x5e8   :  { %7344 = vmatpush.bf16.msrb.mxu1 %v10314_v14  ;;  %v11287_v10 = vld [vmem:[#allocation25 + $0x7f8] sm:$0xf0]  ;;  %v12184_v14 = vld [vmem:[#allocation25 + $0x4ac] sm:$0xf] }
 0x5e9   :  { %v10874_v12 = vor.u32 %v12184_v14, %v10871_v16  ;;  %v11079_v52 = vld [vmem:[#allocation25 + $0x658] sm:$0xf0]  ;;  %v12168_v16 = vld [vmem:[#allocation25 + $0x42c] sm:$0xf] }
 0x5ea   :  { %7372 = vmatpush.bf16.msrb.mxu0 %v10570_v23  ;;  %v11034_v23 = vor.u32 %v12224_v42, %v11031_v54  ;;  %v12208_v54 = vld [vmem:[#allocation25 + $0x56c] sm:$0xf]  ;;  %v11082_v14 = vor.u32 %v12236_v43, %v11079_v52  ;;  %v11175_v52 = vld [vmem:[#allocation25 + $0x718] sm:$0xf0] }
 0x5eb   :  { %7357 = vmatpush.bf16.msrb.mxu3 %v10458_v31  ;;  %7385 = vmatpush.bf16.msrb.mxu2 %v10714_v33  ;;  %v11290_v31 = vor.u32 %v12288_v29, %v11287_v10  ;;  %v13360_v33 = vpop.f32.mrf.mxu0  ;;  %v12260_v43 = vld [vmem:[#allocation25 + $0x70c] sm:$0xf] }
 0x5ec   :  { %7345 = vmatpush.bf16.msrb.mxu1 %v10298_v32  ;;  %v12284_v32 = vld [vmem:[#allocation25 + $0x7cc] sm:$0xf] }
 0x5ed   :  { %v11274_v51 = vor.u32 %v12284_v32, %v11271_v45  ;;  %v12268_v45 = vld [vmem:[#allocation25 + $0x74c] sm:$0xf] }
 0x5ee   :  { %7373 = vmatpush.bf16.msrb.mxu0 %v10554_v38  ;;  %v13364_v38 = vpop.f32.mrf.mxu2 }
 0x5ef   :  { %7358 = vmatpush.bf16.msrb.mxu3 %v10442_v53  ;;  %7386 = vmatpush.bf16.msrb.mxu2 %v10698_v18  ;;  %v12216_v53 = vld [vmem:[#allocation25 + $0x5ac] sm:$0xf]  ;;  %v13372_v40 = vpop.f32.mrf.mxu3 }
 0x5f0   :  { %7346 = vmatpush.bf16.msrb.mxu1 %v10282_v56  ;;  %v12280_v18 = vld [vmem:[#allocation25 + $0x7ac] sm:$0xf]  ;;  %v10839_v56 = vld [vmem:[#allocation25 + $0x478] sm:$0xf0]  ;;  %v11002_v47 = vor.u32 %v12216_v53, %v10999_v13 }
 0x5f1   :  { %v11047_v53 = vld [vmem:[#allocation25 + $0x618] sm:$0xf0] }
 0x5f2   :  { %7374 = vmatpush.bf16.msrb.mxu0 %v10538_v63  ;;  %v11095_v63 = vld [vmem:[#allocation25 + $0x678] sm:$0xf0] }
 0x5f3   :  { %7359 = vmatpush.bf16.msrb.mxu3 %v10426_v6  ;;  %7387 = vmatpush.bf16.msrb.mxu2 %v10682_v49  ;;  %v12276_v6 = vld [vmem:[#allocation25 + $0x78c] sm:$0xf]  ;;  %v11098_v28 = vor.u32 %v12240_v60, %v11095_v63  ;;  %v13370_v49 = vpop.f32.mrf.mxu0  ;;  %v11191_v60 = vld [vmem:[#allocation25 + $0x738] sm:$0xf0] }
 0x5f4   :  { %7395 = vmatpush.bf16.msra.mxu1 %v10906_v1  ;;  %v11258_v1 = vor.u32 %v12280_v18, %v11255_v57  ;;  %v11242_v42 = vor.u32 %v12276_v6, %v11239_v36  ;;  %v10935_v18 = vld [vmem:[#allocation25 + $0x538] sm:$0xf0]  ;;  %v5715_v57 = vperm.slane %v13378_v0, 0  ;;  %v12196_v36 = vld [vmem:[#allocation25 + $0x50c] sm:$0xf] }
 0x5f5   :  { %7347 = vmatmul.bf16.vlgmr.msrb.gmra.mxu1 %v13288_v7  ;;  %7375 = vmatmul.bf16.vlgmr.msrb.gmra.mxu0 %v13290_v55  ;;  %v11130_v7 = vor.u32 %v12248_v24, %v11127_v26  ;;  %v11018_v55 = vor.u32 %v12220_v11, %v11015_v25  ;;  %v12232_v26 = vld [vmem:[#allocation25 + $0x62c] sm:$0xf] }
 0x5f6   :  { %7423 = vmatpush.bf16.msra.mxu0 %v11162_v22  ;;  %v10983_v22 = vld [vmem:[#allocation25 + $0x598] sm:$0xf0]  ;;  %v13374_v29 = vpop.f32.mrf.mxu2  ;;  %v12204_v25 = vld [vmem:[#allocation25 + $0x54c] sm:$0xf] }
 0x5f7   :  { %7360 = vmatpush.bf16.msrb.mxu3 %v10410_v62  ;;  %7388 = vmatpush.bf16.msrb.mxu2 %v10666_v20  ;;  %v10986_v27 = vor.u32 %v12212_v2, %v10983_v22  ;;  %v11223_v62 = vld [vmem:[#allocation25 + $0x778] sm:$0xf0]  ;;  %v7015_v2 = vadd.f32 %v13356_v34, %v5715_v57 }
 0x5f8   :  { %7396 = vmatpush.bf16.msra.mxu1 %v10890_v37  ;;  %v10967_v37 = vld [vmem:[#allocation25 + $0x578] sm:$0xf0] }
 0x5f9   :  { %v10807_v20 = vld [vmem:[#allocation25 + $0x438] sm:$0xf0]  ;;  %v10970_v24 = vor.u32 %v12208_v54, %v10967_v37  ;;  %v11178_v37 = vor.u32 %v12260_v43, %v11175_v52 }
 0x5fa   :  { %7424 = vmatpush.bf16.msra.mxu0 %v11146_v19  ;;  %7361 = vmatmul.bf16.vlgmr.msrb.gmra.mxu3 %v13298_v5  ;;  %v10842_v5 = vor.u32 %v12176_v46, %v10839_v56  ;;  %v12272_v19 = vld [vmem:[#allocation25 + $0x76c] sm:$0xf]  ;;  %v10810_v32 = vor.u32 %v12168_v16, %v10807_v20  ;;  %v7084_v46 = vpop.f32.mrf.mxu3 }
 0x5fb   :  { %7409 = vmatpush.bf16.msra.mxu3 %v11034_v23  ;;  %7437 = vmatpush.bf16.msra.mxu2 %v11290_v31  ;;  %v13376_v23 = vpop.f32.mrf.mxu1  ;;  %v11063_v31 = vld [vmem:[#allocation25 + $0x638] sm:$0xf0]  ;;  %v11226_v11 = vor.u32 %v12272_v19, %v11223_v62 }
 0x5fc   :  { %7397 = vmatpush.bf16.msra.mxu1 %v10874_v12  ;;  %7389 = vmatmul.bf16.vlgmr.msrb.gmra.mxu2 %v13301_v8  ;;  %v10823_v8 = vld [vmem:[#allocation25 + $0x458] sm:$0xf0]  ;;  %v11066_v4 = vor.u32 %v12232_v26, %v11063_v31 }
 0x5fd   :  { %v10826_v10 = vor.u32 %v12172_v3, %v10823_v8  ;;  %v10951_v12 = vld [vmem:[#allocation25 + $0x558] sm:$0xf0]  ;;  %v7013_v3 = vadd.f32 %v13348_v21, %v5715_v57  ;;  %v7029_v8 = vadd.f32 %v13362_v41, %v7015_v2  ;;  %v12296_v41 = vld [vmem:[#allocation28 + $0x28] sm:$0xff] }
 0x5fe   :  { %7425 = vmatpush.bf16.msra.mxu0 %v11130_v7  ;;  %v11207_v7 = vld [vmem:[#allocation25 + $0x758] sm:$0xf0]  ;;  %v10954_v50 = vor.u32 %v12204_v25, %v10951_v12  ;;  %v13384_v22 = vpop.f32.mrf.mxu2 }
 0x5ff   :  { %7410 = vmatpush.bf16.msra.mxu3 %v11018_v55  ;;  %7438 = vmatpush.bf16.msra.mxu2 %v11274_v51  ;;  %v12164_v55 = vld [vmem:[#allocation25 + $0x40c] sm:$0xf]  ;;  %v11210_v13 = vor.u32 %v12268_v45, %v11207_v7  ;;  %v7027_v34 = vadd.f32 %v13352_v59, %v7013_v3  ;;  %v7043_v21 = vadd.f32 %v13360_v33, %v7029_v8  ;;  %v12305_v59 = vld [vmem:[#allocation28 + $0x70] sm:$0xff]  ;;  %v12295_v33 = vld [vmem:[#allocation28 + $0x20] sm:$0xff] }
 0x600   :  { %7398 = vmatpush.bf16.msra.mxu1 %v10858_v30  ;;  %v12228_v51 = vld [vmem:[#allocation25 + $0x60c] sm:$0xf]  ;;  %v10794_v56 = vor.u32 %v12164_v55, %v10791_v44  ;;  %v12293_v7 = vld [vmem:[#allocation28 + $0x10] sm:$0xff] }
 0x601   :  { %v12200_v30 = vld [vmem:[#allocation25 + $0x52c] sm:$0xf]  ;;  %v11050_v63 = vor.u32 %v12228_v51, %v11047_v53  ;;  %v7041_v19 = vadd.f32 %v13350_v58, %v7027_v34  ;;  %v7057_v16 = vadd.f32 %v13364_v38, %v7043_v21  ;;  %v12313_v21 = vld [vmem:[#allocation28 + $0xb0] sm:$0xff] }
 0x602   :  { %7426 = vmatpush.bf16.msra.mxu0 %v11114_v17  ;;  %v13381_v17 = vpop.f32.mrf.mxu0  ;;  %v12304_v58 = vld [vmem:[#allocation28 + $0x68] sm:$0xff] }
 0x603   :  { %7411 = vmatpush.bf16.msra.mxu3 %v11002_v47  ;;  %7439 = vmatpush.bf16.msra.mxu2 %v11258_v1  ;;  %v12264_v47 = vld [vmem:[#allocation25 + $0x72c] sm:$0xf]  ;;  %v12298_v1 = vld [vmem:[#allocation28 + $0x38] sm:$0xff]  ;;  %v7071_v26 = vadd.f32 %v13376_v23, %v7057_v16  ;;  %v12309_v16 = vld [vmem:[#allocation28 + $0x90] sm:$0xff] }
 0x604   :  { %7399 = vmatpush.bf16.msra.mxu1 %v10842_v5  ;;  %v10938_v5 = vor.u32 %v12200_v30, %v10935_v18  ;;  %v11194_v6 = vor.u32 %v12264_v47, %v11191_v60  ;;  %v12292_v53 = vld [vmem:[#allocation28 + $0x8] sm:$0xff]  ;;  %v12301_v30 = vld [vmem:[#allocation28 + $0x50] sm:$0xff]  ;;  %v12291_v47 = vld [vmem:[#allocation28] sm:$0xff] }
 0x605   :  { %v7085_v25 = vadd.f32 %v7084_v46, %v7071_v26 }
 0x606   :  { %7427 = vmatpush.bf16.msra.mxu0 %v11098_v28  ;;  %v10919_v28 = vld [vmem:[#allocation25 + $0x518] sm:$0xf0]  ;;  %v7166_v20 = vpop.f32.mrf.mxu2 }
 0x607   :  { %7412 = vmatpush.bf16.msra.mxu3 %v10986_v27  ;;  %7440 = vmatpush.bf16.msra.mxu2 %v11242_v42  ;;  %v7124_v27 = vpop.f32.mrf.mxu1  ;;  %v12297_v42 = vld [vmem:[#allocation28 + $0x30] sm:$0xff]  ;;  %v10922_v54 = vor.u32 %v12196_v36, %v10919_v28 }
 0x608   :  { %7400 = vmatpush.bf16.msra.mxu1 %v10826_v10  ;;  %v12306_v10 = vld [vmem:[#allocation28 + $0x78] sm:$0xff] }
 0x60a   :  { %7428 = vmatpush.bf16.msra.mxu0 %v11082_v14  ;;  %v7152_v62 = vpop.f32.mrf.mxu0  ;;  %v7138_v14 = vpop.f32.mrf.mxu3 }
 0x60b   :  { %7413 = vmatpush.bf16.msra.mxu3 %v10970_v24  ;;  %7441 = vmatpush.bf16.msra.mxu2 %v11226_v11  ;;  %v12294_v11 = vld [vmem:[#allocation28 + $0x18] sm:$0xff] }
 0x60c   :  { %7401 = vmatpush.bf16.msra.mxu1 %v10810_v32 }
 0x60e   :  { %7429 = vmatpush.bf16.msra.mxu0 %v11066_v4  ;;  %v7168_v4 = vpop.f32.mrf.mxu2 }
 0x60f   :  { %7414 = vmatpush.bf16.msra.mxu3 %v10954_v50  ;;  %7442 = vmatpush.bf16.msra.mxu2 %v11210_v13  ;;  %v7126_v24 = vpop.f32.mrf.mxu1  ;;  %v12302_v50 = vld [vmem:[#allocation28 + $0x58] sm:$0xff] }
 0x610   :  { %7402 = vmatpush.bf16.msra.mxu1 %v10794_v56 }
 0x612   :  { %7430 = vmatpush.bf16.msra.mxu0 %v11050_v63  ;;  %v7154_v45 = vpop.f32.mrf.mxu0 }
 0x613   :  { %7415 = vmatpush.bf16.msra.mxu3 %v10938_v5  ;;  %7443 = vmatpush.bf16.msra.mxu2 %v11194_v6 }
 0x614   :  { %7723 = vmatpush.bf16.msrb.mxu1 %v12298_v1 }
 0x615   :  { %7403 = vmatmul.bf16.vlgmr.msra.gmra.mxu1 %v13320_v35  ;;  %7431 = vmatmul.bf16.vlgmr.msra.gmra.mxu0 %v13322_v9  ;;  %v5716_v35 = vperm.slane %v13378_v0, 1  ;;  %v7055_v9 = vadd.f32 %v13354_v61, %v7041_v19  ;;  %v7140_v61 = vpop.f32.mrf.mxu3  ;;  %v12312_v19 = vld [vmem:[#allocation28 + $0xa8] sm:$0xff] }
 0x617   :  { %7416 = vmatpush.bf16.msra.mxu3 %v10922_v54  ;;  %7444 = vmatpush.bf16.msra.mxu2 %v11178_v37  ;;  %v7125_v31 = vadd.f32 %v7124_v27, %v5716_v35  ;;  %v7069_v38 = vadd.f32 %v13366_v15, %v7055_v9  ;;  %v7180_v55 = vpop.f32.mrf.mxu1  ;;  %v7127_v23 = vadd.f32 %v7126_v24, %v5716_v35  ;;  %v12314_v54 = vld [vmem:[#allocation28 + $0xb8] sm:$0xff]  ;;  %v12307_v24 = vld [vmem:[#allocation28 + $0x80] sm:$0xff] }
 0x618   :  { %7724 = vmatpush.bf16.msrb.mxu1 %v12297_v42  ;;  %7751 = vmatpush.bf16.msrb.mxu0 %v12314_v54 }
 0x619   :  { %v7139_v12 = vadd.f32 %v7138_v14, %v7125_v31  ;;  %v7083_v32 = vadd.f32 %v13372_v40, %v7069_v38  ;;  %v7141_v51 = vadd.f32 %v7140_v61, %v7127_v23  ;;  %v12310_v14 = vld [vmem:[#allocation28 + $0x98] sm:$0xff] }
 0x61a   :  { %7417 = vmatmul.bf16.vlgmr.msra.gmra.mxu3 %v13326_v48  ;;  %7445 = vmatmul.bf16.vlgmr.msra.gmra.mxu2 %v13328_v39  ;;  %v12303_v48 = vld [vmem:[#allocation28 + $0x60] sm:$0xff]  ;;  %v7099_v39 = vadd.f32 %v13381_v17, %v7085_v25  ;;  %v7208_v57 = vpop.f32.mrf.mxu0 }
 0x61b   :  { %7737 = vmatpush.bf16.msrb.mxu3 %v12306_v10  ;;  %v7153_v44 = vadd.f32 %v7152_v62, %v7139_v12  ;;  %v7097_v15 = vadd.f32 %v13370_v49, %v7083_v32  ;;  %v7155_v46 = vadd.f32 %v7154_v45, %v7141_v51  ;;  %v12300_v49 = vld [vmem:[#allocation28 + $0x48] sm:$0xff]  ;;  %v12311_v62 = vld [vmem:[#allocation28 + $0xa0] sm:$0xff] }
 0x61c   :  { %7725 = vmatpush.bf16.msrb.mxu1 %v12296_v41  ;;  %v7113_v13 = vadd.f32 %v13384_v22, %v7099_v39  ;;  %7752 = vmatpush.bf16.msrb.mxu0 %v12313_v21 }
 0x61d   :  { %v7167_v40 = vadd.f32 %v7166_v20, %v7153_v44  ;;  %v7111_v18 = vadd.f32 %v13374_v29, %v7097_v15  ;;  %v7194_v17 = vpop.f32.mrf.mxu3  ;;  %v7169_v6 = vadd.f32 %v7168_v4, %v7155_v46  ;;  %v12299_v29 = vld [vmem:[#allocation28 + $0x40] sm:$0xff]  ;;  %v12308_v20 = vld [vmem:[#allocation28 + $0x88] sm:$0xff] }
 0x61e   :  { %v7455_v60 = vmax.f32 %v7113_v13, 0.0 }
 0x61f   :  { %7738 = vmatpush.bf16.msrb.mxu3 %v12305_v59  ;;  %v7181_v56 = vadd.f32 %v7180_v55, %v7167_v40  ;;  %v7222_v63 = vpop.f32.mrf.mxu2  ;;  %v7451_v2 = vmax.f32 %v7111_v18, 0.0  ;;  %v7182_v5 = vpop.f32.mrf.mxu1 }
 0x620   :  { %7726 = vmatpush.bf16.msrb.mxu1 %v12295_v33  ;;  %v7183_v36 = vadd.f32 %v7182_v5, %v7169_v6  ;;  %7753 = vmatpush.bf16.msrb.mxu0 %v12312_v19  ;;  %v12319_v5 = vld [vmem:[#allocation28 + $0xe0] sm:$0xff]  ;;  %v12318_v6 = vld [vmem:[#allocation28 + $0xd8] sm:$0xff] }
 0x621   :  { %v7195_v1 = vadd.f32 %v7194_v17, %v7181_v56  ;;  %v7459_v22 = vpack.c.bf16 %v7455_v60, %v7451_v2  ;;  %v12320_v2 = vld [vmem:[#allocation28 + $0xe8] sm:$0xff] }
 0x622   :  { %v7210_v27 = vpop.f32.mrf.mxu0 }
 0x623   :  { %7739 = vmatpush.bf16.msrb.mxu3 %v12304_v58  ;;  %v7209_v28 = vadd.f32 %v7208_v57, %v7195_v1  ;;  %v5717_v58 = vperm.slane %v13378_v0, 2  ;;  %v12321_v1 = vld [vmem:[#allocation28 + $0xf0] sm:$0xff] }
 0x624   :  { %7727 = vmatpush.bf16.msrb.mxu1 %v12294_v11  ;;  %7754 = vmatpush.bf16.msrb.mxu0 %v12311_v62 }
 0x625   :  { %v7196_v3 = vpop.f32.mrf.mxu3  ;;  %v7223_v43 = vadd.f32 %v7222_v63, %v7209_v28  ;;  %v12316_v28 = vld [vmem:[#allocation28 + $0xc8] sm:$0xff] }
 0x626   :  { %v7197_v8 = vadd.f32 %v7196_v3, %v7183_v36  ;;  %v12317_v36 = vld [vmem:[#allocation28 + $0xd0] sm:$0xff] }
 0x627   :  { %7740 = vmatpush.bf16.msrb.mxu3 %v12303_v48  ;;  %v7224_v42 = vpop.f32.mrf.mxu2  ;;  %v7452_v37 = vmax.f32 %v7223_v43, 0.0  ;;  %v5718_v43 = vperm.slane %v13378_v0, 3 }
 0x628   :  { %7728 = vmatpush.bf16.msrb.mxu1 %v12293_v7  ;;  %v7211_v52 = vadd.f32 %v7210_v27, %v7197_v8  ;;  %7755 = vmatpush.bf16.msrb.mxu0 %v12310_v14  ;;  %v12315_v27 = vld [vmem:[#allocation28 + $0xc0] sm:$0xff] }
 0x62a   :  { %v7225_v34 = vadd.f32 %v7224_v42, %v7211_v52 }
 0x62b   :  { %7741 = vmatpush.bf16.msrb.mxu3 %v12302_v50 }
 0x62c   :  { %7729 = vmatpush.bf16.msrb.mxu1 %v12292_v53  ;;  %v7456_v10 = vmax.f32 %v7225_v34, 0.0  ;;  %7756 = vmatpush.bf16.msrb.mxu0 %v12309_v16 }
 0x62e   :  { %v7460_v41 = vpack.c.bf16 %v7456_v10, %v7452_v37 }
 0x62f   :  { %7742 = vmatpush.bf16.msrb.mxu3 %v12301_v30 }
 0x630   :  { %7730 = vmatpush.bf16.msrb.mxu1 %v12291_v47  ;;  %7757 = vmatpush.bf16.msrb.mxu0 %v12308_v20  ;;  %v12322_v47 = vld [vmem:[#allocation28 + $0xf8] sm:$0xff] }
 0x631   :  { %7765 = vmatpush.bf16.msrb.mxu2 %v12322_v47 }
 0x632   :  { %v7236_v59 = vpop.f32.mrf.mxu1  ;;  %v7264_v35 = vpop.f32.mrf.mxu0 }
 0x633   :  { %7743 = vmatpush.bf16.msrb.mxu3 %v12300_v49  ;;  %7731 = vmatmul.bf16.vlgmr.msrb.gmra.mxu1 %v7459_v22  ;;  %v7237_v31 = vadd.f32 %v7236_v59, %v5717_v58 }
 0x634   :  { %7758 = vmatpush.bf16.msrb.mxu0 %v12307_v24 }
 0x635   :  { %7766 = vmatpush.bf16.msrb.mxu2 %v12321_v1 }
 0x637   :  { %7744 = vmatpush.bf16.msrb.mxu3 %v12299_v29 }
 0x639   :  { %7767 = vmatpush.bf16.msrb.mxu2 %v12320_v2 }
 0x63a   :  { %7745 = vmatmul.bf16.vlgmr.msrb.gmra.mxu3 %v7460_v41  ;;  %v7238_v26 = vpop.f32.mrf.mxu1  ;;  %v7266_v38 = vpop.f32.mrf.mxu0 }
 0x63b   :  { %v7239_v32 = vadd.f32 %v7238_v26, %v5717_v58 }
 0x63d   :  { %v7250_v33 = vpop.f32.mrf.mxu3  ;;  %7768 = vmatpush.bf16.msrb.mxu2 %v12319_v5 }
 0x63e   :  { %v7251_v11 = vadd.f32 %v7250_v33, %v7237_v31 }
 0x63f   :  { %v7278_v9 = vpop.f32.mrf.mxu2 }
 0x640   :  { %v7265_v45 = vadd.f32 %v7264_v35, %v7251_v11 }
 0x641   :  { %7769 = vmatpush.bf16.msrb.mxu2 %v12318_v6 }
 0x642   :  { %v7279_v7 = vadd.f32 %v7278_v9, %v7265_v45 }
 0x645   :  { %v7252_v25 = vpop.f32.mrf.mxu3  ;;  %7770 = vmatpush.bf16.msrb.mxu2 %v12317_v36 }
 0x646   :  { %v7253_v61 = vadd.f32 %v7252_v25, %v7239_v32 }
 0x647   :  { %v7280_v12 = vpop.f32.mrf.mxu2 }
 0x648   :  { %v7267_v55 = vadd.f32 %v7266_v38, %v7253_v61 }
 0x649   :  { %7771 = vmatpush.bf16.msrb.mxu2 %v12316_v28 }
 0x64a   :  { %v7281_v51 = vadd.f32 %v7280_v12, %v7267_v55 }
 0x64d   :  { %7772 = vmatpush.bf16.msrb.mxu2 %v12315_v27 }
 0x652   :  { %v7292_v48 = vpop.f32.mrf.mxu1  ;;  %v7320_v39 = vpop.f32.mrf.mxu0 }
 0x653   :  { %v7293_v23 = vadd.f32 %v7292_v48, %v7279_v7 }
 0x65a   :  { %v7294_v15 = vpop.f32.mrf.mxu1  ;;  %v7322_v18 = vpop.f32.mrf.mxu0 }
 0x65b   :  { %v7295_v53 = vadd.f32 %v7294_v15, %v7281_v51 }
 0x65d   :  { %v7306_v4 = vpop.f32.mrf.mxu3 }
 0x65e   :  { %v7307_v50 = vadd.f32 %v7306_v4, %v7293_v23  ;;  %v12357_v4 = vld [vmem:[%s13473_s23] ss:$0 sm:$0xff] }
 0x65f   :  { %v7334_v44 = vpop.f32.mrf.mxu2 }
 0x660   :  { %v7321_v13 = vadd.f32 %v7320_v39, %v7307_v50 }
 0x662   :  { %v7335_v57 = vadd.f32 %v7334_v44, %v7321_v13 }
 0x664   :  { %v7453_v60 = vmax.f32 %v7335_v57, 0.0 }
 0x665   :  { %v7308_v40 = vpop.f32.mrf.mxu3 }
 0x666   :  { %v7309_v30 = vadd.f32 %v7308_v40, %v7295_v53 }
 0x667   :  { %v7336_v46 = vpop.f32.mrf.mxu2 }
 0x668   :  { %v7323_v17 = vadd.f32 %v7322_v18, %v7309_v30 }
 0x66a   :  { %v7337_v56 = vadd.f32 %v7336_v46, %v7323_v17 }
 0x66c   :  { %v7457_v63 = vmax.f32 %v7337_v56, 0.0 }
 0x66e   :  { %v7461_v49 = vpack.c.bf16 %v7457_v63, %v7453_v60 }
 0x670   :  { %7759 = vmatmul.bf16.vlgmr.msrb.gmra.mxu0 %v7461_v49 }
 0x672   :  { %v7348_v22 = vpop.f32.mrf.mxu1  ;;  %v7376_v29 = vpop.f32.mrf.mxu0 }
 0x673   :  { %v7349_v42 = vadd.f32 %v7348_v22, %v5718_v43 }
 0x67a   :  { %v7350_v52 = vpop.f32.mrf.mxu1  ;;  %v7378_v54 = vpop.f32.mrf.mxu0 }
 0x67b   :  { %v7351_v41 = vadd.f32 %v7350_v52, %v5718_v43 }
 0x67d   :  { %v7362_v3 = vpop.f32.mrf.mxu3 }
 0x67e   :  { %v7363_v34 = vadd.f32 %v7362_v3, %v7349_v42 }
 0x67f   :  { %v7390_v8 = vpop.f32.mrf.mxu2 }
 0x680   :  { %v7377_v19 = vadd.f32 %v7376_v29, %v7363_v34 }
 0x682   :  { %v7391_v14 = vadd.f32 %v7390_v8, %v7377_v19 }
 0x685   :  { %v7364_v37 = vpop.f32.mrf.mxu3 }
 0x686   :  { %v7365_v62 = vadd.f32 %v7364_v37, %v7351_v41 }
 0x687   :  { %v7392_v10 = vpop.f32.mrf.mxu2 }
 0x688   :  { %v7379_v20 = vadd.f32 %v7378_v54, %v7365_v62 }
 0x68a   :  { %v7393_v0 = vadd.f32 %v7392_v10, %v7379_v20 }
 0x692   :  { %v7404_v21 = vpop.f32.mrf.mxu1  ;;  %v7432_v59 = vpop.f32.mrf.mxu0 }
 0x693   :  { %v7405_v35 = vadd.f32 %v7404_v21, %v7391_v14 }
 0x69a   :  { %v7406_v24 = vpop.f32.mrf.mxu1  ;;  %v7434_v38 = vpop.f32.mrf.mxu0 }
 0x69b   :  { %v7407_v58 = vadd.f32 %v7406_v24, %v7393_v0 }
 0x69d   :  { %v7418_v16 = vpop.f32.mrf.mxu3  ;;  %v7446_v33 = vpop.f32.mrf.mxu2 }
 0x69e   :  { %v7419_v9 = vadd.f32 %v7418_v16, %v7405_v35 }
 0x6a0   :  { %v7433_v26 = vadd.f32 %v7432_v59, %v7419_v9 }
 0x6a2   :  { %v7447_v25 = vadd.f32 %v7446_v33, %v7433_v26 }
 0x6a4   :  { %v7454_v45 = vmax.f32 %v7447_v25, 0.0 }
 0x6a5   :  { %v7420_v31 = vpop.f32.mrf.mxu3  ;;  %v7448_v48 = vpop.f32.mrf.mxu2 }
 0x6a6   :  { %v7421_v11 = vadd.f32 %v7420_v31, %v7407_v58 }
 0x6a8   :  { %v7435_v12 = vadd.f32 %v7434_v38, %v7421_v11 }
 0x6aa   :  { %v7449_v32 = vadd.f32 %v7448_v48, %v7435_v12 }
 0x6ac   :  { %v7458_v61 = vmax.f32 %v7449_v32, 0.0 }
 0x6ae   :  { %v7462_v7 = vpack.c.bf16 %v7458_v61, %v7454_v45 }
 0x6b0   :  { %7773 = vmatmul.bf16.vlgmr.msrb.gmra.mxu2 %v7462_v7  ;;  %v7732_v39 = vpop.f32.mrf.mxu1 }
 0x6b1   :  { %v7733_v44 = vadd.f32 %v12357_v4, %v7732_v39 }
 0x6b8   :  { %v7734_v51 = vpop.f32.mrf.mxu1 }
 0x6b9   :  { %v7735_v30 = vadd.f32 %v12357_v4, %v7734_v51 }
 0x6bd   :  { %v7746_v55 = vpop.f32.mrf.mxu3 }
 0x6be   :  { %v7747_v50 = vadd.f32 %v7746_v55, %v7733_v44 }
 0x6c5   :  { %v7748_v40 = vpop.f32.mrf.mxu3 }
 0x6c6   :  { %v7749_v57 = vadd.f32 %v7748_v40, %v7735_v30 }
 0x6ed   :  { %v7760_v23 = vpop.f32.mrf.mxu0 }
 0x6ee   :  { %v7761_v15 = vadd.f32 %v7760_v23, %v7747_v50 }
 0x6f5   :  { %v7762_v18 = vpop.f32.mrf.mxu0 }
 0x6f6   :  { %v7763_v17 = vadd.f32 %v7762_v18, %v7749_v57 }
 0x733   :  { %v7774_v53 = vpop.f32.mrf.mxu2 }
 0x734   :  { %v7775_v13 = vadd.f32 %v7774_v53, %v7761_v15 }
 0x736   :  { %7779 = vst [vmem:[%s13474_s9] sm:$0xff] %v7775_v13 }
 0x73b   :  { %v7776_v46 = vpop.f32.mrf.mxu2 }
 0x73c   :  { %v7777_v56 = vadd.f32 %v7776_v46, %v7763_v17 }
 0x73e   :  { %7780 = vst [vmem:[%s13474_s9 + $0x8] sm:$0xff] %v7777_v56 }
 0x73f   :  { %7785 = vsyncpa [#allocation3], 1 }
 0x740   :  { %7786 = vsyncpa [#allocation5], 1 }
 0x741   :  { %7787 = vsyncpa [#allocation8], 1 }
 0x742   :  { %7788 = vsyncpa [#allocation11], 1 }
 0x743   :  { %7789 = vsyncpa [#allocation14], 1 }
 0x744   :  { %7790 = vsyncpa [#allocation17], 1 }
 0x745   :  { %7791 = vsyncpa [#allocation20], 1 }
 0x746   :  { %7792 = vsyncpa [#allocation23], 1 }
 0x747   :  { %7793 = vsyncpa [#allocation26], 1 }
 0x748   :  { %7794 = vsyncpa [#allocation29], 1 }

</bundles_post_ra>
